<compile_context>
chip_gen: v6e
topology: v6e:2x2x1
jax: 0.10.0
libtpu: 0.0.40
codegen_flags: <defaults>
</compile_context>

<pallas_src>
import functools
import numpy as np
import jax
import jax.numpy as jnp
from jax.experimental import pallas as pl
from jax.experimental.pallas import tpu as pltpu


OUT_PAD = 128   # lane-dense output width (rating broadcast across all 128 lanes)
FM_KPAD = 128   # FM rank padded to a full lane width (padding columns are zero)

TOWER_KEY_ORDER = ("wqkv", "wo", "ln1g", "ln1b", "w1", "b1", "w2", "b2",
                   "ln2g", "ln2b", "wp", "bp")
FM_KEY_ORDER = ("fm_Vu", "fm_Vi", "fm_wu", "fm_wi", "fm_b", "global_bias")


def _layer_norm(h, g, b, eps=1e-5):
    mu = jnp.mean(h, axis=-1, keepdims=True)
    var = jnp.mean(jnp.square(h - mu), axis=-1, keepdims=True)
    return (h - mu) * jax.lax.rsqrt(var + eps) * g + b


# ----------------------------------------------------------------------------
# Fused kernel: gather + both towers + FM epilogue for one batch tile.
# ----------------------------------------------------------------------------
def deeptrans_kernel(uid_ref, iid_ref, emb_ref,
                     wqkv_ref, wo_ref, ln1g_ref, ln1b_ref,
                     w1_ref, b1_ref, w2_ref, b2_ref, ln2g_ref, ln2b_ref,
                     wp_ref, bp_ref,
                     vu_ref, vi_ref, wu_ref, wi_ref, fmb_ref, gb_ref,
                     out_ref, *, seq_len):
    s = seq_len
    m = uid_ref.shape[0]              # = tb * s
    tb = m // s
    vp, d = emb_ref.shape

    def gather(ids_ref):
        # word2vec lookup as one-hot @ table: exact, MXU-friendly, keeps the
        # embedding roundtrip off HBM.
        ids = ids_ref[...]                                          # (M, 1) i32
        cols = jax.lax.broadcasted_iota(jnp.int32, (m, vp), 1)
        onehot = jnp.where(cols == ids, 1.0, 0.0).astype(jnp.bfloat16)
        x = jnp.dot(onehot, emb_ref[...],
                    preferred_element_type=jnp.float32)             # (M, D)
        return x.astype(jnp.bfloat16)

    def encode(x2d, t):
        # x2d: (M, D) bf16 token embeddings for tower t (0 = user, 1 = item).
        # Fused QKV projection: one N=3D MXU push instead of three N=D pushes.
        qkv = jnp.dot(x2d, wqkv_ref[t],
                      preferred_element_type=jnp.float32)            # (M, 3D)
        q3 = qkv[:, :d].reshape(tb, s, d)
        k3 = qkv[:, d:2 * d].reshape(tb, s, d)
        v3 = qkv[:, 2 * d:].reshape(tb, s, d)

        scale = 1.0 / float(np.sqrt(d))
        # QK^T as a batched contraction (no explicit transpose of K); bf16 casts
        # are inline in the operands to keep vreg live ranges short.
        sc = jnp.einsum("bqd,bkd->bqk",
                        q3.astype(jnp.bfloat16), k3.astype(jnp.bfloat16),
                        preferred_element_type=jnp.float32) * scale
        sc = sc - jnp.max(sc, axis=-1, keepdims=True)
        p = jnp.exp(sc)
        p = p * pl.reciprocal(jnp.sum(p, axis=-1, keepdims=True), approx=True)
        attn = jnp.einsum("bqk,bkd->bqd",
                          p.astype(jnp.bfloat16), v3.astype(jnp.bfloat16),
                          preferred_element_type=jnp.float32)
        attn2d = jnp.dot(attn.reshape(m, d).astype(jnp.bfloat16), wo_ref[t],
                         preferred_element_type=jnp.float32)

        # residual + LayerNorm 1 (f32)
        h = _layer_norm(x2d.astype(jnp.float32) + attn2d,
                        ln1g_ref[t], ln1b_ref[t])

        # position-wise FFN (bf16 MXU operands, f32 accumulation)
        f = jnp.dot(h.astype(jnp.bfloat16), w1_ref[t],
                    preferred_element_type=jnp.float32) + b1_ref[t]
        f = jnp.maximum(f, 0.0)
        f = jnp.dot(f.astype(jnp.bfloat16), w2_ref[t],
                    preferred_element_type=jnp.float32) + b2_ref[t]

        # residual + LayerNorm 2 (f32)
        h2 = _layer_norm(h + f, ln2g_ref[t], ln2b_ref[t])

        # mean-pool over the sequence + projection to latent_size
        pooled = jnp.mean(h2.reshape(tb, s, d), axis=1)              # (TB, D)
        lat = jnp.dot(pooled.astype(jnp.bfloat16), wp_ref[t],
                      preferred_element_type=jnp.float32) + bp_ref[t]
        return lat                                                   # (TB, L) f32

    u_lat = encode(gather(uid_ref), 0)
    i_lat = encode(gather(iid_ref), 1)

    # --- TorchFM(cat([u, i])) without materialising cat.  FM rank is padded to
    #     128 zero columns (adds exactly 0 to xv^2 - x2v2) -> lane-dense dots. ---
    vu = vu_ref[...]
    vi = vi_ref[...]
    xv = (jnp.dot(u_lat, vu, preferred_element_type=jnp.float32) +
          jnp.dot(i_lat, vi, preferred_element_type=jnp.float32))
    x2v2 = (jnp.dot(u_lat * u_lat, vu * vu, preferred_element_type=jnp.float32) +
            jnp.dot(i_lat * i_lat, vi * vi, preferred_element_type=jnp.float32))
    inter = 0.5 * jnp.sum(xv * xv - x2v2, axis=-1, keepdims=True)
    # FM linear term on the VPU (no 1-lane MXU pushes).
    lin = (jnp.sum(u_lat * wu_ref[...], axis=-1, keepdims=True) +
           jnp.sum(i_lat * wi_ref[...], axis=-1, keepdims=True) +
           fmb_ref[...])
    rating = inter + lin + gb_ref[...]                               # (TB, 1)

    # Lane-dense store: broadcast across the 128-lane axis -> unmasked vst.
    # TODO(synk): for very large B, pack ratings along the lane axis instead to
    # avoid the 128x HBM writeback amplification.
    out_ref[...] = jnp.broadcast_to(rating, out_ref.shape)


# ----------------------------------------------------------------------------
# Wrapper: generation-aware VMEM plan, tiling choice, pallas_call.
# ----------------------------------------------------------------------------
def _vmem_plan():
    """Generation-aware scoped-VMEM limit + activation budget for tile sizing."""
    try:
        cap = int(getattr(pltpu.get_tpu_info(), "vmem_capacity_bytes", 0))
    except Exception:
        cap = 0
    if cap <= 0:
        cap = 64 << 20               # conservative fallback: v7x has 64 MiB / TC
    limit = min(int(cap * 0.55), 48 << 20)   # ~35 MiB on v7x, 48 MiB on v5e/v6e
    budget = limit // 3                      # headroom for weights / dbl-buffers / spill
    return limit, budget


def _choose_tb(B, S, D, F, Vp, budget_bytes):
    """Largest batch tile dividing B that keeps tile-aligned blocks and fits VMEM.

    No artificial B//2 clamp: v5e/v6e have a single TensorCore, so we prefer
    filling the MXU M dimension (TB*S >= 128) over extra grid steps.
    # TODO(synk): on v7x, shard the batch axis across the two TensorCores with
    # core-parallel semantics instead of one big tile.
    """
    per_sample = 4 * S * (12 * D + 2 * F + 2 * S + Vp)   # rough f32 live-set / sample
    cap = max(1, budget_bytes // per_sample)
    cands = [d for d in range(1, B + 1)
             if B % d == 0 and (d == B or d % 8 == 0)]   # sublane-tileable blocks
    if not cands:
        cands = [B]
    fitting = [d for d in cands if d <= cap]
    return max(fitting) if fitting else min(cands)


def deeptrans_fused(user_ids, item_ids, params):
    """user_ids/item_ids: (B, S) int32 token ids -> ratings (B,) f32."""
    B, S = user_ids.shape
    emb = params["word2vec"]                      # (Vp, D) bf16, zero-padded rows
    Vp, D = emb.shape
    F = params["towers"]["w1"].shape[-1]

    vmem_limit, budget = _vmem_plan()
    tb = _choose_tb(B, S, D, F, Vp, budget)

    tower_args = [params["towers"][k] for k in TOWER_KEY_ORDER]
    fm_args = [params[k] for k in FM_KEY_ORDER]

    def full_spec(a):
        nd = a.ndim
        # TODO(synk): pipeline_mode=pl.Buffered(1) would drop the unused second
        # VMEM buffer of these constant-index inputs (matters at real D/F).
        return pl.BlockSpec(a.shape, lambda i, _nd=nd: (0,) * _nd)

    # Token ids as (B*S, 1): the wrapper-side reshape is free and the kernel
    # never relayouts a sub-tile (tb, 8, ...) block.
    uid2 = user_ids.reshape(B * S, 1)
    iid2 = item_ids.reshape(B * S, 1)

    in_specs = [pl.BlockSpec((tb * S, 1), lambda i: (i, 0)),
                pl.BlockSpec((tb * S, 1), lambda i: (i, 0))]
    in_specs += [full_spec(a) for a in [emb] + tower_args + fm_args]
    out_spec = pl.BlockSpec((tb, OUT_PAD), lambda i: (i, 0))

    kernel = functools.partial(deeptrans_kernel, seq_len=S)
    out = pl.pallas_call(
        kernel,
        out_shape=jax.ShapeDtypeStruct((B, OUT_PAD), jnp.float32),
        grid=(B // tb,),
        in_specs=in_specs,
        out_specs=out_spec,
        compiler_params=pltpu.CompilerParams(
            dimension_semantics=("parallel",),
            vmem_limit_bytes=vmem_limit),
    )(uid2, iid2, emb, *tower_args, *fm_args)
    return out[:, 0]


# ----------------------------------------------------------------------------
# Parameter init (deterministic, synthetic; kernel-ready stacked / cast layout)
# ----------------------------------------------------------------------------
def _pad_rows(a, mult):
    n = a.shape[0]
    target = -(-n // mult) * mult
    if target == n:
        return a
    pad = jnp.zeros((target - n,) + a.shape[1:], a.dtype)
    return jnp.concatenate([a, pad], axis=0)


def init_tower_params(key, D, F, L):
    ks = jax.random.split(key, 7)
    s = 0.05
    return {
        "wq": jax.random.normal(ks[0], (D, D), jnp.float32) * s,
        "wk": jax.random.normal(ks[1], (D, D), jnp.float32) * s,
        "wv": jax.random.normal(ks[2], (D, D), jnp.float32) * s,
        "wo": jax.random.normal(ks[3], (D, D), jnp.float32) * s,
        "ln1g": jnp.ones((1, D), jnp.float32),
        "ln1b": jnp.zeros((1, D), jnp.float32),
        "w1": jax.random.normal(ks[4], (D, F), jnp.float32) * s,
        "b1": jnp.zeros((1, F), jnp.float32),
        "w2": jax.random.normal(ks[5], (F, D), jnp.float32) * s,
        "b2": jnp.zeros((1, D), jnp.float32),
        "ln2g": jnp.ones((1, D), jnp.float32),
        "ln2b": jnp.zeros((1, D), jnp.float32),
        "wp": jax.random.normal(ks[6], (D, L), jnp.float32) * s,
        "bp": jnp.zeros((1, L), jnp.float32),
    }


def init_params(key, vocab, D, F, L, fm_k):
    k0, k1, k2, k3, k4 = jax.random.split(key, 5)
    user = init_tower_params(k1, D, F, L)
    item = init_tower_params(k2, D, F, L)

    def stack(name, dtype):
        return jnp.stack([user[name], item[name]]).astype(dtype)

    towers = {
        # fused QKV projection weight: (2, D, 3D) bf16
        "wqkv": jnp.stack(
            [jnp.concatenate([user[n] for n in ("wq", "wk", "wv")], axis=-1),
             jnp.concatenate([item[n] for n in ("wq", "wk", "wv")], axis=-1)]
        ).astype(jnp.bfloat16),
        "wo": stack("wo", jnp.bfloat16),
        "w1": stack("w1", jnp.bfloat16),
        "w2": stack("w2", jnp.bfloat16),
        "wp": stack("wp", jnp.bfloat16),
        "ln1g": stack("ln1g", jnp.float32),
        "ln1b": stack("ln1b", jnp.float32),
        "b1": stack("b1", jnp.float32),
        "b2": stack("b2", jnp.float32),
        "ln2g": stack("ln2g", jnp.float32),
        "ln2b": stack("ln2b", jnp.float32),
        "bp": stack("bp", jnp.float32),
    }

    # TorchFM(2L, fm_k): factor matrix padded to 128 zero columns (exact),
    # linear weight stored as row vectors for the VPU-side linear term.
    fm_V = jax.random.normal(k3, (2 * L, fm_k), jnp.float32) * 0.1
    fm_V = jnp.pad(fm_V, ((0, 0), (0, FM_KPAD - fm_k)))
    fm_w = jax.random.normal(k4, (2 * L, 1), jnp.float32) * 0.1

    # frozen word2vec table: bf16, rows zero-padded to a multiple of 128 so the
    # in-kernel one-hot gather matmul has a full-lane K dimension.
    word2vec = (jax.random.normal(k0, (vocab, D), jnp.float32) * 0.1
                ).astype(jnp.bfloat16)
    word2vec = _pad_rows(word2vec, 128)

    return {
        "word2vec": word2vec,
        "towers": towers,
        "fm_Vu": fm_V[:L], "fm_Vi": fm_V[L:],
        "fm_wu": fm_w[:L].reshape(1, L), "fm_wi": fm_w[L:].reshape(1, L),
        "fm_b": jnp.zeros((1, 1), jnp.float32),
        "global_bias": jnp.full((1, 1), 4.0, jnp.float32),
    }


# ----------------------------------------------------------------------------
# Full forward (model_type == 'deeptrans')
# ----------------------------------------------------------------------------
@jax.jit
def deep_trans_forward(params, user_reviews, item_reviews, user_id, item_id):
    # 'deeptrans' path: rating = global_bias + TorchFM(cat)[:, 0]
    # (user_bias / item_bias / final MLP are only used by other model_types).
    final_shape = user_id.shape
    first_dim = int(np.prod(user_id.shape))
    user_reviews = user_reviews.reshape(first_dim, -1)
    item_reviews = item_reviews.reshape(first_dim, -1)
    rating = deeptrans_fused(user_reviews, item_reviews, params)     # (B,)
    return rating.reshape(final_shape)


if __name__ == "__main__":
    # small synthetic hyper-params (D, F, L multiples of 128; S a multiple of 8)
    VOCAB, WORD_DIM, SEQ, LATENT, FF, FM_K, BATCH = 64, 128, 8, 128, 256, 8, 16

    root = jax.random.PRNGKey(0)
    kp, ku, ki, kid_u, kid_i = jax.random.split(root, 5)

    params = init_params(kp, VOCAB, WORD_DIM, FF, LATENT, FM_K)

    user_reviews = jax.random.randint(ku, (BATCH, SEQ), 0, VOCAB, dtype=jnp.int32)
    item_reviews = jax.random.randint(ki, (BATCH, SEQ), 0, VOCAB, dtype=jnp.int32)
    user_id = jax.random.randint(kid_u, (BATCH,), 0, 10, dtype=jnp.int32)
    item_id = jax.random.randint(kid_i, (BATCH,), 0, 10, dtype=jnp.int32)

    rating = deep_trans_forward(params, user_reviews, item_reviews, user_id, item_id)
    jax.block_until_ready(rating)
    assert rating.shape == (BATCH,), rating.shape
    assert bool(jnp.all(jnp.isfinite(rating)))
    print("KERNEL_OK")
</pallas_src>

<mosaic_0001>
module attributes {stable_mosaic.version = 11 : i64} {
  func.func @deeptrans_kernel(%arg0: i32, %arg1: memref<128x1xi32, #tpu.memory_space<vmem>>, %arg2: memref<128x1xi32, #tpu.memory_space<vmem>>, %arg3: memref<128x128xbf16, #tpu.memory_space<vmem>>, %arg4: memref<2x128x384xbf16, #tpu.memory_space<vmem>>, %arg5: memref<2x128x128xbf16, #tpu.memory_space<vmem>>, %arg6: memref<2x1x128xf32, #tpu.memory_space<vmem>>, %arg7: memref<2x1x128xf32, #tpu.memory_space<vmem>>, %arg8: memref<2x128x256xbf16, #tpu.memory_space<vmem>>, %arg9: memref<2x1x256xf32, #tpu.memory_space<vmem>>, %arg10: memref<2x256x128xbf16, #tpu.memory_space<vmem>>, %arg11: memref<2x1x128xf32, #tpu.memory_space<vmem>>, %arg12: memref<2x1x128xf32, #tpu.memory_space<vmem>>, %arg13: memref<2x1x128xf32, #tpu.memory_space<vmem>>, %arg14: memref<2x128x128xbf16, #tpu.memory_space<vmem>>, %arg15: memref<2x1x128xf32, #tpu.memory_space<vmem>>, %arg16: memref<128x128xf32, #tpu.memory_space<vmem>>, %arg17: memref<128x128xf32, #tpu.memory_space<vmem>>, %arg18: memref<1x128xf32, #tpu.memory_space<vmem>>, %arg19: memref<1x128xf32, #tpu.memory_space<vmem>>, %arg20: memref<1x1xf32, #tpu.memory_space<vmem>>, %arg21: memref<1x1xf32, #tpu.memory_space<vmem>>, %arg22: memref<16x128xf32, #tpu.memory_space<vmem>>) attributes {dimension_semantics = [#tpu.dimension_semantics<parallel>], iteration_bounds = array<i64: 1>, scalar_prefetch = 0 : i64, scratch_operands = 0 : i64, tpu.core_type = #tpu.core_type<tc>, window_params = [{transform_indices = @transform_0, window_bounds = array<i64: 128, 1>}, {transform_indices = @transform_1, window_bounds = array<i64: 128, 1>}, {pipeline_mode = #tpu.pipeline_mode<synchronous>, transform_indices = @transform_2, window_bounds = array<i64: 128, 128>}, {pipeline_mode = #tpu.pipeline_mode<synchronous>, transform_indices = @transform_3, window_bounds = array<i64: 2, 128, 384>}, {pipeline_mode = #tpu.pipeline_mode<synchronous>, transform_indices = @transform_4, window_bounds = array<i64: 2, 128, 128>}, {pipeline_mode = #tpu.pipeline_mode<synchronous>, transform_indices = @transform_5, window_bounds = array<i64: 2, 1, 128>}, {pipeline_mode = #tpu.pipeline_mode<synchronous>, transform_indices = @transform_6, window_bounds = array<i64: 2, 1, 128>}, {pipeline_mode = #tpu.pipeline_mode<synchronous>, transform_indices = @transform_7, window_bounds = array<i64: 2, 128, 256>}, {pipeline_mode = #tpu.pipeline_mode<synchronous>, transform_indices = @transform_8, window_bounds = array<i64: 2, 1, 256>}, {pipeline_mode = #tpu.pipeline_mode<synchronous>, transform_indices = @transform_9, window_bounds = array<i64: 2, 256, 128>}, {pipeline_mode = #tpu.pipeline_mode<synchronous>, transform_indices = @transform_10, window_bounds = array<i64: 2, 1, 128>}, {pipeline_mode = #tpu.pipeline_mode<synchronous>, transform_indices = @transform_11, window_bounds = array<i64: 2, 1, 128>}, {pipeline_mode = #tpu.pipeline_mode<synchronous>, transform_indices = @transform_12, window_bounds = array<i64: 2, 1, 128>}, {pipeline_mode = #tpu.pipeline_mode<synchronous>, transform_indices = @transform_13, window_bounds = array<i64: 2, 128, 128>}, {pipeline_mode = #tpu.pipeline_mode<synchronous>, transform_indices = @transform_14, window_bounds = array<i64: 2, 1, 128>}, {pipeline_mode = #tpu.pipeline_mode<synchronous>, transform_indices = @transform_15, window_bounds = array<i64: 128, 128>}, {pipeline_mode = #tpu.pipeline_mode<synchronous>, transform_indices = @transform_16, window_bounds = array<i64: 128, 128>}, {pipeline_mode = #tpu.pipeline_mode<synchronous>, transform_indices = @transform_17, window_bounds = array<i64: 1, 128>}, {pipeline_mode = #tpu.pipeline_mode<synchronous>, transform_indices = @transform_18, window_bounds = array<i64: 1, 128>}, {pipeline_mode = #tpu.pipeline_mode<synchronous>, transform_indices = @transform_19, window_bounds = array<i64: 1, 1>}, {pipeline_mode = #tpu.pipeline_mode<synchronous>, transform_indices = @transform_20, window_bounds = array<i64: 1, 1>}, {transform_indices = @transform_21, window_bounds = array<i64: 16, 128>}]} {
    %c0 = arith.constant 0 : index
    %c0_0 = arith.constant 0 : index
    %0 = vector.load %arg1[%c0, %c0_0] : memref<128x1xi32, #tpu.memory_space<vmem>>, vector<128x1xi32>
    %1 = tpu.iota {dimensions = array<i32: 1>} : vector<128x128xi32>
    %2 = vector.broadcast %0 : vector<128x1xi32> to vector<128x128xi32>
    %3 = arith.cmpi eq, %1, %2 : vector<128x128xi32>
    %cst = arith.constant 1.000000e+00 : f32
    %cst_1 = arith.constant 0.000000e+00 : f32
    %4 = vector.broadcast %cst : f32 to vector<128x128xf32>
    %5 = vector.broadcast %cst_1 : f32 to vector<128x128xf32>
    %6 = arith.select %3, %4, %5 : vector<128x128xi1>, vector<128x128xf32>
    %7 = arith.truncf %6 : vector<128x128xf32> to vector<128x128xbf16>
    %c0_2 = arith.constant 0 : index
    %c0_3 = arith.constant 0 : index
    %8 = vector.load %arg3[%c0_2, %c0_3] : memref<128x128xbf16, #tpu.memory_space<vmem>>, vector<128x128xbf16>
    %cst_4 = arith.constant dense<0.000000e+00> : vector<128x128xf32>
    %9 = tpu.matmul %7, %8, %cst_4 {dimension_numbers = #tpu.dot_dimension_numbers<[1], [0], [0], [1], [0, 0, 1, 1], [], []>} : vector<128x128xbf16>, vector<128x128xbf16>, vector<128x128xf32> -> vector<128x128xf32>
    %10 = arith.truncf %9 : vector<128x128xf32> to vector<128x128xbf16>
    %c0_5 = arith.constant 0 : index
    %c0_6 = arith.constant 0 : index
    %c0_7 = arith.constant 0 : index
    %11 = vector.load %arg4[%c0_5, %c0_6, %c0_7] : memref<2x128x384xbf16, #tpu.memory_space<vmem>>, vector<1x128x384xbf16>
    %12 = vector.shape_cast %11 : vector<1x128x384xbf16> to vector<128x384xbf16>
    %cst_8 = arith.constant dense<0.000000e+00> : vector<128x384xf32>
    %13 = tpu.matmul %10, %12, %cst_8 {dimension_numbers = #tpu.dot_dimension_numbers<[1], [0], [0], [1], [0, 0, 1, 1], [], []>} : vector<128x128xbf16>, vector<128x384xbf16>, vector<128x384xf32> -> vector<128x384xf32>
    %14 = vector.extract_strided_slice %13 {offsets = [0, 0], sizes = [128, 128], strides = [1, 1]} : vector<128x384xf32> to vector<128x128xf32>
    %15 = vector.shape_cast %14 : vector<128x128xf32> to vector<16x8x128xf32>
    %16 = vector.extract_strided_slice %13 {offsets = [0, 128], sizes = [128, 128], strides = [1, 1]} : vector<128x384xf32> to vector<128x128xf32>
    %17 = vector.shape_cast %16 : vector<128x128xf32> to vector<16x8x128xf32>
    %18 = vector.extract_strided_slice %13 {offsets = [0, 256], sizes = [128, 128], strides = [1, 1]} : vector<128x384xf32> to vector<128x128xf32>
    %19 = vector.shape_cast %18 : vector<128x128xf32> to vector<16x8x128xf32>
    %20 = arith.truncf %15 : vector<16x8x128xf32> to vector<16x8x128xbf16>
    %21 = arith.truncf %17 : vector<16x8x128xf32> to vector<16x8x128xbf16>
    "tpu.trace_start"() <{level = 10 : i32, message = "bqd,bkd->bqk"}> : () -> ()
    %cst_9 = arith.constant dense<0.000000e+00> : vector<16x8x8xf32>
    %22 = tpu.matmul %20, %21, %cst_9 {dimension_numbers = #tpu.dot_dimension_numbers<[2], [2], [1], [1], [0, 0, 0, 1, 1, 1], [0], [0]>} : vector<16x8x128xbf16>, vector<16x8x128xbf16>, vector<16x8x8xf32> -> vector<16x8x8xf32>
    "tpu.trace_stop"() : () -> ()
    %cst_10 = arith.constant 0.0883883461 : f32
    %23 = vector.broadcast %cst_10 : f32 to vector<16x8x8xf32>
    %24 = arith.mulf %22, %23 : vector<16x8x8xf32>
    %cst_11 = arith.constant dense<0xFF800000> : vector<16x8xf32>
    %25 = vector.multi_reduction <maximumf>, %24, %cst_11 [2] : vector<16x8x8xf32> to vector<16x8xf32>
    %26 = vector.shape_cast %25 : vector<16x8xf32> to vector<16x8x1xf32>
    %27 = vector.broadcast %26 : vector<16x8x1xf32> to vector<16x8x8xf32>
    %28 = arith.subf %24, %27 : vector<16x8x8xf32>
    %29 = math.exp %28 : vector<16x8x8xf32>
    %cst_12 = arith.constant dense<0.000000e+00> : vector<16x8xf32>
    %30 = vector.multi_reduction <add>, %29, %cst_12 [2] : vector<16x8x8xf32> to vector<16x8xf32>
    %31 = vector.shape_cast %30 : vector<16x8xf32> to vector<16x8x1xf32>
    %32 = tpu.reciprocal %31 {approx = true} : vector<16x8x1xf32> -> vector<16x8x1xf32>
    %33 = vector.broadcast %32 : vector<16x8x1xf32> to vector<16x8x8xf32>
    %34 = arith.mulf %29, %33 : vector<16x8x8xf32>
    %35 = arith.truncf %34 : vector<16x8x8xf32> to vector<16x8x8xbf16>
    %36 = arith.truncf %19 : vector<16x8x128xf32> to vector<16x8x128xbf16>
    "tpu.trace_start"() <{level = 10 : i32, message = "bqk,bkd->bqd"}> : () -> ()
    %cst_13 = arith.constant dense<0.000000e+00> : vector<16x8x128xf32>
    %37 = tpu.matmul %35, %36, %cst_13 {dimension_numbers = #tpu.dot_dimension_numbers<[2], [1], [1], [2], [0, 0, 0, 1, 1, 2], [0], [0]>} : vector<16x8x8xbf16>, vector<16x8x128xbf16>, vector<16x8x128xf32> -> vector<16x8x128xf32>
    "tpu.trace_stop"() : () -> ()
    %38 = vector.shape_cast %37 : vector<16x8x128xf32> to vector<128x128xf32>
    %39 = arith.truncf %38 : vector<128x128xf32> to vector<128x128xbf16>
    %c0_14 = arith.constant 0 : index
    %c0_15 = arith.constant 0 : index
    %c0_16 = arith.constant 0 : index
    %40 = vector.load %arg5[%c0_14, %c0_15, %c0_16] : memref<2x128x128xbf16, #tpu.memory_space<vmem>>, vector<1x128x128xbf16>
    %41 = vector.shape_cast %40 : vector<1x128x128xbf16> to vector<128x128xbf16>
    %cst_17 = arith.constant dense<0.000000e+00> : vector<128x128xf32>
    %42 = tpu.matmul %39, %41, %cst_17 {dimension_numbers = #tpu.dot_dimension_numbers<[1], [0], [0], [1], [0, 0, 1, 1], [], []>} : vector<128x128xbf16>, vector<128x128xbf16>, vector<128x128xf32> -> vector<128x128xf32>
    %43 = arith.extf %10 : vector<128x128xbf16> to vector<128x128xf32>
    %44 = arith.addf %43, %42 : vector<128x128xf32>
    %c0_18 = arith.constant 0 : index
    %c0_19 = arith.constant 0 : index
    %c0_20 = arith.constant 0 : index
    %45 = vector.load %arg6[%c0_18, %c0_19, %c0_20] : memref<2x1x128xf32, #tpu.memory_space<vmem>>, vector<1x1x128xf32>
    %46 = vector.shape_cast %45 : vector<1x1x128xf32> to vector<1x128xf32>
    %c0_21 = arith.constant 0 : index
    %c0_22 = arith.constant 0 : index
    %c0_23 = arith.constant 0 : index
    %47 = vector.load %arg7[%c0_21, %c0_22, %c0_23] : memref<2x1x128xf32, #tpu.memory_space<vmem>>, vector<1x1x128xf32>
    %48 = vector.shape_cast %47 : vector<1x1x128xf32> to vector<1x128xf32>
    %cst_24 = arith.constant dense<0.000000e+00> : vector<128xf32>
    %49 = vector.multi_reduction <add>, %44, %cst_24 [1] : vector<128x128xf32> to vector<128xf32>
    %50 = vector.shape_cast %49 : vector<128xf32> to vector<128x1xf32>
    %cst_25 = arith.constant 1.280000e+02 : f32
    %51 = vector.broadcast %cst_25 : f32 to vector<128x1xf32>
    %52 = arith.divf %50, %51 : vector<128x1xf32>
    %53 = vector.broadcast %52 : vector<128x1xf32> to vector<128x128xf32>
    %54 = arith.subf %44, %53 : vector<128x128xf32>
    %55 = arith.mulf %54, %54 : vector<128x128xf32>
    %cst_26 = arith.constant dense<0.000000e+00> : vector<128xf32>
    %56 = vector.multi_reduction <add>, %55, %cst_26 [1] : vector<128x128xf32> to vector<128xf32>
    %57 = vector.shape_cast %56 : vector<128xf32> to vector<128x1xf32>
    %cst_27 = arith.constant 1.280000e+02 : f32
    %58 = vector.broadcast %cst_27 : f32 to vector<128x1xf32>
    %59 = arith.divf %57, %58 : vector<128x1xf32>
    %60 = vector.broadcast %52 : vector<128x1xf32> to vector<128x128xf32>
    %61 = arith.subf %44, %60 : vector<128x128xf32>
    %cst_28 = arith.constant 9.99999974E-6 : f32
    %62 = vector.broadcast %cst_28 : f32 to vector<128x1xf32>
    %63 = arith.addf %59, %62 : vector<128x1xf32>
    %64 = math.rsqrt %63 : vector<128x1xf32>
    %65 = vector.broadcast %64 : vector<128x1xf32> to vector<128x128xf32>
    %66 = arith.mulf %61, %65 : vector<128x128xf32>
    %67 = vector.broadcast %46 : vector<1x128xf32> to vector<128x128xf32>
    %68 = arith.mulf %66, %67 : vector<128x128xf32>
    %69 = vector.broadcast %48 : vector<1x128xf32> to vector<128x128xf32>
    %70 = arith.addf %68, %69 : vector<128x128xf32>
    %71 = arith.truncf %70 : vector<128x128xf32> to vector<128x128xbf16>
    %c0_29 = arith.constant 0 : index
    %c0_30 = arith.constant 0 : index
    %c0_31 = arith.constant 0 : index
    %72 = vector.load %arg8[%c0_29, %c0_30, %c0_31] : memref<2x128x256xbf16, #tpu.memory_space<vmem>>, vector<1x128x256xbf16>
    %73 = vector.shape_cast %72 : vector<1x128x256xbf16> to vector<128x256xbf16>
    %cst_32 = arith.constant dense<0.000000e+00> : vector<128x256xf32>
    %74 = tpu.matmul %71, %73, %cst_32 {dimension_numbers = #tpu.dot_dimension_numbers<[1], [0], [0], [1], [0, 0, 1, 1], [], []>} : vector<128x128xbf16>, vector<128x256xbf16>, vector<128x256xf32> -> vector<128x256xf32>
    %c0_33 = arith.constant 0 : index
    %c0_34 = arith.constant 0 : index
    %c0_35 = arith.constant 0 : index
    %75 = vector.load %arg9[%c0_33, %c0_34, %c0_35] : memref<2x1x256xf32, #tpu.memory_space<vmem>>, vector<1x1x256xf32>
    %76 = vector.shape_cast %75 : vector<1x1x256xf32> to vector<1x256xf32>
    %77 = vector.broadcast %76 : vector<1x256xf32> to vector<128x256xf32>
    %78 = arith.addf %74, %77 : vector<128x256xf32>
    %cst_36 = arith.constant 0.000000e+00 : f32
    %79 = vector.broadcast %cst_36 : f32 to vector<128x256xf32>
    %80 = arith.maximumf %78, %79 : vector<128x256xf32>
    %81 = arith.truncf %80 : vector<128x256xf32> to vector<128x256xbf16>
    %c0_37 = arith.constant 0 : index
    %c0_38 = arith.constant 0 : index
    %c0_39 = arith.constant 0 : index
    %82 = vector.load %arg10[%c0_37, %c0_38, %c0_39] : memref<2x256x128xbf16, #tpu.memory_space<vmem>>, vector<1x256x128xbf16>
    %83 = vector.shape_cast %82 : vector<1x256x128xbf16> to vector<256x128xbf16>
    %cst_40 = arith.constant dense<0.000000e+00> : vector<128x128xf32>
    %84 = tpu.matmul %81, %83, %cst_40 {dimension_numbers = #tpu.dot_dimension_numbers<[1], [0], [0], [1], [0, 0, 1, 1], [], []>} : vector<128x256xbf16>, vector<256x128xbf16>, vector<128x128xf32> -> vector<128x128xf32>
    %c0_41 = arith.constant 0 : index
    %c0_42 = arith.constant 0 : index
    %c0_43 = arith.constant 0 : index
    %85 = vector.load %arg11[%c0_41, %c0_42, %c0_43] : memref<2x1x128xf32, #tpu.memory_space<vmem>>, vector<1x1x128xf32>
    %86 = vector.shape_cast %85 : vector<1x1x128xf32> to vector<1x128xf32>
    %87 = vector.broadcast %86 : vector<1x128xf32> to vector<128x128xf32>
    %88 = arith.addf %84, %87 : vector<128x128xf32>
    %89 = arith.addf %70, %88 : vector<128x128xf32>
    %c0_44 = arith.constant 0 : index
    %c0_45 = arith.constant 0 : index
    %c0_46 = arith.constant 0 : index
    %90 = vector.load %arg12[%c0_44, %c0_45, %c0_46] : memref<2x1x128xf32, #tpu.memory_space<vmem>>, vector<1x1x128xf32>
    %91 = vector.shape_cast %90 : vector<1x1x128xf32> to vector<1x128xf32>
    %c0_47 = arith.constant 0 : index
    %c0_48 = arith.constant 0 : index
    %c0_49 = arith.constant 0 : index
    %92 = vector.load %arg13[%c0_47, %c0_48, %c0_49] : memref<2x1x128xf32, #tpu.memory_space<vmem>>, vector<1x1x128xf32>
    %93 = vector.shape_cast %92 : vector<1x1x128xf32> to vector<1x128xf32>
    %cst_50 = arith.constant dense<0.000000e+00> : vector<128xf32>
    %94 = vector.multi_reduction <add>, %89, %cst_50 [1] : vector<128x128xf32> to vector<128xf32>
    %95 = vector.shape_cast %94 : vector<128xf32> to vector<128x1xf32>
    %cst_51 = arith.constant 1.280000e+02 : f32
    %96 = vector.broadcast %cst_51 : f32 to vector<128x1xf32>
    %97 = arith.divf %95, %96 : vector<128x1xf32>
    %98 = vector.broadcast %97 : vector<128x1xf32> to vector<128x128xf32>
    %99 = arith.subf %89, %98 : vector<128x128xf32>
    %100 = arith.mulf %99, %99 : vector<128x128xf32>
    %cst_52 = arith.constant dense<0.000000e+00> : vector<128xf32>
    %101 = vector.multi_reduction <add>, %100, %cst_52 [1] : vector<128x128xf32> to vector<128xf32>
    %102 = vector.shape_cast %101 : vector<128xf32> to vector<128x1xf32>
    %cst_53 = arith.constant 1.280000e+02 : f32
    %103 = vector.broadcast %cst_53 : f32 to vector<128x1xf32>
    %104 = arith.divf %102, %103 : vector<128x1xf32>
    %105 = vector.broadcast %97 : vector<128x1xf32> to vector<128x128xf32>
    %106 = arith.subf %89, %105 : vector<128x128xf32>
    %cst_54 = arith.constant 9.99999974E-6 : f32
    %107 = vector.broadcast %cst_54 : f32 to vector<128x1xf32>
    %108 = arith.addf %104, %107 : vector<128x1xf32>
    %109 = math.rsqrt %108 : vector<128x1xf32>
    %110 = vector.broadcast %109 : vector<128x1xf32> to vector<128x128xf32>
    %111 = arith.mulf %106, %110 : vector<128x128xf32>
    %112 = vector.broadcast %91 : vector<1x128xf32> to vector<128x128xf32>
    %113 = arith.mulf %111, %112 : vector<128x128xf32>
    %114 = vector.broadcast %93 : vector<1x128xf32> to vector<128x128xf32>
    %115 = arith.addf %113, %114 : vector<128x128xf32>
    %116 = vector.shape_cast %115 : vector<128x128xf32> to vector<16x8x128xf32>
    %cst_55 = arith.constant dense<0.000000e+00> : vector<16x128xf32>
    %117 = vector.multi_reduction <add>, %116, %cst_55 [1] : vector<16x8x128xf32> to vector<16x128xf32>
    %cst_56 = arith.constant 8.000000e+00 : f32
    %118 = vector.broadcast %cst_56 : f32 to vector<16x128xf32>
    %119 = arith.divf %117, %118 : vector<16x128xf32>
    %120 = arith.truncf %119 : vector<16x128xf32> to vector<16x128xbf16>
    %c0_57 = arith.constant 0 : index
    %c0_58 = arith.constant 0 : index
    %c0_59 = arith.constant 0 : index
    %121 = vector.load %arg14[%c0_57, %c0_58, %c0_59] : memref<2x128x128xbf16, #tpu.memory_space<vmem>>, vector<1x128x128xbf16>
    %122 = vector.shape_cast %121 : vector<1x128x128xbf16> to vector<128x128xbf16>
    %cst_60 = arith.constant dense<0.000000e+00> : vector<16x128xf32>
    %123 = tpu.matmul %120, %122, %cst_60 {dimension_numbers = #tpu.dot_dimension_numbers<[1], [0], [0], [1], [0, 0, 1, 1], [], []>} : vector<16x128xbf16>, vector<128x128xbf16>, vector<16x128xf32> -> vector<16x128xf32>
    %c0_61 = arith.constant 0 : index
    %c0_62 = arith.constant 0 : index
    %c0_63 = arith.constant 0 : index
    %124 = vector.load %arg15[%c0_61, %c0_62, %c0_63] : memref<2x1x128xf32, #tpu.memory_space<vmem>>, vector<1x1x128xf32>
    %125 = vector.shape_cast %124 : vector<1x1x128xf32> to vector<1x128xf32>
    %126 = vector.broadcast %125 : vector<1x128xf32> to vector<16x128xf32>
    %127 = arith.addf %123, %126 : vector<16x128xf32>
    %c0_64 = arith.constant 0 : index
    %c0_65 = arith.constant 0 : index
    %128 = vector.load %arg2[%c0_64, %c0_65] : memref<128x1xi32, #tpu.memory_space<vmem>>, vector<128x1xi32>
    %129 = tpu.iota {dimensions = array<i32: 1>} : vector<128x128xi32>
    %130 = vector.broadcast %128 : vector<128x1xi32> to vector<128x128xi32>
    %131 = arith.cmpi eq, %129, %130 : vector<128x128xi32>
    %cst_66 = arith.constant 1.000000e+00 : f32
    %cst_67 = arith.constant 0.000000e+00 : f32
    %132 = vector.broadcast %cst_66 : f32 to vector<128x128xf32>
    %133 = vector.broadcast %cst_67 : f32 to vector<128x128xf32>
    %134 = arith.select %131, %132, %133 : vector<128x128xi1>, vector<128x128xf32>
    %135 = arith.truncf %134 : vector<128x128xf32> to vector<128x128xbf16>
    %c0_68 = arith.constant 0 : index
    %c0_69 = arith.constant 0 : index
    %136 = vector.load %arg3[%c0_68, %c0_69] : memref<128x128xbf16, #tpu.memory_space<vmem>>, vector<128x128xbf16>
    %cst_70 = arith.constant dense<0.000000e+00> : vector<128x128xf32>
    %137 = tpu.matmul %135, %136, %cst_70 {dimension_numbers = #tpu.dot_dimension_numbers<[1], [0], [0], [1], [0, 0, 1, 1], [], []>} : vector<128x128xbf16>, vector<128x128xbf16>, vector<128x128xf32> -> vector<128x128xf32>
    %138 = arith.truncf %137 : vector<128x128xf32> to vector<128x128xbf16>
    %c1 = arith.constant 1 : index
    %c0_71 = arith.constant 0 : index
    %c0_72 = arith.constant 0 : index
    %139 = vector.load %arg4[%c1, %c0_71, %c0_72] : memref<2x128x384xbf16, #tpu.memory_space<vmem>>, vector<1x128x384xbf16>
    %140 = vector.shape_cast %139 : vector<1x128x384xbf16> to vector<128x384xbf16>
    %cst_73 = arith.constant dense<0.000000e+00> : vector<128x384xf32>
    %141 = tpu.matmul %138, %140, %cst_73 {dimension_numbers = #tpu.dot_dimension_numbers<[1], [0], [0], [1], [0, 0, 1, 1], [], []>} : vector<128x128xbf16>, vector<128x384xbf16>, vector<128x384xf32> -> vector<128x384xf32>
    %142 = vector.extract_strided_slice %141 {offsets = [0, 0], sizes = [128, 128], strides = [1, 1]} : vector<128x384xf32> to vector<128x128xf32>
    %143 = vector.shape_cast %142 : vector<128x128xf32> to vector<16x8x128xf32>
    %144 = vector.extract_strided_slice %141 {offsets = [0, 128], sizes = [128, 128], strides = [1, 1]} : vector<128x384xf32> to vector<128x128xf32>
    %145 = vector.shape_cast %144 : vector<128x128xf32> to vector<16x8x128xf32>
    %146 = vector.extract_strided_slice %141 {offsets = [0, 256], sizes = [128, 128], strides = [1, 1]} : vector<128x384xf32> to vector<128x128xf32>
    %147 = vector.shape_cast %146 : vector<128x128xf32> to vector<16x8x128xf32>
    %148 = arith.truncf %143 : vector<16x8x128xf32> to vector<16x8x128xbf16>
    %149 = arith.truncf %145 : vector<16x8x128xf32> to vector<16x8x128xbf16>
    "tpu.trace_start"() <{level = 10 : i32, message = "bqd,bkd->bqk"}> : () -> ()
    %cst_74 = arith.constant dense<0.000000e+00> : vector<16x8x8xf32>
    %150 = tpu.matmul %148, %149, %cst_74 {dimension_numbers = #tpu.dot_dimension_numbers<[2], [2], [1], [1], [0, 0, 0, 1, 1, 1], [0], [0]>} : vector<16x8x128xbf16>, vector<16x8x128xbf16>, vector<16x8x8xf32> -> vector<16x8x8xf32>
    "tpu.trace_stop"() : () -> ()
    %cst_75 = arith.constant 0.0883883461 : f32
    %151 = vector.broadcast %cst_75 : f32 to vector<16x8x8xf32>
    %152 = arith.mulf %150, %151 : vector<16x8x8xf32>
    %cst_76 = arith.constant dense<0xFF800000> : vector<16x8xf32>
    %153 = vector.multi_reduction <maximumf>, %152, %cst_76 [2] : vector<16x8x8xf32> to vector<16x8xf32>
    %154 = vector.shape_cast %153 : vector<16x8xf32> to vector<16x8x1xf32>
    %155 = vector.broadcast %154 : vector<16x8x1xf32> to vector<16x8x8xf32>
    %156 = arith.subf %152, %155 : vector<16x8x8xf32>
    %157 = math.exp %156 : vector<16x8x8xf32>
    %cst_77 = arith.constant dense<0.000000e+00> : vector<16x8xf32>
    %158 = vector.multi_reduction <add>, %157, %cst_77 [2] : vector<16x8x8xf32> to vector<16x8xf32>
    %159 = vector.shape_cast %158 : vector<16x8xf32> to vector<16x8x1xf32>
    %160 = tpu.reciprocal %159 {approx = true} : vector<16x8x1xf32> -> vector<16x8x1xf32>
    %161 = vector.broadcast %160 : vector<16x8x1xf32> to vector<16x8x8xf32>
    %162 = arith.mulf %157, %161 : vector<16x8x8xf32>
    %163 = arith.truncf %162 : vector<16x8x8xf32> to vector<16x8x8xbf16>
    %164 = arith.truncf %147 : vector<16x8x128xf32> to vector<16x8x128xbf16>
    "tpu.trace_start"() <{level = 10 : i32, message = "bqk,bkd->bqd"}> : () -> ()
    %cst_78 = arith.constant dense<0.000000e+00> : vector<16x8x128xf32>
    %165 = tpu.matmul %163, %164, %cst_78 {dimension_numbers = #tpu.dot_dimension_numbers<[2], [1], [1], [2], [0, 0, 0, 1, 1, 2], [0], [0]>} : vector<16x8x8xbf16>, vector<16x8x128xbf16>, vector<16x8x128xf32> -> vector<16x8x128xf32>
    "tpu.trace_stop"() : () -> ()
    %166 = vector.shape_cast %165 : vector<16x8x128xf32> to vector<128x128xf32>
    %167 = arith.truncf %166 : vector<128x128xf32> to vector<128x128xbf16>
    %c1_79 = arith.constant 1 : index
    %c0_80 = arith.constant 0 : index
    %c0_81 = arith.constant 0 : index
    %168 = vector.load %arg5[%c1_79, %c0_80, %c0_81] : memref<2x128x128xbf16, #tpu.memory_space<vmem>>, vector<1x128x128xbf16>
    %169 = vector.shape_cast %168 : vector<1x128x128xbf16> to vector<128x128xbf16>
    %cst_82 = arith.constant dense<0.000000e+00> : vector<128x128xf32>
    %170 = tpu.matmul %167, %169, %cst_82 {dimension_numbers = #tpu.dot_dimension_numbers<[1], [0], [0], [1], [0, 0, 1, 1], [], []>} : vector<128x128xbf16>, vector<128x128xbf16>, vector<128x128xf32> -> vector<128x128xf32>
    %171 = arith.extf %138 : vector<128x128xbf16> to vector<128x128xf32>
    %172 = arith.addf %171, %170 : vector<128x128xf32>
    %c1_83 = arith.constant 1 : index
    %c0_84 = arith.constant 0 : index
    %c0_85 = arith.constant 0 : index
    %173 = vector.load %arg6[%c1_83, %c0_84, %c0_85] : memref<2x1x128xf32, #tpu.memory_space<vmem>>, vector<1x1x128xf32>
    %174 = vector.shape_cast %173 : vector<1x1x128xf32> to vector<1x128xf32>
    %c1_86 = arith.constant 1 : index
    %c0_87 = arith.constant 0 : index
    %c0_88 = arith.constant 0 : index
    %175 = vector.load %arg7[%c1_86, %c0_87, %c0_88] : memref<2x1x128xf32, #tpu.memory_space<vmem>>, vector<1x1x128xf32>
    %176 = vector.shape_cast %175 : vector<1x1x128xf32> to vector<1x128xf32>
    %cst_89 = arith.constant dense<0.000000e+00> : vector<128xf32>
    %177 = vector.multi_reduction <add>, %172, %cst_89 [1] : vector<128x128xf32> to vector<128xf32>
    %178 = vector.shape_cast %177 : vector<128xf32> to vector<128x1xf32>
    %cst_90 = arith.constant 1.280000e+02 : f32
    %179 = vector.broadcast %cst_90 : f32 to vector<128x1xf32>
    %180 = arith.divf %178, %179 : vector<128x1xf32>
    %181 = vector.broadcast %180 : vector<128x1xf32> to vector<128x128xf32>
    %182 = arith.subf %172, %181 : vector<128x128xf32>
    %183 = arith.mulf %182, %182 : vector<128x128xf32>
    %cst_91 = arith.constant dense<0.000000e+00> : vector<128xf32>
    %184 = vector.multi_reduction <add>, %183, %cst_91 [1] : vector<128x128xf32> to vector<128xf32>
    %185 = vector.shape_cast %184 : vector<128xf32> to vector<128x1xf32>
    %cst_92 = arith.constant 1.280000e+02 : f32
    %186 = vector.broadcast %cst_92 : f32 to vector<128x1xf32>
    %187 = arith.divf %185, %186 : vector<128x1xf32>
    %188 = vector.broadcast %180 : vector<128x1xf32> to vector<128x128xf32>
    %189 = arith.subf %172, %188 : vector<128x128xf32>
    %cst_93 = arith.constant 9.99999974E-6 : f32
    %190 = vector.broadcast %cst_93 : f32 to vector<128x1xf32>
    %191 = arith.addf %187, %190 : vector<128x1xf32>
    %192 = math.rsqrt %191 : vector<128x1xf32>
    %193 = vector.broadcast %192 : vector<128x1xf32> to vector<128x128xf32>
    %194 = arith.mulf %189, %193 : vector<128x128xf32>
    %195 = vector.broadcast %174 : vector<1x128xf32> to vector<128x128xf32>
    %196 = arith.mulf %194, %195 : vector<128x128xf32>
    %197 = vector.broadcast %176 : vector<1x128xf32> to vector<128x128xf32>
    %198 = arith.addf %196, %197 : vector<128x128xf32>
    %199 = arith.truncf %198 : vector<128x128xf32> to vector<128x128xbf16>
    %c1_94 = arith.constant 1 : index
    %c0_95 = arith.constant 0 : index
    %c0_96 = arith.constant 0 : index
    %200 = vector.load %arg8[%c1_94, %c0_95, %c0_96] : memref<2x128x256xbf16, #tpu.memory_space<vmem>>, vector<1x128x256xbf16>
    %201 = vector.shape_cast %200 : vector<1x128x256xbf16> to vector<128x256xbf16>
    %cst_97 = arith.constant dense<0.000000e+00> : vector<128x256xf32>
    %202 = tpu.matmul %199, %201, %cst_97 {dimension_numbers = #tpu.dot_dimension_numbers<[1], [0], [0], [1], [0, 0, 1, 1], [], []>} : vector<128x128xbf16>, vector<128x256xbf16>, vector<128x256xf32> -> vector<128x256xf32>
    %c1_98 = arith.constant 1 : index
    %c0_99 = arith.constant 0 : index
    %c0_100 = arith.constant 0 : index
    %203 = vector.load %arg9[%c1_98, %c0_99, %c0_100] : memref<2x1x256xf32, #tpu.memory_space<vmem>>, vector<1x1x256xf32>
    %204 = vector.shape_cast %203 : vector<1x1x256xf32> to vector<1x256xf32>
    %205 = vector.broadcast %204 : vector<1x256xf32> to vector<128x256xf32>
    %206 = arith.addf %202, %205 : vector<128x256xf32>
    %cst_101 = arith.constant 0.000000e+00 : f32
    %207 = vector.broadcast %cst_101 : f32 to vector<128x256xf32>
    %208 = arith.maximumf %206, %207 : vector<128x256xf32>
    %209 = arith.truncf %208 : vector<128x256xf32> to vector<128x256xbf16>
    %c1_102 = arith.constant 1 : index
    %c0_103 = arith.constant 0 : index
    %c0_104 = arith.constant 0 : index
    %210 = vector.load %arg10[%c1_102, %c0_103, %c0_104] : memref<2x256x128xbf16, #tpu.memory_space<vmem>>, vector<1x256x128xbf16>
    %211 = vector.shape_cast %210 : vector<1x256x128xbf16> to vector<256x128xbf16>
    %cst_105 = arith.constant dense<0.000000e+00> : vector<128x128xf32>
    %212 = tpu.matmul %209, %211, %cst_105 {dimension_numbers = #tpu.dot_dimension_numbers<[1], [0], [0], [1], [0, 0, 1, 1], [], []>} : vector<128x256xbf16>, vector<256x128xbf16>, vector<128x128xf32> -> vector<128x128xf32>
    %c1_106 = arith.constant 1 : index
    %c0_107 = arith.constant 0 : index
    %c0_108 = arith.constant 0 : index
    %213 = vector.load %arg11[%c1_106, %c0_107, %c0_108] : memref<2x1x128xf32, #tpu.memory_space<vmem>>, vector<1x1x128xf32>
    %214 = vector.shape_cast %213 : vector<1x1x128xf32> to vector<1x128xf32>
    %215 = vector.broadcast %214 : vector<1x128xf32> to vector<128x128xf32>
    %216 = arith.addf %212, %215 : vector<128x128xf32>
    %217 = arith.addf %198, %216 : vector<128x128xf32>
    %c1_109 = arith.constant 1 : index
    %c0_110 = arith.constant 0 : index
    %c0_111 = arith.constant 0 : index
    %218 = vector.load %arg12[%c1_109, %c0_110, %c0_111] : memref<2x1x128xf32, #tpu.memory_space<vmem>>, vector<1x1x128xf32>
    %219 = vector.shape_cast %218 : vector<1x1x128xf32> to vector<1x128xf32>
    %c1_112 = arith.constant 1 : index
    %c0_113 = arith.constant 0 : index
    %c0_114 = arith.constant 0 : index
    %220 = vector.load %arg13[%c1_112, %c0_113, %c0_114] : memref<2x1x128xf32, #tpu.memory_space<vmem>>, vector<1x1x128xf32>
    %221 = vector.shape_cast %220 : vector<1x1x128xf32> to vector<1x128xf32>
    %cst_115 = arith.constant dense<0.000000e+00> : vector<128xf32>
    %222 = vector.multi_reduction <add>, %217, %cst_115 [1] : vector<128x128xf32> to vector<128xf32>
    %223 = vector.shape_cast %222 : vector<128xf32> to vector<128x1xf32>
    %cst_116 = arith.constant 1.280000e+02 : f32
    %224 = vector.broadcast %cst_116 : f32 to vector<128x1xf32>
    %225 = arith.divf %223, %224 : vector<128x1xf32>
    %226 = vector.broadcast %225 : vector<128x1xf32> to vector<128x128xf32>
    %227 = arith.subf %217, %226 : vector<128x128xf32>
    %228 = arith.mulf %227, %227 : vector<128x128xf32>
    %cst_117 = arith.constant dense<0.000000e+00> : vector<128xf32>
    %229 = vector.multi_reduction <add>, %228, %cst_117 [1] : vector<128x128xf32> to vector<128xf32>
    %230 = vector.shape_cast %229 : vector<128xf32> to vector<128x1xf32>
    %cst_118 = arith.constant 1.280000e+02 : f32
    %231 = vector.broadcast %cst_118 : f32 to vector<128x1xf32>
    %232 = arith.divf %230, %231 : vector<128x1xf32>
    %233 = vector.broadcast %225 : vector<128x1xf32> to vector<128x128xf32>
    %234 = arith.subf %217, %233 : vector<128x128xf32>
    %cst_119 = arith.constant 9.99999974E-6 : f32
    %235 = vector.broadcast %cst_119 : f32 to vector<128x1xf32>
    %236 = arith.addf %232, %235 : vector<128x1xf32>
    %237 = math.rsqrt %236 : vector<128x1xf32>
    %238 = vector.broadcast %237 : vector<128x1xf32> to vector<128x128xf32>
    %239 = arith.mulf %234, %238 : vector<128x128xf32>
    %240 = vector.broadcast %219 : vector<1x128xf32> to vector<128x128xf32>
    %241 = arith.mulf %239, %240 : vector<128x128xf32>
    %242 = vector.broadcast %221 : vector<1x128xf32> to vector<128x128xf32>
    %243 = arith.addf %241, %242 : vector<128x128xf32>
    %244 = vector.shape_cast %243 : vector<128x128xf32> to vector<16x8x128xf32>
    %cst_120 = arith.constant dense<0.000000e+00> : vector<16x128xf32>
    %245 = vector.multi_reduction <add>, %244, %cst_120 [1] : vector<16x8x128xf32> to vector<16x128xf32>
    %cst_121 = arith.constant 8.000000e+00 : f32
    %246 = vector.broadcast %cst_121 : f32 to vector<16x128xf32>
    %247 = arith.divf %245, %246 : vector<16x128xf32>
    %248 = arith.truncf %247 : vector<16x128xf32> to vector<16x128xbf16>
    %c1_122 = arith.constant 1 : index
    %c0_123 = arith.constant 0 : index
    %c0_124 = arith.constant 0 : index
    %249 = vector.load %arg14[%c1_122, %c0_123, %c0_124] : memref<2x128x128xbf16, #tpu.memory_space<vmem>>, vector<1x128x128xbf16>
    %250 = vector.shape_cast %249 : vector<1x128x128xbf16> to vector<128x128xbf16>
    %cst_125 = arith.constant dense<0.000000e+00> : vector<16x128xf32>
    %251 = tpu.matmul %248, %250, %cst_125 {dimension_numbers = #tpu.dot_dimension_numbers<[1], [0], [0], [1], [0, 0, 1, 1], [], []>} : vector<16x128xbf16>, vector<128x128xbf16>, vector<16x128xf32> -> vector<16x128xf32>
    %c1_126 = arith.constant 1 : index
    %c0_127 = arith.constant 0 : index
    %c0_128 = arith.constant 0 : index
    %252 = vector.load %arg15[%c1_126, %c0_127, %c0_128] : memref<2x1x128xf32, #tpu.memory_space<vmem>>, vector<1x1x128xf32>
    %253 = vector.shape_cast %252 : vector<1x1x128xf32> to vector<1x128xf32>
    %254 = vector.broadcast %253 : vector<1x128xf32> to vector<16x128xf32>
    %255 = arith.addf %251, %254 : vector<16x128xf32>
    %c0_129 = arith.constant 0 : index
    %c0_130 = arith.constant 0 : index
    %256 = vector.load %arg16[%c0_129, %c0_130] : memref<128x128xf32, #tpu.memory_space<vmem>>, vector<128x128xf32>
    %c0_131 = arith.constant 0 : index
    %c0_132 = arith.constant 0 : index
    %257 = vector.load %arg17[%c0_131, %c0_132] : memref<128x128xf32, #tpu.memory_space<vmem>>, vector<128x128xf32>
    %cst_133 = arith.constant dense<0.000000e+00> : vector<16x128xf32>
    %258 = tpu.matmul %127, %256, %cst_133 {dimension_numbers = #tpu.dot_dimension_numbers<[1], [0], [0], [1], [0, 0, 1, 1], [], []>} : vector<16x128xf32>, vector<128x128xf32>, vector<16x128xf32> -> vector<16x128xf32>
    %cst_134 = arith.constant dense<0.000000e+00> : vector<16x128xf32>
    %259 = tpu.matmul %255, %257, %cst_134 {dimension_numbers = #tpu.dot_dimension_numbers<[1], [0], [0], [1], [0, 0, 1, 1], [], []>} : vector<16x128xf32>, vector<128x128xf32>, vector<16x128xf32> -> vector<16x128xf32>
    %260 = arith.addf %258, %259 : vector<16x128xf32>
    %261 = arith.mulf %127, %127 : vector<16x128xf32>
    %262 = arith.mulf %256, %256 : vector<128x128xf32>
    %cst_135 = arith.constant dense<0.000000e+00> : vector<16x128xf32>
    %263 = tpu.matmul %261, %262, %cst_135 {dimension_numbers = #tpu.dot_dimension_numbers<[1], [0], [0], [1], [0, 0, 1, 1], [], []>} : vector<16x128xf32>, vector<128x128xf32>, vector<16x128xf32> -> vector<16x128xf32>
    %264 = arith.mulf %255, %255 : vector<16x128xf32>
    %265 = arith.mulf %257, %257 : vector<128x128xf32>
    %cst_136 = arith.constant dense<0.000000e+00> : vector<16x128xf32>
    %266 = tpu.matmul %264, %265, %cst_136 {dimension_numbers = #tpu.dot_dimension_numbers<[1], [0], [0], [1], [0, 0, 1, 1], [], []>} : vector<16x128xf32>, vector<128x128xf32>, vector<16x128xf32> -> vector<16x128xf32>
    %267 = arith.addf %263, %266 : vector<16x128xf32>
    %268 = arith.mulf %260, %260 : vector<16x128xf32>
    %269 = arith.subf %268, %267 : vector<16x128xf32>
    %cst_137 = arith.constant dense<0.000000e+00> : vector<16xf32>
    %270 = vector.multi_reduction <add>, %269, %cst_137 [1] : vector<16x128xf32> to vector<16xf32>
    %271 = vector.shape_cast %270 : vector<16xf32> to vector<16x1xf32>
    %cst_138 = arith.constant 5.000000e-01 : f32
    %272 = vector.broadcast %cst_138 : f32 to vector<16x1xf32>
    %273 = arith.mulf %272, %271 : vector<16x1xf32>
    %c0_139 = arith.constant 0 : index
    %c0_140 = arith.constant 0 : index
    %274 = vector.load %arg18[%c0_139, %c0_140] : memref<1x128xf32, #tpu.memory_space<vmem>>, vector<1x128xf32>
    %275 = vector.broadcast %274 : vector<1x128xf32> to vector<16x128xf32>
    %276 = arith.mulf %127, %275 : vector<16x128xf32>
    %cst_141 = arith.constant dense<0.000000e+00> : vector<16xf32>
    %277 = vector.multi_reduction <add>, %276, %cst_141 [1] : vector<16x128xf32> to vector<16xf32>
    %278 = vector.shape_cast %277 : vector<16xf32> to vector<16x1xf32>
    %c0_142 = arith.constant 0 : index
    %c0_143 = arith.constant 0 : index
    %279 = vector.load %arg19[%c0_142, %c0_143] : memref<1x128xf32, #tpu.memory_space<vmem>>, vector<1x128xf32>
    %280 = vector.broadcast %279 : vector<1x128xf32> to vector<16x128xf32>
    %281 = arith.mulf %255, %280 : vector<16x128xf32>
    %cst_144 = arith.constant dense<0.000000e+00> : vector<16xf32>
    %282 = vector.multi_reduction <add>, %281, %cst_144 [1] : vector<16x128xf32> to vector<16xf32>
    %283 = vector.shape_cast %282 : vector<16xf32> to vector<16x1xf32>
    %284 = arith.addf %278, %283 : vector<16x1xf32>
    %c0_145 = arith.constant 0 : index
    %c0_146 = arith.constant 0 : index
    %285 = vector.load %arg20[%c0_145, %c0_146] : memref<1x1xf32, #tpu.memory_space<vmem>>, vector<1x1xf32>
    %286 = vector.broadcast %285 : vector<1x1xf32> to vector<16x1xf32>
    %287 = arith.addf %284, %286 : vector<16x1xf32>
    %288 = arith.addf %273, %287 : vector<16x1xf32>
    %c0_147 = arith.constant 0 : index
    %c0_148 = arith.constant 0 : index
    %289 = vector.load %arg21[%c0_147, %c0_148] : memref<1x1xf32, #tpu.memory_space<vmem>>, vector<1x1xf32>
    %290 = vector.broadcast %289 : vector<1x1xf32> to vector<16x1xf32>
    %291 = arith.addf %288, %290 : vector<16x1xf32>
    %292 = vector.shape_cast %291 : vector<16x1xf32> to vector<16x1xf32>
    %293 = vector.broadcast %292 : vector<16x1xf32> to vector<16x128xf32>
    %c0_149 = arith.constant 0 : index
    %c0_150 = arith.constant 0 : index
    %294 = vector.load %arg22[%c0_149, %c0_150] : memref<16x128xf32, #tpu.memory_space<vmem>>, vector<16x128xf32>
    tpu.vector_store %arg22[%c0_149, %c0_150], %293 {strides = array<i32>} : memref<16x128xf32, #tpu.memory_space<vmem>>, vector<16x128xf32>,
    return
  }
  func.func @transform_0(%arg0: i32) -> (i32, i32) {
    %c0_i32 = arith.constant 0 : i32
    %c0_i32_0 = arith.constant 0 : i32
    return %arg0, %c0_i32 : i32, i32
  }
  func.func @transform_1(%arg0: i32) -> (i32, i32) {
    %c0_i32 = arith.constant 0 : i32
    %c0_i32_0 = arith.constant 0 : i32
    return %arg0, %c0_i32 : i32, i32
  }
  func.func @transform_2(%arg0: i32) -> (i32, i32) {
    %c0_i32 = arith.constant 0 : i32
    %c0_i32_0 = arith.constant 0 : i32
    %c0_i32_1 = arith.constant 0 : i32
    return %c0_i32, %c0_i32_0 : i32, i32
  }
  func.func @transform_3(%arg0: i32) -> (i32, i32, i32) {
    %c0_i32 = arith.constant 0 : i32
    %c0_i32_0 = arith.constant 0 : i32
    %c0_i32_1 = arith.constant 0 : i32
    %c0_i32_2 = arith.constant 0 : i32
    return %c0_i32, %c0_i32_0, %c0_i32_1 : i32, i32, i32
  }
  func.func @transform_4(%arg0: i32) -> (i32, i32, i32) {
    %c0_i32 = arith.constant 0 : i32
    %c0_i32_0 = arith.constant 0 : i32
    %c0_i32_1 = arith.constant 0 : i32
    %c0_i32_2 = arith.constant 0 : i32
    return %c0_i32, %c0_i32_0, %c0_i32_1 : i32, i32, i32
  }
  func.func @transform_5(%arg0: i32) -> (i32, i32, i32) {
    %c0_i32 = arith.constant 0 : i32
    %c0_i32_0 = arith.constant 0 : i32
    %c0_i32_1 = arith.constant 0 : i32
    %c0_i32_2 = arith.constant 0 : i32
    return %c0_i32, %c0_i32_0, %c0_i32_1 : i32, i32, i32
  }
  func.func @transform_6(%arg0: i32) -> (i32, i32, i32) {
    %c0_i32 = arith.constant 0 : i32
    %c0_i32_0 = arith.constant 0 : i32
    %c0_i32_1 = arith.constant 0 : i32
    %c0_i32_2 = arith.constant 0 : i32
    return %c0_i32, %c0_i32_0, %c0_i32_1 : i32, i32, i32
  }
  func.func @transform_7(%arg0: i32) -> (i32, i32, i32) {
    %c0_i32 = arith.constant 0 : i32
    %c0_i32_0 = arith.constant 0 : i32
    %c0_i32_1 = arith.constant 0 : i32
    %c0_i32_2 = arith.constant 0 : i32
    return %c0_i32, %c0_i32_0, %c0_i32_1 : i32, i32, i32
  }
  func.func @transform_8(%arg0: i32) -> (i32, i32, i32) {
    %c0_i32 = arith.constant 0 : i32
    %c0_i32_0 = arith.constant 0 : i32
    %c0_i32_1 = arith.constant 0 : i32
    %c0_i32_2 = arith.constant 0 : i32
    return %c0_i32, %c0_i32_0, %c0_i32_1 : i32, i32, i32
  }
  func.func @transform_9(%arg0: i32) -> (i32, i32, i32) {
    %c0_i32 = arith.constant 0 : i32
    %c0_i32_0 = arith.constant 0 : i32
    %c0_i32_1 = arith.constant 0 : i32
    %c0_i32_2 = arith.constant 0 : i32
    return %c0_i32, %c0_i32_0, %c0_i32_1 : i32, i32, i32
  }
  func.func @transform_10(%arg0: i32) -> (i32, i32, i32) {
    %c0_i32 = arith.constant 0 : i32
    %c0_i32_0 = arith.constant 0 : i32
    %c0_i32_1 = arith.constant 0 : i32
    %c0_i32_2 = arith.constant 0 : i32
    return %c0_i32, %c0_i32_0, %c0_i32_1 : i32, i32, i32
  }
  func.func @transform_11(%arg0: i32) -> (i32, i32, i32) {
    %c0_i32 = arith.constant 0 : i32
    %c0_i32_0 = arith.constant 0 : i32
    %c0_i32_1 = arith.constant 0 : i32
    %c0_i32_2 = arith.constant 0 : i32
    return %c0_i32, %c0_i32_0, %c0_i32_1 : i32, i32, i32
  }
  func.func @transform_12(%arg0: i32) -> (i32, i32, i32) {
    %c0_i32 = arith.constant 0 : i32
    %c0_i32_0 = arith.constant 0 : i32
    %c0_i32_1 = arith.constant 0 : i32
    %c0_i32_2 = arith.constant 0 : i32
    return %c0_i32, %c0_i32_0, %c0_i32_1 : i32, i32, i32
  }
  func.func @transform_13(%arg0: i32) -> (i32, i32, i32) {
    %c0_i32 = arith.constant 0 : i32
    %c0_i32_0 = arith.constant 0 : i32
    %c0_i32_1 = arith.constant 0 : i32
    %c0_i32_2 = arith.constant 0 : i32
    return %c0_i32, %c0_i32_0, %c0_i32_1 : i32, i32, i32
  }
  func.func @transform_14(%arg0: i32) -> (i32, i32, i32) {
    %c0_i32 = arith.constant 0 : i32
    %c0_i32_0 = arith.constant 0 : i32
    %c0_i32_1 = arith.constant 0 : i32
    %c0_i32_2 = arith.constant 0 : i32
    return %c0_i32, %c0_i32_0, %c0_i32_1 : i32, i32, i32
  }
  func.func @transform_15(%arg0: i32) -> (i32, i32) {
    %c0_i32 = arith.constant 0 : i32
    %c0_i32_0 = arith.constant 0 : i32
    %c0_i32_1 = arith.constant 0 : i32
    return %c0_i32, %c0_i32_0 : i32, i32
  }
  func.func @transform_16(%arg0: i32) -> (i32, i32) {
    %c0_i32 = arith.constant 0 : i32
    %c0_i32_0 = arith.constant 0 : i32
    %c0_i32_1 = arith.constant 0 : i32
    return %c0_i32, %c0_i32_0 : i32, i32
  }
  func.func @transform_17(%arg0: i32) -> (i32, i32) {
    %c0_i32 = arith.constant 0 : i32
    %c0_i32_0 = arith.constant 0 : i32
    %c0_i32_1 = arith.constant 0 : i32
    return %c0_i32, %c0_i32_0 : i32, i32
  }
  func.func @transform_18(%arg0: i32) -> (i32, i32) {
    %c0_i32 = arith.constant 0 : i32
    %c0_i32_0 = arith.constant 0 : i32
    %c0_i32_1 = arith.constant 0 : i32
    return %c0_i32, %c0_i32_0 : i32, i32
  }
  func.func @transform_19(%arg0: i32) -> (i32, i32) {
    %c0_i32 = arith.constant 0 : i32
    %c0_i32_0 = arith.constant 0 : i32
    %c0_i32_1 = arith.constant 0 : i32
    return %c0_i32, %c0_i32_0 : i32, i32
  }
  func.func @transform_20(%arg0: i32) -> (i32, i32) {
    %c0_i32 = arith.constant 0 : i32
    %c0_i32_0 = arith.constant 0 : i32
    %c0_i32_1 = arith.constant 0 : i32
    return %c0_i32, %c0_i32_0 : i32, i32
  }
  func.func @transform_21(%arg0: i32) -> (i32, i32) {
    %c0_i32 = arith.constant 0 : i32
    %c0_i32_0 = arith.constant 0 : i32
    return %arg0, %c0_i32 : i32, i32
  }
}

</mosaic_0001>

<bundles_post_ra>
// kernel: deep_trans_forward.1
= control target key start
LH: loop header
LB: loop body
LE: loop exit
PB: predicated region body
PF: predicated region fallthrough
CT: control target
= control target key end

     0   :  { %s12618_s0 = inlined_call_operand.vmem [shape: s32[128,1], index: 0, kind: input, shape index: {}]   ;;  %s12619_s1 = inlined_call_operand.vmem [shape: s32[128,1], index: 1, kind: input, shape index: {}]   ;;  %s12620_s2 = inlined_call_operand.vmem [shape: bf16[128,128], index: 2, kind: input, shape index: {}]   ;;  %s12621_s3 = inlined_call_operand.hbm [shape: bf16[2,128,384], index: 3, kind: input, shape index: {}]   ;;  %s12622_s4 = inlined_call_operand.hbm [shape: bf16[2,128,128], index: 4, kind: input, shape index: {}]   ;;  %s12623_s5 = inlined_call_operand.vmem [shape: f32[2,1,128], index: 5, kind: input, shape index: {}]   ;;  %s12624_s6 = inlined_call_operand.vmem [shape: f32[2,1,128], index: 6, kind: input, shape index: {}]   ;;  %s12625_s7 = inlined_call_operand.vmem [shape: bf16[2,128,256], index: 7, kind: input, shape index: {}]   ;;  %s12626_s8 = inlined_call_operand.vmem [shape: f32[2,1,256], index: 8, kind: input, shape index: {}]   ;;  %s12627_s9 = inlined_call_operand.hbm [shape: bf16[2,256,128], index: 9, kind: input, shape index: {}]   ;;  %s12628_s10 = inlined_call_operand.vmem [shape: f32[2,1,128], index: 10, kind: input, shape index: {}]   ;;  %s12629_s11 = inlined_call_operand.vmem [shape: f32[2,1,128], index: 11, kind: input, shape index: {}]   ;;  %s12630_s12 = inlined_call_operand.vmem [shape: f32[2,1,128], index: 12, kind: input, shape index: {}]   ;;  %s12631_s13 = inlined_call_operand.hbm [shape: bf16[2,128,128], index: 13, kind: input, shape index: {}]   ;;  %s12632_s14 = inlined_call_operand.vmem [shape: f32[2,1,128], index: 14, kind: input, shape index: {}]   ;;  %s12633_s15 = inlined_call_operand.hbm [shape: f32[128,128], index: 15, kind: input, shape index: {}]   ;;  %s12634_s16 = inlined_call_operand.hbm [shape: f32[128,128], index: 16, kind: input, shape index: {}]   ;;  %s12635_s17 = inlined_call_operand.vmem [shape: f32[1,128], index: 17, kind: input, shape index: {}]   ;;  %s12636_s18 = inlined_call_operand.vmem [shape: f32[1,128], index: 18, kind: input, shape index: {}]   ;;  %s12637_s19 = inlined_call_operand.<no memory space> [shape: f32[1,1], index: 19, kind: input, shape index: {}]   ;;  %s12638_s21 = inlined_call_operand.vmem [shape: f32[16,128], index: 21, kind: output, shape index: {}]   ;;  %s12639_s20 = inlined_call_operand.<no memory space> [shape: f32[1,1], index: 20, kind: input, shape index: {}]  }
   0x1   :  { %12644 = sst [smem:[#allocation18_spill]] %s12618_s0  ;;  %v26_v0 = vstv %s12637_s19  ;;  %v28_v1 = vstv %s12639_s20 }
   0x2   :  { %12645 = sst [smem:[#allocation19_spill]] %s12619_s1  ;;  %27 = vst [vmem:[#allocation2] sm:$0x1] %v26_v0  ;;  %29 = vst [vmem:[#allocation3] sm:$0x1] %v28_v1 }
   0x3   :  { %12646 = sst [smem:[#allocation20_spill]] %s12620_s2 }
   0x4   :  { %12647 = sst [smem:[#allocation21_spill]] %s12621_s3 }
   0x5   :  { %12648 = sst [smem:[#allocation22_spill]] %s12622_s4 }
   0x6   :  { %12649 = sst [smem:[#allocation23_spill]] %s12623_s5 }
   0x7   :  { %30 = vsyncpa [#allocation5], 0 }
   0x8   :  { %31 = vsyncpa [#allocation7], 0 }
   0x9   :  { %32 = vsyncpa [#allocation10], 0 }
   0xa   :  { %33 = vsyncpa [#allocation13], 0  ;;  %s10147_s3 = smov [#allocation6]  }
   0xb   :  { %s57_s28 = sshll.u32 %s10147_s3, 4  ;;  %s58_s28 = int_to_ptr.vmem [resolvable:$true] %s57_s28 }
   0xc   :  { %s10027_s29 = scalar_lea.vmem %s58_s28, 2048  ;;  %p10032_p1 = scmp.lt.s32.totalorder %s58_s28, %s58_s28 }
   0xd   :  { %p10028_p0 = scmp.ne.s32.totalorder %s58_s28, %s10027_s29  ;;  %p10033_p2 = scmp.lt.s32.totalorder %s10027_s29, %s10027_s29 }
   0xf   :  { %p10034_p3 = por %p10033_p2, %p10032_p1 }
  0x11   :  { %p10035_p4 = pnand %p10034_p3, %p10028_p0 }
  0x13   :  { %10038 = shalt.err (!%p10035_p4)
}
  0x14   :  { %s10148_s19 = smov 64   ;;  %s10149_s0 = smov 4  }
  0x15   :  { %s12650_s30 = sld [smem:[#allocation22_spill]]  ;;  %s10150_s5 = smov [#allocation9]  }
  0x16   :  { %s95_s22 = sshll.u32 %s10150_s5, 4  ;;  %s10151_s23 = smov [#allocation4]   ;;  %s96_s22 = int_to_ptr.vmem [resolvable:$true] %s95_s22 }
  0x17   :  { %s45_s1 = sshll.u32 %s10151_s23, 4  ;;  %s10047_s24 = scalar_lea.vmem %s96_s22, 2048  ;;  %s46_s1 = int_to_ptr.vmem [resolvable:$true] %s45_s1 }
  0x18   :  { %p10048_p5 = scmp.ne.s32.totalorder %s96_s22, %s10047_s24  ;;  %p10052_p6 = scmp.lt.s32.totalorder %s96_s22, %s96_s22 }
  0x19   :  { %p10053_p7 = scmp.lt.s32.totalorder %s10047_s24, %s10047_s24 }
  0x1b   :  { %63 = dma.hbm_to_vmem [thread:$0]  %s12650_s30, 2048, %s58_s28, [#allocation7], %s10148_s19, %s10148_s19, %s10149_s0  }
  0x1c   :  { %p10054_p8 = por %p10053_p7, %p10052_p6 }
  0x1e   :  { %p10055_p9 = pnand %p10054_p8, %p10048_p5 }
  0x20   :  { %10058 = shalt.err (!%p10055_p9)
}
  0x21   :  { %101 = dma.hbm_to_vmem [thread:$0]  %s12631_s13, 2048, %s96_s22, [#allocation10], %s10148_s19, %s10148_s19, %s10149_s0  }
  0x22   :  { %s10067_s26 = scalar_lea.vmem %s46_s1, 6144  ;;  %p10072_p11 = scmp.lt.s32.totalorder %s46_s1, %s46_s1 }
  0x23   :  { %p10068_p10 = scmp.ne.s32.totalorder %s46_s1, %s10067_s26  ;;  %p10073_p12 = scmp.lt.s32.totalorder %s10067_s26, %s10067_s26 }
  0x25   :  { %p10074_p13 = por %p10073_p12, %p10072_p11 }
  0x27   :  { %p10075_p0 = pnand %p10074_p13, %p10068_p10 }
  0x29   :  { %10078 = shalt.err (!%p10075_p0)
}
  0x2a   :  { %s10152_s27 = smov 192   ;;  %s10153_s3 = smov 12  }
  0x2b   :  { %s12651_s20 = sld [smem:[#allocation21_spill]]  ;;  %s10154_s4 = smov [#allocation8]  }
  0x2c   :  { %s77_s30 = sshll.u32 %s10154_s4, 4  ;;  %s10155_s5 = smov [#allocation11]   ;;  %s78_s30 = int_to_ptr.vmem [resolvable:$true] %s77_s30 }
  0x2d   :  { %s109_s23 = sshll.u32 %s10155_s5, 4  ;;  %s10087_s13 = scalar_lea.vmem %s78_s30, 4096  ;;  %s110_s23 = int_to_ptr.vmem [resolvable:$true] %s109_s23 }
  0x2e   :  { %p10088_p1 = scmp.ne.s32.totalorder %s78_s30, %s10087_s13  ;;  %p10092_p2 = scmp.lt.s32.totalorder %s78_s30, %s78_s30 }
  0x2f   :  { %p10093_p3 = scmp.lt.s32.totalorder %s10087_s13, %s10087_s13 }
  0x31   :  { %51 = dma.hbm_to_vmem [thread:$0]  %s12651_s20, 6144, %s46_s1, [#allocation5], %s10152_s27, %s10152_s27, %s10153_s3  }
  0x32   :  { %p10094_p4 = por %p10093_p3, %p10092_p2 }
  0x34   :  { %p10095_p5 = pnand %p10094_p4, %p10088_p1 }
  0x36   :  { %10098 = shalt.err (!%p10095_p5)
}
  0x37   :  { %83 = dma.hbm_to_vmem [thread:$0]  %s12627_s9, 4096, %s78_s30, [#allocation7], %s10148_s19, %s10148_s19, %s10149_s0  }
  0x38   :  { %s10107_s1 = scalar_lea.vmem %s110_s23, 2048  ;;  %p10112_p7 = scmp.lt.s32.totalorder %s110_s23, %s110_s23 }
  0x39   :  { %p10108_p6 = scmp.ne.s32.totalorder %s110_s23, %s10107_s1  ;;  %p10113_p8 = scmp.lt.s32.totalorder %s10107_s1, %s10107_s1 }
  0x3b   :  { %p10114_p9 = por %p10113_p8, %p10112_p7 }
  0x3d   :  { %p10115_p10 = pnand %p10114_p9, %p10108_p6 }
  0x3f   :  { %10118 = shalt.err (!%p10115_p10)
}
  0x40   :  { %s10156_s2 = smov 128   ;;  %s10157_s25 = smov 8  }
  0x41   :  { %115 = dma.hbm_to_vmem [thread:$0]  %s12633_s15, 2048, %s110_s23, [#allocation10], %s10156_s2, %s10156_s2, %s10157_s25  }
  0x42   :  { %s10158_s3 = smov [#allocation12]  }
  0x43   :  { %s121_s28 = sshll.u32 %s10158_s3, 4  ;;  %s122_s28 = int_to_ptr.vmem [resolvable:$true] %s121_s28 }
  0x44   :  { %s10127_s29 = scalar_lea.vmem %s122_s28, 2048  ;;  %p10132_p12 = scmp.lt.s32.totalorder %s122_s28, %s122_s28 }
  0x45   :  { %p10128_p11 = scmp.ne.s32.totalorder %s122_s28, %s10127_s29  ;;  %p10133_p13 = scmp.lt.s32.totalorder %s10127_s29, %s10127_s29 }
  0x47   :  { %p10134_p0 = por %p10133_p13, %p10132_p12 }
  0x49   :  { %p10135_p1 = pnand %p10134_p0, %p10128_p11 }
  0x4b   :  { %10138 = shalt.err (!%p10135_p1)
}
  0x4c   :  { %127 = dma.hbm_to_vmem [thread:$0]  %s12634_s16, 2048, %s122_s28, [#allocation13], %s10156_s2, %s10156_s2, %s10157_s25  }
  0x4d   :  { %10139 = dma.done.wait [#allocation5], 6144  }
  0x4e   :  { %10140 = vsyncadd [#allocation5], 4294961152 }
  0x4f   :  { %10141 = dma.done.wait [#allocation7], 6144  }
  0x50   :  { %10142 = vsyncadd [#allocation7], 4294961152 }
  0x51   :  { %10143 = dma.done.wait [#allocation10], 4096  }
  0x52   :  { %10144 = vsyncadd [#allocation10], 4294963200 }
  0x53   :  { %10145 = dma.done.wait [#allocation13], 2048  }
  0x54   :  { %10146 = vsyncadd [#allocation13], 4294965248  ;;  %v10159_v2 = vmov 0   ;;  %s12652_s20 = sld [smem:[#allocation18_spill]]  ;;  %v9579_v26 = vld [vmem:[#allocation4 + $0xac] ss:$12 sps:$4 sm:$0xff]   ;;  %v171_v40 = vlaneseq }
  0x55   :  { %9570 = vset.pattern.permute.xlu1 %v10159_v2  ;;  %9569 = vset.pattern.permute.xlu0 %v10159_v2  ;;  %s12653_s27 = sld [smem:[#allocation20_spill]]  ;;  %v9581_v27 = vld [vmem:[#allocation4 + $0xa8] ss:$12 sps:$4 sm:$0xff]   ;;  %v9585_v30 = vld [vmem:[#allocation4 + $0x90] ss:$12 sps:$4 sm:$0xff]  }
  0x56   :  { %622 = vmatprep.mubr.bf16.mxu1 %v10159_v2  ;;  %v9583_v28 = vld [vmem:[#allocation4 + $0x94] ss:$12 sps:$4 sm:$0xff]   ;;  %590 = vmatprep.subr.bf16.mxu1 %v9579_v26  ;;  %v9587_v31 = vld [vmem:[#allocation4 + $0x7c] ss:$12 sps:$4 sm:$0xff]   ;;  %v9589_v33 = vld [vmem:[#allocation4 + $0x78] ss:$12 sps:$4 sm:$0xff]  }
  0x57   :  { %591 = vmatpush1.bf16.msra.mxu1 %v9581_v27  ;;  %v9582_v32 = vld [vmem:[#allocation4 + $0xb0] ss:$12 sps:$4 sm:$0xff]   ;;  %v9593_v35 = vld [vmem:[#allocation4 + $0x60] ss:$12 sps:$4 sm:$0xff]   ;;  %v9597_v37 = vld [vmem:[#allocation4 + $0x48] ss:$12 sps:$4 sm:$0xff]  }
  0x58   :  { %592 = vmatprep.subr.bf16.mxu1 %v9583_v28  ;;  %v9591_v34 = vld [vmem:[#allocation4 + $0x64] ss:$12 sps:$4 sm:$0xff]   ;;  %v9595_v36 = vld [vmem:[#allocation4 + $0x4c] ss:$12 sps:$4 sm:$0xff]   ;;  %v9599_v38 = vld [vmem:[#allocation4 + $0x34] ss:$12 sps:$4 sm:$0xff]  }
  0x59   :  { %v9601_v39 = vld [vmem:[#allocation4 + $0x30] ss:$12 sps:$4 sm:$0xff]   ;;  %v10382_v43 = vand.u32 127, %v171_v40  ;;  %v9586_v46 = vld [vmem:[#allocation4 + $0x98] ss:$12 sps:$4 sm:$0xff]   ;;  %s12654_s30 = sld [smem:[#allocation19_spill]] }
  0x5a   :  { %v157_v3 = vld [vmem:[%s12652_s20 + $0x10] sm:$0xff]  ;;  %v155_v4 = vld [vmem:[%s12652_s20] sm:$0xff]  ;;  %v158_v5 = vld [vmem:[%s12652_s20 + $0x18] sm:$0xff]  ;;  %v10160_v47 = vmov 1.0|1.0   ;;  %s12655_s2 = sld [smem:[#allocation23_spill]] }
  0x5b   :  { %180 = vperm.xlu1 %9570, %v157_v3   ;;  %174 = vperm.xlu0 %9569, %v155_v4   ;;  %v156_v6 = vld [vmem:[%s12652_s20 + $0x8] sm:$0xff]  ;;  %v159_v8 = vld [vmem:[%s12652_s20 + $0x20] sm:$0xff]  ;;  %v9571_v9 = vld [vmem:[%s12653_s27 + $0x38] sm:$0xff]  }
  0x5c   :  { %v160_v7 = vld [vmem:[%s12652_s20 + $0x28] sm:$0xff]  ;;  %v9572_v10 = vld [vmem:[%s12653_s27 + $0x30] sm:$0xff]   ;;  %8797 = vmatprep.subr.bf16.mxu0 %v9571_v9  ;;  %v162_v11 = vld [vmem:[%s12652_s20 + $0x38] sm:$0xff]  ;;  %593 = vmatpush1.bf16.msra.mxu1 %v9585_v30 }
  0x5d   :  { %v161_v12 = vld [vmem:[%s12652_s20 + $0x30] sm:$0xff]  ;;  %8798 = vmatpush3.bf16.msra.mxu0 %v9571_v9  ;;  %v9573_v13 = vld [vmem:[%s12653_s27 + $0x28] sm:$0xff]   ;;  %v163_v15 = vld [vmem:[%s12652_s20 + $0x40] sm:$0xff]  ;;  %594 = vmatprep.subr.bf16.mxu1 %v9587_v31  ;;  %v10161_v31 = vmov 0.0  }
  0x5e   :  { %8799 = vmatprep.subr.bf16.mxu0 %v9572_v10  ;;  %v164_v14 = vld [vmem:[%s12652_s20 + $0x48] sm:$0xff]  ;;  %v9574_v16 = vld [vmem:[%s12653_s27 + $0x20] sm:$0xff]   ;;  %v166_v17 = vld [vmem:[%s12652_s20 + $0x58] sm:$0xff] }
  0x5f   :  { %183 = vperm.xlu1 %9570, %v158_v5   ;;  %177 = vperm.xlu0 %9569, %v156_v6   ;;  %v165_v18 = vld [vmem:[%s12652_s20 + $0x50] sm:$0xff]  ;;  %v9575_v19 = vld [vmem:[%s12653_s27 + $0x18] sm:$0xff]   ;;  %v168_v20 = vld [vmem:[%s12652_s20 + $0x68] sm:$0xff] }
  0x60   :  { %v167_v21 = vld [vmem:[%s12652_s20 + $0x60] sm:$0xff]  ;;  %v9576_v22 = vld [vmem:[%s12653_s27 + $0x10] sm:$0xff]   ;;  %v170_v23 = vld [vmem:[%s12652_s20 + $0x78] sm:$0xff]  ;;  %595 = vmatpush1.bf16.msra.mxu1 %v9589_v33 }
  0x61   :  { %8800 = vmatpush3.bf16.msra.mxu0 %v9572_v10  ;;  %v169_v24 = vld [vmem:[%s12652_s20 + $0x70] sm:$0xff]  ;;  %v9577_v25 = vld [vmem:[%s12653_s27 + $0x8] sm:$0xff]   ;;  %v9578_v29 = vld [vmem:[%s12653_s27] sm:$0xff]   ;;  %596 = vmatprep.subr.bf16.mxu1 %v9591_v34 }
  0x62   :  { %8801 = vmatprep.subr.bf16.mxu0 %v9573_v13  ;;  %v9590_v50 = vld [vmem:[#allocation4 + $0x80] ss:$12 sps:$4 sm:$0xff]   ;;  %v9594_v53 = vld [vmem:[#allocation4 + $0x68] ss:$12 sps:$4 sm:$0xff]   ;;  %v9598_v56 = vld [vmem:[#allocation4 + $0x50] ss:$12 sps:$4 sm:$0xff]  }
  0x63   :  { %189 = vperm.xlu1 %9570, %v160_v7   ;;  %186 = vperm.xlu0 %9569, %v159_v8   ;;  %v9602_v59 = vld [vmem:[#allocation4 + $0x38] ss:$12 sps:$4 sm:$0xff]   ;;  %v9603_v0 = vld [vmem:[#allocation4 + $0x1c] ss:$12 sps:$4 sm:$0xff]   ;;  %v9606_v3 = vld [vmem:[#allocation4 + $0x20] ss:$12 sps:$4 sm:$0xff]  }
  0x64   :  { %597 = vmatpush1.bf16.msra.mxu1 %v9593_v35  ;;  %v9605_v1 = vld [vmem:[#allocation4 + $0x18] ss:$12 sps:$4 sm:$0xff]   ;;  %v9609_v5 = vld [vmem:[#allocation4] ss:$12 sps:$4 sm:$0xff]   ;;  %v9610_v6 = vld [vmem:[#allocation4 + $0x8] ss:$12 sps:$4 sm:$0xff]  }
  0x65   :  { %8802 = vmatpush3.bf16.msra.mxu0 %v9573_v13  ;;  %598 = vmatprep.subr.bf16.mxu1 %v9595_v36  ;;  %v9607_v4 = vld [vmem:[#allocation4 + $0x4] ss:$12 sps:$4 sm:$0xff]  }
  0x66   :  { %8803 = vmatprep.subr.bf16.mxu0 %v9574_v16 }
  0x67   :  { %195 = vperm.xlu1 %9570, %v162_v11   ;;  %192 = vperm.xlu0 %9569, %v161_v12  }
  0x68   :  { %599 = vmatpush1.bf16.msra.mxu1 %v9597_v37 }
  0x69   :  { %8804 = vmatpush3.bf16.msra.mxu0 %v9574_v16  ;;  %600 = vmatprep.subr.bf16.mxu1 %v9599_v38 }
  0x6a   :  { %8805 = vmatprep.subr.bf16.mxu0 %v9575_v19 }
  0x6b   :  { %201 = vperm.xlu1 %9570, %v164_v14   ;;  %198 = vperm.xlu0 %9569, %v163_v15  }
  0x6c   :  { %601 = vmatpush1.bf16.msra.mxu1 %v9601_v39 }
  0x6d   :  { %8806 = vmatpush3.bf16.msra.mxu0 %v9575_v19  ;;  %602 = vmatprep.subr.bf16.mxu1 %v9603_v0 }
  0x6e   :  { %8807 = vmatprep.subr.bf16.mxu0 %v9576_v22 }
  0x6f   :  { %207 = vperm.xlu1 %9570, %v166_v17   ;;  %204 = vperm.xlu0 %9569, %v165_v18  }
  0x70   :  { %603 = vmatpush1.bf16.msra.mxu1 %v9605_v1 }
  0x71   :  { %8808 = vmatpush3.bf16.msra.mxu0 %v9576_v22  ;;  %604 = vmatprep.subr.bf16.mxu1 %v9607_v4 }
  0x72   :  { %8809 = vmatprep.subr.bf16.mxu0 %v9577_v25 }
  0x73   :  { %213 = vperm.xlu1 %9570, %v168_v20   ;;  %210 = vperm.xlu0 %9569, %v167_v21  }
  0x74   :  { %605 = vmatpush1.bf16.msra.mxu1 %v9609_v5 }
  0x75   :  { %8810 = vmatpush3.bf16.msra.mxu0 %v9577_v25  ;;  %8867 = vmatprep.subr.bf16.mxu1 %v10161_v31 }
  0x76   :  { %8811 = vmatprep.subr.bf16.mxu0 %v9578_v29 }
  0x77   :  { %219 = vperm.xlu1 %9570, %v170_v23   ;;  %216 = vperm.xlu0 %9569, %v169_v24  }
  0x79   :  { %8812 = vmatpush3.bf16.msra.mxu0 %v9578_v29 }
  0x7a   :  { %8829 = vmatprep.subr.bf16.mxu0 %v9582_v32 }
  0xd6   :  { %v181_v41 = vpop.permute.xlu1 %180  ;;  %v175_v42 = vpop.permute.xlu0 %174 }
  0xd7   :  { %vm223_vm0 = vcmp.eq.s32.totalorder %v10382_v43, %v181_v41  ;;  %vm221_vm4 = vcmp.eq.s32.totalorder %v10382_v43, %v175_v42 }
  0xda   :  { %v184_v44 = vpop.permute.xlu1 %183  ;;  %v178_v45 = vpop.permute.xlu0 %177 }
  0xdb   :  { %vm224_vm1 = vcmp.eq.s32.totalorder %v10382_v43, %v184_v44  ;;  %vm222_vm2 = vcmp.eq.s32.totalorder %v10382_v43, %v178_v45 }
  0xdc   :  { %vm8102_vm3 = vmpackc.low %vm224_vm1, %vm223_vm0 }
  0xdd   :  { %vm8100_vm5 = vmpackc.low %vm222_vm2, %vm221_vm4 }
  0xde   :  { %8813 = vmatprep.mubr.msk.bf16.mxu0 %vm8100_vm5, %v10160_v47  ;;  %v190_v48 = vpop.permute.xlu1 %189  ;;  %v187_v49 = vpop.permute.xlu0 %186 }
  0xdf   :  { %vm226_vm6 = vcmp.eq.s32.totalorder %v10382_v43, %v190_v48  ;;  %8814 = vmatmul.mubr.msk.bf16.vlgmr.msra.gmra.mxu0 %vm8102_vm3, %v10160_v47  ;;  %vm225_vm7 = vcmp.eq.s32.totalorder %v10382_v43, %v187_v49 }
  0xe0   :  { %vm8104_vm8 = vmpackc.low %vm226_vm6, %vm225_vm7  ;;  %8830 = vmatpush3.bf16.msra.mxu0 %v9582_v32 }
  0xe1   :  { %8817 = vmatprep.mubr.msk.bf16.mxu0 %vm8104_vm8, %v10160_v47  ;;  %8831 = vmatprep.subr.bf16.mxu0 %v9586_v46  ;;  %vm10162_vm8 = vmmov 0  }
  0xe2   :  { %v196_v51 = vpop.permute.xlu1 %195  ;;  %v193_v52 = vpop.permute.xlu0 %192 }
  0xe3   :  { %vm228_vm9 = vcmp.eq.s32.totalorder %v10382_v43, %v196_v51  ;;  %vm227_vm10 = vcmp.eq.s32.totalorder %v10382_v43, %v193_v52 }
  0xe4   :  { %vm8106_vm11 = vmpackc.low %vm228_vm9, %vm227_vm10  ;;  %8832 = vmatpush3.bf16.msra.mxu0 %v9586_v46  ;;  %vm1700_vm9 = vcmask 1043456   ;;  %vm1488_vm10 = vcmask 64512  }
  0xe5   :  { %8833 = vmatprep.subr.bf16.mxu0 %v9590_v50 }
  0xe6   :  { %v202_v54 = vpop.permute.xlu1 %201  ;;  %v199_v55 = vpop.permute.xlu0 %198 }
  0xe7   :  { %vm230_vm12 = vcmp.eq.s32.totalorder %v10382_v43, %v202_v54  ;;  %8818 = vmatmul.mubr.msk.bf16.gmra.mxu0 %vm8106_vm11, %v10160_v47  ;;  %vm229_vm13 = vcmp.eq.s32.totalorder %v10382_v43, %v199_v55 }
  0xe8   :  { %vm8108_vm14 = vmpackc.low %vm230_vm12, %vm229_vm13  ;;  %8834 = vmatpush3.bf16.msra.mxu0 %v9590_v50 }
  0xe9   :  { %8821 = vmatprep.mubr.msk.bf16.mxu0 %vm8108_vm14, %v10160_v47  ;;  %8835 = vmatprep.subr.bf16.mxu0 %v9594_v53 }
  0xea   :  { %v208_v57 = vpop.permute.xlu1 %207  ;;  %v205_v58 = vpop.permute.xlu0 %204 }
  0xeb   :  { %vm232_vm15 = vcmp.eq.s32.totalorder %v10382_v43, %v208_v57  ;;  %vm231_vm0 = vcmp.eq.s32.totalorder %v10382_v43, %v205_v58 }
  0xec   :  { %vm8110_vm1 = vmpackc.low %vm232_vm15, %vm231_vm0  ;;  %8836 = vmatpush3.bf16.msra.mxu0 %v9594_v53 }
  0xed   :  { %8837 = vmatprep.subr.bf16.mxu0 %v9598_v56 }
  0xee   :  { %v214_v60 = vpop.permute.xlu1 %213  ;;  %v211_v61 = vpop.permute.xlu0 %210 }
  0xef   :  { %vm234_vm2 = vcmp.eq.s32.totalorder %v10382_v43, %v214_v60  ;;  %8822 = vmatmul.mubr.msk.bf16.gmra.mxu0 %vm8110_vm1, %v10160_v47  ;;  %vm233_vm3 = vcmp.eq.s32.totalorder %v10382_v43, %v211_v61 }
  0xf0   :  { %vm8112_vm4 = vmpackc.low %vm234_vm2, %vm233_vm3  ;;  %8838 = vmatpush3.bf16.msra.mxu0 %v9598_v56 }
  0xf1   :  { %8825 = vmatprep.mubr.msk.bf16.mxu0 %vm8112_vm4, %v10160_v47  ;;  %8839 = vmatprep.subr.bf16.mxu0 %v9602_v59 }
  0xf2   :  { %v220_v62 = vpop.permute.xlu1 %219  ;;  %v217_v63 = vpop.permute.xlu0 %216 }
  0xf3   :  { %vm236_vm5 = vcmp.eq.s32.totalorder %v10382_v43, %v220_v62  ;;  %vm235_vm6 = vcmp.eq.s32.totalorder %v10382_v43, %v217_v63 }
  0xf4   :  { %vm8114_vm7 = vmpackc.low %vm236_vm5, %vm235_vm6  ;;  %8840 = vmatpush3.bf16.msra.mxu0 %v9602_v59 }
  0xf5   :  { %8841 = vmatprep.subr.bf16.mxu0 %v9606_v3 }
  0xf7   :  { %8826 = vmatmul.mubr.msk.bf16.gmra.mxu0 %vm8114_vm7, %v10160_v47 }
  0xf8   :  { %8842 = vmatpush3.bf16.msra.mxu0 %v9606_v3 }
  0xf9   :  { %8843 = vmatprep.subr.bf16.mxu0 %v9610_v6 }
  0xfc   :  { %8844 = vmatpush3.bf16.msra.mxu0 %v9610_v6 }
  0xfd   :  { %8861 = vmatprep.subr.bf16.mxu0 %v10161_v31 }
 0x19f   :  { %v8815_v7 = vpop.f32.mrf.mxu0 }
 0x1a1   :  { %v359_v8 = vpop.f32.mrf.mxu0 }
 0x1a3   :  { %v8816_v9 = vpop.f32.mrf.mxu0 }
 0x1a4   :  { %v10410_v12 = vpack.c.bf16 %v8816_v9, %v8815_v7 }
 0x1a5   :  { %v362_v10 = vpop.f32.mrf.mxu0 }
 0x1a6   :  { %v10408_v11 = vpack.c.bf16 %v362_v10, %v359_v8 }
 0x1a7   :  { %v8819_v13 = vpop.f32.mrf.mxu0 }
 0x1a8   :  { %623 = vmatmul.mubr.bf16.vlgmr.msra.gmra.mxu1 %v10408_v11  ;;  %8845 = vmatprep.mubr.bf16.mxu0 %v10408_v11 }
 0x1a9   :  { %v375_v14 = vpop.f32.mrf.mxu0  ;;  %8846 = vmatmul.mubr.bf16.vlgmr.msra.gmra.mxu0 %v10410_v12  ;;  %632 = vmatprep.mubr.bf16.mxu1 %v10159_v2 }
 0x1ab   :  { %v8820_v15 = vpop.f32.mrf.mxu0 }
 0x1ac   :  { %v10418_v18 = vpack.c.bf16 %v8820_v15, %v8819_v13 }
 0x1ad   :  { %v378_v16 = vpop.f32.mrf.mxu0 }
 0x1ae   :  { %v10416_v17 = vpack.c.bf16 %v378_v16, %v375_v14 }
 0x1af   :  { %v8823_v19 = vpop.f32.mrf.mxu0 }
 0x1b0   :  { %633 = vmatmul.mubr.bf16.gmra.mxu1 %v10410_v12  ;;  %8849 = vmatprep.mubr.bf16.mxu0 %v10416_v17 }
 0x1b1   :  { %v391_v20 = vpop.f32.mrf.mxu0  ;;  %8850 = vmatmul.mubr.bf16.gmra.mxu0 %v10418_v18  ;;  %642 = vmatprep.mubr.bf16.mxu1 %v10159_v2 }
 0x1b3   :  { %v8824_v21 = vpop.f32.mrf.mxu0 }
 0x1b4   :  { %v10426_v24 = vpack.c.bf16 %v8824_v21, %v8823_v19 }
 0x1b5   :  { %v394_v22 = vpop.f32.mrf.mxu0 }
 0x1b6   :  { %v10424_v23 = vpack.c.bf16 %v394_v22, %v391_v20 }
 0x1b7   :  { %v8827_v25 = vpop.f32.mrf.mxu0 }
 0x1b8   :  { %643 = vmatmul.mubr.bf16.gmra.mxu1 %v10416_v17  ;;  %8853 = vmatprep.mubr.bf16.mxu0 %v10424_v23 }
 0x1b9   :  { %v407_v26 = vpop.f32.mrf.mxu0  ;;  %8854 = vmatmul.mubr.bf16.gmra.mxu0 %v10426_v24  ;;  %652 = vmatprep.mubr.bf16.mxu1 %v10159_v2 }
 0x1bb   :  { %v8828_v27 = vpop.f32.mrf.mxu0 }
 0x1bc   :  { %v10434_v30 = vpack.c.bf16 %v8828_v27, %v8827_v25 }
 0x1bd   :  { %v410_v28 = vpop.f32.mrf.mxu0 }
 0x1be   :  { %v10432_v29 = vpack.c.bf16 %v410_v28, %v407_v26 }
 0x1c0   :  { %653 = vmatmul.mubr.bf16.gmra.mxu1 %v10418_v18  ;;  %8857 = vmatprep.mubr.bf16.mxu0 %v10432_v29 }
 0x1c1   :  { %8858 = vmatmul.mubr.bf16.gmra.mxu0 %v10434_v30  ;;  %662 = vmatprep.mubr.bf16.mxu1 %v10159_v2 }
 0x1c2   :  { %8863 = vmatprep.mubr.msk.bf16.mxu0 %vm10162_vm8, %v10161_v31 }
 0x1c8   :  { %663 = vmatmul.mubr.bf16.gmra.mxu1 %v10424_v23 }
 0x1c9   :  { %672 = vmatprep.mubr.bf16.mxu1 %v10159_v2 }
 0x1d0   :  { %673 = vmatmul.mubr.bf16.gmra.mxu1 %v10426_v24 }
 0x1d1   :  { %682 = vmatprep.mubr.bf16.mxu1 %v10159_v2 }
 0x1d8   :  { %683 = vmatmul.mubr.bf16.gmra.mxu1 %v10432_v29 }
 0x1d9   :  { %692 = vmatprep.mubr.bf16.mxu1 %v10159_v2 }
 0x1e0   :  { %693 = vmatmul.mubr.bf16.gmra.mxu1 %v10434_v30 }
 0x1e1   :  { %8869 = vmatprep.mubr.msk.bf16.mxu1 %vm10162_vm8, %v10161_v31 }
 0x268   :  { %v624_v32 = vpop.f32.mrf.mxu1 }
 0x269   :  { %v800_v39 = vpack.c.bf16 %v624_v32, %v624_v32  ;;  %v10485_v32 = vpop.f32.mrf.mxu0 }
 0x26a   :  { %v626_v33 = vpop.f32.mrf.mxu1 }
 0x26b   :  { %v816_v34 = vpack.c.bf16 %v626_v33, %v626_v33 }
 0x26c   :  { %v628_v35 = vpop.f32.mrf.mxu1 }
 0x26d   :  { %8862 = vmatpush3.bf16.xpose.msra.mxu0 %v816_v34  ;;  %v801_v45 = vpack.c.bf16 %v628_v35, %v628_v35 }
 0x26e   :  { %v630_v36 = vpop.f32.mrf.mxu1  ;;  %8873 = vmatprep.subr.bf16.mxu0 %v10161_v31 }
 0x26f   :  { %v817_v37 = vpack.c.bf16 %v630_v36, %v630_v36 }
 0x270   :  { %v634_v38 = vpop.f32.mrf.mxu1 }
 0x271   :  { %8868 = vmatpush3.bf16.xpose.msra.mxu1 %v817_v37  ;;  %v802_v50 = vpack.c.bf16 %v634_v38, %v634_v38  ;;  %v737_v37 = vpop.f32.mrf.mxu0 }
 0x272   :  { %v636_v41 = vpop.f32.mrf.mxu1  ;;  %8879 = vmatprep.subr.bf16.mxu1 %v10161_v31 }
 0x273   :  { %v818_v42 = vpack.c.bf16 %v636_v41, %v636_v41 }
 0x274   :  { %v638_v44 = vpop.f32.mrf.mxu1  ;;  %8864 = vmatmul.mubr.bf16.vlgmr.msra.gmra.mxu0 %v800_v39 }
 0x275   :  { %8874 = vmatpush3.bf16.xpose.msra.mxu0 %v818_v42  ;;  %8875 = vmatprep.mubr.msk.bf16.mxu0 %vm10162_vm8, %v10161_v31  ;;  %v803_v54 = vpack.c.bf16 %v638_v44, %v638_v44  ;;  %v10493_v44 = vpop.f32.mrf.mxu0 }
 0x276   :  { %v640_v46 = vpop.f32.mrf.mxu1  ;;  %8885 = vmatprep.subr.bf16.mxu0 %v10161_v31 }
 0x277   :  { %v819_v48 = vpack.c.bf16 %v640_v46, %v640_v46 }
 0x278   :  { %v644_v49 = vpop.f32.mrf.mxu1  ;;  %8870 = vmatmul.mubr.bf16.vlgmr.msra.gmra.mxu1 %v801_v45 }
 0x279   :  { %8880 = vmatpush3.bf16.xpose.msra.mxu1 %v819_v48  ;;  %8881 = vmatprep.mubr.msk.bf16.mxu1 %vm10162_vm8, %v10161_v31  ;;  %v804_v58 = vpack.c.bf16 %v644_v49, %v644_v49  ;;  %v1681_v49 = vpack.c.bf16 %v737_v37, %v737_v37 }
 0x27a   :  { %v646_v51 = vpop.f32.mrf.mxu1  ;;  %8891 = vmatprep.subr.bf16.mxu1 %v10161_v31 }
 0x27b   :  { %v820_v52 = vpack.c.bf16 %v646_v51, %v646_v51 }
 0x27c   :  { %v648_v53 = vpop.f32.mrf.mxu1  ;;  %8876 = vmatmul.mubr.bf16.vlgmr.msra.gmra.mxu0 %v802_v50  ;;  %v740_v50 = vpop.f32.mrf.mxu0 }
 0x27d   :  { %8886 = vmatpush3.bf16.xpose.msra.mxu0 %v820_v52  ;;  %8887 = vmatprep.mubr.msk.bf16.mxu0 %vm10162_vm8, %v10161_v31  ;;  %v805_v62 = vpack.c.bf16 %v648_v53, %v648_v53  ;;  %v1702_v52 = vsel %vm1700_vm9, %v1681_v49, 0  ;;  %v1682_v53 = vpack.c.bf16 %v740_v50, %v740_v50 }
 0x27e   :  { %v650_v55 = vpop.f32.mrf.mxu1  ;;  %8897 = vmatprep.subr.bf16.mxu0 %v10161_v31 }
 0x27f   :  { %v821_v56 = vpack.c.bf16 %v650_v55, %v650_v55  ;;  %v1748_v55 = vsel %vm1700_vm9, %v1682_v53, 0 }
 0x280   :  { %v654_v57 = vpop.f32.mrf.mxu1  ;;  %8882 = vmatmul.mubr.bf16.vlgmr.msra.gmra.mxu1 %v803_v54 }
 0x281   :  { %8892 = vmatpush3.bf16.xpose.msra.mxu1 %v821_v56  ;;  %8893 = vmatprep.mubr.msk.bf16.mxu1 %vm10162_vm8, %v10161_v31  ;;  %v806_v3 = vpack.c.bf16 %v654_v57, %v654_v57  ;;  %v10509_v56 = vpop.f32.mrf.mxu0 }
 0x282   :  { %v656_v59 = vpop.f32.mrf.mxu1  ;;  %8903 = vmatprep.subr.bf16.mxu1 %v10161_v31 }
 0x283   :  { %v822_v60 = vpack.c.bf16 %v656_v59, %v656_v59  ;;  %v10511_v57 = vpop.f32.mrf.mxu0 }
 0x284   :  { %v658_v61 = vpop.f32.mrf.mxu1  ;;  %8888 = vmatmul.mubr.bf16.vlgmr.msra.gmra.mxu0 %v804_v58 }
 0x285   :  { %8898 = vmatpush3.bf16.xpose.msra.mxu0 %v822_v60  ;;  %8899 = vmatprep.mubr.msk.bf16.mxu0 %vm10162_vm8, %v10161_v31  ;;  %v807_v7 = vpack.c.bf16 %v658_v61, %v658_v61  ;;  %v10513_v58 = vpop.f32.mrf.mxu0 }
 0x286   :  { %v660_v63 = vpop.f32.mrf.mxu1  ;;  %8909 = vmatprep.subr.bf16.mxu0 %v10161_v31 }
 0x287   :  { %v823_v0 = vpack.c.bf16 %v660_v63, %v660_v63  ;;  %v10515_v59 = vpop.f32.mrf.mxu0 }
 0x288   :  { %v664_v1 = vpop.f32.mrf.mxu1  ;;  %8894 = vmatmul.mubr.bf16.vlgmr.msra.gmra.mxu1 %v805_v62 }
 0x289   :  { %8904 = vmatpush3.bf16.xpose.msra.mxu1 %v823_v0  ;;  %8905 = vmatprep.mubr.msk.bf16.mxu1 %vm10162_vm8, %v10161_v31  ;;  %v808_v13 = vpack.c.bf16 %v664_v1, %v664_v1  ;;  %v10517_v60 = vpop.f32.mrf.mxu0 }
 0x28a   :  { %v666_v4 = vpop.f32.mrf.mxu1  ;;  %8915 = vmatprep.subr.bf16.mxu1 %v10161_v31 }
 0x28b   :  { %v824_v5 = vpack.c.bf16 %v666_v4, %v666_v4  ;;  %v10519_v61 = vpop.f32.mrf.mxu0 }
 0x28c   :  { %v668_v6 = vpop.f32.mrf.mxu1  ;;  %8900 = vmatmul.mubr.bf16.vlgmr.msra.gmra.mxu0 %v806_v3 }
 0x28d   :  { %8910 = vmatpush3.bf16.xpose.msra.mxu0 %v824_v5  ;;  %8911 = vmatprep.mubr.msk.bf16.mxu0 %vm10162_vm8, %v10161_v31  ;;  %v809_v19 = vpack.c.bf16 %v668_v6, %v668_v6  ;;  %v10521_v62 = vpop.f32.mrf.mxu0 }
 0x28e   :  { %v670_v8 = vpop.f32.mrf.mxu1  ;;  %8921 = vmatprep.subr.bf16.mxu0 %v10161_v31 }
 0x28f   :  { %v825_v9 = vpack.c.bf16 %v670_v8, %v670_v8  ;;  %v10523_v63 = vpop.f32.mrf.mxu0 }
 0x290   :  { %v674_v10 = vpop.f32.mrf.mxu1  ;;  %8906 = vmatmul.mubr.bf16.vlgmr.msra.gmra.mxu1 %v807_v7 }
 0x291   :  { %8916 = vmatpush3.bf16.xpose.msra.mxu1 %v825_v9  ;;  %8917 = vmatprep.mubr.msk.bf16.mxu1 %vm10162_vm8, %v10161_v31  ;;  %v810_v25 = vpack.c.bf16 %v674_v10, %v674_v10  ;;  %v10525_v0 = vpop.f32.mrf.mxu0 }
 0x292   :  { %v676_v14 = vpop.f32.mrf.mxu1  ;;  %8927 = vmatprep.subr.bf16.mxu1 %v10161_v31 }
 0x293   :  { %v826_v15 = vpack.c.bf16 %v676_v14, %v676_v14  ;;  %v10527_v1 = vpop.f32.mrf.mxu0 }
 0x294   :  { %v678_v16 = vpop.f32.mrf.mxu1  ;;  %8912 = vmatmul.mubr.bf16.vlgmr.msra.gmra.mxu0 %v808_v13 }
 0x295   :  { %8922 = vmatpush3.bf16.xpose.msra.mxu0 %v826_v15  ;;  %8923 = vmatprep.mubr.msk.bf16.mxu0 %vm10162_vm8, %v10161_v31  ;;  %v811_v33 = vpack.c.bf16 %v678_v16, %v678_v16  ;;  %v10529_v3 = vpop.f32.mrf.mxu0 }
 0x296   :  { %v680_v20 = vpop.f32.mrf.mxu1  ;;  %8933 = vmatprep.subr.bf16.mxu0 %v10161_v31 }
 0x297   :  { %v827_v21 = vpack.c.bf16 %v680_v20, %v680_v20  ;;  %v10531_v4 = vpop.f32.mrf.mxu0 }
 0x298   :  { %v684_v22 = vpop.f32.mrf.mxu1  ;;  %8918 = vmatmul.mubr.bf16.vlgmr.msra.gmra.mxu1 %v809_v19 }
 0x299   :  { %8928 = vmatpush3.bf16.xpose.msra.mxu1 %v827_v21  ;;  %8929 = vmatprep.mubr.msk.bf16.mxu1 %vm10162_vm8, %v10161_v31  ;;  %v812_v38 = vpack.c.bf16 %v684_v22, %v684_v22 }
 0x29a   :  { %v686_v26 = vpop.f32.mrf.mxu1  ;;  %8939 = vmatprep.subr.bf16.mxu1 %v10161_v31 }
 0x29b   :  { %v828_v27 = vpack.c.bf16 %v686_v26, %v686_v26 }
 0x29c   :  { %v688_v28 = vpop.f32.mrf.mxu1  ;;  %8924 = vmatmul.mubr.bf16.vlgmr.msra.gmra.mxu0 %v810_v25 }
 0x29d   :  { %8934 = vmatpush3.bf16.xpose.msra.mxu0 %v828_v27  ;;  %8935 = vmatprep.mubr.msk.bf16.mxu0 %vm10162_vm8, %v10161_v31  ;;  %v813_v45 = vpack.c.bf16 %v688_v28, %v688_v28 }
 0x29e   :  { %v690_v34 = vpop.f32.mrf.mxu1  ;;  %8945 = vmatprep.subr.bf16.mxu0 %v10161_v31 }
 0x29f   :  { %v829_v35 = vpack.c.bf16 %v690_v34, %v690_v34 }
 0x2a0   :  { %v694_v36 = vpop.f32.mrf.mxu1  ;;  %8930 = vmatmul.mubr.bf16.vlgmr.msra.gmra.mxu1 %v811_v33 }
 0x2a1   :  { %8940 = vmatpush3.bf16.xpose.msra.mxu1 %v829_v35  ;;  %8941 = vmatprep.mubr.msk.bf16.mxu1 %vm10162_vm8, %v10161_v31  ;;  %v814_v51 = vpack.c.bf16 %v694_v36, %v694_v36 }
 0x2a2   :  { %v696_v39 = vpop.f32.mrf.mxu1  ;;  %8951 = vmatprep.subr.bf16.mxu1 %v10161_v31 }
 0x2a3   :  { %v830_v41 = vpack.c.bf16 %v696_v39, %v696_v39 }
 0x2a4   :  { %v698_v42 = vpop.f32.mrf.mxu1  ;;  %8936 = vmatmul.mubr.bf16.vlgmr.msra.gmra.mxu0 %v812_v38 }
 0x2a5   :  { %8946 = vmatpush3.bf16.xpose.msra.mxu0 %v830_v41  ;;  %8947 = vmatprep.mubr.msk.bf16.mxu0 %vm10162_vm8, %v10161_v31  ;;  %v815_v54 = vpack.c.bf16 %v698_v42, %v698_v42 }
 0x2a6   :  { %v700_v46 = vpop.f32.mrf.mxu1  ;;  %8957 = vmatprep.subr.bf16.mxu0 %v10161_v31 }
 0x2a7   :  { %v831_v48 = vpack.c.bf16 %v700_v46, %v700_v46 }
 0x2a8   :  { %8942 = vmatmul.mubr.bf16.vlgmr.msra.gmra.mxu1 %v813_v45 }
 0x2a9   :  { %8952 = vmatpush3.bf16.xpose.msra.mxu1 %v831_v48  ;;  %8953 = vmatprep.mubr.msk.bf16.mxu1 %vm10162_vm8, %v10161_v31 }
 0x2aa   :  { %8963 = vmatprep.subr.bf16.mxu1 %v10161_v31 }
 0x2ac   :  { %8948 = vmatmul.mubr.bf16.vlgmr.msra.gmra.mxu0 %v814_v51 }
 0x2ad   :  { %8958 = vmatpush3.bf16.msra.mxu0 %v1702_v52  ;;  %8959 = vmatprep.mubr.msk.bf16.mxu0 %vm10162_vm8, %v10161_v31 }
 0x2ae   :  { %8969 = vmatprep.subr.bf16.mxu0 %v10161_v31 }
 0x2b0   :  { %8954 = vmatmul.mubr.bf16.vlgmr.msra.gmra.mxu1 %v815_v54 }
 0x2b1   :  { %8964 = vmatpush3.bf16.msra.mxu1 %v1748_v55  ;;  %8965 = vmatprep.mubr.msk.bf16.mxu1 %vm10162_vm8, %v10161_v31 }
 0x2b2   :  { %8975 = vmatprep.subr.bf16.mxu1 %v10161_v31 }
 0x334   :  { %v866_v5 = vpop.f32.mrf.mxu0 }
 0x335   :  { %v10533_v6 = vmul.f32 0.088388346, %v866_v5 }
 0x336   :  { %v8865_v7 = vpop.f32.mrf.mxu0 }
 0x337   :  { %v1489_v8 = vsel %vm1488_vm10, %v10533_v6, -inf }
 0x338   :  { %1490 = vmax.xlane.f32.xlu0 %v1489_v8  ;;  %v869_v9 = vpop.f32.mrf.mxu0  ;;  %v906_v10 = vpop.f32.mrf.mxu1 }
 0x339   :  { %v10537_v13 = vmul.f32 0.088388346, %v906_v10 }
 0x33a   :  { %v8866_v14 = vpop.f32.mrf.mxu0  ;;  %v8871_v15 = vpop.f32.mrf.mxu1 }
 0x33b   :  { %v1492_v16 = vsel %vm1488_vm10, %v10537_v13, -inf }
 0x33c   :  { %v946_v19 = vpop.f32.mrf.mxu0  ;;  %1493 = vmax.xlane.f32.xlu1 %v1492_v16  ;;  %v909_v20 = vpop.f32.mrf.mxu1 }
 0x33d   :  { %v10541_v21 = vmul.f32 0.088388346, %v946_v19 }
 0x33e   :  { %v8872_v22 = vpop.f32.mrf.mxu1  ;;  %v8877_v25 = vpop.f32.mrf.mxu0 }
 0x33f   :  { %v1495_v26 = vsel %vm1488_vm10, %v10541_v21, -inf }
 0x340   :  { %1496 = vmax.xlane.f32.xlu0 %v1495_v26  ;;  %v949_v27 = vpop.f32.mrf.mxu0  ;;  %v986_v28 = vpop.f32.mrf.mxu1 }
 0x341   :  { %v10545_v33 = vmul.f32 0.088388346, %v986_v28 }
 0x342   :  { %v8878_v34 = vpop.f32.mrf.mxu0  ;;  %v8883_v35 = vpop.f32.mrf.mxu1 }
 0x343   :  { %v1498_v36 = vsel %vm1488_vm10, %v10545_v33, -inf }
 0x344   :  { %v1026_v37 = vpop.f32.mrf.mxu0  ;;  %1499 = vmax.xlane.f32.xlu0 %v1498_v36  ;;  %v989_v38 = vpop.f32.mrf.mxu1 }
 0x345   :  { %v10549_v39 = vmul.f32 0.088388346, %v1026_v37 }
 0x346   :  { %v8884_v41 = vpop.f32.mrf.mxu1  ;;  %v8889_v42 = vpop.f32.mrf.mxu0 }
 0x347   :  { %v1501_v45 = vsel %vm1488_vm10, %v10549_v39, -inf }
 0x348   :  { %v1029_v46 = vpop.f32.mrf.mxu0  ;;  %1502 = vmax.xlane.f32.xlu1 %v1501_v45  ;;  %v1066_v48 = vpop.f32.mrf.mxu1 }
 0x349   :  { %v10553_v49 = vmul.f32 0.088388346, %v1066_v48 }
 0x34a   :  { %v8890_v50 = vpop.f32.mrf.mxu0  ;;  %v8895_v51 = vpop.f32.mrf.mxu1 }
 0x34b   :  { %v1504_v52 = vsel %vm1488_vm10, %v10553_v49, -inf }
 0x34c   :  { %v1106_v53 = vpop.f32.mrf.mxu0  ;;  %1505 = vmax.xlane.f32.xlu0 %v1504_v52  ;;  %v1069_v54 = vpop.f32.mrf.mxu1 }
 0x34d   :  { %v10557_v55 = vmul.f32 0.088388346, %v1106_v53 }
 0x34e   :  { %v8896_v5 = vpop.f32.mrf.mxu1  ;;  %v8901_v7 = vpop.f32.mrf.mxu0 }
 0x34f   :  { %v1507_v8 = vsel %vm1488_vm10, %v10557_v55, -inf }
 0x350   :  { %v1109_v9 = vpop.f32.mrf.mxu0  ;;  %1508 = vmax.xlane.f32.xlu1 %v1507_v8  ;;  %v1146_v10 = vpop.f32.mrf.mxu1 }
 0x351   :  { %v10561_v14 = vmul.f32 0.088388346, %v1146_v10 }
 0x352   :  { %v8902_v15 = vpop.f32.mrf.mxu0  ;;  %v8907_v16 = vpop.f32.mrf.mxu1 }
 0x353   :  { %v1510_v19 = vsel %vm1488_vm10, %v10561_v14, -inf }
 0x354   :  { %v1186_v20 = vpop.f32.mrf.mxu0  ;;  %1511 = vmax.xlane.f32.xlu0 %v1510_v19  ;;  %v1149_v22 = vpop.f32.mrf.mxu1 }
 0x355   :  { %v10565_v25 = vmul.f32 0.088388346, %v1186_v20 }
 0x356   :  { %v8908_v26 = vpop.f32.mrf.mxu1  ;;  %v8913_v27 = vpop.f32.mrf.mxu0 }
 0x357   :  { %v1513_v28 = vsel %vm1488_vm10, %v10565_v25, -inf }
 0x358   :  { %v1189_v34 = vpop.f32.mrf.mxu0  ;;  %1514 = vmax.xlane.f32.xlu1 %v1513_v28  ;;  %v1226_v35 = vpop.f32.mrf.mxu1 }
 0x359   :  { %v10569_v36 = vmul.f32 0.088388346, %v1226_v35 }
 0x35a   :  { %v8914_v37 = vpop.f32.mrf.mxu0  ;;  %v8919_v38 = vpop.f32.mrf.mxu1 }
 0x35b   :  { %v1516_v41 = vsel %vm1488_vm10, %v10569_v36, -inf }
 0x35c   :  { %v1266_v42 = vpop.f32.mrf.mxu0  ;;  %1517 = vmax.xlane.f32.xlu0 %v1516_v41  ;;  %v1229_v45 = vpop.f32.mrf.mxu1 }
 0x35d   :  { %v10573_v46 = vmul.f32 0.088388346, %v1266_v42 }
 0x35e   :  { %v8920_v48 = vpop.f32.mrf.mxu1  ;;  %v8925_v50 = vpop.f32.mrf.mxu0 }
 0x35f   :  { %v1519_v51 = vsel %vm1488_vm10, %v10573_v46, -inf }
 0x360   :  { %v1269_v52 = vpop.f32.mrf.mxu0  ;;  %1520 = vmax.xlane.f32.xlu1 %v1519_v51  ;;  %v1306_v53 = vpop.f32.mrf.mxu1 }
 0x361   :  { %v10577_v54 = vmul.f32 0.088388346, %v1306_v53 }
 0x362   :  { %v8926_v5 = vpop.f32.mrf.mxu0  ;;  %v8931_v7 = vpop.f32.mrf.mxu1 }
 0x363   :  { %v1522_v8 = vsel %vm1488_vm10, %v10577_v54, -inf }
 0x364   :  { %v1346_v9 = vpop.f32.mrf.mxu0  ;;  %1523 = vmax.xlane.f32.xlu0 %v1522_v8  ;;  %v1309_v10 = vpop.f32.mrf.mxu1 }
 0x365   :  { %v10581_v15 = vmul.f32 0.088388346, %v1346_v9 }
 0x366   :  { %v8932_v16 = vpop.f32.mrf.mxu1  ;;  %v8937_v19 = vpop.f32.mrf.mxu0 }
 0x367   :  { %v1525_v20 = vsel %vm1488_vm10, %v10581_v15, -inf }
 0x368   :  { %v1349_v22 = vpop.f32.mrf.mxu0  ;;  %1526 = vmax.xlane.f32.xlu1 %v1525_v20  ;;  %v1386_v26 = vpop.f32.mrf.mxu1 }
 0x369   :  { %v10585_v27 = vmul.f32 0.088388346, %v1386_v26 }
 0x36a   :  { %v8938_v28 = vpop.f32.mrf.mxu0  ;;  %v8943_v34 = vpop.f32.mrf.mxu1 }
 0x36b   :  { %v1528_v35 = vsel %vm1488_vm10, %v10585_v27, -inf }
 0x36c   :  { %v1426_v37 = vpop.f32.mrf.mxu0  ;;  %1529 = vmax.xlane.f32.xlu0 %v1528_v35  ;;  %v1389_v38 = vpop.f32.mrf.mxu1 }
 0x36d   :  { %v10589_v41 = vmul.f32 0.088388346, %v1426_v37 }
 0x36e   :  { %v8944_v42 = vpop.f32.mrf.mxu1  ;;  %v8949_v45 = vpop.f32.mrf.mxu0 }
 0x36f   :  { %v1531_v48 = vsel %vm1488_vm10, %v10589_v41, -inf }
 0x370   :  { %v1429_v50 = vpop.f32.mrf.mxu0  ;;  %1532 = vmax.xlane.f32.xlu1 %v1531_v48  ;;  %v1466_v51 = vpop.f32.mrf.mxu1 }
 0x371   :  { %v10593_v52 = vmul.f32 0.088388346, %v1466_v51 }
 0x372   :  { %v8950_v53 = vpop.f32.mrf.mxu0  ;;  %v8955_v5 = vpop.f32.mrf.mxu1 }
 0x373   :  { %v1534_v7 = vsel %vm1488_vm10, %v10593_v52, -inf }
 0x374   :  { %1535 = vmax.xlane.f32.xlu0 %v1534_v7  ;;  %v1469_v8 = vpop.f32.mrf.mxu1 }
 0x376   :  { %v8956_v9 = vpop.f32.mrf.mxu1 }
 0x3c1   :  { %v1491_v10 = vpop.xlane.xlu0 %1490 }
 0x3c2   :  { %v1537_v16 = vsub.f32 %v10533_v6, %v1491_v10 }
 0x3c4   :  { %v1553_v19 = vmul.f32 1.442695, %v1537_v16 }
 0x3c5   :  { %v1494_v20 = vpop.xlane.xlu1 %1493 }
 0x3c6   :  { %9763 = vpow2.f32 %v1553_v19  ;;  %v1538_v22 = vsub.f32 %v10537_v13, %v1494_v20 }
 0x3c8   :  { %v1555_v26 = vmul.f32 1.442695, %v1538_v22 }
 0x3c9   :  { %v1497_v28 = vpop.xlane.xlu0 %1496 }
 0x3ca   :  { %9765 = vpow2.f32 %v1555_v26  ;;  %v1539_v34 = vsub.f32 %v10541_v21, %v1497_v28 }
 0x3cc   :  { %v1557_v35 = vmul.f32 1.442695, %v1539_v34 }
 0x3cd   :  { %v1500_v37 = vpop.xlane.xlu0 %1499 }
 0x3ce   :  { %9767 = vpow2.f32 %v1557_v35  ;;  %v1540_v38 = vsub.f32 %v10545_v33, %v1500_v37 }
 0x3d0   :  { %v1559_v42 = vmul.f32 1.442695, %v1540_v38 }
 0x3d1   :  { %v1503_v45 = vpop.xlane.xlu1 %1502 }
 0x3d2   :  { %9769 = vpow2.f32 %v1559_v42  ;;  %v1541_v6 = vsub.f32 %v10549_v39, %v1503_v45 }
 0x3d3   :  { %v10602_v48 = vpop.eup %9763 }
 0x3d4   :  { %v1561_v50 = vmul.f32 1.442695, %v1541_v6  ;;  %v1585_v13 = vsel %vm1488_vm10, %v10602_v48, 0.0 }
 0x3d5   :  { %1586 = vadd.xlane.f32.xlu1 %v1585_v13  ;;  %v1506_v51 = vpop.xlane.xlu0 %1505 }
 0x3d6   :  { %9771 = vpow2.f32 %v1561_v50  ;;  %v1542_v21 = vsub.f32 %v10553_v49, %v1506_v51 }
 0x3d7   :  { %v10607_v53 = vpop.eup %9765 }
 0x3d8   :  { %v1563_v5 = vmul.f32 1.442695, %v1542_v21  ;;  %v1588_v33 = vsel %vm1488_vm10, %v10607_v53, 0.0 }
 0x3d9   :  { %v1509_v7 = vpop.xlane.xlu1 %1508  ;;  %1589 = vadd.xlane.f32.xlu0 %v1588_v33 }
 0x3da   :  { %9773 = vpow2.f32 %v1563_v5  ;;  %v1543_v39 = vsub.f32 %v10557_v55, %v1509_v7 }
 0x3db   :  { %v10612_v8 = vpop.eup %9767 }
 0x3dc   :  { %v1565_v9 = vmul.f32 1.442695, %v1543_v39  ;;  %v1591_v10 = vsel %vm1488_vm10, %v10612_v8, 0.0 }
 0x3dd   :  { %1592 = vadd.xlane.f32.xlu1 %v1591_v10  ;;  %v1512_v16 = vpop.xlane.xlu0 %1511 }
 0x3de   :  { %9775 = vpow2.f32 %v1565_v9  ;;  %v1544_v49 = vsub.f32 %v10561_v14, %v1512_v16 }
 0x3df   :  { %v10617_v19 = vpop.eup %9769 }
 0x3e0   :  { %v1567_v20 = vmul.f32 1.442695, %v1544_v49  ;;  %v1594_v22 = vsel %vm1488_vm10, %v10617_v19, 0.0 }
 0x3e1   :  { %v1515_v26 = vpop.xlane.xlu1 %1514  ;;  %1595 = vadd.xlane.f32.xlu0 %v1594_v22 }
 0x3e2   :  { %9777 = vpow2.f32 %v1567_v20  ;;  %v1545_v55 = vsub.f32 %v10565_v25, %v1515_v26 }
 0x3e3   :  { %v10622_v28 = vpop.eup %9771 }
 0x3e4   :  { %v1569_v34 = vmul.f32 1.442695, %v1545_v55  ;;  %v1597_v35 = vsel %vm1488_vm10, %v10622_v28, 0.0 }
 0x3e5   :  { %1598 = vadd.xlane.f32.xlu1 %v1597_v35  ;;  %v1518_v37 = vpop.xlane.xlu0 %1517 }
 0x3e6   :  { %9779 = vpow2.f32 %v1569_v34  ;;  %v1546_v14 = vsub.f32 %v10569_v36, %v1518_v37 }
 0x3e7   :  { %v10627_v38 = vpop.eup %9773 }
 0x3e8   :  { %v1571_v42 = vmul.f32 1.442695, %v1546_v14  ;;  %v1600_v45 = vsel %vm1488_vm10, %v10627_v38, 0.0 }
 0x3e9   :  { %v1521_v6 = vpop.xlane.xlu1 %1520  ;;  %1601 = vadd.xlane.f32.xlu0 %v1600_v45 }
 0x3ea   :  { %9781 = vpow2.f32 %v1571_v42  ;;  %v1547_v25 = vsub.f32 %v10573_v46, %v1521_v6 }
 0x3eb   :  { %v10632_v50 = vpop.eup %9775 }
 0x3ec   :  { %v1573_v13 = vmul.f32 1.442695, %v1547_v25  ;;  %v1603_v51 = vsel %vm1488_vm10, %v10632_v50, 0.0 }
 0x3ed   :  { %1604 = vadd.xlane.f32.xlu1 %v1603_v51  ;;  %v1524_v21 = vpop.xlane.xlu0 %1523 }
 0x3ee   :  { %9783 = vpow2.f32 %v1573_v13  ;;  %v1548_v36 = vsub.f32 %v10577_v54, %v1524_v21 }
 0x3ef   :  { %v10637_v5 = vpop.eup %9777 }
 0x3f0   :  { %v1575_v33 = vmul.f32 1.442695, %v1548_v36  ;;  %v1606_v7 = vsel %vm1488_vm10, %v10637_v5, 0.0 }
 0x3f1   :  { %v1527_v39 = vpop.xlane.xlu1 %1526  ;;  %1607 = vadd.xlane.f32.xlu0 %v1606_v7 }
 0x3f2   :  { %9785 = vpow2.f32 %v1575_v33  ;;  %v1549_v46 = vsub.f32 %v10581_v15, %v1527_v39 }
 0x3f3   :  { %v10642_v9 = vpop.eup %9779 }
 0x3f4   :  { %v1577_v10 = vmul.f32 1.442695, %v1549_v46  ;;  %v1609_v16 = vsel %vm1488_vm10, %v10642_v9, 0.0 }
 0x3f5   :  { %1610 = vadd.xlane.f32.xlu1 %v1609_v16  ;;  %v1530_v49 = vpop.xlane.xlu0 %1529 }
 0x3f6   :  { %9787 = vpow2.f32 %v1577_v10  ;;  %v1550_v54 = vsub.f32 %v10585_v27, %v1530_v49  ;;  %v1683_v49 = vpack.c.bf16 %v10485_v32, %v10485_v32 }
 0x3f7   :  { %v10647_v20 = vpop.eup %9781 }
 0x3f8   :  { %v1579_v22 = vmul.f32 1.442695, %v1550_v54  ;;  %v1612_v26 = vsel %vm1488_vm10, %v10647_v20, 0.0 }
 0x3f9   :  { %v1533_v55 = vpop.xlane.xlu1 %1532  ;;  %1613 = vadd.xlane.f32.xlu0 %v1612_v26 }
 0x3fa   :  { %9789 = vpow2.f32 %v1579_v22  ;;  %v1551_v15 = vsub.f32 %v10589_v41, %v1533_v55 }
 0x3fb   :  { %v10652_v34 = vpop.eup %9783 }
 0x3fc   :  { %v1581_v35 = vmul.f32 1.442695, %v1551_v15  ;;  %v1615_v37 = vsel %vm1488_vm10, %v10652_v34, 0.0  ;;  %v1794_v15 = vsel %vm1700_vm9, %v1683_v49, 0 }
 0x3fd   :  { %1616 = vadd.xlane.f32.xlu1 %v1615_v37  ;;  %v1536_v14 = vpop.xlane.xlu0 %1535 }
 0x3fe   :  { %9791 = vpow2.f32 %v1581_v35  ;;  %v1552_v27 = vsub.f32 %v10593_v52, %v1536_v14  ;;  %v1684_v35 = vpack.c.bf16 %v10493_v44, %v10493_v44 }
 0x3ff   :  { %v10657_v42 = vpop.eup %9785 }
 0x400   :  { %v1583_v45 = vmul.f32 1.442695, %v1552_v27  ;;  %v1618_v6 = vsel %vm1488_vm10, %v10657_v42, 0.0  ;;  %v1840_v27 = vsel %vm1700_vm9, %v1684_v35, 0 }
 0x401   :  { %1619 = vadd.xlane.f32.xlu0 %v1618_v6 }
 0x402   :  { %9793 = vpow2.f32 %v1583_v45  ;;  %v1685_v45 = vpack.c.bf16 %v10511_v57, %v10511_v57 }
 0x403   :  { %v10661_v41 = vpop.eup %9787 }
 0x404   :  { %v1621_v25 = vsel %vm1488_vm10, %v10661_v41, 0.0 }
 0x405   :  { %1622 = vadd.xlane.f32.xlu1 %v1621_v25 }
 0x407   :  { %v10665_v13 = vpop.eup %9789 }
 0x408   :  { %v1624_v51 = vsel %vm1488_vm10, %v10665_v13, 0.0 }
 0x409   :  { %1625 = vadd.xlane.f32.xlu0 %v1624_v51  ;;  %v1886_v51 = vsel %vm1700_vm9, %v1685_v45, 0  ;;  %v1691_v45 = vpack.c.bf16 %v10517_v60, %v10517_v60  ;;  %v1692_v60 = vpack.c.bf16 %v10521_v62, %v10521_v62 }
 0x40b   :  { %v10669_v52 = vpop.eup %9791 }
 0x40c   :  { %v1627_v21 = vsel %vm1488_vm10, %v10669_v52, 0.0 }
 0x40d   :  { %1628 = vadd.xlane.f32.xlu1 %v1627_v21  ;;  %v1686_v21 = vpack.c.bf16 %v10515_v59, %v10515_v59 }
 0x40f   :  { %v10673_v36 = vpop.eup %9793  ;;  %v1932_v59 = vsel %vm1700_vm9, %v1686_v21, 0 }
 0x410   :  { %v1630_v33 = vsel %vm1488_vm10, %v10673_v36, 0.0 }
 0x411   :  { %1631 = vadd.xlane.f32.xlu0 %v1630_v33 }
 0x45e   :  { %v1587_v7 = vpop.xlane.xlu1 %1586 }
 0x45f   :  { %9795 = vrcp.f32 %v1587_v7 }
 0x462   :  { %v1590_v39 = vpop.xlane.xlu0 %1589 }
 0x463   :  { %9797 = vrcp.f32 %v1590_v39  ;;  %v1687_v39 = vpack.c.bf16 %v10509_v56, %v10509_v56  ;;  %v1688_v56 = vpack.c.bf16 %v10513_v58, %v10513_v58 }
 0x465   :  { %v1978_v49 = vsel %vm1700_vm9, %v1687_v39, 0 }
 0x466   :  { %v1593_v46 = vpop.xlane.xlu1 %1592 }
 0x467   :  { %9799 = vrcp.f32 %v1593_v46 }
 0x46a   :  { %v1596_v10 = vpop.xlane.xlu0 %1595 }
 0x46b   :  { %9801 = vrcp.f32 %v1596_v10 }
 0x46c   :  { %v9796_v16 = vpop.eup %9795 }
 0x46d   :  { %v1649_v54 = vmul.f32 %v9796_v16, %v10602_v48 }
 0x46e   :  { %v1599_v22 = vpop.xlane.xlu1 %1598 }
 0x46f   :  { %9803 = vrcp.f32 %v1599_v22  ;;  %v1665_v26 = vpack.c.bf16 %v1649_v54, %v1649_v54 }
 0x470   :  { %v9798_v55 = vpop.eup %9797 }
 0x471   :  { %8960 = vmatmul.mubr.msk.bf16.vlgmr.msra.gmra.mxu0 %vm1488_vm10, %v1665_v26  ;;  %v1650_v37 = vmul.f32 %v9798_v55, %v10607_v53  ;;  %v2024_v55 = vsel %vm1700_vm9, %v1688_v56, 0  ;;  %v9611_v56 = vld [vmem:[#allocation6 + $0x38] sm:$0xff]  }
 0x472   :  { %8970 = vmatpush3.bf16.msra.mxu0 %v1794_v15  ;;  %v1602_v14 = vpop.xlane.xlu0 %1601  ;;  %8971 = vmatprep.mubr.msk.bf16.mxu0 %vm10162_vm8, %v10161_v31  ;;  %v1689_v15 = vpack.c.bf16 %v10519_v61, %v10519_v61 }
 0x473   :  { %9805 = vrcp.f32 %v1602_v14  ;;  %v1666_v32 = vpack.c.bf16 %v1650_v37, %v1650_v37  ;;  %8981 = vmatprep.subr.bf16.mxu0 %v10161_v31 }
 0x474   :  { %v9800_v48 = vpop.eup %9799  ;;  %v2070_v14 = vsel %vm1700_vm9, %v1689_v15, 0 }
 0x475   :  { %8966 = vmatmul.mubr.msk.bf16.vlgmr.msra.gmra.mxu1 %vm1488_vm10, %v1666_v32  ;;  %v1651_v44 = vmul.f32 %v9800_v48, %v10612_v8  ;;  %v1690_v32 = vpack.c.bf16 %v10523_v63, %v10523_v63 }
 0x476   :  { %8976 = vmatpush3.bf16.msra.mxu1 %v1840_v27  ;;  %v1605_v53 = vpop.xlane.xlu1 %1604  ;;  %8977 = vmatprep.mubr.msk.bf16.mxu1 %vm10162_vm8, %v10161_v31 }
 0x477   :  { %9807 = vrcp.f32 %v1605_v53  ;;  %v1667_v6 = vpack.c.bf16 %v1651_v44, %v1651_v44  ;;  %8987 = vmatprep.subr.bf16.mxu1 %v10161_v31  ;;  %v2116_v63 = vsel %vm1700_vm9, %v1690_v32, 0  ;;  %v9616_v32 = vld [vmem:[#allocation6 + $0x10] sm:$0xff]  }
 0x478   :  { %v9802_v25 = vpop.eup %9801 }
 0x479   :  { %8972 = vmatmul.mubr.msk.bf16.vlgmr.msra.gmra.mxu0 %vm1488_vm10, %v1667_v6  ;;  %v1652_v57 = vmul.f32 %v9802_v25, %v10617_v19  ;;  %v2162_v25 = vsel %vm1700_vm9, %v1691_v45, 0 }
 0x47a   :  { %8982 = vmatpush3.bf16.msra.mxu0 %v1886_v51  ;;  %v1608_v8 = vpop.xlane.xlu0 %1607  ;;  %8983 = vmatprep.mubr.msk.bf16.mxu0 %vm10162_vm8, %v10161_v31 }
 0x47b   :  { %9809 = vrcp.f32 %v1608_v8  ;;  %v1668_v33 = vpack.c.bf16 %v1652_v57, %v1652_v57  ;;  %8993 = vmatprep.subr.bf16.mxu0 %v10161_v31  ;;  %v2208_v8 = vsel %vm1700_vm9, %v1692_v60, 0 }
 0x47c   :  { %v9804_v7 = vpop.eup %9803 }
 0x47d   :  { %8978 = vmatmul.mubr.msk.bf16.vlgmr.msra.gmra.mxu1 %vm1488_vm10, %v1668_v33  ;;  %v1653_v46 = vmul.f32 %v9804_v7, %v10622_v28  ;;  %v1693_v33 = vpack.c.bf16 %v10527_v1, %v10527_v1 }
 0x47e   :  { %8988 = vmatpush3.bf16.msra.mxu1 %v1932_v59  ;;  %v1611_v19 = vpop.xlane.xlu1 %1610  ;;  %8989 = vmatprep.mubr.msk.bf16.mxu1 %vm10162_vm8, %v10161_v31 }
 0x47f   :  { %9811 = vrcp.f32 %v1611_v19  ;;  %v1669_v10 = vpack.c.bf16 %v1653_v46, %v1653_v46  ;;  %8999 = vmatprep.subr.bf16.mxu1 %v10161_v31  ;;  %v2254_v59 = vsel %vm1700_vm9, %v1693_v33, 0  ;;  %v1694_v46 = vpack.c.bf16 %v10531_v4, %v10531_v4 }
 0x480   :  { %v9806_v16 = vpop.eup %9805 }
 0x481   :  { %8984 = vmatmul.mubr.msk.bf16.vlgmr.msra.gmra.mxu0 %vm1488_vm10, %v1669_v10  ;;  %v1654_v54 = vmul.f32 %v9806_v16, %v10627_v38  ;;  %v1695_v16 = vpack.c.bf16 %v10525_v0, %v10525_v0  ;;  %v2300_v4 = vsel %vm1700_vm9, %v1694_v46, 0  ;;  %v1696_v0 = vpack.c.bf16 %v10529_v3, %v10529_v3 }
 0x482   :  { %8994 = vmatpush3.bf16.msra.mxu0 %v1978_v49  ;;  %v1614_v28 = vpop.xlane.xlu0 %1613  ;;  %8995 = vmatprep.mubr.msk.bf16.mxu0 %vm10162_vm8, %v10161_v31 }
 0x483   :  { %9813 = vrcp.f32 %v1614_v28  ;;  %v1670_v22 = vpack.c.bf16 %v1654_v54, %v1654_v54  ;;  %9005 = vmatprep.subr.bf16.mxu0 %v10161_v31  ;;  %v2346_v28 = vsel %vm1700_vm9, %v1695_v16, 0 }
 0x484   :  { %v9808_v26 = vpop.eup %9807 }
 0x485   :  { %8990 = vmatmul.mubr.msk.bf16.vlgmr.msra.gmra.mxu1 %vm1488_vm10, %v1670_v22  ;;  %v1655_v58 = vmul.f32 %v9808_v26, %v10632_v50 }
 0x486   :  { %9000 = vmatpush3.bf16.msra.mxu1 %v2024_v55  ;;  %v1617_v38 = vpop.xlane.xlu1 %1616  ;;  %9001 = vmatprep.mubr.msk.bf16.mxu1 %vm10162_vm8, %v10161_v31  ;;  %v2392_v55 = vsel %vm1700_vm9, %v1696_v0, 0 }
 0x487   :  { %9815 = vrcp.f32 %v1617_v38  ;;  %v1671_v35 = vpack.c.bf16 %v1655_v58, %v1655_v58  ;;  %9011 = vmatprep.subr.bf16.mxu1 %v10161_v31  ;;  %v9612_v58 = vld [vmem:[#allocation6 + $0x30] sm:$0xff]  }
 0x488   :  { %v9810_v37 = vpop.eup %9809 }
 0x489   :  { %8996 = vmatmul.mubr.msk.bf16.vlgmr.msra.gmra.mxu0 %vm1488_vm10, %v1671_v35  ;;  %v1656_v61 = vmul.f32 %v9810_v37, %v10637_v5  ;;  %v9613_v37 = vld [vmem:[#allocation6 + $0x28] sm:$0xff]  }
 0x48a   :  { %9006 = vmatpush3.bf16.msra.mxu0 %v2070_v14  ;;  %v1620_v50 = vpop.xlane.xlu0 %1619  ;;  %9007 = vmatprep.mubr.msk.bf16.mxu0 %vm10162_vm8, %v10161_v31  ;;  %v9615_v14 = vld [vmem:[#allocation6 + $0x18] sm:$0xff]  }
 0x48b   :  { %9817 = vrcp.f32 %v1620_v50  ;;  %v1672_v48 = vpack.c.bf16 %v1656_v61, %v1656_v61  ;;  %9017 = vmatprep.subr.bf16.mxu0 %v10161_v31  ;;  %v9618_v61 = vld [vmem:[#allocation6] sm:$0xff]  }
 0x48c   :  { %v9812_v27 = vpop.eup %9811 }
 0x48d   :  { %9002 = vmatmul.mubr.msk.bf16.vlgmr.msra.gmra.mxu1 %vm1488_vm10, %v1672_v48  ;;  %v1657_v44 = vmul.f32 %v9812_v27, %v10642_v9 }
 0x48e   :  { %9012 = vmatpush3.bf16.msra.mxu1 %v2116_v63  ;;  %v1623_v5 = vpop.xlane.xlu1 %1622  ;;  %9013 = vmatprep.mubr.msk.bf16.mxu1 %vm10162_vm8, %v10161_v31 }
 0x48f   :  { %9819 = vrcp.f32 %v1623_v5  ;;  %v1673_v53 = vpack.c.bf16 %v1657_v44, %v1657_v44  ;;  %9023 = vmatprep.subr.bf16.mxu1 %v10161_v31 }
 0x490   :  { %v9814_v6 = vpop.eup %9813 }
 0x491   :  { %9008 = vmatmul.mubr.msk.bf16.vlgmr.msra.gmra.mxu0 %vm1488_vm10, %v1673_v53  ;;  %v1658_v51 = vmul.f32 %v9814_v6, %v10647_v20 }
 0x492   :  { %9018 = vmatpush3.bf16.msra.mxu0 %v2162_v25  ;;  %v1626_v9 = vpop.xlane.xlu0 %1625  ;;  %9019 = vmatprep.mubr.msk.bf16.mxu0 %vm10162_vm8, %v10161_v31 }
 0x493   :  { %9821 = vrcp.f32 %v1626_v9  ;;  %v1674_v21 = vpack.c.bf16 %v1658_v51, %v1658_v51  ;;  %9029 = vmatprep.subr.bf16.mxu0 %v10161_v31 }
 0x494   :  { %v9816_v57 = vpop.eup %9815 }
 0x495   :  { %9014 = vmatmul.mubr.msk.bf16.vlgmr.msra.gmra.mxu1 %vm1488_vm10, %v1674_v21  ;;  %v1659_v62 = vmul.f32 %v9816_v57, %v10652_v34 }
 0x496   :  { %9024 = vmatpush3.bf16.msra.mxu1 %v2208_v8  ;;  %v1629_v20 = vpop.xlane.xlu1 %1628  ;;  %9025 = vmatprep.mubr.msk.bf16.mxu1 %vm10162_vm8, %v10161_v31 }
 0x497   :  { %9823 = vrcp.f32 %v1629_v20  ;;  %v1675_v7 = vpack.c.bf16 %v1659_v62, %v1659_v62  ;;  %9035 = vmatprep.subr.bf16.mxu1 %v10161_v31 }
 0x498   :  { %v9818_v39 = vpop.eup %9817 }
 0x499   :  { %9020 = vmatmul.mubr.msk.bf16.vlgmr.msra.gmra.mxu0 %vm1488_vm10, %v1675_v7  ;;  %v1660_v1 = vmul.f32 %v9818_v39, %v10657_v42 }
 0x49a   :  { %9030 = vmatpush3.bf16.msra.mxu0 %v2254_v59  ;;  %v1632_v34 = vpop.xlane.xlu0 %1631  ;;  %9031 = vmatprep.mubr.msk.bf16.mxu0 %vm10162_vm8, %v10161_v31 }
 0x49b   :  { %9825 = vrcp.f32 %v1632_v34  ;;  %v1676_v19 = vpack.c.bf16 %v1660_v1, %v1660_v1  ;;  %9041 = vmatprep.subr.bf16.mxu0 %v10161_v31 }
 0x49c   :  { %v9820_v10 = vpop.eup %9819 }
 0x49d   :  { %9026 = vmatmul.mubr.msk.bf16.vlgmr.msra.gmra.mxu1 %vm1488_vm10, %v1676_v19  ;;  %v1661_v49 = vmul.f32 %v9820_v10, %v10661_v41 }
 0x49e   :  { %9036 = vmatpush3.bf16.msra.mxu1 %v2300_v4  ;;  %9037 = vmatprep.mubr.msk.bf16.mxu1 %vm10162_vm8, %v10161_v31 }
 0x49f   :  { %v1677_v42 = vpack.c.bf16 %v1661_v49, %v1661_v49  ;;  %9047 = vmatprep.subr.bf16.mxu1 %v10161_v31 }
 0x4a0   :  { %v9822_v54 = vpop.eup %9821 }
 0x4a1   :  { %9032 = vmatmul.mubr.msk.bf16.vlgmr.msra.gmra.mxu0 %vm1488_vm10, %v1677_v42  ;;  %v1662_v22 = vmul.f32 %v9822_v54, %v10665_v13 }
 0x4a2   :  { %9042 = vmatpush3.bf16.msra.mxu0 %v2346_v28  ;;  %9043 = vmatprep.mubr.msk.bf16.mxu0 %vm10162_vm8, %v10161_v31 }
 0x4a3   :  { %v1678_v41 = vpack.c.bf16 %v1662_v22, %v1662_v22  ;;  %9053 = vmatprep.subr.bf16.mxu0 %v9611_v56 }
 0x4a4   :  { %v9824_v26 = vpop.eup %9823 }
 0x4a5   :  { %9038 = vmatmul.mubr.msk.bf16.vlgmr.msra.gmra.mxu1 %vm1488_vm10, %v1678_v41  ;;  %v1663_v15 = vmul.f32 %v9824_v26, %v10669_v52  ;;  %v9614_v52 = vld [vmem:[#allocation6 + $0x20] sm:$0xff]  }
 0x4a6   :  { %9048 = vmatpush3.bf16.msra.mxu1 %v2392_v55  ;;  %9049 = vmatprep.mubr.msk.bf16.mxu1 %vm10162_vm8, %v10161_v31 }
 0x4a7   :  { %v1679_v3 = vpack.c.bf16 %v1663_v15, %v1663_v15 }
 0x4a8   :  { %v9826_v13 = vpop.eup %9825 }
 0x4a9   :  { %9044 = vmatmul.mubr.msk.bf16.vlgmr.msra.gmra.mxu0 %vm1488_vm10, %v1679_v3  ;;  %v1664_v38 = vmul.f32 %v9826_v13, %v10673_v36  ;;  %v9617_v36 = vld [vmem:[#allocation6 + $0x8] sm:$0xff]  }
 0x4aa   :  { %9054 = vmatpush3.bf16.msra.mxu0 %v9611_v56 }
 0x4ab   :  { %v1680_v35 = vpack.c.bf16 %v1664_v38, %v1664_v38  ;;  %9055 = vmatprep.subr.bf16.mxu0 %v9612_v58 }
 0x4ad   :  { %9050 = vmatmul.mubr.msk.bf16.vlgmr.msra.gmra.mxu1 %vm1488_vm10, %v1680_v35 }
 0x4ae   :  { %9056 = vmatpush3.bf16.msra.mxu0 %v9612_v58  ;;  %3006 = vmatprep.mubr.bf16.mxu1 %v10159_v2 }
 0x4af   :  { %9057 = vmatprep.subr.bf16.mxu0 %v9613_v37 }
 0x4b2   :  { %9058 = vmatpush3.bf16.msra.mxu0 %v9613_v37 }
 0x4b3   :  { %9059 = vmatprep.subr.bf16.mxu0 %v9614_v52 }
 0x4b6   :  { %9060 = vmatpush3.bf16.msra.mxu0 %v9614_v52 }
 0x4b7   :  { %9061 = vmatprep.subr.bf16.mxu0 %v9615_v14 }
 0x4ba   :  { %9062 = vmatpush3.bf16.msra.mxu0 %v9615_v14 }
 0x4bb   :  { %9063 = vmatprep.subr.bf16.mxu0 %v9616_v32 }
 0x4be   :  { %9064 = vmatpush3.bf16.msra.mxu0 %v9616_v32 }
 0x4bf   :  { %9065 = vmatprep.subr.bf16.mxu0 %v9617_v36 }
 0x4c2   :  { %9066 = vmatpush3.bf16.msra.mxu0 %v9617_v36 }
 0x4c3   :  { %9067 = vmatprep.subr.bf16.mxu0 %v9618_v61 }
 0x4c6   :  { %9068 = vmatpush3.bf16.msra.mxu0 %v9618_v61 }
 0x531   :  { %v1738_v50 = vpop.f32.mrf.mxu0 }
 0x533   :  { %v8961_v48 = vpop.f32.mrf.mxu0 }
 0x535   :  { %v1741_v27 = vpop.f32.mrf.mxu0  ;;  %v1784_v45 = vpop.f32.mrf.mxu1 }
 0x536   :  { %v2434_v63 = vpack.c.bf16 %v1784_v45, %v1738_v50 }
 0x537   :  { %v8962_v44 = vpop.f32.mrf.mxu0  ;;  %v8967_v5 = vpop.f32.mrf.mxu1 }
 0x538   :  { %9069 = vmatprep.mubr.bf16.mxu0 %v2434_v63 }
 0x539   :  { %v1787_v53 = vpop.f32.mrf.mxu1  ;;  %v1830_v6 = vpop.f32.mrf.mxu0 }
 0x53b   :  { %v8968_v25 = vpop.f32.mrf.mxu1  ;;  %v8973_v60 = vpop.f32.mrf.mxu0 }
 0x53d   :  { %v1833_v51 = vpop.f32.mrf.mxu0  ;;  %v1876_v9 = vpop.f32.mrf.mxu1 }
 0x53e   :  { %v2435_v21 = vpack.c.bf16 %v1876_v9, %v1830_v6 }
 0x53f   :  { %v8974_v57 = vpop.f32.mrf.mxu0  ;;  %v8979_v8 = vpop.f32.mrf.mxu1 }
 0x540   :  { %9070 = vmatmul.mubr.bf16.vlgmr.msra.gmra.mxu0 %v2435_v21 }
 0x541   :  { %v1879_v33 = vpop.f32.mrf.mxu1  ;;  %v1922_v62 = vpop.f32.mrf.mxu0 }
 0x543   :  { %v8980_v20 = vpop.f32.mrf.mxu1  ;;  %v8985_v7 = vpop.f32.mrf.mxu0 }
 0x545   :  { %v1925_v39 = vpop.f32.mrf.mxu0  ;;  %v1968_v59 = vpop.f32.mrf.mxu1 }
 0x546   :  { %v2436_v46 = vpack.c.bf16 %v1968_v59, %v1922_v62 }
 0x547   :  { %v8986_v1 = vpop.f32.mrf.mxu0  ;;  %v8991_v34 = vpop.f32.mrf.mxu1 }
 0x548   :  { %9073 = vmatprep.mubr.bf16.mxu0 %v2436_v46  ;;  %v2603_v46 = vunpack.c.l.bf16 %v10408_v11 }
 0x549   :  { %v1971_v19 = vpop.f32.mrf.mxu1  ;;  %v2014_v10 = vpop.f32.mrf.mxu0 }
 0x54b   :  { %v8992_v16 = vpop.f32.mrf.mxu1  ;;  %v8997_v4 = vpop.f32.mrf.mxu0 }
 0x54c   :  { %v2604_v16 = vunpack.c.h.bf16 %v10408_v11 }
 0x54d   :  { %v2017_v49 = vpop.f32.mrf.mxu0  ;;  %v2060_v42 = vpop.f32.mrf.mxu1 }
 0x54e   :  { %v2437_v56 = vpack.c.bf16 %v2060_v42, %v2014_v10  ;;  %v2605_v10 = vunpack.c.l.bf16 %v10410_v12 }
 0x54f   :  { %v8998_v54 = vpop.f32.mrf.mxu0  ;;  %v9003_v28 = vpop.f32.mrf.mxu1 }
 0x550   :  { %9074 = vmatmul.mubr.bf16.gmra.mxu0 %v2437_v56  ;;  %v2606_v56 = vunpack.c.h.bf16 %v10410_v12  ;;  %v2608_v12 = vunpack.c.h.bf16 %v10416_v17 }
 0x551   :  { %v2063_v0 = vpop.f32.mrf.mxu1  ;;  %v2106_v22 = vpop.f32.mrf.mxu0 }
 0x552   :  { %v2607_v0 = vunpack.c.l.bf16 %v10416_v17 }
 0x553   :  { %v9004_v41 = vpop.f32.mrf.mxu1  ;;  %v9009_v26 = vpop.f32.mrf.mxu0 }
 0x554   :  { %v2609_v26 = vunpack.c.l.bf16 %v10418_v18 }
 0x555   :  { %v2109_v55 = vpop.f32.mrf.mxu0  ;;  %v2152_v15 = vpop.f32.mrf.mxu1 }
 0x556   :  { %v2438_v3 = vpack.c.bf16 %v2152_v15, %v2106_v22 }
 0x557   :  { %v9010_v58 = vpop.f32.mrf.mxu0  ;;  %v9015_v13 = vpop.f32.mrf.mxu1 }
 0x558   :  { %9077 = vmatprep.mubr.bf16.mxu0 %v2438_v3  ;;  %v2610_v58 = vunpack.c.h.bf16 %v10418_v18  ;;  %v2612_v18 = vunpack.c.h.bf16 %v10424_v23 }
 0x559   :  { %v2155_v38 = vpop.f32.mrf.mxu1  ;;  %v2198_v35 = vpop.f32.mrf.mxu0 }
 0x55b   :  { %v9016_v37 = vpop.f32.mrf.mxu1  ;;  %v9021_v52 = vpop.f32.mrf.mxu0 }
 0x55d   :  { %v2201_v14 = vpop.f32.mrf.mxu0  ;;  %v2244_v32 = vpop.f32.mrf.mxu1 }
 0x55e   :  { %v2439_v36 = vpack.c.bf16 %v2244_v32, %v2198_v35  ;;  %v2611_v35 = vunpack.c.l.bf16 %v10424_v23  ;;  %v2613_v14 = vunpack.c.l.bf16 %v10426_v24 }
 0x55f   :  { %v9022_v61 = vpop.f32.mrf.mxu0  ;;  %v9027_v50 = vpop.f32.mrf.mxu1 }
 0x560   :  { %9078 = vmatmul.mubr.bf16.gmra.mxu0 %v2439_v36  ;;  %v2614_v50 = vunpack.c.h.bf16 %v10426_v24  ;;  %v2616_v24 = vunpack.c.h.bf16 %v10432_v29 }
 0x561   :  { %v2247_v48 = vpop.f32.mrf.mxu1  ;;  %v2290_v27 = vpop.f32.mrf.mxu0 }
 0x563   :  { %v9028_v45 = vpop.f32.mrf.mxu1  ;;  %v9033_v63 = vpop.f32.mrf.mxu0 }
 0x564   :  { %v2615_v45 = vunpack.c.l.bf16 %v10432_v29  ;;  %v9621_v29 = vld [vmem:[%s12625_s7 + $0x74] ss:$8 sps:$4 sm:$0xff]  }
 0x565   :  { %v2293_v44 = vpop.f32.mrf.mxu0  ;;  %v2336_v5 = vpop.f32.mrf.mxu1  ;;  %2974 = vmatprep.subr.bf16.mxu1 %v9621_v29  ;;  %v9639_v29 = vld [vmem:[%s12625_s7 + $0x14] ss:$8 sps:$4 sm:$0xff]  }
 0x566   :  { %v2440_v53 = vpack.c.bf16 %v2336_v5, %v2290_v27  ;;  %v2617_v5 = vunpack.c.l.bf16 %v10434_v30 }
 0x567   :  { %v9034_v6 = vpop.f32.mrf.mxu0  ;;  %v9039_v25 = vpop.f32.mrf.mxu1 }
 0x568   :  { %9081 = vmatprep.mubr.bf16.mxu0 %v2440_v53 }
 0x569   :  { %v2339_v60 = vpop.f32.mrf.mxu1  ;;  %v2382_v51 = vpop.f32.mrf.mxu0 }
 0x56a   :  { %v2618_v60 = vunpack.c.h.bf16 %v10434_v30 }
 0x56b   :  { %v9040_v9 = vpop.f32.mrf.mxu1  ;;  %v9045_v21 = vpop.f32.mrf.mxu0 }
 0x56c   :  { %v9619_v9 = vld [vmem:[%s12625_s7 + $0x70] ss:$8 sps:$4 sm:$0xff]  }
 0x56d   :  { %v2385_v57 = vpop.f32.mrf.mxu0  ;;  %v2428_v8 = vpop.f32.mrf.mxu1  ;;  %2975 = vmatpush1.bf16.msra.mxu1 %v9619_v9 }
 0x56e   :  { %v2441_v33 = vpack.c.bf16 %v2428_v8, %v2382_v51 }
 0x56f   :  { %v9046_v62 = vpop.f32.mrf.mxu0  ;;  %v9051_v20 = vpop.f32.mrf.mxu1 }
 0x570   :  { %9082 = vmatmul.mubr.bf16.gmra.mxu0 %v2441_v33 }
 0x571   :  { %v2431_v7 = vpop.f32.mrf.mxu1 }
 0x573   :  { %v9052_v39 = vpop.f32.mrf.mxu1 }
 0x600   :  { %v9071_v59 = vpop.f32.mrf.mxu0 }
 0x601   :  { %v10798_v49 = vadd.f32 %v9071_v59, %v2605_v10 }
 0x602   :  { %v2540_v1 = vpop.f32.mrf.mxu0 }
 0x603   :  { %v10793_v34 = vadd.f32 %v2603_v46, %v2540_v1 }
 0x604   :  { %v9072_v19 = vpop.f32.mrf.mxu0 }
 0x605   :  { %2637 = vadd.xlane.f32.xlu1 %v10793_v34  ;;  %v10805_v54 = vadd.f32 %v9072_v19, %v2606_v56 }
 0x606   :  { %v2543_v4 = vpop.f32.mrf.mxu0 }
 0x607   :  { %v10800_v42 = vadd.f32 %v2604_v16, %v2543_v4 }
 0x609   :  { %2641 = vadd.xlane.f32.xlu1 %v10798_v49  ;;  %2639 = vadd.xlane.f32.xlu0 %v10800_v42 }
 0x60d   :  { %2643 = vadd.xlane.f32.xlu0 %v10805_v54 }
 0x610   :  { %v9075_v28 = vpop.f32.mrf.mxu0 }
 0x611   :  { %v10814_v15 = vadd.f32 %v9075_v28, %v2609_v26  ;;  %v9622_v28 = vld [vmem:[%s12625_s7 + $0x60] ss:$8 sps:$4 sm:$0xff]  }
 0x612   :  { %v2556_v22 = vpop.f32.mrf.mxu0 }
 0x613   :  { %v10809_v11 = vadd.f32 %v2607_v0, %v2556_v22 }
 0x614   :  { %v9076_v41 = vpop.f32.mrf.mxu0 }
 0x615   :  { %2645 = vadd.xlane.f32.xlu1 %v10809_v11  ;;  %v10821_v13 = vadd.f32 %v9076_v41, %v2610_v58  ;;  %v9625_v58 = vld [vmem:[%s12625_s7 + $0x50] ss:$8 sps:$4 sm:$0xff]  }
 0x616   :  { %v2559_v55 = vpop.f32.mrf.mxu0 }
 0x617   :  { %v10816_v3 = vadd.f32 %v2608_v12, %v2559_v55  ;;  %v9627_v12 = vld [vmem:[%s12625_s7 + $0x54] ss:$8 sps:$4 sm:$0xff]  }
 0x619   :  { %2649 = vadd.xlane.f32.xlu1 %v10814_v15  ;;  %2647 = vadd.xlane.f32.xlu0 %v10816_v3 }
 0x61d   :  { %2651 = vadd.xlane.f32.xlu0 %v10821_v13 }
 0x620   :  { %v9079_v38 = vpop.f32.mrf.mxu0 }
 0x621   :  { %v10830_v36 = vadd.f32 %v9079_v38, %v2613_v14  ;;  %v9628_v14 = vld [vmem:[%s12625_s7 + $0x40] ss:$8 sps:$4 sm:$0xff]  }
 0x622   :  { %v2572_v37 = vpop.f32.mrf.mxu0 }
 0x623   :  { %v10825_v17 = vadd.f32 %v2611_v35, %v2572_v37 }
 0x624   :  { %v9080_v52 = vpop.f32.mrf.mxu0 }
 0x625   :  { %2653 = vadd.xlane.f32.xlu1 %v10825_v17  ;;  %v10837_v48 = vadd.f32 %v9080_v52, %v2614_v50  ;;  %v9633_v50 = vld [vmem:[%s12625_s7 + $0x34] ss:$8 sps:$4 sm:$0xff]  }
 0x626   :  { %v2575_v32 = vpop.f32.mrf.mxu0 }
 0x627   :  { %v10832_v61 = vadd.f32 %v2612_v18, %v2575_v32  ;;  %v9631_v32 = vld [vmem:[%s12625_s7 + $0x30] ss:$8 sps:$4 sm:$0xff]  }
 0x629   :  { %2657 = vadd.xlane.f32.xlu1 %v10830_v36  ;;  %2655 = vadd.xlane.f32.xlu0 %v10832_v61 }
 0x62d   :  { %2659 = vadd.xlane.f32.xlu0 %v10837_v48 }
 0x630   :  { %v9083_v27 = vpop.f32.mrf.mxu0 }
 0x631   :  { %v10846_v6 = vadd.f32 %v9083_v27, %v2617_v5 }
 0x632   :  { %v2588_v63 = vpop.f32.mrf.mxu0 }
 0x633   :  { %v10841_v23 = vadd.f32 %v2615_v45, %v2588_v63  ;;  %v9636_v45 = vld [vmem:[%s12625_s7 + $0x24] ss:$8 sps:$4 sm:$0xff]  }
 0x634   :  { %v9084_v44 = vpop.f32.mrf.mxu0 }
 0x635   :  { %2661 = vadd.xlane.f32.xlu1 %v10841_v23  ;;  %v10853_v51 = vadd.f32 %v9084_v44, %v2618_v60  ;;  %v9634_v44 = vld [vmem:[%s12625_s7 + $0x20] ss:$8 sps:$4 sm:$0xff]  }
 0x636   :  { %v2591_v53 = vpop.f32.mrf.mxu0 }
 0x637   :  { %v10848_v25 = vadd.f32 %v2616_v24, %v2591_v53 }
 0x639   :  { %2665 = vadd.xlane.f32.xlu1 %v10846_v6  ;;  %2663 = vadd.xlane.f32.xlu0 %v10848_v25 }
 0x63d   :  { %2667 = vadd.xlane.f32.xlu0 %v10853_v51 }
 0x68e   :  { %v2638_v21 = vpop.xlane.xlu1 %2637 }
 0x68f   :  { %v2670_v30 = vmul.f32 0.0078125, %v2638_v21 }
 0x691   :  { %v10863_v57 = vsub.f32 %v10793_v34, %v2670_v30  ;;  %v9637_v30 = vld [vmem:[%s12625_s7 + $0x10] ss:$8 sps:$4 sm:$0xff]  }
 0x692   :  { %v2642_v8 = vpop.xlane.xlu1 %2641  ;;  %v2640_v33 = vpop.xlane.xlu0 %2639 }
 0x693   :  { %v2672_v62 = vmul.f32 0.0078125, %v2642_v8  ;;  %v2671_v20 = vmul.f32 0.0078125, %v2640_v33  ;;  %v2702_v7 = vmul.f32 %v10863_v57, %v10863_v57 }
 0x695   :  { %2718 = vadd.xlane.f32.xlu1 %v2702_v7  ;;  %v10868_v39 = vsub.f32 %v10798_v49, %v2672_v62  ;;  %v10871_v59 = vsub.f32 %v10800_v42, %v2671_v20  ;;  %v9624_v42 = vld [vmem:[%s12625_s7 + $0x64] ss:$8 sps:$4 sm:$0xff]   ;;  %v9640_v7 = vld [vmem:[%s12625_s7] ss:$8 sps:$4 sm:$0xff]  }
 0x696   :  { %v2644_v46 = vpop.xlane.xlu0 %2643  ;;  %2976 = vmatprep.subr.bf16.mxu1 %v9624_v42 }
 0x697   :  { %v2673_v1 = vmul.f32 0.0078125, %v2644_v46  ;;  %v2704_v34 = vmul.f32 %v10868_v39, %v10868_v39  ;;  %v2703_v19 = vmul.f32 %v10871_v59, %v10871_v59  ;;  %2977 = vmatpush1.bf16.msra.mxu1 %v9622_v28 }
 0x698   :  { %2978 = vmatprep.subr.bf16.mxu1 %v9627_v12  ;;  %v3903_v12 = vld [vmem:[%s12654_s30 + $0x10] sm:$0xff] }
 0x699   :  { %2722 = vadd.xlane.f32.xlu1 %v2704_v34  ;;  %2720 = vadd.xlane.f32.xlu0 %v2703_v19  ;;  %v10878_v10 = vsub.f32 %v10805_v54, %v2673_v1 }
 0x69b   :  { %v2705_v16 = vmul.f32 %v10878_v10, %v10878_v10  ;;  %2979 = vmatpush1.bf16.msra.mxu1 %v9625_v58  ;;  %v3904_v58 = vld [vmem:[%s12654_s30 + $0x18] sm:$0xff] }
 0x69d   :  { %2724 = vadd.xlane.f32.xlu0 %v2705_v16 }
 0x69e   :  { %v2646_v4 = vpop.xlane.xlu1 %2645 }
 0x69f   :  { %v2674_v49 = vmul.f32 0.0078125, %v2646_v4 }
 0x6a1   :  { %v10886_v56 = vsub.f32 %v10809_v11, %v2674_v49 }
 0x6a2   :  { %v2650_v0 = vpop.xlane.xlu1 %2649  ;;  %v2648_v54 = vpop.xlane.xlu0 %2647 }
 0x6a3   :  { %v2676_v22 = vmul.f32 0.0078125, %v2650_v0  ;;  %v2675_v41 = vmul.f32 0.0078125, %v2648_v54  ;;  %v2706_v26 = vmul.f32 %v10886_v56, %v10886_v56 }
 0x6a5   :  { %2726 = vadd.xlane.f32.xlu1 %v2706_v26  ;;  %v10897_v11 = vsub.f32 %v10814_v15, %v2676_v22  ;;  %v10900_v55 = vsub.f32 %v10816_v3, %v2675_v41  ;;  %v9630_v15 = vld [vmem:[%s12625_s7 + $0x44] ss:$8 sps:$4 sm:$0xff]  }
 0x6a6   :  { %v2652_v38 = vpop.xlane.xlu0 %2651  ;;  %2980 = vmatprep.subr.bf16.mxu1 %v9630_v15  ;;  %v3910_v15 = vld [vmem:[%s12654_s30 + $0x48] sm:$0xff] }
 0x6a7   :  { %v2677_v35 = vmul.f32 0.0078125, %v2652_v38  ;;  %v2708_v37 = vmul.f32 %v10897_v11, %v10897_v11  ;;  %v2707_v52 = vmul.f32 %v10900_v55, %v10900_v55  ;;  %2981 = vmatpush1.bf16.msra.mxu1 %v9628_v14  ;;  %v3906_v38 = vld [vmem:[%s12654_s30 + $0x28] sm:$0xff]  ;;  %v3909_v14 = vld [vmem:[%s12654_s30 + $0x40] sm:$0xff] }
 0x6a8   :  { %2982 = vmatprep.subr.bf16.mxu1 %v9633_v50  ;;  %v3913_v50 = vld [vmem:[%s12654_s30 + $0x60] sm:$0xff] }
 0x6a9   :  { %2730 = vadd.xlane.f32.xlu1 %v2708_v37  ;;  %2728 = vadd.xlane.f32.xlu0 %v2707_v52  ;;  %v10913_v3 = vsub.f32 %v10821_v13, %v2677_v35  ;;  %v3905_v35 = vld [vmem:[%s12654_s30 + $0x20] sm:$0xff]  ;;  %v3908_v37 = vld [vmem:[%s12654_s30 + $0x38] sm:$0xff]  ;;  %v3907_v52 = vld [vmem:[%s12654_s30 + $0x30] sm:$0xff] }
 0x6ab   :  { %v2709_v18 = vmul.f32 %v10913_v3, %v10913_v3  ;;  %2983 = vmatpush1.bf16.msra.mxu1 %v9631_v32  ;;  %v3911_v32 = vld [vmem:[%s12654_s30 + $0x50] sm:$0xff] }
 0x6ac   :  { %2984 = vmatprep.subr.bf16.mxu1 %v9636_v45  ;;  %v9645_v45 = vld [vmem:[#allocation8 + $0x70] sm:$0xff]  }
 0x6ad   :  { %2732 = vadd.xlane.f32.xlu0 %v2709_v18  ;;  %v3912_v18 = vld [vmem:[%s12654_s30 + $0x58] sm:$0xff] }
 0x6ae   :  { %v2654_v13 = vpop.xlane.xlu1 %2653 }
 0x6af   :  { %v2678_v27 = vmul.f32 0.0078125, %v2654_v13  ;;  %2985 = vmatpush1.bf16.msra.mxu1 %v9634_v44  ;;  %v9643_v13 = vld [vmem:[#allocation8 + $0x78] sm:$0xff]   ;;  %v9646_v44 = vld [vmem:[#allocation8 + $0x30] sm:$0xff]  }
 0x6b0   :  { %2986 = vmatprep.subr.bf16.mxu1 %v9639_v29  ;;  %8467 = vmatprep.subr.bf16.mxu0 %v9643_v13  ;;  %v9652_v29 = vld [vmem:[#allocation8 + $0x18] sm:$0xff]  }
 0x6b1   :  { %v10930_v63 = vsub.f32 %v10825_v17, %v2678_v27  ;;  %v9644_v27 = vld [vmem:[#allocation8 + $0x38] sm:$0xff]  }
 0x6b2   :  { %v2658_v5 = vpop.xlane.xlu1 %2657  ;;  %v2656_v24 = vpop.xlane.xlu0 %2655  ;;  %8468 = vmatpush3.bf16.msra.mxu0 %v9644_v27 }
 0x6b3   :  { %v2680_v53 = vmul.f32 0.0078125, %v2658_v5  ;;  %v2679_v60 = vmul.f32 0.0078125, %v2656_v24  ;;  %v2710_v9 = vmul.f32 %v10930_v63, %v10930_v63  ;;  %2987 = vmatpush1.bf16.msra.mxu1 %v9637_v30  ;;  %8469 = vmatprep.subr.bf16.mxu0 %v9645_v45  ;;  %v9647_v5 = vld [vmem:[#allocation8 + $0x68] sm:$0xff]  }
 0x6b4   :  { %v9648_v24 = vld [vmem:[#allocation8 + $0x28] sm:$0xff]  }
 0x6b5   :  { %2734 = vadd.xlane.f32.xlu1 %v2710_v9  ;;  %v10941_v17 = vsub.f32 %v10830_v36, %v2680_v53  ;;  %v10944_v21 = vsub.f32 %v10832_v61, %v2679_v60  ;;  %v9642_v36 = vld [vmem:[%s12625_s7 + $0x4] ss:$8 sps:$4 sm:$0xff]   ;;  %v9651_v9 = vld [vmem:[#allocation8 + $0x58] sm:$0xff]  }
 0x6b6   :  { %v2660_v8 = vpop.xlane.xlu0 %2659  ;;  %2988 = vmatprep.subr.bf16.mxu1 %v9642_v36  ;;  %8470 = vmatpush3.bf16.msra.mxu0 %v9646_v44  ;;  %v9649_v53 = vld [vmem:[#allocation8 + $0x60] sm:$0xff]  }
 0x6b7   :  { %v2681_v33 = vmul.f32 0.0078125, %v2660_v8  ;;  %v2712_v62 = vmul.f32 %v10941_v17, %v10941_v17  ;;  %v2711_v20 = vmul.f32 %v10944_v21, %v10944_v21  ;;  %2989 = vmatpush1.bf16.msra.mxu1 %v9640_v7  ;;  %8471 = vmatprep.subr.bf16.mxu0 %v9647_v5  ;;  %v9650_v60 = vld [vmem:[#allocation8 + $0x20] sm:$0xff]  }
 0x6b8   :  { %9085 = vmatprep.subr.bf16.mxu1 %v10161_v31 }
 0x6b9   :  { %2738 = vadd.xlane.f32.xlu1 %v2712_v62  ;;  %2736 = vadd.xlane.f32.xlu0 %v2711_v20  ;;  %v10957_v61 = vsub.f32 %v10837_v48, %v2681_v33 }
 0x6ba   :  { %8472 = vmatpush3.bf16.msra.mxu0 %v9648_v24 }
 0x6bb   :  { %v2713_v46 = vmul.f32 %v10957_v61, %v10957_v61  ;;  %8473 = vmatprep.subr.bf16.mxu0 %v9649_v53 }
 0x6bd   :  { %2740 = vadd.xlane.f32.xlu0 %v2713_v46 }
 0x6be   :  { %v2662_v1 = vpop.xlane.xlu1 %2661  ;;  %8474 = vmatpush3.bf16.msra.mxu0 %v9650_v60 }
 0x6bf   :  { %v2682_v34 = vmul.f32 0.0078125, %v2662_v1  ;;  %8475 = vmatprep.subr.bf16.mxu0 %v9651_v9 }
 0x6c1   :  { %v10966_v19 = vsub.f32 %v10841_v23, %v2682_v34 }
 0x6c2   :  { %v2666_v16 = vpop.xlane.xlu1 %2665  ;;  %v2664_v48 = vpop.xlane.xlu0 %2663  ;;  %8476 = vmatpush3.bf16.msra.mxu0 %v9652_v29 }
 0x6c3   :  { %v2684_v4 = vmul.f32 0.0078125, %v2666_v16  ;;  %v2683_v49 = vmul.f32 0.0078125, %v2664_v48  ;;  %v2714_v42 = vmul.f32 %v10966_v19, %v10966_v19 }
 0x6c5   :  { %2742 = vadd.xlane.f32.xlu1 %v2714_v42  ;;  %v10971_v28 = vsub.f32 %v10846_v6, %v2684_v4  ;;  %v10974_v0 = vsub.f32 %v10848_v25, %v2683_v49  ;;  %v3901_v25 = vld [vmem:[%s12654_s30] sm:$0xff] }
 0x6c6   :  { %v2668_v54 = vpop.xlane.xlu0 %2667 }
 0x6c7   :  { %v2685_v22 = vmul.f32 0.0078125, %v2668_v54  ;;  %v2716_v23 = vmul.f32 %v10971_v28, %v10971_v28  ;;  %v2715_v41 = vmul.f32 %v10974_v0, %v10974_v0 }
 0x6c9   :  { %2746 = vadd.xlane.f32.xlu1 %v2716_v23  ;;  %2744 = vadd.xlane.f32.xlu0 %v2715_v41  ;;  %v10981_v26 = vsub.f32 %v10853_v51, %v2685_v22  ;;  %v3902_v51 = vld [vmem:[%s12654_s30 + $0x8] sm:$0xff] }
 0x6cb   :  { %v2717_v6 = vmul.f32 %v10981_v26, %v10981_v26 }
 0x6cd   :  { %2748 = vadd.xlane.f32.xlu0 %v2717_v6 }
 0x6da   :  { %3918 = vperm.xlu1 %9570, %v3901_v25  }
 0x6de   :  { %3924 = vperm.xlu1 %9570, %v3903_v12   ;;  %v11028_v12 = vld [vmem:[%s12655_s2] ss:$0 sm:$0xff] }
 0x6e2   :  { %3927 = vperm.xlu1 %9570, %v3904_v58  }
 0x6e3   :  { %3921 = vperm.xlu0 %9569, %v3902_v51  }
 0x6e6   :  { %3933 = vperm.xlu1 %9570, %v3906_v38  }
 0x6e7   :  { %3930 = vperm.xlu0 %9569, %v3905_v35  }
 0x6ea   :  { %3939 = vperm.xlu1 %9570, %v3908_v37  }
 0x6eb   :  { %3936 = vperm.xlu0 %9569, %v3907_v52  }
 0x6ee   :  { %3945 = vperm.xlu1 %9570, %v3910_v15  }
 0x6ef   :  { %3942 = vperm.xlu0 %9569, %v3909_v14  }
 0x6f2   :  { %3951 = vperm.xlu1 %9570, %v3912_v18  }
 0x6f3   :  { %3948 = vperm.xlu0 %9569, %v3911_v32  }
 0x6f6   :  { %3954 = vperm.xlu1 %9570, %v3913_v50  }
 0x71e   :  { %v2719_v30 = vpop.xlane.xlu1 %2718 }
 0x71f   :  { %v2750_v8 = vmul.f32 0.0078125, %v2719_v30 }
 0x721   :  { %v2766_v33 = vadd.f32 1e-05, %v2750_v8 }
 0x722   :  { %v2723_v62 = vpop.xlane.xlu1 %2722  ;;  %v2721_v20 = vpop.xlane.xlu0 %2720 }
 0x723   :  { %9827 = vrsqrt.f32 %v2766_v33  ;;  %v2752_v36 = vmul.f32 0.0078125, %v2723_v62  ;;  %v2751_v7 = vmul.f32 0.0078125, %v2721_v20 }
 0x725   :  { %v2767_v46 = vadd.f32 1e-05, %v2751_v7  ;;  %v2768_v1 = vadd.f32 1e-05, %v2752_v36 }
 0x726   :  { %v2725_v34 = vpop.xlane.xlu0 %2724 }
 0x727   :  { %v2753_v16 = vmul.f32 0.0078125, %v2725_v34  ;;  %9829 = vrsqrt.f32 %v2767_v46 }
 0x728   :  { %9831 = vrsqrt.f32 %v2768_v1 }
 0x729   :  { %v2769_v48 = vadd.f32 1e-05, %v2753_v16 }
 0x72b   :  { %9833 = vrsqrt.f32 %v2769_v48 }
 0x72e   :  { %v2727_v4 = vpop.xlane.xlu1 %2726 }
 0x72f   :  { %v2754_v49 = vmul.f32 0.0078125, %v2727_v4 }
 0x730   :  { %v9828_v42 = vpop.eup %9827 }
 0x731   :  { %v2770_v54 = vadd.f32 1e-05, %v2754_v49  ;;  %v2798_v41 = vmul.f32 %v9828_v42, %v10863_v57  ;;  %v11035_v57 = vld [vmem:[%s12624_s6] ss:$0 sm:$0xff] }
 0x732   :  { %v2731_v22 = vpop.xlane.xlu1 %2730  ;;  %v2729_v23 = vpop.xlane.xlu0 %2728 }
 0x733   :  { %9835 = vrsqrt.f32 %v2770_v54  ;;  %v2756_v6 = vmul.f32 0.0078125, %v2731_v22  ;;  %v2755_v25 = vmul.f32 0.0078125, %v2729_v23  ;;  %v2820_v52 = vmul.f32 %v11028_v12, %v2798_v41 }
 0x734   :  { %v9830_v58 = vpop.eup %9829 }
 0x735   :  { %v2771_v51 = vadd.f32 1e-05, %v2755_v25  ;;  %v2772_v38 = vadd.f32 1e-05, %v2756_v6  ;;  %v2799_v37 = vmul.f32 %v9830_v58, %v10871_v59  ;;  %v9832_v15 = vpop.eup %9831  ;;  %v11040_v27 = vadd.f32 %v11035_v57, %v2820_v52 }
 0x736   :  { %v2733_v35 = vpop.xlane.xlu0 %2732  ;;  %v2800_v45 = vmul.f32 %v9832_v15, %v10868_v39 }
 0x737   :  { %v2757_v14 = vmul.f32 0.0078125, %v2733_v35  ;;  %9837 = vrsqrt.f32 %v2771_v51  ;;  %v2821_v32 = vmul.f32 %v11028_v12, %v2799_v37 }
 0x738   :  { %v9834_v18 = vpop.eup %9833  ;;  %9839 = vrsqrt.f32 %v2772_v38  ;;  %v2822_v53 = vmul.f32 %v11028_v12, %v2800_v45 }
 0x739   :  { %v2773_v50 = vadd.f32 1e-05, %v2757_v14  ;;  %v2801_v13 = vmul.f32 %v9834_v18, %v10878_v10  ;;  %v11043_v59 = vadd.f32 %v11035_v57, %v2821_v32 }
 0x73a   :  { %v11055_v8 = vadd.f32 %v11035_v57, %v2822_v53 }
 0x73b   :  { %9841 = vrsqrt.f32 %v2773_v50  ;;  %v2858_v44 = vpack.c.bf16 %v11043_v59, %v11040_v27  ;;  %v2823_v5 = vmul.f32 %v11028_v12, %v2801_v13 }
 0x73d   :  { %3007 = vmatmul.mubr.bf16.vlgmr.msra.gmra.mxu1 %v2858_v44  ;;  %v11052_v9 = vadd.f32 %v11035_v57, %v2823_v5 }
 0x73e   :  { %v2735_v24 = vpop.xlane.xlu1 %2734  ;;  %3016 = vmatprep.mubr.bf16.mxu1 %v10159_v2 }
 0x73f   :  { %v2758_v10 = vmul.f32 0.0078125, %v2735_v24  ;;  %v2859_v36 = vpack.c.bf16 %v11052_v9, %v11055_v8 }
 0x740   :  { %v9836_v60 = vpop.eup %9835 }
 0x741   :  { %v2774_v29 = vadd.f32 1e-05, %v2758_v10  ;;  %v2802_v33 = vmul.f32 %v9836_v60, %v10886_v56 }
 0x742   :  { %v2739_v30 = vpop.xlane.xlu1 %2738  ;;  %v2737_v39 = vpop.xlane.xlu0 %2736 }
 0x743   :  { %9843 = vrsqrt.f32 %v2774_v29  ;;  %v2760_v62 = vmul.f32 0.0078125, %v2739_v30  ;;  %v2759_v20 = vmul.f32 0.0078125, %v2737_v39  ;;  %v2824_v48 = vmul.f32 %v11028_v12, %v2802_v33 }
 0x744   :  { %v9838_v7 = vpop.eup %9837 }
 0x745   :  { %v2775_v46 = vadd.f32 1e-05, %v2759_v20  ;;  %v2776_v1 = vadd.f32 1e-05, %v2760_v62  ;;  %3017 = vmatmul.mubr.bf16.gmra.mxu1 %v2859_v36  ;;  %v2803_v16 = vmul.f32 %v9838_v7, %v10900_v55  ;;  %v9840_v4 = vpop.eup %9839  ;;  %v11066_v23 = vadd.f32 %v11035_v57, %v2824_v48 }
 0x746   :  { %v2741_v34 = vpop.xlane.xlu0 %2740  ;;  %3026 = vmatprep.mubr.bf16.mxu1 %v10159_v2  ;;  %v2804_v55 = vmul.f32 %v9840_v4, %v10897_v11 }
 0x747   :  { %v2761_v49 = vmul.f32 0.0078125, %v2741_v34  ;;  %9845 = vrsqrt.f32 %v2775_v46  ;;  %v2825_v42 = vmul.f32 %v11028_v12, %v2803_v16 }
 0x748   :  { %v9842_v56 = vpop.eup %9841  ;;  %9847 = vrsqrt.f32 %v2776_v1  ;;  %v2826_v51 = vmul.f32 %v11028_v12, %v2804_v55 }
 0x749   :  { %v2777_v54 = vadd.f32 1e-05, %v2761_v49  ;;  %v2805_v22 = vmul.f32 %v9842_v56, %v10913_v3  ;;  %v11069_v41 = vadd.f32 %v11035_v57, %v2825_v42 }
 0x74a   :  { %v11081_v15 = vadd.f32 %v11035_v57, %v2826_v51 }
 0x74b   :  { %9849 = vrsqrt.f32 %v2777_v54  ;;  %v2860_v6 = vpack.c.bf16 %v11069_v41, %v11066_v23  ;;  %v2827_v25 = vmul.f32 %v11028_v12, %v2805_v22 }
 0x74d   :  { %3027 = vmatmul.mubr.bf16.gmra.mxu1 %v2860_v6  ;;  %v11078_v35 = vadd.f32 %v11035_v57, %v2827_v25 }
 0x74e   :  { %v2743_v58 = vpop.xlane.xlu1 %2742  ;;  %3036 = vmatprep.mubr.bf16.mxu1 %v10159_v2 }
 0x74f   :  { %v2762_v3 = vmul.f32 0.0078125, %v2743_v58  ;;  %v2861_v50 = vpack.c.bf16 %v11078_v35, %v11081_v15 }
 0x750   :  { %v9844_v38 = vpop.eup %9843 }
 0x751   :  { %v2778_v37 = vadd.f32 1e-05, %v2762_v3  ;;  %v2806_v14 = vmul.f32 %v9844_v38, %v10930_v63  ;;  %v9654_v3 = vld [vmem:[#allocation8 + $0x10] sm:$0xff]   ;;  %v9656_v38 = vld [vmem:[#allocation8 + $0x8] sm:$0xff]  }
 0x752   :  { %v2747_v52 = vpop.xlane.xlu1 %2746  ;;  %v2745_v11 = vpop.xlane.xlu0 %2744 }
 0x753   :  { %9851 = vrsqrt.f32 %v2778_v37  ;;  %v2764_v18 = vmul.f32 0.0078125, %v2747_v52  ;;  %v2763_v32 = vmul.f32 0.0078125, %v2745_v11  ;;  %v2828_v53 = vmul.f32 %v11028_v12, %v2806_v14  ;;  %v9657_v37 = vld [vmem:[#allocation8 + $0x40] sm:$0xff]  }
 0x754   :  { %v9846_v13 = vpop.eup %9845  ;;  %v9658_v52 = vld [vmem:[#allocation8] sm:$0xff]   ;;  %v11143_v11 = vshrl.u32 %v171_v40, 7 }
 0x755   :  { %v2779_v45 = vadd.f32 1e-05, %v2763_v32  ;;  %v2780_v44 = vadd.f32 1e-05, %v2764_v18  ;;  %3037 = vmatmul.mubr.bf16.gmra.mxu1 %v2861_v50  ;;  %v2807_v24 = vmul.f32 %v9846_v13, %v10944_v21  ;;  %v9848_v10 = vpop.eup %9847  ;;  %v11092_v33 = vadd.f32 %v11035_v57, %v2828_v53  ;;  %v2882_v32 = vld [vmem:[%s12626_s8] sm:$0x3] }
 0x756   :  { %v2749_v5 = vpop.xlane.xlu0 %2748  ;;  %3046 = vmatprep.mubr.bf16.mxu1 %v10159_v2  ;;  %v2808_v21 = vmul.f32 %v9848_v10, %v10941_v17  ;;  %v2890_v14 = vsub.s32 1, %v11143_v11  ;;  %v2886_v18 = vsub.s32 0, %v11143_v11 }
 0x757   :  { %v2765_v60 = vmul.f32 0.0078125, %v2749_v5  ;;  %9853 = vrsqrt.f32 %v2779_v45  ;;  %v2829_v29 = vmul.f32 %v11028_v12, %v2807_v24 }
 0x758   :  { %v9850_v63 = vpop.eup %9849  ;;  %9855 = vrsqrt.f32 %v2780_v44  ;;  %v2830_v7 = vmul.f32 %v11028_v12, %v2808_v21  ;;  %v11152_v13 = vrot.slane %v2882_v32, %v2890_v14  ;;  %v11156_v45 = vrot.slane %v2882_v32, %v2886_v18 }
 0x759   :  { %v2781_v30 = vadd.f32 1e-05, %v2765_v60  ;;  %v2809_v39 = vmul.f32 %v9850_v63, %v10957_v61  ;;  %v11095_v62 = vadd.f32 %v11035_v57, %v2829_v29 }
 0x75a   :  { %v11107_v1 = vadd.f32 %v11035_v57, %v2830_v7 }
 0x75b   :  { %9857 = vrsqrt.f32 %v2781_v30  ;;  %v2862_v20 = vpack.c.bf16 %v11095_v62, %v11092_v33  ;;  %v2831_v36 = vmul.f32 %v11028_v12, %v2809_v39 }
 0x75d   :  { %3047 = vmatmul.mubr.bf16.gmra.mxu1 %v2862_v20  ;;  %v11104_v46 = vadd.f32 %v11035_v57, %v2831_v36 }
 0x75e   :  { %3056 = vmatprep.mubr.bf16.mxu1 %v10159_v2 }
 0x75f   :  { %v2863_v34 = vpack.c.bf16 %v11104_v46, %v11107_v1 }
 0x760   :  { %v9852_v61 = vpop.eup %9851 }
 0x761   :  { %v2810_v17 = vmul.f32 %v9852_v61, %v10966_v19 }
 0x763   :  { %v2832_v4 = vmul.f32 %v11028_v12, %v2810_v17  ;;  %v9660_v17 = vld [vmem:[%s12653_s27 + $0x30] sm:$0xff]  }
 0x764   :  { %v9854_v16 = vpop.eup %9853 }
 0x765   :  { %3057 = vmatmul.mubr.bf16.gmra.mxu1 %v2863_v34  ;;  %v2811_v48 = vmul.f32 %v9854_v16, %v10974_v0  ;;  %v9856_v49 = vpop.eup %9855  ;;  %v11118_v22 = vadd.f32 %v11035_v57, %v2832_v4 }
 0x766   :  { %3066 = vmatprep.mubr.bf16.mxu1 %v10159_v2  ;;  %v2812_v55 = vmul.f32 %v9856_v49, %v10971_v28  ;;  %v9653_v28 = vld [vmem:[#allocation8 + $0x50] sm:$0xff]  }
 0x767   :  { %v2833_v42 = vmul.f32 %v11028_v12, %v2811_v48  ;;  %8477 = vmatprep.subr.bf16.mxu0 %v9653_v28 }
 0x768   :  { %v9858_v56 = vpop.eup %9857  ;;  %v2834_v25 = vmul.f32 %v11028_v12, %v2812_v55  ;;  %8478 = vmatpush3.bf16.msra.mxu0 %v9654_v3 }
 0x769   :  { %v2813_v54 = vmul.f32 %v9858_v56, %v10981_v26  ;;  %v11121_v19 = vadd.f32 %v11035_v57, %v2833_v42 }
 0x76a   :  { %v11133_v58 = vadd.f32 %v11035_v57, %v2834_v25 }
 0x76b   :  { %v2864_v0 = vpack.c.bf16 %v11121_v19, %v11118_v22  ;;  %v2835_v6 = vmul.f32 %v11028_v12, %v2813_v54  ;;  %v9655_v12 = vld [vmem:[#allocation8 + $0x48] sm:$0xff]  }
 0x76c   :  { %8479 = vmatprep.subr.bf16.mxu0 %v9655_v12  ;;  %v9661_v54 = vld [vmem:[%s12653_s27 + $0x28] sm:$0xff]   ;;  %v9662_v12 = vld [vmem:[%s12653_s27 + $0x20] sm:$0xff]  }
 0x76d   :  { %3067 = vmatmul.mubr.bf16.gmra.mxu1 %v2864_v0  ;;  %v11130_v26 = vadd.f32 %v11035_v57, %v2835_v6  ;;  %8480 = vmatpush3.bf16.msra.mxu0 %v9656_v38  ;;  %v9659_v57 = vld [vmem:[%s12653_s27 + $0x38] sm:$0xff]  }
 0x76e   :  { %3076 = vmatprep.mubr.bf16.mxu1 %v10159_v2  ;;  %8481 = vmatprep.subr.bf16.mxu0 %v9657_v37 }
 0x76f   :  { %v2865_v51 = vpack.c.bf16 %v11130_v26, %v11133_v58 }
 0x771   :  { %8482 = vmatpush3.bf16.msra.mxu0 %v9658_v52 }
 0x772   :  { %9105 = vmatprep.subr.bf16.mxu0 %v9659_v57 }
 0x775   :  { %3077 = vmatmul.mubr.bf16.gmra.mxu1 %v2865_v51 }
 0x776   :  { %9101 = vmatprep.mubr.msk.bf16.mxu1 %vm10162_vm8, %v10161_v31 }
 0x7fd   :  { %v3008_v50 = vpop.f32.mrf.mxu1 }
 0x7fe   :  { %v3009_v53 = vadd.f32 %v3008_v50, %v11156_v45 }
 0x7ff   :  { %v3010_v44 = vpop.f32.mrf.mxu1 }
 0x800   :  { %v3011_v5 = vadd.f32 %v3010_v44, %v11152_v13  ;;  %v3087_v21 = vmax.f32 %v3009_v53, 0.0 }
 0x801   :  { %v3012_v40 = vpop.f32.mrf.mxu1 }
 0x802   :  { %v3013_v24 = vadd.f32 %v3012_v40, %v11156_v45  ;;  %v3088_v30 = vmax.f32 %v3011_v5, 0.0  ;;  %v9663_v40 = vld [vmem:[%s12653_s27 + $0x18] sm:$0xff]  }
 0x803   :  { %v3014_v10 = vpop.f32.mrf.mxu1 }
 0x804   :  { %v3015_v60 = vadd.f32 %v3014_v10, %v11152_v13  ;;  %v3089_v63 = vmax.f32 %v3013_v24, 0.0 }
 0x805   :  { %v3018_v29 = vpop.f32.mrf.mxu1 }
 0x806   :  { %v3090_v39 = vmax.f32 %v3015_v60, 0.0  ;;  %v3119_v7 = vpack.c.bf16 %v3089_v63, %v3087_v21  ;;  %v3019_v48 = vadd.f32 %v3018_v29, %v11156_v45 }
 0x807   :  { %v3020_v20 = vpop.f32.mrf.mxu1 }
 0x808   :  { %v3120_v36 = vpack.c.bf16 %v3090_v39, %v3088_v30  ;;  %v3021_v34 = vadd.f32 %v3020_v20, %v11152_v13  ;;  %v3091_v6 = vmax.f32 %v3019_v48, 0.0  ;;  %v9664_v30 = vld [vmem:[%s12653_s27 + $0x10] sm:$0xff]  }
 0x809   :  { %v3022_v61 = vpop.f32.mrf.mxu1 }
 0x80a   :  { %v3023_v16 = vadd.f32 %v3022_v61, %v11156_v45  ;;  %3302 = vmatprep.mubr.bf16.mxu0 %v3120_v36  ;;  %v3092_v55 = vmax.f32 %v3021_v34, 0.0  ;;  %v9665_v34 = vld [vmem:[%s12653_s27 + $0x8] sm:$0xff]  }
 0x80b   :  { %v3024_v4 = vpop.f32.mrf.mxu1  ;;  %3303 = vmatmul.mubr.bf16.vlgmr.msra.gmra.mxu0 %v3119_v7 }
 0x80c   :  { %v3025_v49 = vadd.f32 %v3024_v4, %v11152_v13  ;;  %9106 = vmatpush3.bf16.msra.mxu0 %v9659_v57  ;;  %v3093_v56 = vmax.f32 %v3023_v16, 0.0 }
 0x80d   :  { %v3028_v42 = vpop.f32.mrf.mxu1  ;;  %9107 = vmatprep.subr.bf16.mxu0 %v9660_v17 }
 0x80e   :  { %v3094_v0 = vmax.f32 %v3025_v49, 0.0  ;;  %v3121_v28 = vpack.c.bf16 %v3093_v56, %v3091_v6  ;;  %v3029_v52 = vadd.f32 %v3028_v42, %v11156_v45 }
 0x80f   :  { %v3030_v25 = vpop.f32.mrf.mxu1 }
 0x810   :  { %v3122_v51 = vpack.c.bf16 %v3094_v0, %v3092_v55  ;;  %9108 = vmatpush3.bf16.msra.mxu0 %v9660_v17  ;;  %v3031_v38 = vadd.f32 %v3030_v25, %v11152_v13  ;;  %v3095_v53 = vmax.f32 %v3029_v52, 0.0  ;;  %v9666_v55 = vld [vmem:[%s12653_s27] sm:$0xff]  }
 0x811   :  { %v3032_v3 = vpop.f32.mrf.mxu1  ;;  %9109 = vmatprep.subr.bf16.mxu0 %v9661_v54 }
 0x812   :  { %v3033_v37 = vadd.f32 %v3032_v3, %v11156_v45  ;;  %3310 = vmatprep.mubr.bf16.mxu0 %v3122_v51  ;;  %v3096_v5 = vmax.f32 %v3031_v38, 0.0 }
 0x813   :  { %v3034_v57 = vpop.f32.mrf.mxu1  ;;  %3311 = vmatmul.mubr.bf16.gmra.mxu0 %v3121_v28 }
 0x814   :  { %v3035_v32 = vadd.f32 %v3034_v57, %v11152_v13  ;;  %9110 = vmatpush3.bf16.msra.mxu0 %v9661_v54  ;;  %v3097_v50 = vmax.f32 %v3033_v37, 0.0 }
 0x815   :  { %v3038_v44 = vpop.f32.mrf.mxu1  ;;  %9111 = vmatprep.subr.bf16.mxu0 %v9662_v12 }
 0x816   :  { %v3098_v24 = vmax.f32 %v3035_v32, 0.0  ;;  %v3123_v63 = vpack.c.bf16 %v3097_v50, %v3095_v53  ;;  %v3039_v20 = vadd.f32 %v3038_v44, %v11156_v45 }
 0x817   :  { %v3040_v10 = vpop.f32.mrf.mxu1 }
 0x818   :  { %v3124_v60 = vpack.c.bf16 %v3098_v24, %v3096_v5  ;;  %9112 = vmatpush3.bf16.msra.mxu0 %v9662_v12  ;;  %v3041_v39 = vadd.f32 %v3040_v10, %v11152_v13  ;;  %v3099_v4 = vmax.f32 %v3039_v20, 0.0 }
 0x819   :  { %v3042_v29 = vpop.f32.mrf.mxu1  ;;  %9113 = vmatprep.subr.bf16.mxu0 %v9663_v40 }
 0x81a   :  { %v3043_v21 = vadd.f32 %v3042_v29, %v11156_v45  ;;  %3318 = vmatprep.mubr.bf16.mxu0 %v3124_v60  ;;  %v3100_v16 = vmax.f32 %v3041_v39, 0.0  ;;  %v3919_v29 = vpop.permute.xlu1 %3918 }
 0x81b   :  { %v3044_v36 = vpop.f32.mrf.mxu1  ;;  %3319 = vmatmul.mubr.bf16.gmra.mxu0 %v3123_v63  ;;  %vm3965_vm12 = vcmp.eq.s32.totalorder %v10382_v43, %v3919_v29 }
 0x81c   :  { %v3045_v7 = vadd.f32 %v3044_v36, %v11152_v13  ;;  %9114 = vmatpush3.bf16.msra.mxu0 %v9663_v40  ;;  %v3101_v61 = vmax.f32 %v3043_v21, 0.0 }
 0x81d   :  { %v3048_v17 = vpop.f32.mrf.mxu1  ;;  %9115 = vmatprep.subr.bf16.mxu0 %v9664_v30 }
 0x81e   :  { %v3102_v48 = vmax.f32 %v3045_v7, 0.0  ;;  %v3125_v42 = vpack.c.bf16 %v3101_v61, %v3099_v4  ;;  %v3049_v25 = vadd.f32 %v3048_v17, %v11156_v45  ;;  %v3925_v4 = vpop.permute.xlu1 %3924 }
 0x81f   :  { %v3050_v49 = vpop.f32.mrf.mxu1  ;;  %vm3967_vm1 = vcmp.eq.s32.totalorder %v10382_v43, %v3925_v4 }
 0x820   :  { %v3126_v56 = vpack.c.bf16 %v3102_v48, %v3100_v16  ;;  %9116 = vmatpush3.bf16.msra.mxu0 %v9664_v30  ;;  %v3051_v0 = vadd.f32 %v3050_v49, %v11152_v13  ;;  %v3103_v52 = vmax.f32 %v3049_v25, 0.0 }
 0x821   :  { %v3052_v54 = vpop.f32.mrf.mxu1  ;;  %9117 = vmatprep.subr.bf16.mxu0 %v9665_v34 }
 0x822   :  { %v3053_v6 = vadd.f32 %v3052_v54, %v11156_v45  ;;  %3326 = vmatprep.mubr.bf16.mxu0 %v3126_v56  ;;  %v3104_v38 = vmax.f32 %v3051_v0, 0.0 }
 0x823   :  { %v3054_v51 = vpop.f32.mrf.mxu1  ;;  %3327 = vmatmul.mubr.bf16.gmra.mxu0 %v3125_v42 }
 0x824   :  { %v3055_v28 = vadd.f32 %v3054_v51, %v11152_v13  ;;  %9118 = vmatpush3.bf16.msra.mxu0 %v9665_v34  ;;  %v3105_v3 = vmax.f32 %v3053_v6, 0.0 }
 0x825   :  { %v3058_v12 = vpop.f32.mrf.mxu1  ;;  %9119 = vmatprep.subr.bf16.mxu0 %v9666_v55 }
 0x826   :  { %v3106_v37 = vmax.f32 %v3055_v28, 0.0  ;;  %v3127_v50 = vpack.c.bf16 %v3105_v3, %v3103_v52  ;;  %v3059_v24 = vadd.f32 %v3058_v12, %v11156_v45  ;;  %v3928_v3 = vpop.permute.xlu1 %3927 }
 0x827   :  { %v3060_v57 = vpop.f32.mrf.mxu1  ;;  %vm3968_vm14 = vcmp.eq.s32.totalorder %v10382_v43, %v3928_v3 }
 0x828   :  { %v3128_v32 = vpack.c.bf16 %v3106_v37, %v3104_v38  ;;  %9120 = vmatpush3.bf16.msra.mxu0 %v9666_v55  ;;  %v3061_v40 = vadd.f32 %v3060_v57, %v11152_v13  ;;  %v3107_v21 = vmax.f32 %v3059_v24, 0.0  ;;  %v3922_v37 = vpop.permute.xlu0 %3921  ;;  %vm8220_vm2 = vmpackc.low %vm3968_vm14, %vm3967_vm1 }
 0x829   :  { %v3062_v44 = vpop.f32.mrf.mxu1  ;;  %vm3966_vm11 = vcmp.eq.s32.totalorder %v10382_v43, %v3922_v37 }
 0x82a   :  { %v3063_v5 = vadd.f32 %v3062_v44, %v11156_v45  ;;  %3334 = vmatprep.mubr.bf16.mxu0 %v3128_v32  ;;  %v3108_v30 = vmax.f32 %v3061_v40, 0.0  ;;  %vm8218_vm13 = vmpackc.low %vm3966_vm11, %vm3965_vm12 }
 0x82b   :  { %v3064_v53 = vpop.f32.mrf.mxu1  ;;  %3335 = vmatmul.mubr.bf16.gmra.mxu0 %v3127_v50 }
 0x82c   :  { %v3065_v10 = vadd.f32 %v3064_v53, %v11152_v13  ;;  %v3109_v60 = vmax.f32 %v3063_v5, 0.0  ;;  %v3934_v53 = vpop.permute.xlu1 %3933 }
 0x82d   :  { %v3068_v63 = vpop.f32.mrf.mxu1  ;;  %vm3970_vm15 = vcmp.eq.s32.totalorder %v10382_v43, %v3934_v53 }
 0x82e   :  { %v3110_v39 = vmax.f32 %v3065_v10, 0.0  ;;  %v3129_v7 = vpack.c.bf16 %v3109_v60, %v3107_v21  ;;  %v3069_v16 = vadd.f32 %v3068_v63, %v11156_v45  ;;  %v3931_v10 = vpop.permute.xlu0 %3930 }
 0x82f   :  { %v3070_v20 = vpop.f32.mrf.mxu1  ;;  %vm3969_vm0 = vcmp.eq.s32.totalorder %v10382_v43, %v3931_v10 }
 0x830   :  { %v3130_v36 = vpack.c.bf16 %v3110_v39, %v3108_v30  ;;  %v3071_v17 = vadd.f32 %v3070_v20, %v11152_v13  ;;  %v3111_v0 = vmax.f32 %v3069_v16, 0.0  ;;  %vm8222_vm3 = vmpackc.low %vm3970_vm15, %vm3969_vm0  ;;  %v11232_v20 = vld [vmem:[%s12628_s10] ss:$0 sm:$0xff] }
 0x831   :  { %v3072_v61 = vpop.f32.mrf.mxu1 }
 0x832   :  { %v3073_v34 = vadd.f32 %v3072_v61, %v11156_v45  ;;  %3342 = vmatprep.mubr.bf16.mxu0 %v3130_v36  ;;  %v3112_v54 = vmax.f32 %v3071_v17, 0.0 }
 0x833   :  { %v3074_v48 = vpop.f32.mrf.mxu1  ;;  %3343 = vmatmul.mubr.bf16.gmra.mxu0 %v3129_v7 }
 0x834   :  { %v3075_v49 = vadd.f32 %v3074_v48, %v11152_v13  ;;  %v3113_v56 = vmax.f32 %v3073_v34, 0.0 }
 0x835   :  { %v3078_v42 = vpop.f32.mrf.mxu1 }
 0x836   :  { %v3114_v55 = vmax.f32 %v3075_v49, 0.0  ;;  %v3131_v51 = vpack.c.bf16 %v3113_v56, %v3111_v0  ;;  %v3079_v52 = vadd.f32 %v3078_v42, %v11156_v45 }
 0x837   :  { %v3080_v6 = vpop.f32.mrf.mxu1 }
 0x838   :  { %v3132_v25 = vpack.c.bf16 %v3114_v55, %v3112_v54  ;;  %v3081_v12 = vadd.f32 %v3080_v6, %v11152_v13  ;;  %v3115_v5 = vmax.f32 %v3079_v52, 0.0 }
 0x839   :  { %v3082_v28 = vpop.f32.mrf.mxu1 }
 0x83a   :  { %v3083_v38 = vadd.f32 %v3082_v28, %v11156_v45  ;;  %3350 = vmatprep.mubr.bf16.mxu0 %v3132_v25  ;;  %v3116_v44 = vmax.f32 %v3081_v12, 0.0  ;;  %v3937_v45 = vpop.permute.xlu0 %3936 }
 0x83b   :  { %v3084_v57 = vpop.f32.mrf.mxu1  ;;  %3351 = vmatmul.mubr.bf16.gmra.mxu0 %v3131_v51  ;;  %vm3971_vm5 = vcmp.eq.s32.totalorder %v10382_v43, %v3937_v45 }
 0x83c   :  { %v3085_v32 = vadd.f32 %v3084_v57, %v11152_v13  ;;  %v3117_v50 = vmax.f32 %v3083_v38, 0.0  ;;  %v3940_v13 = vpop.permute.xlu1 %3939 }
 0x83d   :  { %vm3972_vm4 = vcmp.eq.s32.totalorder %v10382_v43, %v3940_v13 }
 0x83e   :  { %v3118_v40 = vmax.f32 %v3085_v32, 0.0  ;;  %v3133_v60 = vpack.c.bf16 %v3117_v50, %v3115_v5  ;;  %v3943_v29 = vpop.permute.xlu0 %3942  ;;  %vm8224_vm11 = vmpackc.low %vm3972_vm4, %vm3971_vm5 }
 0x83f   :  { %vm3973_vm7 = vcmp.eq.s32.totalorder %v10382_v43, %v3943_v29 }
 0x840   :  { %v3134_v24 = vpack.c.bf16 %v3118_v40, %v3116_v44  ;;  %v3946_v63 = vpop.permute.xlu1 %3945 }
 0x841   :  { %vm3974_vm6 = vcmp.eq.s32.totalorder %v10382_v43, %v3946_v63 }
 0x842   :  { %3358 = vmatprep.mubr.bf16.mxu0 %v3134_v24  ;;  %vm8226_vm12 = vmpackc.low %vm3974_vm6, %vm3973_vm7  ;;  %v3949_v39 = vpop.permute.xlu0 %3948  ;;  %vm3789_vm6 = vcmask 1041409   ;;  %vm3791_vm7 = vcmask 1042434  }
 0x843   :  { %3359 = vmatmul.mubr.bf16.gmra.mxu0 %v3133_v60  ;;  %vm3975_vm14 = vcmp.eq.s32.totalorder %v10382_v43, %v3949_v39 }
 0x844   :  { %9121 = vmatprep.mubr.msk.bf16.mxu0 %vm8218_vm13, %v10160_v47  ;;  %v3952_v30 = vpop.permute.xlu1 %3951 }
 0x845   :  { %vm3976_vm13 = vcmp.eq.s32.totalorder %v10382_v43, %v3952_v30 }
 0x846   :  { %vm8228_vm15 = vmpackc.low %vm3976_vm13, %vm3975_vm14  ;;  %vm3797_vm13 = vcmask 1045509   ;;  %vm3799_vm14 = vcmask 1046534  }
 0x84b   :  { %9122 = vmatmul.mubr.msk.bf16.vlgmr.msra.gmra.mxu0 %vm8220_vm2, %v10160_v47 }
 0x84c   :  { %9125 = vmatprep.mubr.msk.bf16.mxu0 %vm8222_vm3, %v10160_v47 }
 0x853   :  { %9126 = vmatmul.mubr.msk.bf16.gmra.mxu0 %vm8224_vm11, %v10160_v47  ;;  %vm3793_vm11 = vcmask 1043459  }
 0x854   :  { %9129 = vmatprep.mubr.msk.bf16.mxu0 %vm8226_vm12, %v10160_v47  ;;  %vm3795_vm12 = vcmask 1044484  }
 0x85b   :  { %9130 = vmatmul.mubr.msk.bf16.gmra.mxu0 %vm8228_vm15, %v10160_v47  ;;  %vm3801_vm15 = vcmask 1047559  }
 0x8cb   :  { %v8483_v21 = vpop.f32.mrf.mxu0 }
 0x8cd   :  { %v8484_v36 = vpop.f32.mrf.mxu0 }
 0x8ce   :  { %v8485_v7 = vadd.f32 %v8484_v36, %v8483_v21 }
 0x8cf   :  { %v8486_v61 = vpop.f32.mrf.mxu0 }
 0x8d0   :  { %v3305_v17 = vadd.f32 %v8485_v7, %v11232_v20 }
 0x8d1   :  { %v8487_v34 = vpop.f32.mrf.mxu0 }
 0x8d2   :  { %v8488_v16 = vadd.f32 %v8487_v34, %v8486_v61  ;;  %v11236_v48 = vadd.f32 %v3305_v17, %v11040_v27 }
 0x8d3   :  { %v8489_v4 = vpop.f32.mrf.mxu0 }
 0x8d4   :  { %3385 = vadd.xlane.f32.xlu0 %v11236_v48  ;;  %v3308_v49 = vadd.f32 %v8488_v16, %v11232_v20 }
 0x8d5   :  { %v8490_v56 = vpop.f32.mrf.mxu0 }
 0x8d6   :  { %v8491_v42 = vadd.f32 %v8490_v56, %v8489_v4  ;;  %v11241_v54 = vadd.f32 %v3308_v49, %v11043_v59 }
 0x8d7   :  { %v8492_v55 = vpop.f32.mrf.mxu0 }
 0x8d8   :  { %v3313_v0 = vadd.f32 %v8491_v42, %v11232_v20  ;;  %3387 = vadd.xlane.f32.xlu1 %v11241_v54 }
 0x8d9   :  { %v8493_v6 = vpop.f32.mrf.mxu0 }
 0x8da   :  { %v8494_v25 = vadd.f32 %v8493_v6, %v8492_v55  ;;  %v11246_v27 = vadd.f32 %v3313_v0, %v11055_v8  ;;  %v3915_v6 = vld [vmem:[%s12654_s30 + $0x70] sm:$0xff] }
 0x8db   :  { %v8495_v51 = vpop.f32.mrf.mxu0 }
 0x8dc   :  { %v3316_v28 = vadd.f32 %v8494_v25, %v11232_v20  ;;  %3389 = vadd.xlane.f32.xlu1 %v11246_v27 }
 0x8dd   :  { %v8496_v3 = vpop.f32.mrf.mxu0 }
 0x8de   :  { %v8497_v12 = vadd.f32 %v8496_v3, %v8495_v51  ;;  %v11251_v59 = vadd.f32 %v3316_v28, %v11052_v9 }
 0x8df   :  { %v8498_v38 = vpop.f32.mrf.mxu0 }
 0x8e0   :  { %v3321_v37 = vadd.f32 %v8497_v12, %v11232_v20  ;;  %3391 = vadd.xlane.f32.xlu1 %v11251_v59 }
 0x8e1   :  { %v8499_v52 = vpop.f32.mrf.mxu0 }
 0x8e2   :  { %v8500_v57 = vadd.f32 %v8499_v52, %v8498_v38  ;;  %v11256_v8 = vadd.f32 %v3321_v37, %v11066_v23 }
 0x8e3   :  { %v8501_v32 = vpop.f32.mrf.mxu0 }
 0x8e4   :  { %v3324_v50 = vadd.f32 %v8500_v57, %v11232_v20  ;;  %3393 = vadd.xlane.f32.xlu1 %v11256_v8 }
 0x8e5   :  { %v8502_v44 = vpop.f32.mrf.mxu0 }
 0x8e6   :  { %v8503_v40 = vadd.f32 %v8502_v44, %v8501_v32  ;;  %v11261_v9 = vadd.f32 %v3324_v50, %v11069_v41 }
 0x8e7   :  { %v8504_v5 = vpop.f32.mrf.mxu0 }
 0x8e8   :  { %v3329_v24 = vadd.f32 %v8503_v40, %v11232_v20  ;;  %3395 = vadd.xlane.f32.xlu1 %v11261_v9 }
 0x8e9   :  { %v8505_v53 = vpop.f32.mrf.mxu0 }
 0x8ea   :  { %v8506_v10 = vadd.f32 %v8505_v53, %v8504_v5  ;;  %v11266_v23 = vadd.f32 %v3329_v24, %v11081_v15  ;;  %v9667_v5 = vld [vmem:[#allocation4 + $0x170] ss:$12 sps:$4 sm:$0xff]  }
 0x8eb   :  { %v8507_v60 = vpop.f32.mrf.mxu0  ;;  %9137 = vmatprep.subr.bf16.mxu0 %v9667_v5 }
 0x8ec   :  { %v3332_v13 = vadd.f32 %v8506_v10, %v11232_v20  ;;  %3397 = vadd.xlane.f32.xlu1 %v11266_v23  ;;  %9138 = vmatpush3.bf16.msra.mxu0 %v9667_v5  ;;  %v9669_v10 = vld [vmem:[#allocation4 + $0x140] ss:$12 sps:$4 sm:$0xff]  }
 0x8ed   :  { %v8508_v45 = vpop.f32.mrf.mxu0 }
 0x8ee   :  { %v8509_v63 = vadd.f32 %v8508_v45, %v8507_v60  ;;  %v11271_v41 = vadd.f32 %v3332_v13, %v11078_v35  ;;  %v9671_v60 = vld [vmem:[#allocation4 + $0x110] ss:$12 sps:$4 sm:$0xff]   ;;  %v9673_v13 = vld [vmem:[#allocation4 + $0xe0] ss:$12 sps:$4 sm:$0xff]   ;;  %v9674_v45 = vld [vmem:[#allocation4 + $0xc8] ss:$12 sps:$4 sm:$0xff]  }
 0x8ef   :  { %v8510_v29 = vpop.f32.mrf.mxu0 }
 0x8f0   :  { %v3337_v30 = vadd.f32 %v8509_v63, %v11232_v20  ;;  %3399 = vadd.xlane.f32.xlu1 %v11271_v41  ;;  %v11324_v63 = vpop.permute.xlu1 %3954 }
 0x8f1   :  { %v8511_v39 = vpop.f32.mrf.mxu0  ;;  %vm3977_vm1 = vcmp.eq.s32.totalorder %v10382_v43, %v11324_v63 }
 0x8f2   :  { %v8512_v21 = vadd.f32 %v8511_v39, %v8510_v29  ;;  %v11276_v15 = vadd.f32 %v3337_v30, %v11092_v33 }
 0x8f3   :  { %v8513_v36 = vpop.f32.mrf.mxu0 }
 0x8f4   :  { %3401 = vadd.xlane.f32.xlu0 %v11276_v15  ;;  %v3340_v7 = vadd.f32 %v8512_v21, %v11232_v20 }
 0x8f5   :  { %v8514_v61 = vpop.f32.mrf.mxu0 }
 0x8f6   :  { %v8515_v17 = vadd.f32 %v8514_v61, %v8513_v36  ;;  %v11281_v35 = vadd.f32 %v3340_v7, %v11095_v62 }
 0x8f7   :  { %v8516_v34 = vpop.f32.mrf.mxu0 }
 0x8f8   :  { %v3345_v16 = vadd.f32 %v8515_v17, %v11232_v20  ;;  %3403 = vadd.xlane.f32.xlu0 %v11281_v35 }
 0x8f9   :  { %v8517_v4 = vpop.f32.mrf.mxu0 }
 0x8fa   :  { %v8518_v49 = vadd.f32 %v8517_v4, %v8516_v34  ;;  %v11286_v33 = vadd.f32 %v3345_v16, %v11107_v1 }
 0x8fb   :  { %v8519_v56 = vpop.f32.mrf.mxu0 }
 0x8fc   :  { %v3348_v42 = vadd.f32 %v8518_v49, %v11232_v20  ;;  %3405 = vadd.xlane.f32.xlu0 %v11286_v33 }
 0x8fd   :  { %v8520_v55 = vpop.f32.mrf.mxu0 }
 0x8fe   :  { %v8521_v0 = vadd.f32 %v8520_v55, %v8519_v56  ;;  %v11291_v62 = vadd.f32 %v3348_v42, %v11104_v46  ;;  %v3916_v46 = vld [vmem:[%s12654_s30 + $0x78] sm:$0xff] }
 0x8ff   :  { %v8522_v25 = vpop.f32.mrf.mxu0 }
 0x900   :  { %v3353_v51 = vadd.f32 %v8521_v0, %v11232_v20  ;;  %3407 = vadd.xlane.f32.xlu0 %v11291_v62 }
 0x901   :  { %v8523_v1 = vpop.f32.mrf.mxu0  ;;  %3960 = vperm.xlu1 %9570, %v3915_v6  }
 0x902   :  { %v8524_v28 = vadd.f32 %v8523_v1, %v8522_v25  ;;  %v11299_v3 = vadd.f32 %v3353_v51, %v11118_v22 }
 0x903   :  { %v8525_v12 = vpop.f32.mrf.mxu0 }
 0x904   :  { %v3356_v38 = vadd.f32 %v8524_v28, %v11232_v20  ;;  %3409 = vadd.xlane.f32.xlu0 %v11299_v3 }
 0x905   :  { %v8526_v37 = vpop.f32.mrf.mxu0  ;;  %3963 = vperm.xlu1 %9570, %v3916_v46  }
 0x906   :  { %v8527_v52 = vadd.f32 %v8526_v37, %v8525_v12  ;;  %v11307_v57 = vadd.f32 %v3356_v38, %v11121_v19  ;;  %v9668_v19 = vld [vmem:[#allocation4 + $0x158] ss:$12 sps:$4 sm:$0xff]  }
 0x907   :  { %v8528_v32 = vpop.f32.mrf.mxu0  ;;  %9139 = vmatprep.subr.bf16.mxu0 %v9668_v19 }
 0x908   :  { %v3361_v50 = vadd.f32 %v8527_v52, %v11232_v20  ;;  %3411 = vadd.xlane.f32.xlu0 %v11307_v57  ;;  %9140 = vmatpush3.bf16.msra.mxu0 %v9668_v19 }
 0x909   :  { %v8529_v22 = vpop.f32.mrf.mxu0  ;;  %9141 = vmatprep.subr.bf16.mxu0 %v9669_v10 }
 0x90a   :  { %v8530_v44 = vadd.f32 %v8529_v22, %v8528_v32  ;;  %v11312_v40 = vadd.f32 %v3361_v50, %v11133_v58  ;;  %v9670_v58 = vld [vmem:[#allocation4 + $0x128] ss:$12 sps:$4 sm:$0xff]  }
 0x90c   :  { %v3364_v24 = vadd.f32 %v8530_v44, %v11232_v20  ;;  %3413 = vadd.xlane.f32.xlu0 %v11312_v40  ;;  %9142 = vmatpush3.bf16.msra.mxu0 %v9669_v10  ;;  %v9672_v20 = vld [vmem:[#allocation4 + $0xf8] ss:$12 sps:$4 sm:$0xff]  }
 0x90d   :  { %9143 = vmatprep.subr.bf16.mxu0 %v9670_v58 }
 0x90e   :  { %v11317_v53 = vadd.f32 %v3364_v24, %v11130_v26  ;;  %v3914_v26 = vld [vmem:[%s12654_s30 + $0x68] sm:$0xff] }
 0x910   :  { %3415 = vadd.xlane.f32.xlu0 %v11317_v53  ;;  %9144 = vmatpush3.bf16.msra.mxu0 %v9670_v58 }
 0x911   :  { %9145 = vmatprep.subr.bf16.mxu0 %v9671_v60 }
 0x914   :  { %9146 = vmatpush3.bf16.msra.mxu0 %v9671_v60 }
 0x915   :  { %9147 = vmatprep.subr.bf16.mxu0 %v9672_v20 }
 0x918   :  { %9148 = vmatpush3.bf16.msra.mxu0 %v9672_v20 }
 0x919   :  { %9149 = vmatprep.subr.bf16.mxu0 %v9673_v13 }
 0x91c   :  { %9150 = vmatpush3.bf16.msra.mxu0 %v9673_v13 }
 0x91d   :  { %9151 = vmatprep.subr.bf16.mxu0 %v9674_v45 }
 0x920   :  { %9152 = vmatpush3.bf16.msra.mxu0 %v9674_v45 }
 0x921   :  { %9169 = vmatprep.subr.bf16.mxu0 %v10161_v31 }
 0x926   :  { %3957 = vperm.xlu0 %9569, %v3914_v26  }
 0x95d   :  { %v3386_v29 = vpop.xlane.xlu0 %3385 }
 0x95e   :  { %v3417_v30 = vmul.f32 0.0078125, %v3386_v29 }
 0x960   :  { %v11327_v39 = vsub.f32 %v11236_v48, %v3417_v30 }
 0x961   :  { %v3388_v21 = vpop.xlane.xlu1 %3387 }
 0x962   :  { %v3418_v36 = vmul.f32 0.0078125, %v3388_v21  ;;  %v3449_v7 = vmul.f32 %v11327_v39, %v11327_v39 }
 0x964   :  { %v11332_v61 = vsub.f32 %v11241_v54, %v3418_v36  ;;  %3465 = vadd.xlane.f32.xlu0 %v3449_v7 }
 0x965   :  { %v3390_v17 = vpop.xlane.xlu1 %3389 }
 0x966   :  { %v3419_v34 = vmul.f32 0.0078125, %v3390_v17  ;;  %v3450_v16 = vmul.f32 %v11332_v61, %v11332_v61 }
 0x968   :  { %v11337_v4 = vsub.f32 %v11246_v27, %v3419_v34  ;;  %3467 = vadd.xlane.f32.xlu1 %v3450_v16 }
 0x969   :  { %v3392_v48 = vpop.xlane.xlu1 %3391 }
 0x96a   :  { %v3420_v49 = vmul.f32 0.0078125, %v3392_v48  ;;  %v3451_v56 = vmul.f32 %v11337_v4, %v11337_v4 }
 0x96c   :  { %v11342_v42 = vsub.f32 %v11251_v59, %v3420_v49  ;;  %3469 = vadd.xlane.f32.xlu1 %v3451_v56 }
 0x96d   :  { %v3394_v54 = vpop.xlane.xlu1 %3393 }
 0x96e   :  { %v3421_v55 = vmul.f32 0.0078125, %v3394_v54  ;;  %v3452_v0 = vmul.f32 %v11342_v42, %v11342_v42 }
 0x970   :  { %v11347_v6 = vsub.f32 %v11256_v8, %v3421_v55  ;;  %3471 = vadd.xlane.f32.xlu1 %v3452_v0 }
 0x971   :  { %v3396_v27 = vpop.xlane.xlu1 %3395 }
 0x972   :  { %v3422_v25 = vmul.f32 0.0078125, %v3396_v27  ;;  %v3453_v51 = vmul.f32 %v11347_v6, %v11347_v6 }
 0x974   :  { %v11352_v1 = vsub.f32 %v11261_v9, %v3422_v25  ;;  %3473 = vadd.xlane.f32.xlu1 %v3453_v51 }
 0x975   :  { %v3398_v59 = vpop.xlane.xlu1 %3397 }
 0x976   :  { %v3423_v28 = vmul.f32 0.0078125, %v3398_v59  ;;  %v3454_v46 = vmul.f32 %v11352_v1, %v11352_v1 }
 0x978   :  { %v11357_v12 = vsub.f32 %v11266_v23, %v3423_v28  ;;  %3475 = vadd.xlane.f32.xlu1 %v3454_v46 }
 0x979   :  { %v3400_v8 = vpop.xlane.xlu1 %3399 }
 0x97a   :  { %v3424_v38 = vmul.f32 0.0078125, %v3400_v8  ;;  %v3455_v37 = vmul.f32 %v11357_v12, %v11357_v12 }
 0x97c   :  { %v11362_v52 = vsub.f32 %v11271_v41, %v3424_v38  ;;  %3477 = vadd.xlane.f32.xlu1 %v3455_v37  ;;  %v9123_v41 = vpop.f32.mrf.mxu0 }
 0x97d   :  { %v3402_v9 = vpop.xlane.xlu0 %3401  ;;  %v3961_v54 = vpop.permute.xlu1 %3960 }
 0x97e   :  { %v3425_v32 = vmul.f32 0.0078125, %v3402_v9  ;;  %v3456_v50 = vmul.f32 %v11362_v52, %v11362_v52  ;;  %vm3979_vm3 = vcmp.eq.s32.totalorder %v10382_v43, %v3961_v54  ;;  %v11442_v54 = vld [vmem:[%s12629_s11] ss:$0 sm:$0xff] }
 0x980   :  { %v11367_v22 = vsub.f32 %v11276_v15, %v3425_v32  ;;  %3479 = vadd.xlane.f32.xlu1 %v3456_v50  ;;  %v4103_v15 = vpop.f32.mrf.mxu0 }
 0x981   :  { %v3404_v23 = vpop.xlane.xlu0 %3403  ;;  %v3964_v59 = vpop.permute.xlu1 %3963 }
 0x982   :  { %v3426_v44 = vmul.f32 0.0078125, %v3404_v23  ;;  %v3457_v5 = vmul.f32 %v11367_v22, %v11367_v22  ;;  %v9124_v45 = vpop.f32.mrf.mxu0  ;;  %vm3980_vm0 = vcmp.eq.s32.totalorder %v10382_v43, %v3964_v59 }
 0x983   :  { %vm8232_vm5 = vmpackc.low %vm3980_vm0, %vm3979_vm3  ;;  %v11416_v37 = vpack.c.bf16 %v9124_v45, %v9123_v41  ;;  %v9678_v41 = vld [vmem:[#allocation9 + $0x20] sm:$0xff]  }
 0x984   :  { %v11372_v24 = vsub.f32 %v11281_v35, %v3426_v44  ;;  %3481 = vadd.xlane.f32.xlu0 %v3457_v5  ;;  %v4106_v36 = vpop.f32.mrf.mxu0  ;;  %v9676_v44 = vld [vmem:[#allocation9 + $0x30] sm:$0xff]   ;;  %v9677_v5 = vld [vmem:[#allocation9 + $0x28] sm:$0xff]  }
 0x985   :  { %v3406_v19 = vpop.xlane.xlu0 %3405 }
 0x986   :  { %v3427_v10 = vmul.f32 0.0078125, %v3406_v19  ;;  %v3458_v58 = vmul.f32 %v11372_v24, %v11372_v24  ;;  %v9127_v16 = vpop.f32.mrf.mxu0  ;;  %v9679_v19 = vld [vmem:[#allocation9 + $0x18] sm:$0xff]  }
 0x988   :  { %v11377_v60 = vsub.f32 %v11286_v33, %v3427_v10  ;;  %3483 = vadd.xlane.f32.xlu0 %v3458_v58  ;;  %v4119_v55 = vpop.f32.mrf.mxu0  ;;  %v9680_v10 = vld [vmem:[#allocation9 + $0x10] sm:$0xff]   ;;  %v9681_v58 = vld [vmem:[#allocation9 + $0x8] sm:$0xff]  }
 0x989   :  { %v3408_v20 = vpop.xlane.xlu0 %3407 }
 0x98a   :  { %v3428_v26 = vmul.f32 0.0078125, %v3408_v20  ;;  %v3459_v13 = vmul.f32 %v11377_v60, %v11377_v60  ;;  %v9128_v51 = vpop.f32.mrf.mxu0  ;;  %v9685_v20 = vld [vmem:[#allocation4 + $0x16c] ss:$12 sps:$4 sm:$0xff]  }
 0x98b   :  { %v11422_v32 = vpack.c.bf16 %v9128_v51, %v9127_v16  ;;  %v11448_v51 = vld [vmem:[%s12630_s12] ss:$0 sm:$0xff] }
 0x98c   :  { %v11382_v35 = vsub.f32 %v11291_v62, %v3428_v26  ;;  %3485 = vadd.xlane.f32.xlu0 %v3459_v13  ;;  %v4122_v46 = vpop.f32.mrf.mxu0 }
 0x98d   :  { %v3410_v29 = vpop.xlane.xlu0 %3409  ;;  %v11418_v9 = vpack.c.bf16 %v4122_v46, %v4119_v55 }
 0x98e   :  { %v3429_v30 = vmul.f32 0.0078125, %v3410_v29  ;;  %v3460_v21 = vmul.f32 %v11382_v35, %v11382_v35  ;;  %v9131_v8 = vpop.f32.mrf.mxu0 }
 0x990   :  { %v11387_v33 = vsub.f32 %v11299_v3, %v3429_v30  ;;  %3487 = vadd.xlane.f32.xlu0 %v3460_v21  ;;  %v4135_v38 = vpop.f32.mrf.mxu0 }
 0x991   :  { %v3412_v7 = vpop.xlane.xlu0 %3411 }
 0x992   :  { %v3430_v17 = vmul.f32 0.0078125, %v3412_v7  ;;  %v3461_v34 = vmul.f32 %v11387_v33, %v11387_v33  ;;  %v9132_v63 = vpop.f32.mrf.mxu0 }
 0x993   :  { %v11429_v23 = vpack.c.bf16 %v9132_v63, %v9131_v8 }
 0x994   :  { %v11392_v62 = vsub.f32 %v11307_v57, %v3430_v17  ;;  %3489 = vadd.xlane.f32.xlu0 %v3461_v34 }
 0x995   :  { %v3414_v48 = vpop.xlane.xlu0 %3413 }
 0x996   :  { %v3431_v49 = vmul.f32 0.0078125, %v3414_v48  ;;  %v3462_v56 = vmul.f32 %v11392_v62, %v11392_v62 }
 0x998   :  { %v11397_v3 = vsub.f32 %v11312_v40, %v3431_v49  ;;  %3491 = vadd.xlane.f32.xlu0 %v3462_v56 }
 0x999   :  { %v3416_v0 = vpop.xlane.xlu0 %3415 }
 0x99a   :  { %v3432_v27 = vmul.f32 0.0078125, %v3416_v0  ;;  %v3463_v25 = vmul.f32 %v11397_v3, %v11397_v3 }
 0x99c   :  { %v11402_v57 = vsub.f32 %v11317_v53, %v3432_v27  ;;  %3493 = vadd.xlane.f32.xlu0 %v3463_v25  ;;  %v11411_v53 = vpack.c.bf16 %v4106_v36, %v4103_v15  ;;  %v9682_v15 = vld [vmem:[#allocation9] sm:$0xff]  }
 0x99e   :  { %v3464_v28 = vmul.f32 %v11402_v57, %v11402_v57 }
 0x9a0   :  { %3495 = vadd.xlane.f32.xlu0 %v3464_v28 }
 0x9a1   :  { %v3958_v40 = vpop.permute.xlu0 %3957 }
 0x9a2   :  { %vm3978_vm2 = vcmp.eq.s32.totalorder %v10382_v43, %v3958_v40  ;;  %v4138_v43 = vpop.f32.mrf.mxu0 }
 0x9a3   :  { %vm8230_vm4 = vmpackc.low %vm3978_vm2, %vm3977_vm1  ;;  %v11424_v50 = vpack.c.bf16 %v4138_v43, %v4135_v38 }
 0x9a4   :  { %9133 = vmatprep.mubr.msk.bf16.mxu0 %vm8230_vm4, %v10160_v47 }
 0x9a5   :  { %9134 = vmatmul.mubr.msk.bf16.gmra.mxu0 %vm8232_vm5, %v10160_v47  ;;  %v9675_v47 = vld [vmem:[#allocation9 + $0x38] sm:$0xff]  }
 0x9a6   :  { %9153 = vmatprep.mubr.bf16.mxu0 %v11411_v53  ;;  %9086 = vmatpush3.bf16.msra.mxu1 %v9675_v47 }
 0x9a7   :  { %9087 = vmatprep.subr.bf16.mxu1 %v10161_v31 }
 0x9aa   :  { %9088 = vmatpush3.bf16.msra.mxu1 %v9676_v44 }
 0x9ab   :  { %9089 = vmatprep.subr.bf16.mxu1 %v10161_v31 }
 0x9ad   :  { %9154 = vmatmul.mubr.bf16.vlgmr.msra.gmra.mxu0 %v11416_v37 }
 0x9ae   :  { %9157 = vmatprep.mubr.bf16.mxu0 %v11418_v9  ;;  %9090 = vmatpush3.bf16.msra.mxu1 %v9677_v5 }
 0x9af   :  { %9091 = vmatprep.subr.bf16.mxu1 %v10161_v31 }
 0x9b2   :  { %9092 = vmatpush3.bf16.msra.mxu1 %v9678_v41 }
 0x9b3   :  { %9093 = vmatprep.subr.bf16.mxu1 %v10161_v31 }
 0x9b5   :  { %9158 = vmatmul.mubr.bf16.gmra.mxu0 %v11422_v32 }
 0x9b6   :  { %9161 = vmatprep.mubr.bf16.mxu0 %v11424_v50  ;;  %9094 = vmatpush3.bf16.msra.mxu1 %v9679_v19 }
 0x9b7   :  { %9095 = vmatprep.subr.bf16.mxu1 %v10161_v31 }
 0x9ba   :  { %9096 = vmatpush3.bf16.msra.mxu1 %v9680_v10 }
 0x9bb   :  { %9097 = vmatprep.subr.bf16.mxu1 %v10161_v31 }
 0x9bd   :  { %9162 = vmatmul.mubr.bf16.gmra.mxu0 %v11429_v23 }
 0x9be   :  { %9098 = vmatpush3.bf16.msra.mxu1 %v9681_v58 }
 0x9bf   :  { %9099 = vmatprep.subr.bf16.mxu1 %v10161_v31 }
 0x9c2   :  { %9100 = vmatpush3.bf16.msra.mxu1 %v9682_v15 }
 0x9c3   :  { %4335 = vmatprep.subr.bf16.mxu1 %v9685_v20 }
 0x9ed   :  { %v3466_v26 = vpop.xlane.xlu0 %3465 }
 0x9ee   :  { %v3497_v13 = vmul.f32 0.0078125, %v3466_v26 }
 0x9f0   :  { %v3513_v45 = vadd.f32 1e-05, %v3497_v13 }
 0x9f1   :  { %v3468_v29 = vpop.xlane.xlu1 %3467 }
 0x9f2   :  { %v3498_v30 = vmul.f32 0.0078125, %v3468_v29  ;;  %9859 = vrsqrt.f32 %v3513_v45 }
 0x9f4   :  { %v3514_v21 = vadd.f32 1e-05, %v3498_v30 }
 0x9f5   :  { %v3470_v36 = vpop.xlane.xlu1 %3469 }
 0x9f6   :  { %9861 = vrsqrt.f32 %v3514_v21  ;;  %v3499_v17 = vmul.f32 0.0078125, %v3470_v36 }
 0x9f8   :  { %v3515_v16 = vadd.f32 1e-05, %v3499_v17 }
 0x9f9   :  { %v3472_v7 = vpop.xlane.xlu1 %3471 }
 0x9fa   :  { %9863 = vrsqrt.f32 %v3515_v16  ;;  %v3500_v55 = vmul.f32 0.0078125, %v3472_v7 }
 0x9fc   :  { %v3516_v28 = vadd.f32 1e-05, %v3500_v55 }
 0x9fd   :  { %v3474_v34 = vpop.xlane.xlu1 %3473 }
 0x9fe   :  { %9865 = vrsqrt.f32 %v3516_v28 }
 0x9ff   :  { %v9860_v48 = vpop.eup %9859 }
 0xa00   :  { %v3545_v56 = vmul.f32 %v9860_v48, %v11327_v39  ;;  %v3501_v39 = vmul.f32 0.0078125, %v3474_v34 }
 0xa01   :  { %v3476_v49 = vpop.xlane.xlu1 %3475 }
 0xa02   :  { %v3567_v25 = vmul.f32 %v11442_v54, %v3545_v56  ;;  %v3502_v46 = vmul.f32 0.0078125, %v3476_v49  ;;  %v3517_v43 = vadd.f32 1e-05, %v3501_v39 }
 0xa03   :  { %v9862_v0 = vpop.eup %9861 }
 0xa04   :  { %v3546_v59 = vmul.f32 %v9862_v0, %v11332_v61  ;;  %v3589_v38 = vadd.f32 %v11448_v51, %v3567_v25  ;;  %v3518_v47 = vadd.f32 1e-05, %v3502_v46  ;;  %9867 = vrsqrt.f32 %v3517_v43 }
 0xa05   :  { %v3478_v27 = vpop.xlane.xlu1 %3477 }
 0xa06   :  { %v3503_v40 = vmul.f32 0.0078125, %v3478_v27  ;;  %v3568_v63 = vmul.f32 %v11442_v54, %v3546_v59  ;;  %v3605_v19 = vrot.slane %v3589_v38, 4  ;;  %9869 = vrsqrt.f32 %v3518_v47 }
 0xa07   :  { %v9864_v58 = vpop.eup %9863 }
 0xa08   :  { %v3519_v41 = vadd.f32 1e-05, %v3503_v40  ;;  %v3590_v61 = vadd.f32 %v11448_v51, %v3568_v63  ;;  %v3606_v13 = vadd.f32 %v3605_v19, %v3589_v38  ;;  %v3547_v45 = vmul.f32 %v9864_v58, %v11337_v4 }
 0xa09   :  { %v3480_v8 = vpop.xlane.xlu1 %3479 }
 0xa0a   :  { %v3504_v44 = vmul.f32 0.0078125, %v3480_v8  ;;  %9871 = vrsqrt.f32 %v3519_v41  ;;  %v3611_v30 = vrot.slane %v3590_v61, 4  ;;  %v3607_v7 = vrot.slane %v3606_v13, 2 }
 0xa0b   :  { %v3569_v17 = vmul.f32 %v11442_v54, %v3547_v45  ;;  %v9866_v48 = vpop.eup %9865 }
 0xa0c   :  { %v3520_v15 = vadd.f32 1e-05, %v3504_v44  ;;  %v3612_v16 = vadd.f32 %v3611_v30, %v3590_v61  ;;  %v3608_v55 = vadd.f32 %v3607_v7, %v3606_v13  ;;  %v3548_v25 = vmul.f32 %v9866_v48, %v11342_v42 }
 0xa0d   :  { %v3482_v5 = vpop.xlane.xlu0 %3481  ;;  %v3591_v0 = vadd.f32 %v11448_v51, %v3569_v17 }
 0xa0e   :  { %v3505_v10 = vmul.f32 0.0078125, %v3482_v5  ;;  %v3613_v27 = vrot.slane %v3612_v16, 2  ;;  %v3609_v38 = vrot.slane %v3608_v55, 1  ;;  %v3570_v44 = vmul.f32 %v11442_v54, %v3548_v25 }
 0xa0f   :  { %v3617_v63 = vrot.slane %v3591_v0, 4 }
 0xa10   :  { %v3521_v20 = vadd.f32 1e-05, %v3505_v10  ;;  %v3614_v47 = vadd.f32 %v3613_v27, %v3612_v16 }
 0xa11   :  { %v3484_v26 = vpop.xlane.xlu0 %3483  ;;  %v9868_v59 = vpop.eup %9867 }
 0xa12   :  { %9873 = vrsqrt.f32 %v3521_v20  ;;  %v3506_v29 = vmul.f32 0.0078125, %v3484_v26  ;;  %v3549_v41 = vmul.f32 %v9868_v59, %v11347_v6  ;;  %v3618_v20 = vadd.f32 %v3617_v63, %v3591_v0 }
 0xa13   :  { %9875 = vrsqrt.f32 %v3520_v15  ;;  %v9870_v46 = vpop.eup %9869  ;;  %v3610_v15 = vadd.f32 %v3609_v38, %v3608_v55  ;;  %v3615_v45 = vrot.slane %v3614_v47, 1 }
 0xa14   :  { %v3522_v21 = vadd.f32 1e-05, %v3506_v29  ;;  %v3550_v58 = vmul.f32 %v9870_v46, %v11352_v1  ;;  %v3592_v29 = vadd.f32 %v11448_v51, %v3570_v44 }
 0xa15   :  { %v3486_v36 = vpop.xlane.xlu0 %3485 }
 0xa16   :  { %9877 = vrsqrt.f32 %v3522_v21  ;;  %v3507_v34 = vmul.f32 0.0078125, %v3486_v36  ;;  %v3571_v21 = vmul.f32 %v11442_v54, %v3549_v41  ;;  %v3572_v1 = vmul.f32 %v11442_v54, %v3550_v58 }
 0xa17   :  { %v9872_v8 = vpop.eup %9871 }
 0xa18   :  { %v3523_v49 = vadd.f32 1e-05, %v3507_v34  ;;  %v3551_v26 = vmul.f32 %v9872_v8, %v11357_v12  ;;  %v3702_v34 = vmul.f32 0.125, %v3610_v15  ;;  %v3619_v12 = vrot.slane %v3618_v20, 2 }
 0xa19   :  { %v3488_v56 = vpop.xlane.xlu0 %3487  ;;  %v3594_v59 = vadd.f32 %v11448_v51, %v3572_v1 }
 0xa1a   :  { %9879 = vrsqrt.f32 %v3523_v49  ;;  %v3508_v4 = vmul.f32 0.0078125, %v3488_v56  ;;  %v3573_v16 = vmul.f32 %v11442_v54, %v3551_v26  ;;  %v3616_v49 = vadd.f32 %v3615_v45, %v3614_v47 }
 0xa1b   :  { %v3623_v56 = vrot.slane %v3592_v29, 4  ;;  %v3718_v46 = vpack.c.bf16 %v3702_v34, %v3702_v34  ;;  %v3620_v63 = vadd.f32 %v3619_v12, %v3618_v20  ;;  %v3635_v58 = vrot.slane %v3594_v59, 4 }
 0xa1c   :  { %v3524_v28 = vadd.f32 1e-05, %v3508_v4 }
 0xa1d   :  { %v3490_v39 = vpop.xlane.xlu0 %3489  ;;  %v3621_v45 = vrot.slane %v3620_v63, 1  ;;  %v3636_v12 = vadd.f32 %v3635_v58, %v3594_v59 }
 0xa1e   :  { %v3509_v40 = vmul.f32 0.0078125, %v3490_v39  ;;  %9881 = vrsqrt.f32 %v3524_v28 }
 0xa1f   :  { %v9874_v43 = vpop.eup %9873 }
 0xa20   :  { %v3525_v5 = vadd.f32 1e-05, %v3509_v40  ;;  %v3553_v19 = vmul.f32 %v9874_v43, %v11367_v22  ;;  %v9876_v42 = vpop.eup %9875  ;;  %v3595_v40 = vadd.f32 %v11448_v51, %v3573_v16  ;;  %v3624_v43 = vadd.f32 %v3623_v56, %v3592_v29 }
 0xa21   :  { %v3492_v10 = vpop.xlane.xlu0 %3491  ;;  %v3552_v6 = vmul.f32 %v9876_v42, %v11362_v52  ;;  %v3593_v52 = vadd.f32 %v11448_v51, %v3571_v21  ;;  %v3622_v56 = vadd.f32 %v3621_v45, %v3620_v63 }
 0xa22   :  { %9883 = vrsqrt.f32 %v3525_v5  ;;  %v3510_v61 = vmul.f32 0.0078125, %v3492_v10  ;;  %v3575_v22 = vmul.f32 %v11442_v54, %v3553_v19  ;;  %v3703_v10 = vmul.f32 0.125, %v3616_v49 }
 0xa23   :  { %v9878_v13 = vpop.eup %9877  ;;  %v3574_v4 = vmul.f32 %v11442_v54, %v3552_v6  ;;  %v3629_v42 = vrot.slane %v3593_v52, 4  ;;  %v3641_v15 = vrot.slane %v3595_v40, 4  ;;  %v3625_v29 = vrot.slane %v3624_v43, 2 }
 0xa24   :  { %v3526_v30 = vadd.f32 1e-05, %v3510_v61  ;;  %v3554_v7 = vmul.f32 %v9878_v13, %v11372_v24  ;;  %v3597_v27 = vadd.f32 %v11448_v51, %v3575_v22  ;;  %v3719_v1 = vpack.c.bf16 %v3703_v10, %v3703_v10 }
 0xa25   :  { %v3494_v36 = vpop.xlane.xlu0 %3493  ;;  %v3596_v5 = vadd.f32 %v11448_v51, %v3574_v4  ;;  %v3642_v16 = vadd.f32 %v3641_v15, %v3595_v40  ;;  %v3626_v4 = vadd.f32 %v3625_v29, %v3624_v43  ;;  %v3637_v40 = vrot.slane %v3636_v12, 2 }
 0xa26   :  { %9885 = vrsqrt.f32 %v3526_v30  ;;  %v3511_v17 = vmul.f32 0.0078125, %v3494_v36  ;;  %v3576_v55 = vmul.f32 %v11442_v54, %v3554_v7  ;;  %v3630_v7 = vadd.f32 %v3629_v42, %v3593_v52 }
 0xa27   :  { %v9880_v48 = vpop.eup %9879  ;;  %v3647_v21 = vrot.slane %v3596_v5, 4  ;;  %v11495_v43 = vmul.f32 0.125, %v3622_v56 }
 0xa28   :  { %v3527_v0 = vadd.f32 1e-05, %v3511_v17  ;;  %v3555_v24 = vmul.f32 %v9880_v48, %v11377_v60  ;;  %v3598_v28 = vadd.f32 %v11448_v51, %v3576_v55  ;;  %v3653_v60 = vrot.slane %v3597_v27, 4 }
 0xa29   :  { %v3496_v25 = vpop.xlane.xlu0 %3495  ;;  %v3631_v52 = vrot.slane %v3630_v7, 2 }
 0xa2a   :  { %9887 = vrsqrt.f32 %v3527_v0  ;;  %v3512_v39 = vmul.f32 0.0078125, %v3496_v25  ;;  %v3577_v8 = vmul.f32 %v11442_v54, %v3555_v24  ;;  %v3659_v47 = vrot.slane %v3598_v28, 4 }
 0xa2b   :  { %v9882_v38 = vpop.eup %9881  ;;  %v3654_v6 = vadd.f32 %v3653_v60, %v3597_v27  ;;  %v3648_v27 = vadd.f32 %v3647_v21, %v3596_v5  ;;  %v3632_v10 = vadd.f32 %v3631_v52, %v3630_v7 }
 0xa2c   :  { %v3528_v44 = vadd.f32 1e-05, %v3512_v39  ;;  %v3599_v41 = vadd.f32 %v11448_v51, %v3577_v8  ;;  %v3556_v19 = vmul.f32 %v9882_v38, %v11382_v35  ;;  %v3660_v26 = vadd.f32 %v3659_v47, %v3598_v28 }
 0xa2d   :  { %v11485_v35 = vunpack.c.l.b16 %v3718_v46  ;;  %v3655_v24 = vrot.slane %v3654_v6, 2  ;;  %v11490_v28 = vunpack.c.l.b16 %v3719_v1  ;;  %v3643_v8 = vrot.slane %v3642_v16, 2 }
 0xa2e   :  { %9889 = vrsqrt.f32 %v3528_v44  ;;  %v3665_v13 = vrot.slane %v3599_v41, 4  ;;  %v3578_v20 = vmul.f32 %v11442_v54, %v3556_v19  ;;  %v3661_v48 = vrot.slane %v3660_v26, 2 }
 0xa2f   :  { %v9884_v61 = vpop.eup %9883  ;;  %v3649_v5 = vrot.slane %v3648_v27, 2  ;;  %v3633_v7 = vrot.slane %v3632_v10, 1 }
 0xa30   :  { %v3557_v30 = vmul.f32 %v9884_v61, %v11387_v33  ;;  %v3666_v22 = vadd.f32 %v3665_v13, %v3599_v41  ;;  %v3600_v36 = vadd.f32 %v11448_v51, %v3578_v20  ;;  %v3662_v38 = vadd.f32 %v3661_v48, %v3660_v26 }
 0xa31   :  { %v3656_v41 = vadd.f32 %v3655_v24, %v3654_v6  ;;  %v3627_v13 = vrot.slane %v3626_v4, 1  ;;  %v3638_v26 = vadd.f32 %v3637_v40, %v3636_v12  ;;  %v3644_v20 = vadd.f32 %v3643_v8, %v3642_v16 }
 0xa32   :  { %v3579_v17 = vmul.f32 %v11442_v54, %v3557_v30  ;;  %v3671_v49 = vrot.slane %v3600_v36, 4  ;;  %v3667_v55 = vrot.slane %v3666_v22, 2  ;;  %v3663_v45 = vrot.slane %v3662_v38, 1 }
 0xa33   :  { %v9886_v34 = vpop.eup %9885  ;;  %v3639_v56 = vrot.slane %v3638_v26, 1  ;;  %v3645_v16 = vrot.slane %v3644_v20, 1 }
 0xa34   :  { %v3601_v33 = vadd.f32 %v11448_v51, %v3579_v17  ;;  %v3558_v0 = vmul.f32 %v9886_v34, %v11392_v62  ;;  %v3672_v25 = vadd.f32 %v3671_v49, %v3600_v36  ;;  %v3668_v47 = vadd.f32 %v3667_v55, %v3666_v22 }
 0xa35   :  { %v3650_v22 = vadd.f32 %v3649_v5, %v3648_v27  ;;  %v3657_v36 = vrot.slane %v3656_v41, 1  ;;  %v3628_v49 = vadd.f32 %v3627_v13, %v3626_v4  ;;  %v3664_v55 = vadd.f32 %v3663_v45, %v3662_v38 }
 0xa36   :  { %v3677_v39 = vrot.slane %v3601_v33, 4  ;;  %v3580_v46 = vmul.f32 %v11442_v54, %v3558_v0  ;;  %v3673_v63 = vrot.slane %v3672_v25, 2  ;;  %v3669_v29 = vrot.slane %v3668_v47, 1 }
 0xa37   :  { %v9888_v59 = vpop.eup %9887  ;;  %v3705_v8 = vmul.f32 0.125, %v3628_v49  ;;  %v3711_v4 = vmul.f32 0.125, %v3664_v55 }
 0xa38   :  { %v3678_v44 = vadd.f32 %v3677_v39, %v3601_v33  ;;  %v3602_v60 = vadd.f32 %v11448_v51, %v3580_v46  ;;  %v3559_v62 = vmul.f32 %v9888_v59, %v11397_v3  ;;  %v3674_v19 = vadd.f32 %v3673_v63, %v3672_v25 }
 0xa39   :  { %v3670_v33 = vadd.f32 %v3669_v29, %v3668_v47  ;;  %v3658_v25 = vadd.f32 %v3657_v36, %v3656_v41  ;;  %v3651_v39 = vrot.slane %v3650_v22, 1  ;;  %v3634_v46 = vadd.f32 %v3633_v7, %v3632_v10 }
 0xa3a   :  { %v3679_v42 = vrot.slane %v3678_v44, 2  ;;  %v3683_v58 = vrot.slane %v3602_v60, 4  ;;  %v3581_v61 = vmul.f32 %v11442_v54, %v3559_v62  ;;  %v3675_v1 = vrot.slane %v3674_v19, 1 }
 0xa3b   :  { %v9890_v15 = vpop.eup %9889  ;;  %v3640_v63 = vadd.f32 %v3639_v56, %v3638_v26  ;;  %v3712_v38 = vmul.f32 0.125, %v3670_v33  ;;  %v3646_v47 = vadd.f32 %v3645_v16, %v3644_v20  ;;  %v3710_v62 = vmul.f32 0.125, %v3658_v25 }
 0xa3c   :  { %v3680_v30 = vadd.f32 %v3679_v42, %v3678_v44  ;;  %v3684_v21 = vadd.f32 %v3683_v58, %v3602_v60  ;;  %v3603_v3 = vadd.f32 %v11448_v51, %v3581_v61  ;;  %v3560_v6 = vmul.f32 %v9890_v15, %v11402_v57 }
 0xa3d   :  { %v3676_v52 = vadd.f32 %v3675_v1, %v3674_v19  ;;  %v3652_v19 = vadd.f32 %v3651_v39, %v3650_v22  ;;  %v3706_v10 = vmul.f32 0.125, %v3634_v46  ;;  %v3707_v61 = vmul.f32 0.125, %v3640_v63 }
 0xa3e   :  { %v3681_v17 = vrot.slane %v3680_v30, 1  ;;  %v3685_v34 = vrot.slane %v3684_v21, 2  ;;  %v3689_v48 = vrot.slane %v3603_v3, 4  ;;  %v3582_v12 = vmul.f32 %v11442_v54, %v3560_v6 }
 0xa3f   :  { %v3713_v5 = vmul.f32 0.125, %v3676_v52  ;;  %v3727_v15 = vpack.c.bf16 %v3711_v4, %v3711_v4  ;;  %v3721_v45 = vpack.c.bf16 %v3705_v8, %v3705_v8  ;;  %v3728_v29 = vpack.c.bf16 %v3712_v38, %v3712_v38 }
 0xa40   :  { %v3686_v0 = vadd.f32 %v3685_v34, %v3684_v21  ;;  %v3690_v24 = vadd.f32 %v3689_v48, %v3603_v3  ;;  %v3604_v27 = vadd.f32 %v11448_v51, %v3582_v12  ;;  %v3682_v57 = vadd.f32 %v3681_v17, %v3680_v30 }
 0xa41   :  { %v3720_v51 = vpack.c.bf16 %v11495_v43, %v11495_v43  ;;  %v3708_v30 = vmul.f32 0.125, %v3646_v47  ;;  %v3726_v21 = vpack.c.bf16 %v3710_v62, %v3710_v62  ;;  %v3729_v3 = vpack.c.bf16 %v3713_v5, %v3713_v5 }
 0xa42   :  { %v3687_v59 = vrot.slane %v3686_v0, 1  ;;  %v3691_v40 = vrot.slane %v3690_v24, 2  ;;  %v3695_v44 = vrot.slane %v3604_v27, 4  ;;  %v3714_v42 = vmul.f32 0.125, %v3682_v57 }
 0xa43   :  { %v3709_v36 = vmul.f32 0.125, %v3652_v19  ;;  %v3775_v1 = vunpack.c.l.b16 %v3720_v51  ;;  %v3722_v43 = vpack.c.bf16 %v3706_v10, %v3706_v10  ;;  %v3723_v17 = vpack.c.bf16 %v3707_v61, %v3707_v61  ;;  %v9683_v10 = vld [vmem:[#allocation4 + $0x168] ss:$12 sps:$4 sm:$0xff]  }
 0xa44   :  { %v3688_v54 = vadd.f32 %v3687_v59, %v3686_v0  ;;  %v3692_v60 = vadd.f32 %v3691_v40, %v3690_v24  ;;  %v3696_v41 = vadd.f32 %v3695_v44, %v3604_v27  ;;  %v3730_v6 = vpack.c.bf16 %v3714_v42, %v3714_v42 }
 0xa45   :  { %v3782_v34 = vunpack.c.l.b16 %v3727_v15  ;;  %v3776_v56 = vunpack.c.l.b16 %v3721_v45  ;;  %v3783_v55 = vunpack.c.l.b16 %v3728_v29  ;;  %v3724_v12 = vpack.c.bf16 %v3708_v30, %v3708_v30  ;;  %v9688_v15 = vld [vmem:[#allocation4 + $0x154] ss:$12 sps:$4 sm:$0xff]   ;;  %v9689_v45 = vld [vmem:[#allocation4 + $0x138] ss:$12 sps:$4 sm:$0xff]  }
 0xa46   :  { %v3693_v58 = vrot.slane %v3692_v60, 1  ;;  %v3715_v13 = vmul.f32 0.125, %v3688_v54  ;;  %v3697_v26 = vrot.slane %v3696_v41, 2  ;;  %v3781_v33 = vunpack.c.l.b16 %v3726_v21  ;;  %v9694_v29 = vld [vmem:[#allocation4 + $0x124] ss:$12 sps:$4 sm:$0xff]  }
 0xa47   :  { %v3784_v0 = vunpack.c.l.b16 %v3729_v3  ;;  %v3725_v25 = vpack.c.bf16 %v3709_v36, %v3709_v36  ;;  %v3777_v52 = vunpack.c.l.b16 %v3722_v43  ;;  %v3785_v27 = vunpack.c.l.b16 %v3730_v6  ;;  %v9697_v30 = vld [vmem:[#allocation4 + $0x10c] ss:$12 sps:$4 sm:$0xff]   ;;  %v9695_v3 = vld [vmem:[#allocation4 + $0x108] ss:$12 sps:$4 sm:$0xff]   ;;  %v9698_v43 = vld [vmem:[#allocation4 + $0xf0] ss:$12 sps:$4 sm:$0xff]  }
 0xa48   :  { %v3694_v20 = vadd.f32 %v3693_v58, %v3692_v60  ;;  %v3698_v22 = vadd.f32 %v3697_v26, %v3696_v41  ;;  %v3731_v48 = vpack.c.bf16 %v3715_v13, %v3715_v13  ;;  %v3790_v39 = vsel %vm3789_vm6, %v11490_v28, %v11485_v35  ;;  %v9686_v13 = vld [vmem:[#allocation4 + $0x150] ss:$12 sps:$4 sm:$0xff]  }
 0xa49   :  { %v3778_v57 = vunpack.c.l.b16 %v3723_v17  ;;  %v3803_v40 = vsel %vm3789_vm6, %v3782_v34, %v3781_v33  ;;  %v3779_v8 = vunpack.c.l.b16 %v3724_v12  ;;  %v3792_v4 = vsel %vm3791_vm7, %v3775_v1, %v3790_v39  ;;  %v9691_v26 = vld [vmem:[#allocation4 + $0x13c] ss:$12 sps:$4 sm:$0xff]  }
 0xa4a   :  { %v3716_v7 = vmul.f32 0.125, %v3694_v20  ;;  %v3699_v49 = vrot.slane %v3698_v22, 1  ;;  %v3786_v59 = vunpack.c.l.b16 %v3731_v48  ;;  %v3804_v44 = vsel %vm3791_vm7, %v3783_v55, %v3803_v40  ;;  %v9692_v20 = vld [vmem:[#allocation4 + $0x120] ss:$12 sps:$4 sm:$0xff]   ;;  %v9703_v6 = vld [vmem:[#allocation4 + $0xdc] ss:$12 sps:$4 sm:$0xff]  }
 0xa4b   :  { %v3780_v54 = vunpack.c.l.b16 %v3725_v25  ;;  %v3794_v60 = vsel %vm3793_vm11, %v3776_v56, %v3792_v4  ;;  %v3805_v47 = vsel %vm3793_vm11, %v3784_v0, %v3804_v44  ;;  %v9701_v48 = vld [vmem:[#allocation4 + $0xd8] ss:$12 sps:$4 sm:$0xff]   ;;  %v9704_v56 = vld [vmem:[#allocation4 + $0xc0] ss:$12 sps:$4 sm:$0xff]  }
 0xa4c   :  { %v3732_v16 = vpack.c.bf16 %v3716_v7, %v3716_v7  ;;  %v3700_v24 = vadd.f32 %v3699_v49, %v3698_v22  ;;  %v3796_v35 = vsel %vm3795_vm12, %v3777_v52, %v3794_v60  ;;  %v3806_v28 = vsel %vm3795_vm12, %v3785_v27, %v3805_v47  ;;  %v9700_v22 = vld [vmem:[#allocation4 + $0xf4] ss:$12 sps:$4 sm:$0xff]   ;;  %v9706_v49 = vld [vmem:[#allocation4 + $0xc4] ss:$12 sps:$4 sm:$0xff]  }
 0xa4d   :  { %v3798_v5 = vsel %vm3797_vm13, %v3778_v57, %v3796_v35  ;;  %v3807_v41 = vsel %vm3797_vm13, %v3786_v59, %v3806_v28 }
 0xa4e   :  { %v3717_v46 = vmul.f32 0.125, %v3700_v24  ;;  %v3787_v63 = vunpack.c.l.b16 %v3732_v16  ;;  %v3800_v19 = vsel %vm3799_vm14, %v3779_v8, %v3798_v5 }
 0xa4f   :  { %v3802_v42 = vsel %vm3801_vm15, %v3780_v54, %v3800_v19 }
 0xa50   :  { %v3733_v38 = vpack.c.bf16 %v3717_v46, %v3717_v46  ;;  %v3808_v51 = vsel %vm3799_vm14, %v3787_v63, %v3807_v41 }
 0xa52   :  { %v3788_v62 = vunpack.c.l.b16 %v3733_v38 }
 0xa54   :  { %v3809_v58 = vsel %vm3801_vm15, %v3788_v62, %v3808_v51 }
 0xa55   :  { %v3810_v61 = vpack.c.b16 %v3809_v58, %v3802_v42 }
 0xa57   :  { %9102 = vmatmul.mubr.bf16.vlgmr.msra.gmra.mxu1 %v3810_v61 }
 0xa58   :  { %4336 = vmatpush1.bf16.msra.mxu1 %v9683_v10  ;;  %4367 = vmatprep.mubr.bf16.mxu1 %v10159_v2 }
 0xa59   :  { %4337 = vmatprep.subr.bf16.mxu1 %v9688_v15 }
 0xa5c   :  { %4338 = vmatpush1.bf16.msra.mxu1 %v9686_v13 }
 0xa5d   :  { %4339 = vmatprep.subr.bf16.mxu1 %v9691_v26 }
 0xa60   :  { %4340 = vmatpush1.bf16.msra.mxu1 %v9689_v45 }
 0xa61   :  { %4341 = vmatprep.subr.bf16.mxu1 %v9694_v29 }
 0xa64   :  { %4342 = vmatpush1.bf16.msra.mxu1 %v9692_v20 }
 0xa65   :  { %v9135_v21 = vpop.f32.mrf.mxu0  ;;  %4343 = vmatprep.subr.bf16.mxu1 %v9697_v30 }
 0xa67   :  { %v4151_v36 = vpop.f32.mrf.mxu0 }
 0xa68   :  { %4344 = vmatpush1.bf16.msra.mxu1 %v9695_v3 }
 0xa69   :  { %v9136_v1 = vpop.f32.mrf.mxu0  ;;  %4345 = vmatprep.subr.bf16.mxu1 %v9700_v22 }
 0xa6a   :  { %v11523_v34 = vpack.c.bf16 %v9136_v1, %v9135_v21 }
 0xa6b   :  { %v4154_v7 = vpop.f32.mrf.mxu0 }
 0xa6c   :  { %v11521_v17 = vpack.c.bf16 %v4154_v7, %v4151_v36  ;;  %4346 = vmatpush1.bf16.msra.mxu1 %v9698_v43 }
 0xa6d   :  { %4347 = vmatprep.subr.bf16.mxu1 %v9703_v6 }
 0xa6e   :  { %9165 = vmatprep.mubr.bf16.mxu0 %v11521_v17 }
 0xa6f   :  { %9166 = vmatmul.mubr.bf16.gmra.mxu0 %v11523_v34 }
 0xa70   :  { %9171 = vmatprep.mubr.msk.bf16.mxu0 %vm10162_vm8, %v10161_v31  ;;  %4348 = vmatpush1.bf16.msra.mxu1 %v9701_v48 }
 0xa71   :  { %4349 = vmatprep.subr.bf16.mxu1 %v9706_v49 }
 0xa74   :  { %4350 = vmatpush1.bf16.msra.mxu1 %v9704_v56 }
 0xa75   :  { %9175 = vmatprep.subr.bf16.mxu1 %v10161_v31 }
 0xa77   :  { %4368 = vmatmul.mubr.bf16.vlgmr.msra.gmra.mxu1 %v11411_v53 }
 0xa78   :  { %4377 = vmatprep.mubr.bf16.mxu1 %v10159_v2 }
 0xa7f   :  { %4378 = vmatmul.mubr.bf16.gmra.mxu1 %v11416_v37 }
 0xa80   :  { %4387 = vmatprep.mubr.bf16.mxu1 %v10159_v2 }
 0xa87   :  { %4388 = vmatmul.mubr.bf16.gmra.mxu1 %v11418_v9 }
 0xa88   :  { %4397 = vmatprep.mubr.bf16.mxu1 %v10159_v2 }
 0xa8f   :  { %4398 = vmatmul.mubr.bf16.gmra.mxu1 %v11422_v32 }
 0xa90   :  { %4407 = vmatprep.mubr.bf16.mxu1 %v10159_v2 }
 0xa97   :  { %4408 = vmatmul.mubr.bf16.gmra.mxu1 %v11424_v50 }
 0xa98   :  { %4417 = vmatprep.mubr.bf16.mxu1 %v10159_v2 }
 0xa9f   :  { %4418 = vmatmul.mubr.bf16.gmra.mxu1 %v11429_v23 }
 0xaa0   :  { %4427 = vmatprep.mubr.bf16.mxu1 %v10159_v2 }
 0xaa7   :  { %4428 = vmatmul.mubr.bf16.gmra.mxu1 %v11521_v17 }
 0xaa8   :  { %4437 = vmatprep.mubr.bf16.mxu1 %v10159_v2 }
 0xaaf   :  { %4438 = vmatmul.mubr.bf16.gmra.mxu1 %v11523_v34 }
 0xab0   :  { %9177 = vmatprep.mubr.msk.bf16.mxu1 %vm10162_vm8, %v10161_v31 }
 0xb17   :  { %v11547_v55 = vpop.f32.mrf.mxu1 }
 0xb19   :  { %v9103_v12 = vpop.f32.mrf.mxu1 }
 0xb1b   :  { %v11549_v16 = vpop.f32.mrf.mxu1 }
 0xb1d   :  { %v9104_v33 = vpop.f32.mrf.mxu1 }
 0xb37   :  { %v4369_v0 = vpop.f32.mrf.mxu1 }
 0xb38   :  { %v4545_v57 = vpack.c.bf16 %v4369_v0, %v4369_v0 }
 0xb39   :  { %v4371_v24 = vpop.f32.mrf.mxu1 }
 0xb3a   :  { %v4561_v25 = vpack.c.bf16 %v4371_v24, %v4371_v24 }
 0xb3b   :  { %v4373_v52 = vpop.f32.mrf.mxu1 }
 0xb3c   :  { %9170 = vmatpush3.bf16.xpose.msra.mxu0 %v4561_v25  ;;  %v4546_v63 = vpack.c.bf16 %v4373_v52, %v4373_v52  ;;  %v11583_v25 = vpop.f32.mrf.mxu0 }
 0xb3d   :  { %v4375_v27 = vpop.f32.mrf.mxu1  ;;  %9181 = vmatprep.subr.bf16.mxu0 %v10161_v31 }
 0xb3e   :  { %v4562_v39 = vpack.c.bf16 %v4375_v27, %v4375_v27 }
 0xb3f   :  { %v4379_v46 = vpop.f32.mrf.mxu1 }
 0xb40   :  { %9176 = vmatpush3.bf16.xpose.msra.mxu1 %v4562_v39  ;;  %v4547_v54 = vpack.c.bf16 %v4379_v46, %v4379_v46 }
 0xb41   :  { %v4381_v59 = vpop.f32.mrf.mxu1  ;;  %9187 = vmatprep.subr.bf16.mxu1 %v10161_v31 }
 0xb42   :  { %v4563_v40 = vpack.c.bf16 %v4381_v59, %v4381_v59 }
 0xb43   :  { %v4383_v8 = vpop.f32.mrf.mxu1  ;;  %9172 = vmatmul.mubr.bf16.vlgmr.msra.gmra.mxu0 %v4545_v57  ;;  %v4482_v57 = vpop.f32.mrf.mxu0 }
 0xb44   :  { %9182 = vmatpush3.bf16.xpose.msra.mxu0 %v4563_v40  ;;  %9183 = vmatprep.mubr.msk.bf16.mxu0 %vm10162_vm8, %v10161_v31  ;;  %v4548_v28 = vpack.c.bf16 %v4383_v8, %v4383_v8 }
 0xb45   :  { %v4385_v4 = vpop.f32.mrf.mxu1  ;;  %9193 = vmatprep.subr.bf16.mxu0 %v10161_v31 }
 0xb46   :  { %v4564_v44 = vpack.c.bf16 %v4385_v4, %v4385_v4  ;;  %v11591_v4 = vpop.f32.mrf.mxu0 }
 0xb47   :  { %v4389_v38 = vpop.f32.mrf.mxu1  ;;  %9178 = vmatmul.mubr.bf16.vlgmr.msra.gmra.mxu1 %v4546_v63 }
 0xb48   :  { %9188 = vmatpush3.bf16.xpose.msra.mxu1 %v4564_v44  ;;  %9189 = vmatprep.mubr.msk.bf16.mxu1 %vm10162_vm8, %v10161_v31  ;;  %v4549_v19 = vpack.c.bf16 %v4389_v38, %v4389_v38 }
 0xb49   :  { %v4391_v60 = vpop.f32.mrf.mxu1  ;;  %9199 = vmatprep.subr.bf16.mxu1 %v10161_v31 }
 0xb4a   :  { %v4565_v47 = vpack.c.bf16 %v4391_v60, %v4391_v60  ;;  %v5425_v60 = vpack.c.bf16 %v4482_v57, %v4482_v57 }
 0xb4b   :  { %v4393_v35 = vpop.f32.mrf.mxu1  ;;  %9184 = vmatmul.mubr.bf16.vlgmr.msra.gmra.mxu0 %v4547_v54 }
 0xb4c   :  { %9194 = vmatpush3.bf16.xpose.msra.mxu0 %v4565_v47  ;;  %9195 = vmatprep.mubr.msk.bf16.mxu0 %vm10162_vm8, %v10161_v31  ;;  %v4550_v58 = vpack.c.bf16 %v4393_v35, %v4393_v35  ;;  %v4485_v47 = vpop.f32.mrf.mxu0 }
 0xb4d   :  { %v4395_v62 = vpop.f32.mrf.mxu1  ;;  %9205 = vmatprep.subr.bf16.mxu0 %v10161_v31 }
 0xb4e   :  { %v4566_v5 = vpack.c.bf16 %v4395_v62, %v4395_v62  ;;  %v5426_v62 = vpack.c.bf16 %v4485_v47, %v4485_v47 }
 0xb4f   :  { %v4399_v41 = vpop.f32.mrf.mxu1  ;;  %9190 = vmatmul.mubr.bf16.vlgmr.msra.gmra.mxu1 %v4548_v28  ;;  %v5445_v28 = vsel %vm1700_vm9, %v5425_v60, 0 }
 0xb50   :  { %9200 = vmatpush3.bf16.xpose.msra.mxu1 %v4566_v5  ;;  %9201 = vmatprep.mubr.msk.bf16.mxu1 %vm10162_vm8, %v10161_v31  ;;  %v4551_v26 = vpack.c.bf16 %v4399_v41, %v4399_v41  ;;  %v5491_v41 = vsel %vm1700_vm9, %v5426_v62, 0 }
 0xb51   :  { %v4401_v51 = vpop.f32.mrf.mxu1  ;;  %9211 = vmatprep.subr.bf16.mxu1 %v10161_v31 }
 0xb52   :  { %v4567_v10 = vpack.c.bf16 %v4401_v51, %v4401_v51 }
 0xb53   :  { %v4403_v42 = vpop.f32.mrf.mxu1  ;;  %9196 = vmatmul.mubr.bf16.vlgmr.msra.gmra.mxu0 %v4549_v19  ;;  %v11607_v19 = vpop.f32.mrf.mxu0 }
 0xb54   :  { %9206 = vmatpush3.bf16.xpose.msra.mxu0 %v4567_v10  ;;  %9207 = vmatprep.mubr.msk.bf16.mxu0 %vm10162_vm8, %v10161_v31  ;;  %v4552_v30 = vpack.c.bf16 %v4403_v42, %v4403_v42 }
 0xb55   :  { %v4405_v61 = vpop.f32.mrf.mxu1  ;;  %9217 = vmatprep.subr.bf16.mxu0 %v10161_v31  ;;  %v11609_v51 = vpop.f32.mrf.mxu0 }
 0xb56   :  { %v4568_v15 = vpack.c.bf16 %v4405_v61, %v4405_v61 }
 0xb57   :  { %v4409_v13 = vpop.f32.mrf.mxu1  ;;  %9202 = vmatmul.mubr.bf16.vlgmr.msra.gmra.mxu1 %v4550_v58  ;;  %v11611_v10 = vpop.f32.mrf.mxu0 }
 0xb58   :  { %9212 = vmatpush3.bf16.xpose.msra.mxu1 %v4568_v15  ;;  %9213 = vmatprep.mubr.msk.bf16.mxu1 %vm10162_vm8, %v10161_v31  ;;  %v4553_v36 = vpack.c.bf16 %v4409_v13, %v4409_v13 }
 0xb59   :  { %v4411_v45 = vpop.f32.mrf.mxu1  ;;  %9223 = vmatprep.subr.bf16.mxu1 %v10161_v31  ;;  %v11613_v42 = vpop.f32.mrf.mxu0 }
 0xb5a   :  { %v4569_v29 = vpack.c.bf16 %v4411_v45, %v4411_v45 }
 0xb5b   :  { %v4413_v20 = vpop.f32.mrf.mxu1  ;;  %9208 = vmatmul.mubr.bf16.vlgmr.msra.gmra.mxu0 %v4551_v26  ;;  %v11615_v58 = vpop.f32.mrf.mxu0 }
 0xb5c   :  { %9218 = vmatpush3.bf16.xpose.msra.mxu0 %v4569_v29  ;;  %9219 = vmatprep.mubr.msk.bf16.mxu0 %vm10162_vm8, %v10161_v31  ;;  %v4554_v7 = vpack.c.bf16 %v4413_v20, %v4413_v20 }
 0xb5d   :  { %v4415_v21 = vpop.f32.mrf.mxu1  ;;  %9229 = vmatprep.subr.bf16.mxu0 %v10161_v31  ;;  %v11617_v61 = vpop.f32.mrf.mxu0 }
 0xb5e   :  { %v4570_v3 = vpack.c.bf16 %v4415_v21, %v4415_v21 }
 0xb5f   :  { %v4419_v22 = vpop.f32.mrf.mxu1  ;;  %9214 = vmatmul.mubr.bf16.vlgmr.msra.gmra.mxu1 %v4552_v30  ;;  %v11619_v15 = vpop.f32.mrf.mxu0 }
 0xb60   :  { %9224 = vmatpush3.bf16.xpose.msra.mxu1 %v4570_v3  ;;  %9225 = vmatprep.mubr.msk.bf16.mxu1 %vm10162_vm8, %v10161_v31  ;;  %v4555_v12 = vpack.c.bf16 %v4419_v22, %v4419_v22 }
 0xb61   :  { %v4421_v1 = vpop.f32.mrf.mxu1  ;;  %9235 = vmatprep.subr.bf16.mxu1 %v10161_v31  ;;  %v11621_v13 = vpop.f32.mrf.mxu0 }
 0xb62   :  { %v4571_v43 = vpack.c.bf16 %v4421_v1, %v4421_v1 }
 0xb63   :  { %v4423_v6 = vpop.f32.mrf.mxu1  ;;  %9220 = vmatmul.mubr.bf16.vlgmr.msra.gmra.mxu0 %v4553_v36  ;;  %v11623_v26 = vpop.f32.mrf.mxu0 }
 0xb64   :  { %9230 = vmatpush3.bf16.xpose.msra.mxu0 %v4571_v43  ;;  %9231 = vmatprep.mubr.msk.bf16.mxu0 %vm10162_vm8, %v10161_v31  ;;  %v4556_v52 = vpack.c.bf16 %v4423_v6, %v4423_v6 }
 0xb65   :  { %v4425_v48 = vpop.f32.mrf.mxu1  ;;  %9241 = vmatprep.subr.bf16.mxu0 %v10161_v31  ;;  %v11625_v45 = vpop.f32.mrf.mxu0 }
 0xb66   :  { %v4572_v49 = vpack.c.bf16 %v4425_v48, %v4425_v48 }
 0xb67   :  { %v4429_v56 = vpop.f32.mrf.mxu1  ;;  %9226 = vmatmul.mubr.bf16.vlgmr.msra.gmra.mxu1 %v4554_v7  ;;  %v11627_v29 = vpop.f32.mrf.mxu0 }
 0xb68   :  { %9236 = vmatpush3.bf16.xpose.msra.mxu1 %v4572_v49  ;;  %9237 = vmatprep.mubr.msk.bf16.mxu1 %vm10162_vm8, %v10161_v31  ;;  %v4557_v59 = vpack.c.bf16 %v4429_v56, %v4429_v56 }
 0xb69   :  { %v4431_v33 = vpop.f32.mrf.mxu1  ;;  %9247 = vmatprep.subr.bf16.mxu1 %v10161_v31  ;;  %v11629_v20 = vpop.f32.mrf.mxu0 }
 0xb6a   :  { %v4573_v0 = vpack.c.bf16 %v4431_v33, %v4431_v33 }
 0xb6b   :  { %v4433_v24 = vpop.f32.mrf.mxu1  ;;  %9232 = vmatmul.mubr.bf16.vlgmr.msra.gmra.mxu0 %v4555_v12 }
 0xb6c   :  { %9242 = vmatpush3.bf16.xpose.msra.mxu0 %v4573_v0  ;;  %9243 = vmatprep.mubr.msk.bf16.mxu0 %vm10162_vm8, %v10161_v31  ;;  %v4558_v44 = vpack.c.bf16 %v4433_v24, %v4433_v24 }
 0xb6d   :  { %v4435_v27 = vpop.f32.mrf.mxu1  ;;  %9253 = vmatprep.subr.bf16.mxu0 %v10161_v31 }
 0xb6e   :  { %v4574_v39 = vpack.c.bf16 %v4435_v27, %v4435_v27 }
 0xb6f   :  { %v4439_v46 = vpop.f32.mrf.mxu1  ;;  %9238 = vmatmul.mubr.bf16.vlgmr.msra.gmra.mxu1 %v4556_v52 }
 0xb70   :  { %9248 = vmatpush3.bf16.xpose.msra.mxu1 %v4574_v39  ;;  %9249 = vmatprep.mubr.msk.bf16.mxu1 %vm10162_vm8, %v10161_v31  ;;  %v4559_v35 = vpack.c.bf16 %v4439_v46, %v4439_v46 }
 0xb71   :  { %v4441_v40 = vpop.f32.mrf.mxu1  ;;  %9259 = vmatprep.subr.bf16.mxu1 %v10161_v31 }
 0xb72   :  { %v4575_v8 = vpack.c.bf16 %v4441_v40, %v4441_v40 }
 0xb73   :  { %v4443_v63 = vpop.f32.mrf.mxu1  ;;  %9244 = vmatmul.mubr.bf16.vlgmr.msra.gmra.mxu0 %v4557_v59 }
 0xb74   :  { %9254 = vmatpush3.bf16.xpose.msra.mxu0 %v4575_v8  ;;  %9255 = vmatprep.mubr.msk.bf16.mxu0 %vm10162_vm8, %v10161_v31  ;;  %v4560_v5 = vpack.c.bf16 %v4443_v63, %v4443_v63 }
 0xb75   :  { %v4445_v38 = vpop.f32.mrf.mxu1  ;;  %9265 = vmatprep.subr.bf16.mxu0 %v10161_v31 }
 0xb76   :  { %v4576_v54 = vpack.c.bf16 %v4445_v38, %v4445_v38 }
 0xb77   :  { %9250 = vmatmul.mubr.bf16.vlgmr.msra.gmra.mxu1 %v4558_v44 }
 0xb78   :  { %9260 = vmatpush3.bf16.xpose.msra.mxu1 %v4576_v54  ;;  %9261 = vmatprep.mubr.msk.bf16.mxu1 %vm10162_vm8, %v10161_v31 }
 0xb79   :  { %9271 = vmatprep.subr.bf16.mxu1 %v10161_v31 }
 0xb7b   :  { %9256 = vmatmul.mubr.bf16.vlgmr.msra.gmra.mxu0 %v4559_v35 }
 0xb7c   :  { %9266 = vmatpush3.bf16.msra.mxu0 %v5445_v28  ;;  %9267 = vmatprep.mubr.msk.bf16.mxu0 %vm10162_vm8, %v10161_v31 }
 0xb7d   :  { %9277 = vmatprep.subr.bf16.mxu0 %v10161_v31 }
 0xb7f   :  { %9262 = vmatmul.mubr.bf16.vlgmr.msra.gmra.mxu1 %v4560_v5 }
 0xb80   :  { %9272 = vmatpush3.bf16.msra.mxu1 %v5491_v41  ;;  %9273 = vmatprep.mubr.msk.bf16.mxu1 %vm10162_vm8, %v10161_v31 }
 0xb81   :  { %9283 = vmatprep.subr.bf16.mxu1 %v10161_v31 }
 0xc03   :  { %v4611_v30 = vpop.f32.mrf.mxu0 }
 0xc04   :  { %v11631_v21 = vmul.f32 0.088388346, %v4611_v30 }
 0xc05   :  { %v9173_v3 = vpop.f32.mrf.mxu0 }
 0xc06   :  { %v5233_v22 = vsel %vm1488_vm10, %v11631_v21, -inf }
 0xc07   :  { %5234 = vmax.xlane.f32.xlu1 %v5233_v22  ;;  %v4614_v36 = vpop.f32.mrf.mxu0  ;;  %v4651_v1 = vpop.f32.mrf.mxu1 }
 0xc08   :  { %v11635_v43 = vmul.f32 0.088388346, %v4651_v1 }
 0xc09   :  { %v9174_v6 = vpop.f32.mrf.mxu0  ;;  %v9179_v7 = vpop.f32.mrf.mxu1 }
 0xc0a   :  { %v5236_v48 = vsel %vm1488_vm10, %v11635_v43, -inf }
 0xc0b   :  { %v4691_v49 = vpop.f32.mrf.mxu0  ;;  %5237 = vmax.xlane.f32.xlu0 %v5236_v48  ;;  %v4654_v56 = vpop.f32.mrf.mxu1 }
 0xc0c   :  { %v11639_v12 = vmul.f32 0.088388346, %v4691_v49 }
 0xc0d   :  { %v9180_v33 = vpop.f32.mrf.mxu1  ;;  %v9185_v0 = vpop.f32.mrf.mxu0 }
 0xc0e   :  { %v5239_v24 = vsel %vm1488_vm10, %v11639_v12, -inf }
 0xc0f   :  { %5240 = vmax.xlane.f32.xlu1 %v5239_v24  ;;  %v4694_v52 = vpop.f32.mrf.mxu0  ;;  %v4731_v27 = vpop.f32.mrf.mxu1 }
 0xc10   :  { %v11643_v39 = vmul.f32 0.088388346, %v4731_v27 }
 0xc11   :  { %v9186_v46 = vpop.f32.mrf.mxu0  ;;  %v9191_v57 = vpop.f32.mrf.mxu1 }
 0xc12   :  { %v5242_v59 = vsel %vm1488_vm10, %v11643_v39, -inf }
 0xc13   :  { %v4771_v40 = vpop.f32.mrf.mxu0  ;;  %5243 = vmax.xlane.f32.xlu0 %v5242_v59  ;;  %v4734_v8 = vpop.f32.mrf.mxu1 }
 0xc14   :  { %v11647_v63 = vmul.f32 0.088388346, %v4771_v40 }
 0xc15   :  { %v9192_v44 = vpop.f32.mrf.mxu1  ;;  %v9197_v38 = vpop.f32.mrf.mxu0 }
 0xc16   :  { %v5245_v54 = vsel %vm1488_vm10, %v11647_v63, -inf }
 0xc17   :  { %5246 = vmax.xlane.f32.xlu1 %v5245_v54  ;;  %v4774_v60 = vpop.f32.mrf.mxu0  ;;  %v4811_v47 = vpop.f32.mrf.mxu1 }
 0xc18   :  { %v11651_v35 = vmul.f32 0.088388346, %v4811_v47 }
 0xc19   :  { %v9198_v28 = vpop.f32.mrf.mxu0  ;;  %v9203_v62 = vpop.f32.mrf.mxu1 }
 0xc1a   :  { %v5248_v5 = vsel %vm1488_vm10, %v11651_v35, -inf }
 0xc1b   :  { %v4851_v41 = vpop.f32.mrf.mxu0  ;;  %5249 = vmax.xlane.f32.xlu0 %v5248_v5  ;;  %v4814_v30 = vpop.f32.mrf.mxu1 }
 0xc1c   :  { %v11655_v3 = vmul.f32 0.088388346, %v4851_v41 }
 0xc1d   :  { %v9204_v22 = vpop.f32.mrf.mxu1  ;;  %v9209_v36 = vpop.f32.mrf.mxu0 }
 0xc1e   :  { %v5251_v1 = vsel %vm1488_vm10, %v11655_v3, -inf }
 0xc1f   :  { %5252 = vmax.xlane.f32.xlu1 %v5251_v1  ;;  %v4854_v6 = vpop.f32.mrf.mxu0  ;;  %v4891_v7 = vpop.f32.mrf.mxu1 }
 0xc20   :  { %v11659_v48 = vmul.f32 0.088388346, %v4891_v7 }
 0xc21   :  { %v9210_v49 = vpop.f32.mrf.mxu0  ;;  %v9215_v56 = vpop.f32.mrf.mxu1 }
 0xc22   :  { %v5254_v33 = vsel %vm1488_vm10, %v11659_v48, -inf }
 0xc23   :  { %v4931_v0 = vpop.f32.mrf.mxu0  ;;  %5255 = vmax.xlane.f32.xlu0 %v5254_v33  ;;  %v4894_v24 = vpop.f32.mrf.mxu1 }
 0xc24   :  { %v11663_v52 = vmul.f32 0.088388346, %v4931_v0 }
 0xc25   :  { %v9216_v27 = vpop.f32.mrf.mxu1  ;;  %v9221_v46 = vpop.f32.mrf.mxu0 }
 0xc26   :  { %v5257_v57 = vsel %vm1488_vm10, %v11663_v52, -inf }
 0xc27   :  { %5258 = vmax.xlane.f32.xlu1 %v5257_v57  ;;  %v4934_v59 = vpop.f32.mrf.mxu0  ;;  %v4971_v40 = vpop.f32.mrf.mxu1 }
 0xc28   :  { %v11667_v8 = vmul.f32 0.088388346, %v4971_v40 }
 0xc29   :  { %v9222_v44 = vpop.f32.mrf.mxu0  ;;  %v9227_v38 = vpop.f32.mrf.mxu1 }
 0xc2a   :  { %v5260_v54 = vsel %vm1488_vm10, %v11667_v8, -inf }
 0xc2b   :  { %v5011_v60 = vpop.f32.mrf.mxu0  ;;  %5261 = vmax.xlane.f32.xlu0 %v5260_v54  ;;  %v4974_v47 = vpop.f32.mrf.mxu1 }
 0xc2c   :  { %v11671_v28 = vmul.f32 0.088388346, %v5011_v60 }
 0xc2d   :  { %v9228_v62 = vpop.f32.mrf.mxu1  ;;  %v9233_v5 = vpop.f32.mrf.mxu0 }
 0xc2e   :  { %v5263_v41 = vsel %vm1488_vm10, %v11671_v28, -inf }
 0xc2f   :  { %5264 = vmax.xlane.f32.xlu1 %v5263_v41  ;;  %v5014_v30 = vpop.f32.mrf.mxu0  ;;  %v5051_v22 = vpop.f32.mrf.mxu1 }
 0xc30   :  { %v11675_v36 = vmul.f32 0.088388346, %v5051_v22 }
 0xc31   :  { %v9234_v1 = vpop.f32.mrf.mxu0  ;;  %v9239_v6 = vpop.f32.mrf.mxu1 }
 0xc32   :  { %v5266_v7 = vsel %vm1488_vm10, %v11675_v36, -inf }
 0xc33   :  { %v5091_v49 = vpop.f32.mrf.mxu0  ;;  %5267 = vmax.xlane.f32.xlu0 %v5266_v7  ;;  %v5054_v56 = vpop.f32.mrf.mxu1 }
 0xc34   :  { %v11679_v33 = vmul.f32 0.088388346, %v5091_v49 }
 0xc35   :  { %v9240_v0 = vpop.f32.mrf.mxu1  ;;  %v9245_v24 = vpop.f32.mrf.mxu0 }
 0xc36   :  { %v5269_v27 = vsel %vm1488_vm10, %v11679_v33, -inf }
 0xc37   :  { %5270 = vmax.xlane.f32.xlu1 %v5269_v27  ;;  %v5094_v46 = vpop.f32.mrf.mxu0  ;;  %v5131_v57 = vpop.f32.mrf.mxu1 }
 0xc38   :  { %v11683_v59 = vmul.f32 0.088388346, %v5131_v57 }
 0xc39   :  { %v9246_v40 = vpop.f32.mrf.mxu0  ;;  %v9251_v44 = vpop.f32.mrf.mxu1 }
 0xc3a   :  { %v5272_v38 = vsel %vm1488_vm10, %v11683_v59, -inf }
 0xc3b   :  { %v5171_v54 = vpop.f32.mrf.mxu0  ;;  %5273 = vmax.xlane.f32.xlu0 %v5272_v38  ;;  %v5134_v60 = vpop.f32.mrf.mxu1 }
 0xc3c   :  { %v11687_v47 = vmul.f32 0.088388346, %v5171_v54 }
 0xc3d   :  { %v9252_v62 = vpop.f32.mrf.mxu1  ;;  %v9257_v5 = vpop.f32.mrf.mxu0 }
 0xc3e   :  { %v5275_v41 = vsel %vm1488_vm10, %v11687_v47, -inf }
 0xc3f   :  { %5276 = vmax.xlane.f32.xlu1 %v5275_v41  ;;  %v5174_v30 = vpop.f32.mrf.mxu0  ;;  %v5211_v22 = vpop.f32.mrf.mxu1 }
 0xc40   :  { %v11691_v1 = vmul.f32 0.088388346, %v5211_v22 }
 0xc41   :  { %v9258_v6 = vpop.f32.mrf.mxu0  ;;  %v9263_v7 = vpop.f32.mrf.mxu1 }
 0xc42   :  { %v5278_v49 = vsel %vm1488_vm10, %v11691_v1, -inf }
 0xc43   :  { %5279 = vmax.xlane.f32.xlu0 %v5278_v49  ;;  %v5214_v56 = vpop.f32.mrf.mxu1 }
 0xc45   :  { %v9264_v0 = vpop.f32.mrf.mxu1 }
 0xc90   :  { %v5235_v24 = vpop.xlane.xlu1 %5234 }
 0xc91   :  { %v5281_v27 = vsub.f32 %v11631_v21, %v5235_v24 }
 0xc93   :  { %v5297_v46 = vmul.f32 1.442695, %v5281_v27 }
 0xc94   :  { %v5238_v57 = vpop.xlane.xlu0 %5237 }
 0xc95   :  { %9891 = vpow2.f32 %v5297_v46  ;;  %v5282_v40 = vsub.f32 %v11635_v43, %v5238_v57 }
 0xc97   :  { %v5299_v44 = vmul.f32 1.442695, %v5282_v40 }
 0xc98   :  { %v5241_v38 = vpop.xlane.xlu1 %5240 }
 0xc99   :  { %9893 = vpow2.f32 %v5299_v44  ;;  %v5283_v54 = vsub.f32 %v11639_v12, %v5241_v38 }
 0xc9b   :  { %v5301_v60 = vmul.f32 1.442695, %v5283_v54 }
 0xc9c   :  { %v5244_v62 = vpop.xlane.xlu0 %5243 }
 0xc9d   :  { %9895 = vpow2.f32 %v5301_v60  ;;  %v5284_v5 = vsub.f32 %v11643_v39, %v5244_v62 }
 0xc9f   :  { %v5303_v41 = vmul.f32 1.442695, %v5284_v5 }
 0xca0   :  { %v5247_v30 = vpop.xlane.xlu1 %5246 }
 0xca1   :  { %9897 = vpow2.f32 %v5303_v41  ;;  %v5285_v21 = vsub.f32 %v11647_v63, %v5247_v30 }
 0xca2   :  { %v11700_v22 = vpop.eup %9891 }
 0xca3   :  { %v5305_v6 = vmul.f32 1.442695, %v5285_v21  ;;  %v5329_v43 = vsel %vm1488_vm10, %v11700_v22, 0.0 }
 0xca4   :  { %5330 = vadd.xlane.f32.xlu1 %v5329_v43  ;;  %v5250_v7 = vpop.xlane.xlu0 %5249 }
 0xca5   :  { %9899 = vpow2.f32 %v5305_v6  ;;  %v5286_v12 = vsub.f32 %v11651_v35, %v5250_v7 }
 0xca6   :  { %v11705_v49 = vpop.eup %9893 }
 0xca7   :  { %v5307_v56 = vmul.f32 1.442695, %v5286_v12  ;;  %v5332_v39 = vsel %vm1488_vm10, %v11705_v49, 0.0 }
 0xca8   :  { %v5253_v0 = vpop.xlane.xlu1 %5252  ;;  %5333 = vadd.xlane.f32.xlu0 %v5332_v39 }
 0xca9   :  { %9901 = vpow2.f32 %v5307_v56  ;;  %v5287_v63 = vsub.f32 %v11655_v3, %v5253_v0 }
 0xcaa   :  { %v11710_v24 = vpop.eup %9895 }
 0xcab   :  { %v5309_v27 = vmul.f32 1.442695, %v5287_v63  ;;  %v5335_v46 = vsel %vm1488_vm10, %v11710_v24, 0.0 }
 0xcac   :  { %5336 = vadd.xlane.f32.xlu1 %v5335_v46  ;;  %v5256_v57 = vpop.xlane.xlu0 %5255 }
 0xcad   :  { %9903 = vpow2.f32 %v5309_v27  ;;  %v5288_v35 = vsub.f32 %v11659_v48, %v5256_v57 }
 0xcae   :  { %v11715_v40 = vpop.eup %9897 }
 0xcaf   :  { %v5311_v44 = vmul.f32 1.442695, %v5288_v35  ;;  %v5338_v38 = vsel %vm1488_vm10, %v11715_v40, 0.0 }
 0xcb0   :  { %v5259_v54 = vpop.xlane.xlu1 %5258  ;;  %5339 = vadd.xlane.f32.xlu0 %v5338_v38 }
 0xcb1   :  { %9905 = vpow2.f32 %v5311_v44  ;;  %v5289_v3 = vsub.f32 %v11663_v52, %v5259_v54 }
 0xcb2   :  { %v11720_v60 = vpop.eup %9899 }
 0xcb3   :  { %v5313_v62 = vmul.f32 1.442695, %v5289_v3  ;;  %v5341_v5 = vsel %vm1488_vm10, %v11720_v60, 0.0 }
 0xcb4   :  { %5342 = vadd.xlane.f32.xlu1 %v5341_v5  ;;  %v5262_v41 = vpop.xlane.xlu0 %5261 }
 0xcb5   :  { %9907 = vpow2.f32 %v5313_v62  ;;  %v5290_v48 = vsub.f32 %v11667_v8, %v5262_v41 }
 0xcb6   :  { %v11725_v30 = vpop.eup %9901 }
 0xcb7   :  { %v5315_v21 = vmul.f32 1.442695, %v5290_v48  ;;  %v5344_v6 = vsel %vm1488_vm10, %v11725_v30, 0.0 }
 0xcb8   :  { %v5265_v43 = vpop.xlane.xlu1 %5264  ;;  %5345 = vadd.xlane.f32.xlu0 %v5344_v6 }
 0xcb9   :  { %9909 = vpow2.f32 %v5315_v21  ;;  %v5291_v52 = vsub.f32 %v11671_v28, %v5265_v43 }
 0xcba   :  { %v11730_v7 = vpop.eup %9903 }
 0xcbb   :  { %v5317_v12 = vmul.f32 1.442695, %v5291_v52  ;;  %v5347_v56 = vsel %vm1488_vm10, %v11730_v7, 0.0 }
 0xcbc   :  { %5348 = vadd.xlane.f32.xlu1 %v5347_v56  ;;  %v5268_v39 = vpop.xlane.xlu0 %5267 }
 0xcbd   :  { %9911 = vpow2.f32 %v5317_v12  ;;  %v5292_v8 = vsub.f32 %v11675_v36, %v5268_v39 }
 0xcbe   :  { %v11735_v0 = vpop.eup %9905 }
 0xcbf   :  { %v5319_v63 = vmul.f32 1.442695, %v5292_v8  ;;  %v5350_v27 = vsel %vm1488_vm10, %v11735_v0, 0.0 }
 0xcc0   :  { %v5271_v46 = vpop.xlane.xlu1 %5270  ;;  %5351 = vadd.xlane.f32.xlu0 %v5350_v27 }
 0xcc1   :  { %9913 = vpow2.f32 %v5319_v63  ;;  %v5293_v28 = vsub.f32 %v11679_v33, %v5271_v46 }
 0xcc2   :  { %v11740_v57 = vpop.eup %9907 }
 0xcc3   :  { %v5321_v35 = vmul.f32 1.442695, %v5293_v28  ;;  %v5353_v44 = vsel %vm1488_vm10, %v11740_v57, 0.0 }
 0xcc4   :  { %5354 = vadd.xlane.f32.xlu1 %v5353_v44  ;;  %v5274_v38 = vpop.xlane.xlu0 %5273 }
 0xcc5   :  { %9915 = vpow2.f32 %v5321_v35  ;;  %v5294_v36 = vsub.f32 %v11683_v59, %v5274_v38 }
 0xcc6   :  { %v11745_v54 = vpop.eup %9909 }
 0xcc7   :  { %v5323_v3 = vmul.f32 1.442695, %v5294_v36  ;;  %v5356_v62 = vsel %vm1488_vm10, %v11745_v54, 0.0 }
 0xcc8   :  { %v5277_v5 = vpop.xlane.xlu1 %5276  ;;  %5357 = vadd.xlane.f32.xlu0 %v5356_v62 }
 0xcc9   :  { %9917 = vpow2.f32 %v5323_v3  ;;  %v5295_v33 = vsub.f32 %v11687_v47, %v5277_v5  ;;  %v5427_v3 = vpack.c.bf16 %v11583_v25, %v11583_v25 }
 0xcca   :  { %v11750_v41 = vpop.eup %9911 }
 0xccb   :  { %v5325_v48 = vmul.f32 1.442695, %v5295_v33  ;;  %v5359_v21 = vsel %vm1488_vm10, %v11750_v41, 0.0 }
 0xccc   :  { %5360 = vadd.xlane.f32.xlu1 %v5359_v21  ;;  %v5280_v6 = vpop.xlane.xlu0 %5279  ;;  %v5537_v21 = vsel %vm1700_vm9, %v5427_v3, 0 }
 0xccd   :  { %9919 = vpow2.f32 %v5325_v48  ;;  %v5296_v59 = vsub.f32 %v11691_v1, %v5280_v6  ;;  %v5428_v6 = vpack.c.bf16 %v11591_v4, %v11591_v4 }
 0xcce   :  { %v11755_v43 = vpop.eup %9913 }
 0xccf   :  { %v5327_v52 = vmul.f32 1.442695, %v5296_v59  ;;  %v5362_v12 = vsel %vm1488_vm10, %v11755_v43, 0.0 }
 0xcd0   :  { %5363 = vadd.xlane.f32.xlu0 %v5362_v12  ;;  %v5583_v12 = vsel %vm1700_vm9, %v5428_v6, 0 }
 0xcd1   :  { %9921 = vpow2.f32 %v5327_v52 }
 0xcd2   :  { %v11759_v47 = vpop.eup %9915 }
 0xcd3   :  { %v5365_v56 = vsel %vm1488_vm10, %v11759_v47, 0.0 }
 0xcd4   :  { %5366 = vadd.xlane.f32.xlu1 %v5365_v56  ;;  %v5429_v56 = vpack.c.bf16 %v11609_v51, %v11609_v51 }
 0xcd6   :  { %v11763_v39 = vpop.eup %9917 }
 0xcd7   :  { %v5368_v8 = vsel %vm1488_vm10, %v11763_v39, 0.0 }
 0xcd8   :  { %5369 = vadd.xlane.f32.xlu0 %v5368_v8 }
 0xcda   :  { %v11767_v1 = vpop.eup %9919 }
 0xcdb   :  { %v5371_v63 = vsel %vm1488_vm10, %v11767_v1, 0.0 }
 0xcdc   :  { %5372 = vadd.xlane.f32.xlu1 %v5371_v63 }
 0xcde   :  { %v11771_v27 = vpop.eup %9921 }
 0xcdf   :  { %v5374_v46 = vsel %vm1488_vm10, %v11771_v27, 0.0 }
 0xce0   :  { %5375 = vadd.xlane.f32.xlu0 %v5374_v46  ;;  %v5629_v46 = vsel %vm1700_vm9, %v5429_v56, 0 }
 0xd2d   :  { %v5331_v28 = vpop.xlane.xlu1 %5330 }
 0xd2e   :  { %9923 = vrcp.f32 %v5331_v28  ;;  %v5430_v28 = vpack.c.bf16 %v11613_v42, %v11613_v42 }
 0xd30   :  { %v5675_v42 = vsel %vm1700_vm9, %v5430_v28, 0 }
 0xd31   :  { %v5334_v35 = vpop.xlane.xlu0 %5333 }
 0xd32   :  { %9925 = vrcp.f32 %v5334_v35 }
 0xd35   :  { %v5337_v44 = vpop.xlane.xlu1 %5336 }
 0xd36   :  { %9927 = vrcp.f32 %v5337_v44 }
 0xd39   :  { %v5340_v38 = vpop.xlane.xlu0 %5339 }
 0xd3a   :  { %9929 = vrcp.f32 %v5340_v38  ;;  %v5431_v38 = vpack.c.bf16 %v11607_v19, %v11607_v19  ;;  %v5432_v19 = vpack.c.bf16 %v11611_v10, %v11611_v10 }
 0xd3b   :  { %v9924_v36 = vpop.eup %9923 }
 0xd3c   :  { %v5393_v62 = vmul.f32 %v9924_v36, %v11700_v22  ;;  %v5767_v6 = vsel %vm1700_vm9, %v5432_v19, 0  ;;  %v5439_v19 = vpack.c.bf16 %v11623_v26, %v11623_v26  ;;  %v5440_v26 = vpack.c.bf16 %v11627_v29, %v11627_v29 }
 0xd3d   :  { %v5343_v5 = vpop.xlane.xlu1 %5342 }
 0xd3e   :  { %v5409_v33 = vpack.c.bf16 %v5393_v62, %v5393_v62  ;;  %9931 = vrcp.f32 %v5343_v5  ;;  %v5721_v5 = vsel %vm1700_vm9, %v5431_v38, 0  ;;  %v5437_v38 = vpack.c.bf16 %v11625_v45, %v11625_v45 }
 0xd3f   :  { %v9926_v48 = vpop.eup %9925 }
 0xd40   :  { %v5394_v59 = vmul.f32 %v9926_v48, %v11705_v49  ;;  %9268 = vmatmul.mubr.msk.bf16.vlgmr.msra.gmra.mxu0 %vm1488_vm10, %v5409_v33 }
 0xd41   :  { %9278 = vmatpush3.bf16.msra.mxu0 %v5537_v21  ;;  %v5346_v52 = vpop.xlane.xlu0 %5345  ;;  %9279 = vmatprep.mubr.msk.bf16.mxu0 %vm10162_vm8, %v10161_v31 }
 0xd42   :  { %v5410_v25 = vpack.c.bf16 %v5394_v59, %v5394_v59  ;;  %9933 = vrcp.f32 %v5346_v52  ;;  %9289 = vmatprep.subr.bf16.mxu0 %v10161_v31  ;;  %v5433_v59 = vpack.c.bf16 %v11617_v61, %v11617_v61 }
 0xd43   :  { %v9928_v22 = vpop.eup %9927 }
 0xd44   :  { %v5395_v4 = vmul.f32 %v9928_v22, %v11710_v24  ;;  %9274 = vmatmul.mubr.msk.bf16.vlgmr.msra.gmra.mxu1 %vm1488_vm10, %v5410_v25  ;;  %v5813_v22 = vsel %vm1700_vm9, %v5433_v59, 0 }
 0xd45   :  { %9284 = vmatpush3.bf16.msra.mxu1 %v5583_v12  ;;  %v5349_v49 = vpop.xlane.xlu1 %5348  ;;  %9285 = vmatprep.mubr.msk.bf16.mxu1 %vm10162_vm8, %v10161_v31  ;;  %v5434_v12 = vpack.c.bf16 %v11621_v13, %v11621_v13 }
 0xd46   :  { %v5411_v8 = vpack.c.bf16 %v5395_v4, %v5395_v4  ;;  %9935 = vrcp.f32 %v5349_v49  ;;  %9295 = vmatprep.subr.bf16.mxu1 %v10161_v31  ;;  %v5435_v49 = vpack.c.bf16 %v11615_v58, %v11615_v58  ;;  %v5436_v58 = vpack.c.bf16 %v11619_v15, %v11619_v15 }
 0xd47   :  { %v9930_v63 = vpop.eup %9929  ;;  %v5859_v13 = vsel %vm1700_vm9, %v5434_v12, 0  ;;  %v9709_v12 = vld [vmem:[#allocation6 + $0x68] sm:$0xff]  }
 0xd48   :  { %v5396_v51 = vmul.f32 %v9930_v63, %v11715_v40  ;;  %9280 = vmatmul.mubr.msk.bf16.vlgmr.msra.gmra.mxu0 %vm1488_vm10, %v5411_v8  ;;  %v5905_v28 = vsel %vm1700_vm9, %v5435_v49, 0 }
 0xd49   :  { %9290 = vmatpush3.bf16.msra.mxu0 %v5629_v46  ;;  %v5352_v24 = vpop.xlane.xlu0 %5351  ;;  %9291 = vmatprep.mubr.msk.bf16.mxu0 %vm10162_vm8, %v10161_v31 }
 0xd4a   :  { %v5412_v35 = vpack.c.bf16 %v5396_v51, %v5396_v51  ;;  %9937 = vrcp.f32 %v5352_v24  ;;  %9301 = vmatprep.subr.bf16.mxu0 %v10161_v31 }
 0xd4b   :  { %v9932_v44 = vpop.eup %9931 }
 0xd4c   :  { %v5397_v36 = vmul.f32 %v9932_v44, %v11720_v60  ;;  %9286 = vmatmul.mubr.msk.bf16.vlgmr.msra.gmra.mxu1 %vm1488_vm10, %v5412_v35  ;;  %v5951_v44 = vsel %vm1700_vm9, %v5436_v58, 0 }
 0xd4d   :  { %9296 = vmatpush3.bf16.msra.mxu1 %v5675_v42  ;;  %v5355_v40 = vpop.xlane.xlu1 %5354  ;;  %9297 = vmatprep.mubr.msk.bf16.mxu1 %vm10162_vm8, %v10161_v31 }
 0xd4e   :  { %v5413_v3 = vpack.c.bf16 %v5397_v36, %v5397_v36  ;;  %9939 = vrcp.f32 %v5355_v40  ;;  %9307 = vmatprep.subr.bf16.mxu1 %v10161_v31  ;;  %v5997_v40 = vsel %vm1700_vm9, %v5437_v38, 0 }
 0xd4f   :  { %v9934_v62 = vpop.eup %9933 }
 0xd50   :  { %v5398_v60 = vmul.f32 %v9934_v62, %v11725_v30  ;;  %9292 = vmatmul.mubr.msk.bf16.vlgmr.msra.gmra.mxu0 %vm1488_vm10, %v5413_v3  ;;  %v5438_v3 = vpack.c.bf16 %v11629_v20, %v11629_v20 }
 0xd51   :  { %9302 = vmatpush3.bf16.msra.mxu0 %v5721_v5  ;;  %v5358_v33 = vpop.xlane.xlu0 %5357  ;;  %9303 = vmatprep.mubr.msk.bf16.mxu0 %vm10162_vm8, %v10161_v31 }
 0xd52   :  { %v5414_v48 = vpack.c.bf16 %v5398_v60, %v5398_v60  ;;  %9941 = vrcp.f32 %v5358_v33  ;;  %9313 = vmatprep.subr.bf16.mxu0 %v10161_v31  ;;  %v6043_v20 = vsel %vm1700_vm9, %v5438_v3, 0  ;;  %v9707_v33 = vld [vmem:[#allocation6 + $0x78] sm:$0xff]  }
 0xd53   :  { %v9936_v21 = vpop.eup %9935 }
 0xd54   :  { %v5399_v10 = vmul.f32 %v9936_v21, %v11730_v7  ;;  %9298 = vmatmul.mubr.msk.bf16.vlgmr.msra.gmra.mxu1 %vm1488_vm10, %v5414_v48  ;;  %v6089_v21 = vsel %vm1700_vm9, %v5439_v19, 0 }
 0xd55   :  { %9308 = vmatpush3.bf16.msra.mxu1 %v5767_v6  ;;  %v5361_v30 = vpop.xlane.xlu1 %5360  ;;  %9309 = vmatprep.mubr.msk.bf16.mxu1 %vm10162_vm8, %v10161_v31 }
 0xd56   :  { %v5415_v52 = vpack.c.bf16 %v5399_v10, %v5399_v10  ;;  %9943 = vrcp.f32 %v5361_v30  ;;  %9319 = vmatprep.subr.bf16.mxu1 %v10161_v31  ;;  %v6135_v10 = vsel %vm1700_vm9, %v5440_v26, 0 }
 0xd57   :  { %v9938_v25 = vpop.eup %9937 }
 0xd58   :  { %v5400_v61 = vmul.f32 %v9938_v25, %v11735_v0  ;;  %9304 = vmatmul.mubr.msk.bf16.vlgmr.msra.gmra.mxu0 %vm1488_vm10, %v5415_v52 }
 0xd59   :  { %9314 = vmatpush3.bf16.msra.mxu0 %v5813_v22  ;;  %v5364_v7 = vpop.xlane.xlu0 %5363  ;;  %9315 = vmatprep.mubr.msk.bf16.mxu0 %vm10162_vm8, %v10161_v31 }
 0xd5a   :  { %v5416_v56 = vpack.c.bf16 %v5400_v61, %v5400_v61  ;;  %9945 = vrcp.f32 %v5364_v7  ;;  %9325 = vmatprep.subr.bf16.mxu0 %v10161_v31  ;;  %v9711_v61 = vld [vmem:[#allocation6 + $0x58] sm:$0xff]   ;;  %v9712_v7 = vld [vmem:[#allocation6 + $0x50] sm:$0xff]  }
 0xd5b   :  { %v9940_v4 = vpop.eup %9939 }
 0xd5c   :  { %v5401_v8 = vmul.f32 %v9940_v4, %v11740_v57  ;;  %9310 = vmatmul.mubr.msk.bf16.vlgmr.msra.gmra.mxu1 %vm1488_vm10, %v5416_v56  ;;  %v9714_v56 = vld [vmem:[#allocation6 + $0x40] sm:$0xff]  }
 0xd5d   :  { %9320 = vmatpush3.bf16.msra.mxu1 %v5859_v13  ;;  %v5367_v0 = vpop.xlane.xlu1 %5366  ;;  %9321 = vmatprep.mubr.msk.bf16.mxu1 %vm10162_vm8, %v10161_v31 }
 0xd5e   :  { %v5417_v63 = vpack.c.bf16 %v5401_v8, %v5401_v8  ;;  %9947 = vrcp.f32 %v5367_v0  ;;  %9331 = vmatprep.subr.bf16.mxu1 %v10161_v31 }
 0xd5f   :  { %v9942_v46 = vpop.eup %9941 }
 0xd60   :  { %v5402_v57 = vmul.f32 %v9942_v46, %v11745_v54  ;;  %9316 = vmatmul.mubr.msk.bf16.vlgmr.msra.gmra.mxu0 %vm1488_vm10, %v5417_v63 }
 0xd61   :  { %9326 = vmatpush3.bf16.msra.mxu0 %v5905_v28  ;;  %v5370_v51 = vpop.xlane.xlu0 %5369  ;;  %9327 = vmatprep.mubr.msk.bf16.mxu0 %vm10162_vm8, %v10161_v31 }
 0xd62   :  { %v5418_v24 = vpack.c.bf16 %v5402_v57, %v5402_v57  ;;  %9949 = vrcp.f32 %v5370_v51  ;;  %9337 = vmatprep.subr.bf16.mxu0 %v10161_v31 }
 0xd63   :  { %v9944_v35 = vpop.eup %9943 }
 0xd64   :  { %v5403_v15 = vmul.f32 %v9944_v35, %v11750_v41  ;;  %9322 = vmatmul.mubr.msk.bf16.vlgmr.msra.gmra.mxu1 %vm1488_vm10, %v5418_v24 }
 0xd65   :  { %9332 = vmatpush3.bf16.msra.mxu1 %v5951_v44  ;;  %v5373_v54 = vpop.xlane.xlu1 %5372  ;;  %9333 = vmatprep.mubr.msk.bf16.mxu1 %vm10162_vm8, %v10161_v31 }
 0xd66   :  { %v5419_v36 = vpack.c.bf16 %v5403_v15, %v5403_v15  ;;  %9951 = vrcp.f32 %v5373_v54  ;;  %9343 = vmatprep.subr.bf16.mxu1 %v10161_v31 }
 0xd67   :  { %v9946_v42 = vpop.eup %9945 }
 0xd68   :  { %v5404_v45 = vmul.f32 %v9946_v42, %v11755_v43  ;;  %9328 = vmatmul.mubr.msk.bf16.vlgmr.msra.gmra.mxu0 %vm1488_vm10, %v5419_v36 }
 0xd69   :  { %9338 = vmatpush3.bf16.msra.mxu0 %v5997_v40  ;;  %v5376_v41 = vpop.xlane.xlu0 %5375  ;;  %9339 = vmatprep.mubr.msk.bf16.mxu0 %vm10162_vm8, %v10161_v31 }
 0xd6a   :  { %v5420_v62 = vpack.c.bf16 %v5404_v45, %v5404_v45  ;;  %9953 = vrcp.f32 %v5376_v41  ;;  %9349 = vmatprep.subr.bf16.mxu0 %v10161_v31 }
 0xd6b   :  { %v9948_v5 = vpop.eup %9947 }
 0xd6c   :  { %v5405_v60 = vmul.f32 %v9948_v5, %v11759_v47  ;;  %9334 = vmatmul.mubr.msk.bf16.vlgmr.msra.gmra.mxu1 %vm1488_vm10, %v5420_v62 }
 0xd6d   :  { %9344 = vmatpush3.bf16.msra.mxu1 %v6043_v20  ;;  %9345 = vmatprep.mubr.msk.bf16.mxu1 %vm10162_vm8, %v10161_v31 }
 0xd6e   :  { %v5421_v43 = vpack.c.bf16 %v5405_v60, %v5405_v60  ;;  %9355 = vmatprep.subr.bf16.mxu1 %v10161_v31 }
 0xd6f   :  { %v9950_v48 = vpop.eup %9949 }
 0xd70   :  { %v5406_v47 = vmul.f32 %v9950_v48, %v11763_v39  ;;  %9340 = vmatmul.mubr.msk.bf16.vlgmr.msra.gmra.mxu0 %vm1488_vm10, %v5421_v43  ;;  %v9708_v39 = vld [vmem:[#allocation6 + $0x70] sm:$0xff]  }
 0xd71   :  { %9350 = vmatpush3.bf16.msra.mxu0 %v6089_v21  ;;  %9351 = vmatprep.mubr.msk.bf16.mxu0 %vm10162_vm8, %v10161_v31 }
 0xd72   :  { %v5422_v6 = vpack.c.bf16 %v5406_v47, %v5406_v47  ;;  %9361 = vmatprep.subr.bf16.mxu0 %v9707_v33 }
 0xd73   :  { %v9952_v59 = vpop.eup %9951 }
 0xd74   :  { %v5407_v30 = vmul.f32 %v9952_v59, %v11767_v1  ;;  %9346 = vmatmul.mubr.msk.bf16.vlgmr.msra.gmra.mxu1 %vm1488_vm10, %v5422_v6  ;;  %v9710_v1 = vld [vmem:[#allocation6 + $0x60] sm:$0xff]  }
 0xd75   :  { %9356 = vmatpush3.bf16.msra.mxu1 %v6135_v10  ;;  %9357 = vmatprep.mubr.msk.bf16.mxu1 %vm10162_vm8, %v10161_v31 }
 0xd76   :  { %v5423_v29 = vpack.c.bf16 %v5407_v30, %v5407_v30 }
 0xd77   :  { %v9954_v52 = vpop.eup %9953 }
 0xd78   :  { %v5408_v25 = vmul.f32 %v9954_v52, %v11771_v27  ;;  %9352 = vmatmul.mubr.msk.bf16.vlgmr.msra.gmra.mxu0 %vm1488_vm10, %v5423_v29  ;;  %v9713_v27 = vld [vmem:[#allocation6 + $0x48] sm:$0xff]  }
 0xd79   :  { %9362 = vmatpush3.bf16.msra.mxu0 %v9707_v33 }
 0xd7a   :  { %v5424_v22 = vpack.c.bf16 %v5408_v25, %v5408_v25  ;;  %9363 = vmatprep.subr.bf16.mxu0 %v9708_v39 }
 0xd7c   :  { %9358 = vmatmul.mubr.msk.bf16.vlgmr.msra.gmra.mxu1 %vm1488_vm10, %v5424_v22 }
 0xd7d   :  { %9364 = vmatpush3.bf16.msra.mxu0 %v9708_v39  ;;  %6753 = vmatprep.mubr.bf16.mxu1 %v10159_v2 }
 0xd7e   :  { %9365 = vmatprep.subr.bf16.mxu0 %v9709_v12 }
 0xd81   :  { %9366 = vmatpush3.bf16.msra.mxu0 %v9709_v12 }
 0xd82   :  { %9367 = vmatprep.subr.bf16.mxu0 %v9710_v1 }
 0xd85   :  { %9368 = vmatpush3.bf16.msra.mxu0 %v9710_v1 }
 0xd86   :  { %9369 = vmatprep.subr.bf16.mxu0 %v9711_v61 }
 0xd89   :  { %9370 = vmatpush3.bf16.msra.mxu0 %v9711_v61 }
 0xd8a   :  { %9371 = vmatprep.subr.bf16.mxu0 %v9712_v7 }
 0xd8d   :  { %9372 = vmatpush3.bf16.msra.mxu0 %v9712_v7 }
 0xd8e   :  { %9373 = vmatprep.subr.bf16.mxu0 %v9713_v27 }
 0xd91   :  { %9374 = vmatpush3.bf16.msra.mxu0 %v9713_v27 }
 0xd92   :  { %9375 = vmatprep.subr.bf16.mxu0 %v9714_v56 }
 0xd95   :  { %9376 = vmatpush3.bf16.msra.mxu0 %v9714_v56 }
 0xe00   :  { %v5481_v4 = vpop.f32.mrf.mxu0 }
 0xe02   :  { %v9269_v49 = vpop.f32.mrf.mxu0 }
 0xe04   :  { %v5484_v8 = vpop.f32.mrf.mxu0  ;;  %v5527_v13 = vpop.f32.mrf.mxu1 }
 0xe05   :  { %v6177_v0 = vpack.c.bf16 %v5527_v13, %v5481_v4 }
 0xe06   :  { %v9270_v63 = vpop.f32.mrf.mxu0  ;;  %v9275_v46 = vpop.f32.mrf.mxu1 }
 0xe07   :  { %9377 = vmatprep.mubr.bf16.mxu0 %v6177_v0 }
 0xe08   :  { %v5530_v28 = vpop.f32.mrf.mxu1  ;;  %v5573_v58 = vpop.f32.mrf.mxu0 }
 0xe0a   :  { %v9276_v57 = vpop.f32.mrf.mxu1  ;;  %v9281_v51 = vpop.f32.mrf.mxu0 }
 0xe0c   :  { %v5576_v24 = vpop.f32.mrf.mxu0  ;;  %v5619_v35 = vpop.f32.mrf.mxu1 }
 0xe0d   :  { %v6178_v44 = vpack.c.bf16 %v5619_v35, %v5573_v58 }
 0xe0e   :  { %v9282_v38 = vpop.f32.mrf.mxu0  ;;  %v9287_v15 = vpop.f32.mrf.mxu1 }
 0xe0f   :  { %9378 = vmatmul.mubr.bf16.vlgmr.msra.gmra.mxu0 %v6178_v44 }
 0xe10   :  { %v5622_v54 = vpop.f32.mrf.mxu1  ;;  %v5665_v36 = vpop.f32.mrf.mxu0 }
 0xe12   :  { %v9288_v42 = vpop.f32.mrf.mxu1  ;;  %v9293_v40 = vpop.f32.mrf.mxu0 }
 0xe14   :  { %v5668_v3 = vpop.f32.mrf.mxu0  ;;  %v5711_v45 = vpop.f32.mrf.mxu1 }
 0xe15   :  { %v6179_v41 = vpack.c.bf16 %v5711_v45, %v5665_v36 }
 0xe16   :  { %v9294_v62 = vpop.f32.mrf.mxu0  ;;  %v9299_v5 = vpop.f32.mrf.mxu1 }
 0xe17   :  { %9381 = vmatprep.mubr.bf16.mxu0 %v6179_v41  ;;  %v6347_v5 = vunpack.c.l.bf16 %v11411_v53 }
 0xe18   :  { %v5714_v19 = vpop.f32.mrf.mxu1  ;;  %v5757_v60 = vpop.f32.mrf.mxu0 }
 0xe1a   :  { %v9300_v20 = vpop.f32.mrf.mxu1  ;;  %v9305_v43 = vpop.f32.mrf.mxu0 }
 0xe1b   :  { %v6349_v43 = vunpack.c.l.bf16 %v11416_v37 }
 0xe1c   :  { %v5760_v33 = vpop.f32.mrf.mxu0  ;;  %v5803_v48 = vpop.f32.mrf.mxu1 }
 0xe1d   :  { %v6180_v21 = vpack.c.bf16 %v5803_v48, %v5757_v60  ;;  %v6348_v33 = vunpack.c.h.bf16 %v11411_v53 }
 0xe1e   :  { %v9306_v26 = vpop.f32.mrf.mxu0  ;;  %v9311_v47 = vpop.f32.mrf.mxu1 }
 0xe1f   :  { %9382 = vmatmul.mubr.bf16.gmra.mxu0 %v6180_v21  ;;  %v6350_v47 = vunpack.c.h.bf16 %v11416_v37  ;;  %v6352_v37 = vunpack.c.h.bf16 %v11418_v9 }
 0xe20   :  { %v5806_v6 = vpop.f32.mrf.mxu1  ;;  %v5849_v59 = vpop.f32.mrf.mxu0 }
 0xe22   :  { %v9312_v10 = vpop.f32.mrf.mxu1  ;;  %v9317_v30 = vpop.f32.mrf.mxu0 }
 0xe23   :  { %v6351_v10 = vunpack.c.l.bf16 %v11418_v9 }
 0xe24   :  { %v5852_v29 = vpop.f32.mrf.mxu0  ;;  %v5895_v39 = vpop.f32.mrf.mxu1 }
 0xe25   :  { %v6181_v52 = vpack.c.bf16 %v5895_v39, %v5849_v59  ;;  %v6353_v39 = vunpack.c.l.bf16 %v11422_v32 }
 0xe26   :  { %v9318_v25 = vpop.f32.mrf.mxu0  ;;  %v9323_v22 = vpop.f32.mrf.mxu1 }
 0xe27   :  { %9385 = vmatprep.mubr.bf16.mxu0 %v6181_v52 }
 0xe28   :  { %v5898_v12 = vpop.f32.mrf.mxu1  ;;  %v5941_v1 = vpop.f32.mrf.mxu0 }
 0xe29   :  { %v6354_v12 = vunpack.c.h.bf16 %v11422_v32  ;;  %v6356_v32 = vunpack.c.h.bf16 %v11424_v50 }
 0xe2a   :  { %v9324_v61 = vpop.f32.mrf.mxu1  ;;  %v9329_v7 = vpop.f32.mrf.mxu0 }
 0xe2b   :  { %v6355_v7 = vunpack.c.l.bf16 %v11424_v50 }
 0xe2c   :  { %v5944_v27 = vpop.f32.mrf.mxu0  ;;  %v5987_v56 = vpop.f32.mrf.mxu1 }
 0xe2d   :  { %v6182_v4 = vpack.c.bf16 %v5987_v56, %v5941_v1 }
 0xe2e   :  { %v9330_v49 = vpop.f32.mrf.mxu0  ;;  %v9335_v8 = vpop.f32.mrf.mxu1 }
 0xe2f   :  { %9386 = vmatmul.mubr.bf16.gmra.mxu0 %v6182_v4  ;;  %v6357_v4 = vunpack.c.l.bf16 %v11429_v23 }
 0xe30   :  { %v5990_v13 = vpop.f32.mrf.mxu1  ;;  %v6033_v0 = vpop.f32.mrf.mxu0 }
 0xe32   :  { %v9336_v63 = vpop.f32.mrf.mxu1  ;;  %v9341_v46 = vpop.f32.mrf.mxu0 }
 0xe34   :  { %v6036_v28 = vpop.f32.mrf.mxu0  ;;  %v6079_v58 = vpop.f32.mrf.mxu1 }
 0xe35   :  { %v6183_v57 = vpack.c.bf16 %v6079_v58, %v6033_v0  ;;  %v6358_v0 = vunpack.c.h.bf16 %v11429_v23  ;;  %v6359_v28 = vunpack.c.l.bf16 %v11521_v17  ;;  %v6360_v23 = vunpack.c.h.bf16 %v11521_v17  ;;  %v9717_v17 = vld [vmem:[%s12625_s7 + $0xf4] ss:$8 sps:$4 sm:$0xff]  }
 0xe36   :  { %v9342_v51 = vpop.f32.mrf.mxu0  ;;  %v9347_v24 = vpop.f32.mrf.mxu1  ;;  %6721 = vmatprep.subr.bf16.mxu1 %v9717_v17 }
 0xe37   :  { %9389 = vmatprep.mubr.bf16.mxu0 %v6183_v57  ;;  %v6361_v51 = vunpack.c.l.bf16 %v11523_v34 }
 0xe38   :  { %v6082_v35 = vpop.f32.mrf.mxu1  ;;  %v6125_v44 = vpop.f32.mrf.mxu0 }
 0xe3a   :  { %v9348_v38 = vpop.f32.mrf.mxu1  ;;  %v9353_v15 = vpop.f32.mrf.mxu0 }
 0xe3b   :  { %v6362_v38 = vunpack.c.h.bf16 %v11523_v34 }
 0xe3c   :  { %v6128_v54 = vpop.f32.mrf.mxu0  ;;  %v6171_v36 = vpop.f32.mrf.mxu1 }
 0xe3d   :  { %v6184_v42 = vpack.c.bf16 %v6171_v36, %v6125_v44  ;;  %v9715_v54 = vld [vmem:[%s12625_s7 + $0xf0] ss:$8 sps:$4 sm:$0xff]  }
 0xe3e   :  { %v9354_v40 = vpop.f32.mrf.mxu0  ;;  %v9359_v3 = vpop.f32.mrf.mxu1  ;;  %6722 = vmatpush1.bf16.msra.mxu1 %v9715_v54 }
 0xe3f   :  { %9390 = vmatmul.mubr.bf16.gmra.mxu0 %v6184_v42 }
 0xe40   :  { %v6174_v45 = vpop.f32.mrf.mxu1 }
 0xe42   :  { %v9360_v41 = vpop.f32.mrf.mxu1 }
 0xecf   :  { %v9379_v62 = vpop.f32.mrf.mxu0 }
 0xed0   :  { %v11896_v21 = vadd.f32 %v9379_v62, %v6349_v43 }
 0xed1   :  { %v6284_v19 = vpop.f32.mrf.mxu0 }
 0xed2   :  { %v11891_v60 = vadd.f32 %v6347_v5, %v6284_v19 }
 0xed3   :  { %v9380_v20 = vpop.f32.mrf.mxu0 }
 0xed4   :  { %6383 = vadd.xlane.f32.xlu1 %v11891_v60  ;;  %v11903_v6 = vadd.f32 %v9380_v20, %v6350_v47 }
 0xed5   :  { %v6287_v48 = vpop.f32.mrf.mxu0 }
 0xed6   :  { %v11898_v26 = vadd.f32 %v6348_v33, %v6287_v48 }
 0xed8   :  { %6387 = vadd.xlane.f32.xlu1 %v11896_v21  ;;  %6385 = vadd.xlane.f32.xlu0 %v11898_v26 }
 0xedc   :  { %6389 = vadd.xlane.f32.xlu0 %v11903_v6 }
 0xedf   :  { %v9383_v59 = vpop.f32.mrf.mxu0 }
 0xee0   :  { %v11912_v25 = vadd.f32 %v9383_v59, %v6353_v39 }
 0xee1   :  { %v6300_v30 = vpop.f32.mrf.mxu0 }
 0xee2   :  { %v11907_v53 = vadd.f32 %v6351_v10, %v6300_v30  ;;  %v9720_v10 = vld [vmem:[%s12625_s7 + $0xe4] ss:$8 sps:$4 sm:$0xff]  }
 0xee3   :  { %v9384_v29 = vpop.f32.mrf.mxu0  ;;  %6723 = vmatprep.subr.bf16.mxu1 %v9720_v10 }
 0xee4   :  { %6391 = vadd.xlane.f32.xlu1 %v11907_v53  ;;  %v11919_v1 = vadd.f32 %v9384_v29, %v6354_v12 }
 0xee5   :  { %v6303_v52 = vpop.f32.mrf.mxu0 }
 0xee6   :  { %v11914_v22 = vadd.f32 %v6352_v37, %v6303_v52 }
 0xee8   :  { %6395 = vadd.xlane.f32.xlu1 %v11912_v25  ;;  %6393 = vadd.xlane.f32.xlu0 %v11914_v22 }
 0xeec   :  { %6397 = vadd.xlane.f32.xlu0 %v11919_v1 }
 0xeef   :  { %v9387_v61 = vpop.f32.mrf.mxu0 }
 0xef0   :  { %v11928_v8 = vadd.f32 %v9387_v61, %v6357_v4  ;;  %v9723_v61 = vld [vmem:[%s12625_s7 + $0xd4] ss:$8 sps:$4 sm:$0xff]  }
 0xef1   :  { %v6316_v27 = vpop.f32.mrf.mxu0 }
 0xef2   :  { %v11923_v9 = vadd.f32 %v6355_v7, %v6316_v27  ;;  %v9721_v27 = vld [vmem:[%s12625_s7 + $0xd0] ss:$8 sps:$4 sm:$0xff]  }
 0xef3   :  { %v9388_v56 = vpop.f32.mrf.mxu0 }
 0xef4   :  { %6399 = vadd.xlane.f32.xlu1 %v11923_v9  ;;  %v11935_v63 = vadd.f32 %v9388_v56, %v6358_v0 }
 0xef5   :  { %v6319_v49 = vpop.f32.mrf.mxu0 }
 0xef6   :  { %v11930_v13 = vadd.f32 %v6356_v32, %v6319_v49  ;;  %v9726_v32 = vld [vmem:[%s12625_s7 + $0xc4] ss:$8 sps:$4 sm:$0xff]   ;;  %v9724_v49 = vld [vmem:[%s12625_s7 + $0xc0] ss:$8 sps:$4 sm:$0xff]  }
 0xef8   :  { %6403 = vadd.xlane.f32.xlu1 %v11928_v8  ;;  %6401 = vadd.xlane.f32.xlu0 %v11930_v13 }
 0xefc   :  { %6405 = vadd.xlane.f32.xlu0 %v11935_v63 }
 0xeff   :  { %v9391_v46 = vpop.f32.mrf.mxu0 }
 0xf00   :  { %v11944_v35 = vadd.f32 %v9391_v46, %v6361_v51  ;;  %v9732_v51 = vld [vmem:[%s12625_s7 + $0xa4] ss:$8 sps:$4 sm:$0xff]  }
 0xf01   :  { %v6332_v58 = vpop.f32.mrf.mxu0 }
 0xf02   :  { %v11939_v50 = vadd.f32 %v6359_v28, %v6332_v58  ;;  %v9727_v28 = vld [vmem:[%s12625_s7 + $0xb0] ss:$8 sps:$4 sm:$0xff]  }
 0xf03   :  { %v9392_v57 = vpop.f32.mrf.mxu0 }
 0xf04   :  { %6407 = vadd.xlane.f32.xlu1 %v11939_v50  ;;  %v11951_v15 = vadd.f32 %v9392_v57, %v6362_v38  ;;  %v9730_v38 = vld [vmem:[%s12625_s7 + $0xa0] ss:$8 sps:$4 sm:$0xff]  }
 0xf05   :  { %v6335_v24 = vpop.f32.mrf.mxu0 }
 0xf06   :  { %v11946_v44 = vadd.f32 %v6360_v23, %v6335_v24 }
 0xf08   :  { %6411 = vadd.xlane.f32.xlu1 %v11944_v35  ;;  %6409 = vadd.xlane.f32.xlu0 %v11946_v44 }
 0xf0c   :  { %6413 = vadd.xlane.f32.xlu0 %v11951_v15 }
 0xf5d   :  { %v6384_v36 = vpop.xlane.xlu1 %6383 }
 0xf5e   :  { %v6415_v34 = vmul.f32 0.0078125, %v6384_v36 }
 0xf60   :  { %v11961_v42 = vsub.f32 %v11891_v60, %v6415_v34 }
 0xf61   :  { %v6388_v40 = vpop.xlane.xlu1 %6387  ;;  %v6386_v3 = vpop.xlane.xlu0 %6385 }
 0xf62   :  { %v6417_v45 = vmul.f32 0.0078125, %v6388_v40  ;;  %v6416_v41 = vmul.f32 0.0078125, %v6386_v3  ;;  %v6447_v62 = vmul.f32 %v11961_v42, %v11961_v42  ;;  %v9735_v40 = vld [vmem:[%s12625_s7 + $0x94] ss:$8 sps:$4 sm:$0xff]  }
 0xf64   :  { %v11966_v5 = vsub.f32 %v11896_v21, %v6417_v45  ;;  %v11969_v19 = vsub.f32 %v11898_v26, %v6416_v41  ;;  %6463 = vadd.xlane.f32.xlu1 %v6447_v62  ;;  %v9733_v45 = vld [vmem:[%s12625_s7 + $0x90] ss:$8 sps:$4 sm:$0xff]  }
 0xf65   :  { %v6390_v20 = vpop.xlane.xlu0 %6389 }
 0xf66   :  { %v6418_v43 = vmul.f32 0.0078125, %v6390_v20  ;;  %v6449_v60 = vmul.f32 %v11966_v5, %v11966_v5  ;;  %v6448_v33 = vmul.f32 %v11969_v19, %v11969_v19  ;;  %v9738_v20 = vld [vmem:[%s12625_s7 + $0x84] ss:$8 sps:$4 sm:$0xff]  }
 0xf68   :  { %v11976_v48 = vsub.f32 %v11903_v6, %v6418_v43  ;;  %6467 = vadd.xlane.f32.xlu1 %v6449_v60  ;;  %6465 = vadd.xlane.f32.xlu0 %v6448_v33  ;;  %v9718_v6 = vld [vmem:[%s12625_s7 + $0xe0] ss:$8 sps:$4 sm:$0xff]  }
 0xf69   :  { %6724 = vmatpush1.bf16.msra.mxu1 %v9718_v6  ;;  %v9736_v43 = vld [vmem:[%s12625_s7 + $0x80] ss:$8 sps:$4 sm:$0xff]  }
 0xf6a   :  { %v6450_v21 = vmul.f32 %v11976_v48, %v11976_v48  ;;  %6725 = vmatprep.subr.bf16.mxu1 %v9723_v61 }
 0xf6c   :  { %6469 = vadd.xlane.f32.xlu0 %v6450_v21 }
 0xf6d   :  { %v6392_v26 = vpop.xlane.xlu1 %6391  ;;  %6726 = vmatpush1.bf16.msra.mxu1 %v9721_v27  ;;  %v9740_v27 = vld [vmem:[#allocation8 + $0xb8] sm:$0xff]  }
 0xf6e   :  { %v6419_v47 = vmul.f32 0.0078125, %v6392_v26  ;;  %6727 = vmatprep.subr.bf16.mxu1 %v9726_v32  ;;  %v9744_v32 = vld [vmem:[#allocation8 + $0xa8] sm:$0xff]  }
 0xf70   :  { %v11981_v59 = vsub.f32 %v11907_v53, %v6419_v47 }
 0xf71   :  { %v6396_v30 = vpop.xlane.xlu1 %6395  ;;  %v6394_v29 = vpop.xlane.xlu0 %6393  ;;  %6728 = vmatpush1.bf16.msra.mxu1 %v9724_v49  ;;  %v9745_v49 = vld [vmem:[#allocation8 + $0xe0] sm:$0xff]  }
 0xf72   :  { %v6421_v39 = vmul.f32 0.0078125, %v6396_v30  ;;  %v6420_v37 = vmul.f32 0.0078125, %v6394_v29  ;;  %v6451_v52 = vmul.f32 %v11981_v59, %v11981_v59 }
 0xf74   :  { %v11992_v53 = vsub.f32 %v11912_v25, %v6421_v39  ;;  %v11995_v12 = vsub.f32 %v11914_v22, %v6420_v37  ;;  %6471 = vadd.xlane.f32.xlu1 %v6451_v52 }
 0xf75   :  { %v6398_v7 = vpop.xlane.xlu0 %6397 }
 0xf76   :  { %v6422_v56 = vmul.f32 0.0078125, %v6398_v7  ;;  %v6453_v4 = vmul.f32 %v11992_v53, %v11992_v53  ;;  %v6452_v25 = vmul.f32 %v11995_v12, %v11995_v12 }
 0xf78   :  { %v12008_v22 = vsub.f32 %v11919_v1, %v6422_v56  ;;  %6475 = vadd.xlane.f32.xlu1 %v6453_v4  ;;  %6473 = vadd.xlane.f32.xlu0 %v6452_v25  ;;  %v9729_v1 = vld [vmem:[%s12625_s7 + $0xb4] ss:$8 sps:$4 sm:$0xff]   ;;  %v9743_v25 = vld [vmem:[#allocation8 + $0xe8] sm:$0xff]  }
 0xf79   :  { %6729 = vmatprep.subr.bf16.mxu1 %v9729_v1  ;;  %v9741_v56 = vld [vmem:[#allocation8 + $0xf0] sm:$0xff]   ;;  %v9748_v1 = vld [vmem:[#allocation8 + $0x98] sm:$0xff]  }
 0xf7a   :  { %v6454_v0 = vmul.f32 %v12008_v22, %v12008_v22  ;;  %6730 = vmatpush1.bf16.msra.mxu1 %v9727_v28  ;;  %v9742_v4 = vld [vmem:[#allocation8 + $0xb0] sm:$0xff]  }
 0xf7b   :  { %6731 = vmatprep.subr.bf16.mxu1 %v9732_v51 }
 0xf7c   :  { %6477 = vadd.xlane.f32.xlu0 %v6454_v0  ;;  %v9747_v0 = vld [vmem:[#allocation8 + $0xd8] sm:$0xff]  }
 0xf7d   :  { %v6400_v46 = vpop.xlane.xlu1 %6399 }
 0xf7e   :  { %v6423_v58 = vmul.f32 0.0078125, %v6400_v46  ;;  %6732 = vmatpush1.bf16.msra.mxu1 %v9730_v38 }
 0xf7f   :  { %6733 = vmatprep.subr.bf16.mxu1 %v9735_v40 }
 0xf80   :  { %v12025_v57 = vsub.f32 %v11923_v9, %v6423_v58 }
 0xf81   :  { %v6404_v23 = vpop.xlane.xlu1 %6403  ;;  %v6402_v24 = vpop.xlane.xlu0 %6401 }
 0xf82   :  { %v6425_v54 = vmul.f32 0.0078125, %v6404_v23  ;;  %v6424_v17 = vmul.f32 0.0078125, %v6402_v24  ;;  %v6455_v36 = vmul.f32 %v12025_v57, %v12025_v57  ;;  %6734 = vmatpush1.bf16.msra.mxu1 %v9733_v45 }
 0xf83   :  { %6735 = vmatprep.subr.bf16.mxu1 %v9738_v20 }
 0xf84   :  { %v12036_v9 = vsub.f32 %v11928_v8, %v6425_v54  ;;  %v12039_v34 = vsub.f32 %v11930_v13, %v6424_v17  ;;  %6479 = vadd.xlane.f32.xlu1 %v6455_v36 }
 0xf85   :  { %v6406_v3 = vpop.xlane.xlu0 %6405 }
 0xf86   :  { %v6426_v41 = vmul.f32 0.0078125, %v6406_v3  ;;  %v6457_v62 = vmul.f32 %v12036_v9, %v12036_v9  ;;  %v6456_v8 = vmul.f32 %v12039_v34, %v12039_v34  ;;  %6736 = vmatpush1.bf16.msra.mxu1 %v9736_v43 }
 0xf87   :  { %9393 = vmatprep.subr.bf16.mxu1 %v10161_v31 }
 0xf88   :  { %v12052_v13 = vsub.f32 %v11935_v63, %v6426_v41  ;;  %6483 = vadd.xlane.f32.xlu1 %v6457_v62  ;;  %6481 = vadd.xlane.f32.xlu0 %v6456_v8 }
 0xf8a   :  { %v6458_v60 = vmul.f32 %v12052_v13, %v12052_v13 }
 0xf8c   :  { %6485 = vadd.xlane.f32.xlu0 %v6458_v60 }
 0xf8d   :  { %v6408_v63 = vpop.xlane.xlu1 %6407 }
 0xf8e   :  { %v6427_v33 = vmul.f32 0.0078125, %v6408_v63 }
 0xf90   :  { %v12064_v21 = vsub.f32 %v11939_v50, %v6427_v33 }
 0xf91   :  { %v6412_v26 = vpop.xlane.xlu1 %6411  ;;  %v6410_v47 = vpop.xlane.xlu0 %6409 }
 0xf92   :  { %v6429_v10 = vmul.f32 0.0078125, %v6412_v26  ;;  %v6428_v30 = vmul.f32 0.0078125, %v6410_v47  ;;  %v6459_v29 = vmul.f32 %v12064_v21, %v12064_v21  ;;  %v12087_v26 = vld [vmem:[%s12655_s2 + $0x1] ss:$0 sm:$0xff] }
 0xf94   :  { %v12069_v6 = vsub.f32 %v11944_v35, %v6429_v10  ;;  %v12072_v39 = vsub.f32 %v11946_v44, %v6428_v30  ;;  %6487 = vadd.xlane.f32.xlu1 %v6459_v29  ;;  %v9739_v44 = vld [vmem:[#allocation8 + $0xf8] sm:$0xff]  }
 0xf95   :  { %v6414_v37 = vpop.xlane.xlu0 %6413  ;;  %8652 = vmatprep.subr.bf16.mxu0 %v9739_v44 }
 0xf96   :  { %v6430_v52 = vmul.f32 0.0078125, %v6414_v37  ;;  %v6461_v50 = vmul.f32 %v12069_v6, %v12069_v6  ;;  %v6460_v61 = vmul.f32 %v12072_v39, %v12072_v39  ;;  %8653 = vmatpush3.bf16.msra.mxu0 %v9740_v27 }
 0xf97   :  { %8654 = vmatprep.subr.bf16.mxu0 %v9741_v56 }
 0xf98   :  { %v12079_v7 = vsub.f32 %v11951_v15, %v6430_v52  ;;  %6491 = vadd.xlane.f32.xlu1 %v6461_v50  ;;  %6489 = vadd.xlane.f32.xlu0 %v6460_v61  ;;  %v9746_v15 = vld [vmem:[#allocation8 + $0xa0] sm:$0xff]   ;;  %v12094_v61 = vld [vmem:[%s12624_s6 + $0x1] ss:$0 sm:$0xff] }
 0xf9a   :  { %v6462_v35 = vmul.f32 %v12079_v7, %v12079_v7  ;;  %8655 = vmatpush3.bf16.msra.mxu0 %v9742_v4 }
 0xf9b   :  { %8656 = vmatprep.subr.bf16.mxu0 %v9743_v25 }
 0xf9c   :  { %6493 = vadd.xlane.f32.xlu0 %v6462_v35 }
 0xf9e   :  { %8657 = vmatpush3.bf16.msra.mxu0 %v9744_v32 }
 0xf9f   :  { %8658 = vmatprep.subr.bf16.mxu0 %v9745_v49 }
 0xfa2   :  { %8659 = vmatpush3.bf16.msra.mxu0 %v9746_v15 }
 0xfa3   :  { %8660 = vmatprep.subr.bf16.mxu0 %v9747_v0 }
 0xfa6   :  { %8661 = vmatpush3.bf16.msra.mxu0 %v9748_v1 }
 0xfed   :  { %v6464_v46 = vpop.xlane.xlu1 %6463 }
 0xfee   :  { %v6495_v28 = vmul.f32 0.0078125, %v6464_v46 }
 0xff0   :  { %v6511_v58 = vadd.f32 1e-05, %v6495_v28 }
 0xff1   :  { %v6468_v51 = vpop.xlane.xlu1 %6467  ;;  %v6466_v23 = vpop.xlane.xlu0 %6465 }
 0xff2   :  { %9955 = vrsqrt.f32 %v6511_v58  ;;  %v6497_v24 = vmul.f32 0.0078125, %v6468_v51  ;;  %v6496_v38 = vmul.f32 0.0078125, %v6466_v23 }
 0xff4   :  { %v6512_v54 = vadd.f32 1e-05, %v6496_v38  ;;  %v6513_v17 = vadd.f32 1e-05, %v6497_v24 }
 0xff5   :  { %v6470_v36 = vpop.xlane.xlu0 %6469 }
 0xff6   :  { %v6498_v40 = vmul.f32 0.0078125, %v6470_v36  ;;  %9957 = vrsqrt.f32 %v6512_v54 }
 0xff7   :  { %9959 = vrsqrt.f32 %v6513_v17 }
 0xff8   :  { %v6514_v3 = vadd.f32 1e-05, %v6498_v40 }
 0xffa   :  { %9961 = vrsqrt.f32 %v6514_v3 }
 0xffd   :  { %v6472_v45 = vpop.xlane.xlu1 %6471 }
 0xffe   :  { %v6499_v41 = vmul.f32 0.0078125, %v6472_v45 }
 0xfff   :  { %v9956_v62 = vpop.eup %9955 }
0x1000   :  { %v6515_v8 = vadd.f32 1e-05, %v6499_v41  ;;  %v6543_v20 = vmul.f32 %v9956_v62, %v11961_v42 }
0x1001   :  { %v6476_v43 = vpop.xlane.xlu1 %6475  ;;  %v6474_v60 = vpop.xlane.xlu0 %6473 }
0x1002   :  { %9963 = vrsqrt.f32 %v6515_v8  ;;  %v6501_v63 = vmul.f32 0.0078125, %v6476_v43  ;;  %v6500_v33 = vmul.f32 0.0078125, %v6474_v60  ;;  %v6565_v52 = vmul.f32 %v12087_v26, %v6543_v20 }
0x1003   :  { %v9958_v47 = vpop.eup %9957 }
0x1004   :  { %v6516_v10 = vadd.f32 1e-05, %v6500_v33  ;;  %v6544_v30 = vmul.f32 %v9958_v47, %v11969_v19  ;;  %v6517_v29 = vadd.f32 1e-05, %v6501_v63  ;;  %v9960_v50 = vpop.eup %9959  ;;  %v12099_v19 = vadd.f32 %v12094_v61, %v6565_v52 }
0x1005   :  { %v6478_v37 = vpop.xlane.xlu0 %6477  ;;  %v6545_v25 = vmul.f32 %v9960_v50, %v11966_v5 }
0x1006   :  { %v6502_v42 = vmul.f32 0.0078125, %v6478_v37  ;;  %9965 = vrsqrt.f32 %v6516_v10  ;;  %v6566_v44 = vmul.f32 %v12087_v26, %v6544_v30 }
0x1007   :  { %v9962_v35 = vpop.eup %9961  ;;  %9967 = vrsqrt.f32 %v6517_v29  ;;  %v6567_v0 = vmul.f32 %v12087_v26, %v6545_v25 }
0x1008   :  { %v6518_v27 = vadd.f32 1e-05, %v6502_v42  ;;  %v6546_v56 = vmul.f32 %v9962_v35, %v11976_v48  ;;  %v12102_v4 = vadd.f32 %v12094_v61, %v6566_v44 }
0x1009   :  { %v12114_v51 = vadd.f32 %v12094_v61, %v6567_v0 }
0x100a   :  { %9969 = vrsqrt.f32 %v6518_v27  ;;  %v6603_v32 = vpack.c.bf16 %v12102_v4, %v12099_v19  ;;  %v6568_v49 = vmul.f32 %v12087_v26, %v6546_v56 }
0x100c   :  { %6754 = vmatmul.mubr.bf16.vlgmr.msra.gmra.mxu1 %v6603_v32  ;;  %v12111_v46 = vadd.f32 %v12094_v61, %v6568_v49 }
0x100d   :  { %v6480_v15 = vpop.xlane.xlu1 %6479  ;;  %6763 = vmatprep.mubr.bf16.mxu1 %v10159_v2 }
0x100e   :  { %v6503_v48 = vmul.f32 0.0078125, %v6480_v15  ;;  %v6604_v54 = vpack.c.bf16 %v12111_v46, %v12114_v51 }
0x100f   :  { %v9964_v1 = vpop.eup %9963 }
0x1010   :  { %v6519_v28 = vadd.f32 1e-05, %v6503_v48  ;;  %v6547_v23 = vmul.f32 %v9964_v1, %v11981_v59 }
0x1011   :  { %v6484_v58 = vpop.xlane.xlu1 %6483  ;;  %v6482_v5 = vpop.xlane.xlu0 %6481 }
0x1012   :  { %9971 = vrsqrt.f32 %v6519_v28  ;;  %v6505_v24 = vmul.f32 0.0078125, %v6484_v58  ;;  %v6504_v38 = vmul.f32 0.0078125, %v6482_v5  ;;  %v6569_v41 = vmul.f32 %v12087_v26, %v6547_v23 }
0x1013   :  { %v9966_v17 = vpop.eup %9965 }
0x1014   :  { %v6520_v36 = vadd.f32 1e-05, %v6504_v38  ;;  %v6521_v40 = vadd.f32 1e-05, %v6505_v24  ;;  %6764 = vmatmul.mubr.bf16.gmra.mxu1 %v6604_v54  ;;  %v6548_v45 = vmul.f32 %v9966_v17, %v11995_v12  ;;  %v9968_v62 = vpop.eup %9967  ;;  %v12125_v63 = vadd.f32 %v12094_v61, %v6569_v41 }
0x1015   :  { %v6486_v3 = vpop.xlane.xlu0 %6485  ;;  %6773 = vmatprep.mubr.bf16.mxu1 %v10159_v2  ;;  %v6549_v12 = vmul.f32 %v9968_v62, %v11992_v53 }
0x1016   :  { %v6506_v8 = vmul.f32 0.0078125, %v6486_v3  ;;  %9973 = vrsqrt.f32 %v6520_v36  ;;  %v6570_v20 = vmul.f32 %v12087_v26, %v6548_v45 }
0x1017   :  { %v9970_v59 = vpop.eup %9969  ;;  %9975 = vrsqrt.f32 %v6521_v40  ;;  %v6571_v29 = vmul.f32 %v12087_v26, %v6549_v12 }
0x1018   :  { %v6522_v43 = vadd.f32 1e-05, %v6506_v8  ;;  %v6550_v60 = vmul.f32 %v9970_v59, %v12008_v22  ;;  %v12128_v33 = vadd.f32 %v12094_v61, %v6570_v20 }
0x1019   :  { %v12140_v35 = vadd.f32 %v12094_v61, %v6571_v29 }
0x101a   :  { %9977 = vrsqrt.f32 %v6522_v43  ;;  %v6605_v47 = vpack.c.bf16 %v12128_v33, %v12125_v63  ;;  %v6572_v10 = vmul.f32 %v12087_v26, %v6550_v60 }
0x101c   :  { %6774 = vmatmul.mubr.bf16.gmra.mxu1 %v6605_v47  ;;  %v12137_v52 = vadd.f32 %v12094_v61, %v6572_v10 }
0x101d   :  { %v6488_v30 = vpop.xlane.xlu1 %6487  ;;  %6783 = vmatprep.mubr.bf16.mxu1 %v10159_v2 }
0x101e   :  { %v6507_v22 = vmul.f32 0.0078125, %v6488_v30  ;;  %v6606_v25 = vpack.c.bf16 %v12137_v52, %v12140_v35 }
0x101f   :  { %v9972_v37 = vpop.eup %9971 }
0x1020   :  { %v6523_v50 = vadd.f32 1e-05, %v6507_v22  ;;  %v6551_v44 = vmul.f32 %v9972_v37, %v12025_v57 }
0x1021   :  { %v6492_v42 = vpop.xlane.xlu1 %6491  ;;  %v6490_v53 = vpop.xlane.xlu0 %6489 }
0x1022   :  { %9979 = vrsqrt.f32 %v6523_v50  ;;  %v6509_v27 = vmul.f32 0.0078125, %v6492_v42  ;;  %v6508_v56 = vmul.f32 0.0078125, %v6490_v53  ;;  %v6573_v1 = vmul.f32 %v12087_v26, %v6551_v44  ;;  %v9750_v50 = vld [vmem:[#allocation8 + $0x90] sm:$0xff]   ;;  %v9752_v42 = vld [vmem:[#allocation8 + $0x88] sm:$0xff]   ;;  %v9754_v53 = vld [vmem:[#allocation8 + $0x80] sm:$0xff]  }
0x1023   :  { %v9974_v32 = vpop.eup %9973 }
0x1024   :  { %v6524_v49 = vadd.f32 1e-05, %v6508_v56  ;;  %v6525_v15 = vadd.f32 1e-05, %v6509_v27  ;;  %6784 = vmatmul.mubr.bf16.gmra.mxu1 %v6606_v25  ;;  %v6552_v48 = vmul.f32 %v9974_v32, %v12039_v34  ;;  %v9976_v28 = vpop.eup %9975  ;;  %v12151_v38 = vadd.f32 %v12094_v61, %v6573_v1 }
0x1025   :  { %v6494_v0 = vpop.xlane.xlu0 %6493  ;;  %6793 = vmatprep.mubr.bf16.mxu1 %v10159_v2  ;;  %v6553_v34 = vmul.f32 %v9976_v28, %v12036_v9 }
0x1026   :  { %v6510_v58 = vmul.f32 0.0078125, %v6494_v0  ;;  %9981 = vrsqrt.f32 %v6524_v49  ;;  %v6574_v5 = vmul.f32 %v12087_v26, %v6552_v48 }
0x1027   :  { %v9978_v57 = vpop.eup %9977  ;;  %9983 = vrsqrt.f32 %v6525_v15  ;;  %v6575_v40 = vmul.f32 %v12087_v26, %v6553_v34 }
0x1028   :  { %v6526_v23 = vadd.f32 1e-05, %v6510_v58  ;;  %v6554_v24 = vmul.f32 %v9978_v57, %v12052_v13  ;;  %v12154_v54 = vadd.f32 %v12094_v61, %v6574_v5 }
0x1029   :  { %v12166_v45 = vadd.f32 %v12094_v61, %v6575_v40 }
0x102a   :  { %9985 = vrsqrt.f32 %v6526_v23  ;;  %v6607_v17 = vpack.c.bf16 %v12154_v54, %v12151_v38  ;;  %v6576_v36 = vmul.f32 %v12087_v26, %v6554_v24 }
0x102c   :  { %6794 = vmatmul.mubr.bf16.gmra.mxu1 %v6607_v17  ;;  %v12163_v3 = vadd.f32 %v12094_v61, %v6576_v36 }
0x102d   :  { %6803 = vmatprep.mubr.bf16.mxu1 %v10159_v2 }
0x102e   :  { %v6608_v41 = vpack.c.bf16 %v12163_v3, %v12166_v45 }
0x102f   :  { %v9980_v13 = vpop.eup %9979 }
0x1030   :  { %v6555_v9 = vmul.f32 %v9980_v13, %v12064_v21 }
0x1032   :  { %v6577_v59 = vmul.f32 %v12087_v26, %v6555_v9 }
0x1033   :  { %v9982_v62 = vpop.eup %9981 }
0x1034   :  { %6804 = vmatmul.mubr.bf16.gmra.mxu1 %v6608_v41  ;;  %v6556_v8 = vmul.f32 %v9982_v62, %v12072_v39  ;;  %v9984_v20 = vpop.eup %9983  ;;  %v12177_v47 = vadd.f32 %v12094_v61, %v6577_v59 }
0x1035   :  { %6813 = vmatprep.mubr.bf16.mxu1 %v10159_v2  ;;  %v6557_v10 = vmul.f32 %v9984_v20, %v12069_v6  ;;  %v9749_v6 = vld [vmem:[#allocation8 + $0xd0] sm:$0xff]  }
0x1036   :  { %v6578_v60 = vmul.f32 %v12087_v26, %v6556_v8  ;;  %8662 = vmatprep.subr.bf16.mxu0 %v9749_v6 }
0x1037   :  { %v9986_v43 = vpop.eup %9985  ;;  %v6579_v29 = vmul.f32 %v12087_v26, %v6557_v10  ;;  %8663 = vmatpush3.bf16.msra.mxu0 %v9750_v50 }
0x1038   :  { %v6558_v12 = vmul.f32 %v9986_v43, %v12079_v7  ;;  %v12180_v21 = vadd.f32 %v12094_v61, %v6578_v60 }
0x1039   :  { %v12192_v22 = vadd.f32 %v12094_v61, %v6579_v29 }
0x103a   :  { %v6609_v39 = vpack.c.bf16 %v12180_v21, %v12177_v47  ;;  %v6580_v30 = vmul.f32 %v12087_v26, %v6558_v12  ;;  %v9751_v26 = vld [vmem:[#allocation8 + $0xc8] sm:$0xff]  }
0x103b   :  { %8664 = vmatprep.subr.bf16.mxu0 %v9751_v26 }
0x103c   :  { %6814 = vmatmul.mubr.bf16.gmra.mxu1 %v6609_v39  ;;  %v12189_v7 = vadd.f32 %v12094_v61, %v6580_v30  ;;  %8665 = vmatpush3.bf16.msra.mxu0 %v9752_v42  ;;  %v8302_v61 = vld [vmem:[%s12626_s8 + $0x2] sm:$0x3] }
0x103d   :  { %6823 = vmatprep.mubr.bf16.mxu1 %v10159_v2  ;;  %v9753_v2 = vld [vmem:[#allocation8 + $0xc0] sm:$0xff]   ;;  %v12203_v27 = vrot.slane %v8302_v61, %v2890_v14  ;;  %v12207_v56 = vrot.slane %v8302_v61, %v2886_v18 }
0x103e   :  { %v6610_v37 = vpack.c.bf16 %v12189_v7, %v12192_v22  ;;  %8666 = vmatprep.subr.bf16.mxu0 %v9753_v2 }
0x1040   :  { %8667 = vmatpush3.bf16.msra.mxu0 %v9754_v53 }
0x1044   :  { %6824 = vmatmul.mubr.bf16.gmra.mxu1 %v6610_v37 }
0x1045   :  { %9409 = vmatprep.mubr.msk.bf16.mxu1 %vm10162_vm8, %v10161_v31 }
0x10cc   :  { %v6755_v44 = vpop.f32.mrf.mxu1 }
0x10cd   :  { %v6756_v0 = vadd.f32 %v6755_v44, %v12207_v56 }
0x10ce   :  { %v6757_v25 = vpop.f32.mrf.mxu1 }
0x10cf   :  { %v6758_v49 = vadd.f32 %v6757_v25, %v12203_v27  ;;  %v6834_v5 = vmax.f32 %v6756_v0, 0.0 }
0x10d0   :  { %v6759_v32 = vpop.f32.mrf.mxu1 }
0x10d1   :  { %v6760_v15 = vadd.f32 %v6759_v32, %v12207_v56  ;;  %v6835_v57 = vmax.f32 %v6758_v49, 0.0 }
0x10d2   :  { %v6761_v48 = vpop.f32.mrf.mxu1 }
0x10d3   :  { %v6762_v1 = vadd.f32 %v6761_v48, %v12203_v27  ;;  %v6836_v28 = vmax.f32 %v6760_v15, 0.0 }
0x10d4   :  { %v6765_v58 = vpop.f32.mrf.mxu1 }
0x10d5   :  { %v6837_v14 = vmax.f32 %v6762_v1, 0.0  ;;  %v6866_v18 = vpack.c.bf16 %v6836_v28, %v6834_v5  ;;  %v6766_v36 = vadd.f32 %v6765_v58, %v12207_v56 }
0x10d6   :  { %v6767_v23 = vpop.f32.mrf.mxu1 }
0x10d7   :  { %v6867_v11 = vpack.c.bf16 %v6837_v14, %v6835_v57  ;;  %v6768_v34 = vadd.f32 %v6767_v23, %v12203_v27  ;;  %v6838_v59 = vmax.f32 %v6766_v36, 0.0 }
0x10d8   :  { %v6769_v24 = vpop.f32.mrf.mxu1 }
0x10d9   :  { %v6770_v17 = vadd.f32 %v6769_v24, %v12207_v56  ;;  %7051 = vmatprep.mubr.bf16.mxu0 %v6867_v11  ;;  %v6839_v62 = vmax.f32 %v6768_v34, 0.0 }
0x10da   :  { %v6771_v40 = vpop.f32.mrf.mxu1  ;;  %7052 = vmatmul.mubr.bf16.vlgmr.msra.gmra.mxu0 %v6866_v18 }
0x10db   :  { %v6772_v13 = vadd.f32 %v6771_v40, %v12203_v27  ;;  %v6840_v9 = vmax.f32 %v6770_v17, 0.0 }
0x10dc   :  { %v6775_v41 = vpop.f32.mrf.mxu1 }
0x10dd   :  { %v6841_v8 = vmax.f32 %v6772_v13, 0.0  ;;  %v6868_v60 = vpack.c.bf16 %v6840_v9, %v6838_v59  ;;  %v6776_v30 = vadd.f32 %v6775_v41, %v12207_v56 }
0x10de   :  { %v6777_v20 = vpop.f32.mrf.mxu1 }
0x10df   :  { %v6869_v43 = vpack.c.bf16 %v6841_v8, %v6839_v62  ;;  %v6778_v10 = vadd.f32 %v6777_v20, %v12203_v27  ;;  %v6842_v2 = vmax.f32 %v6776_v30, 0.0 }
0x10e0   :  { %v6779_v12 = vpop.f32.mrf.mxu1 }
0x10e1   :  { %v6780_v39 = vadd.f32 %v6779_v12, %v12207_v56  ;;  %7059 = vmatprep.mubr.bf16.mxu0 %v6869_v43  ;;  %v6843_v26 = vmax.f32 %v6778_v10, 0.0 }
0x10e2   :  { %v6781_v29 = vpop.f32.mrf.mxu1  ;;  %7060 = vmatmul.mubr.bf16.gmra.mxu0 %v6868_v60 }
0x10e3   :  { %v6782_v37 = vadd.f32 %v6781_v29, %v12203_v27  ;;  %v6844_v6 = vmax.f32 %v6780_v39, 0.0 }
0x10e4   :  { %v6785_v50 = vpop.f32.mrf.mxu1 }
0x10e5   :  { %v6845_v42 = vmax.f32 %v6782_v37, 0.0  ;;  %v6870_v44 = vpack.c.bf16 %v6844_v6, %v6842_v2  ;;  %v6786_v15 = vadd.f32 %v6785_v50, %v12207_v56 }
0x10e6   :  { %v6787_v53 = vpop.f32.mrf.mxu1 }
0x10e7   :  { %v6871_v61 = vpack.c.bf16 %v6845_v42, %v6843_v26  ;;  %v6788_v32 = vadd.f32 %v6787_v53, %v12203_v27  ;;  %v6846_v14 = vmax.f32 %v6786_v15, 0.0 }
0x10e8   :  { %v6789_v25 = vpop.f32.mrf.mxu1 }
0x10e9   :  { %v6790_v49 = vadd.f32 %v6789_v25, %v12207_v56  ;;  %7067 = vmatprep.mubr.bf16.mxu0 %v6871_v61  ;;  %v6847_v58 = vmax.f32 %v6788_v32, 0.0 }
0x10ea   :  { %v6791_v0 = vpop.f32.mrf.mxu1  ;;  %7068 = vmatmul.mubr.bf16.gmra.mxu0 %v6870_v44 }
0x10eb   :  { %v6792_v48 = vadd.f32 %v6791_v0, %v12203_v27  ;;  %v6848_v1 = vmax.f32 %v6790_v49, 0.0 }
0x10ec   :  { %v6795_v28 = vpop.f32.mrf.mxu1 }
0x10ed   :  { %v6849_v57 = vmax.f32 %v6792_v48, 0.0  ;;  %v6872_v11 = vpack.c.bf16 %v6848_v1, %v6846_v14  ;;  %v6796_v17 = vadd.f32 %v6795_v28, %v12207_v56 }
0x10ee   :  { %v6797_v5 = vpop.f32.mrf.mxu1 }
0x10ef   :  { %v6873_v23 = vpack.c.bf16 %v6849_v57, %v6847_v58  ;;  %v6798_v24 = vadd.f32 %v6797_v5, %v12203_v27  ;;  %v6850_v8 = vmax.f32 %v6796_v17, 0.0 }
0x10f0   :  { %v6799_v18 = vpop.f32.mrf.mxu1 }
0x10f1   :  { %v6800_v34 = vadd.f32 %v6799_v18, %v12207_v56  ;;  %7075 = vmatprep.mubr.bf16.mxu0 %v6873_v23  ;;  %v6851_v41 = vmax.f32 %v6798_v24, 0.0 }
0x10f2   :  { %v6801_v36 = vpop.f32.mrf.mxu1  ;;  %7076 = vmatmul.mubr.bf16.gmra.mxu0 %v6872_v11 }
0x10f3   :  { %v6802_v40 = vadd.f32 %v6801_v36, %v12203_v27  ;;  %v6852_v13 = vmax.f32 %v6800_v34, 0.0 }
0x10f4   :  { %v6805_v9 = vpop.f32.mrf.mxu1 }
0x10f5   :  { %v6853_v62 = vmax.f32 %v6802_v40, 0.0  ;;  %v6874_v43 = vpack.c.bf16 %v6852_v13, %v6850_v8  ;;  %v6806_v39 = vadd.f32 %v6805_v9, %v12207_v56 }
0x10f6   :  { %v6807_v59 = vpop.f32.mrf.mxu1 }
0x10f7   :  { %v6875_v20 = vpack.c.bf16 %v6853_v62, %v6851_v41  ;;  %v6808_v12 = vadd.f32 %v6807_v59, %v12203_v27  ;;  %v6854_v42 = vmax.f32 %v6806_v39, 0.0 }
0x10f8   :  { %v6809_v60 = vpop.f32.mrf.mxu1 }
0x10f9   :  { %v6810_v10 = vadd.f32 %v6809_v60, %v12207_v56  ;;  %7083 = vmatprep.mubr.bf16.mxu0 %v6875_v20  ;;  %v6855_v50 = vmax.f32 %v6808_v12, 0.0  ;;  %v12244_v20 = vld [vmem:[%s12628_s10 + $0x1] ss:$0 sm:$0xff] }
0x10fa   :  { %v6811_v30 = vpop.f32.mrf.mxu1  ;;  %7084 = vmatmul.mubr.bf16.gmra.mxu0 %v6874_v43 }
0x10fb   :  { %v6812_v29 = vadd.f32 %v6811_v30, %v12203_v27  ;;  %v6856_v37 = vmax.f32 %v6810_v10, 0.0 }
0x10fc   :  { %v6815_v6 = vpop.f32.mrf.mxu1 }
0x10fd   :  { %v6857_v26 = vmax.f32 %v6812_v29, 0.0  ;;  %v6876_v61 = vpack.c.bf16 %v6856_v37, %v6854_v42  ;;  %v6816_v49 = vadd.f32 %v6815_v6, %v12207_v56 }
0x10fe   :  { %v6817_v2 = vpop.f32.mrf.mxu1 }
0x10ff   :  { %v6877_v53 = vpack.c.bf16 %v6857_v26, %v6855_v50  ;;  %v6818_v25 = vadd.f32 %v6817_v2, %v12203_v27  ;;  %v6858_v57 = vmax.f32 %v6816_v49, 0.0 }
0x1100   :  { %v6819_v44 = vpop.f32.mrf.mxu1 }
0x1101   :  { %v6820_v32 = vadd.f32 %v6819_v44, %v12207_v56  ;;  %7091 = vmatprep.mubr.bf16.mxu0 %v6877_v53  ;;  %v6859_v28 = vmax.f32 %v6818_v25, 0.0 }
0x1102   :  { %v6821_v15 = vpop.f32.mrf.mxu1  ;;  %7092 = vmatmul.mubr.bf16.gmra.mxu0 %v6876_v61 }
0x1103   :  { %v6822_v0 = vadd.f32 %v6821_v15, %v12203_v27  ;;  %v6860_v48 = vmax.f32 %v6820_v32, 0.0 }
0x1104   :  { %v6825_v1 = vpop.f32.mrf.mxu1 }
0x1105   :  { %v6861_v58 = vmax.f32 %v6822_v0, 0.0  ;;  %v6878_v23 = vpack.c.bf16 %v6860_v48, %v6858_v57  ;;  %v6826_v34 = vadd.f32 %v6825_v1, %v12207_v56 }
0x1106   :  { %v6827_v14 = vpop.f32.mrf.mxu1 }
0x1107   :  { %v6879_v5 = vpack.c.bf16 %v6861_v58, %v6859_v28  ;;  %v6828_v18 = vadd.f32 %v6827_v14, %v12203_v27  ;;  %v6862_v41 = vmax.f32 %v6826_v34, 0.0 }
0x1108   :  { %v6829_v11 = vpop.f32.mrf.mxu1 }
0x1109   :  { %v6830_v24 = vadd.f32 %v6829_v11, %v12207_v56  ;;  %7099 = vmatprep.mubr.bf16.mxu0 %v6879_v5  ;;  %v6863_v13 = vmax.f32 %v6828_v18, 0.0 }
0x110a   :  { %v6831_v17 = vpop.f32.mrf.mxu1  ;;  %7100 = vmatmul.mubr.bf16.gmra.mxu0 %v6878_v23 }
0x110b   :  { %v6832_v36 = vadd.f32 %v6831_v17, %v12203_v27  ;;  %v6864_v40 = vmax.f32 %v6830_v24, 0.0 }
0x110d   :  { %v6865_v9 = vmax.f32 %v6832_v36, 0.0  ;;  %v6880_v8 = vpack.c.bf16 %v6864_v40, %v6862_v41 }
0x110f   :  { %v6881_v62 = vpack.c.bf16 %v6865_v9, %v6863_v13 }
0x1111   :  { %7107 = vmatprep.mubr.bf16.mxu0 %v6881_v62 }
0x1112   :  { %7108 = vmatmul.mubr.bf16.gmra.mxu0 %v6880_v8 }
0x119a   :  { %v8668_v59 = vpop.f32.mrf.mxu0 }
0x119c   :  { %v8669_v43 = vpop.f32.mrf.mxu0 }
0x119d   :  { %v8670_v56 = vadd.f32 %v8669_v43, %v8668_v59 }
0x119e   :  { %v8671_v60 = vpop.f32.mrf.mxu0 }
0x119f   :  { %v7054_v12 = vadd.f32 %v8670_v56, %v12244_v20 }
0x11a0   :  { %v8672_v27 = vpop.f32.mrf.mxu0 }
0x11a1   :  { %v8673_v10 = vadd.f32 %v8672_v27, %v8671_v60  ;;  %v12248_v39 = vadd.f32 %v7054_v12, %v12099_v19 }
0x11a2   :  { %v8674_v30 = vpop.f32.mrf.mxu0 }
0x11a3   :  { %v7057_v29 = vadd.f32 %v8673_v10, %v12244_v20  ;;  %7136 = vadd.xlane.f32.xlu1 %v12248_v39 }
0x11a4   :  { %v8675_v37 = vpop.f32.mrf.mxu0 }
0x11a5   :  { %v8676_v6 = vadd.f32 %v8675_v37, %v8674_v30  ;;  %v12253_v50 = vadd.f32 %v7057_v29, %v12102_v4 }
0x11a6   :  { %v8677_v26 = vpop.f32.mrf.mxu0 }
0x11a7   :  { %v7062_v42 = vadd.f32 %v8676_v6, %v12244_v20  ;;  %7138 = vadd.xlane.f32.xlu0 %v12253_v50 }
0x11a8   :  { %v8678_v2 = vpop.f32.mrf.mxu0 }
0x11a9   :  { %v8679_v53 = vadd.f32 %v8678_v2, %v8677_v26  ;;  %v12258_v19 = vadd.f32 %v7062_v42, %v12114_v51 }
0x11aa   :  { %v8680_v61 = vpop.f32.mrf.mxu0 }
0x11ab   :  { %v7065_v44 = vadd.f32 %v8679_v53, %v12244_v20  ;;  %7140 = vadd.xlane.f32.xlu1 %v12258_v19 }
0x11ac   :  { %v8681_v25 = vpop.f32.mrf.mxu0 }
0x11ad   :  { %v8682_v32 = vadd.f32 %v8681_v25, %v8680_v61  ;;  %v12263_v4 = vadd.f32 %v7065_v44, %v12111_v46 }
0x11ae   :  { %v8683_v49 = vpop.f32.mrf.mxu0 }
0x11af   :  { %v7070_v15 = vadd.f32 %v8682_v32, %v12244_v20  ;;  %7142 = vadd.xlane.f32.xlu1 %v12263_v4 }
0x11b0   :  { %v8684_v0 = vpop.f32.mrf.mxu0 }
0x11b1   :  { %v8685_v48 = vadd.f32 %v8684_v0, %v8683_v49  ;;  %v12268_v51 = vadd.f32 %v7070_v15, %v12125_v63 }
0x11b2   :  { %v8686_v1 = vpop.f32.mrf.mxu0 }
0x11b3   :  { %v7073_v28 = vadd.f32 %v8685_v48, %v12244_v20  ;;  %7144 = vadd.xlane.f32.xlu1 %v12268_v51 }
0x11b4   :  { %v8687_v58 = vpop.f32.mrf.mxu0 }
0x11b5   :  { %v12273_v57 = vadd.f32 %v7073_v28, %v12128_v33  ;;  %v8688_v11 = vadd.f32 %v8687_v58, %v8686_v1 }
0x11b6   :  { %v8689_v46 = vpop.f32.mrf.mxu0 }
0x11b7   :  { %7146 = vadd.xlane.f32.xlu1 %v12273_v57  ;;  %v7078_v17 = vadd.f32 %v8688_v11, %v12244_v20 }
0x11b8   :  { %v8690_v14 = vpop.f32.mrf.mxu0 }
0x11b9   :  { %v8691_v36 = vadd.f32 %v8690_v14, %v8689_v46  ;;  %v12288_v43 = vadd.f32 %v7078_v17, %v12140_v35 }
0x11ba   :  { %v8692_v5 = vpop.f32.mrf.mxu0 }
0x11bb   :  { %v7081_v62 = vadd.f32 %v8691_v36, %v12244_v20 }
0x11bc   :  { %v8693_v23 = vpop.f32.mrf.mxu0 }
0x11bd   :  { %v8694_v18 = vadd.f32 %v8693_v23, %v8692_v5  ;;  %v12297_v10 = vadd.f32 %v7081_v62, %v12137_v52 }
0x11be   :  { %v8695_v24 = vpop.f32.mrf.mxu0 }
0x11bf   :  { %v7086_v63 = vadd.f32 %v8694_v18, %v12244_v20 }
0x11c0   :  { %v8696_v34 = vpop.f32.mrf.mxu0 }
0x11c1   :  { %v8697_v40 = vadd.f32 %v8696_v34, %v8695_v24  ;;  %v12279_v13 = vadd.f32 %v7086_v63, %v12151_v38 }
0x11c2   :  { %v8698_v33 = vpop.f32.mrf.mxu0 }
0x11c3   :  { %v7089_v9 = vadd.f32 %v8697_v40, %v12244_v20  ;;  %7152 = vadd.xlane.f32.xlu1 %v12279_v13 }
0x11c4   :  { %v8699_v41 = vpop.f32.mrf.mxu0 }
0x11c5   :  { %v8700_v8 = vadd.f32 %v8699_v41, %v8698_v33  ;;  %v12285_v59 = vadd.f32 %v7089_v9, %v12154_v54 }
0x11c6   :  { %v8701_v56 = vpop.f32.mrf.mxu0 }
0x11c7   :  { %v7094_v60 = vadd.f32 %v8700_v8, %v12244_v20  ;;  %7154 = vadd.xlane.f32.xlu0 %v12285_v59  ;;  %7148 = vadd.xlane.f32.xlu1 %v12288_v43 }
0x11c8   :  { %v8702_v38 = vpop.f32.mrf.mxu0 }
0x11c9   :  { %v8703_v12 = vadd.f32 %v8702_v38, %v8701_v56  ;;  %v12294_v27 = vadd.f32 %v7094_v60, %v12166_v45 }
0x11ca   :  { %v8704_v54 = vpop.f32.mrf.mxu0 }
0x11cb   :  { %v7097_v30 = vadd.f32 %v8703_v12, %v12244_v20  ;;  %7156 = vadd.xlane.f32.xlu0 %v12294_v27  ;;  %7150 = vadd.xlane.f32.xlu1 %v12297_v10 }
0x11cc   :  { %v8705_v35 = vpop.f32.mrf.mxu0 }
0x11cd   :  { %v8706_v29 = vadd.f32 %v8705_v35, %v8704_v54  ;;  %v12303_v37 = vadd.f32 %v7097_v30, %v12163_v3 }
0x11ce   :  { %v8707_v6 = vpop.f32.mrf.mxu0 }
0x11cf   :  { %v7102_v26 = vadd.f32 %v8706_v29, %v12244_v20  ;;  %7158 = vadd.xlane.f32.xlu0 %v12303_v37 }
0x11d0   :  { %v8708_v45 = vpop.f32.mrf.mxu0 }
0x11d1   :  { %v8709_v52 = vadd.f32 %v8708_v45, %v8707_v6  ;;  %v12308_v42 = vadd.f32 %v7102_v26, %v12177_v47  ;;  %v8201_v26 = vld [vmem:[%s12632_s14] ss:$0 sm:$0xff] }
0x11d2   :  { %v8710_v2 = vpop.f32.mrf.mxu0 }
0x11d3   :  { %v7105_v53 = vadd.f32 %v8709_v52, %v12244_v20  ;;  %7160 = vadd.xlane.f32.xlu0 %v12308_v42  ;;  %v12381_v52 = vadd.f32 %v8201_v26, %v11547_v55 }
0x11d4   :  { %v8711_v61 = vpop.f32.mrf.mxu0 }
0x11d5   :  { %v8712_v44 = vadd.f32 %v8711_v61, %v8710_v2  ;;  %v12313_v3 = vadd.f32 %v7105_v53, %v12180_v21 }
0x11d6   :  { %v8713_v25 = vpop.f32.mrf.mxu0 }
0x11d7   :  { %v7110_v32 = vadd.f32 %v8712_v44, %v12244_v20  ;;  %7162 = vadd.xlane.f32.xlu0 %v12313_v3 }
0x11d8   :  { %v8714_v49 = vpop.f32.mrf.mxu0 }
0x11d9   :  { %v8715_v15 = vadd.f32 %v8714_v49, %v8713_v25  ;;  %v12318_v47 = vadd.f32 %v7110_v32, %v12192_v22 }
0x11db   :  { %v7113_v0 = vadd.f32 %v8715_v15, %v12244_v20  ;;  %7164 = vadd.xlane.f32.xlu0 %v12318_v47 }
0x11dd   :  { %v12323_v48 = vadd.f32 %v7113_v0, %v12189_v7 }
0x11df   :  { %7166 = vadd.xlane.f32.xlu0 %v12323_v48 }
0x122c   :  { %v7137_v21 = vpop.xlane.xlu1 %7136 }
0x122d   :  { %v7168_v1 = vmul.f32 0.0078125, %v7137_v21 }
0x122f   :  { %v12327_v28 = vsub.f32 %v12248_v39, %v7168_v1 }
0x1230   :  { %v7139_v58 = vpop.xlane.xlu0 %7138 }
0x1231   :  { %v7169_v46 = vmul.f32 0.0078125, %v7139_v58  ;;  %v7200_v22 = vmul.f32 %v12327_v28, %v12327_v28 }
0x1233   :  { %v12332_v14 = vsub.f32 %v12253_v50, %v7169_v46  ;;  %7216 = vadd.xlane.f32.xlu1 %v7200_v22 }
0x1234   :  { %v7141_v20 = vpop.xlane.xlu1 %7140 }
0x1235   :  { %v7170_v5 = vmul.f32 0.0078125, %v7141_v20  ;;  %v7201_v7 = vmul.f32 %v12332_v14, %v12332_v14 }
0x1237   :  { %v12337_v23 = vsub.f32 %v12258_v19, %v7170_v5  ;;  %7218 = vadd.xlane.f32.xlu0 %v7201_v7 }
0x1238   :  { %v7143_v39 = vpop.xlane.xlu1 %7142 }
0x1239   :  { %v7171_v11 = vmul.f32 0.0078125, %v7143_v39  ;;  %v7202_v18 = vmul.f32 %v12337_v23, %v12337_v23 }
0x123b   :  { %v12342_v24 = vsub.f32 %v12263_v4, %v7171_v11  ;;  %7220 = vadd.xlane.f32.xlu1 %v7202_v18  ;;  %v9755_v11 = vld [vmem:[#allocation9 + $0x78] sm:$0xff]   ;;  %v9756_v18 = vld [vmem:[#allocation9 + $0x70] sm:$0xff]  }
0x123c   :  { %v7145_v50 = vpop.xlane.xlu1 %7144  ;;  %9394 = vmatpush3.bf16.msra.mxu1 %v9755_v11 }
0x123d   :  { %v7172_v63 = vmul.f32 0.0078125, %v7145_v50  ;;  %v7203_v34 = vmul.f32 %v12342_v24, %v12342_v24  ;;  %9395 = vmatprep.subr.bf16.mxu1 %v10161_v31  ;;  %v9759_v50 = vld [vmem:[#allocation9 + $0x58] sm:$0xff]  }
0x123f   :  { %v12347_v17 = vsub.f32 %v12268_v51, %v7172_v63  ;;  %7222 = vadd.xlane.f32.xlu1 %v7203_v34  ;;  %v9760_v63 = vld [vmem:[#allocation9 + $0x50] sm:$0xff]   ;;  %v9761_v34 = vld [vmem:[#allocation9 + $0x48] sm:$0xff]  }
0x1240   :  { %v7147_v19 = vpop.xlane.xlu1 %7146  ;;  %9396 = vmatpush3.bf16.msra.mxu1 %v9756_v18 }
0x1241   :  { %v7173_v36 = vmul.f32 0.0078125, %v7147_v19  ;;  %v7204_v40 = vmul.f32 %v12347_v17, %v12347_v17  ;;  %9397 = vmatprep.subr.bf16.mxu1 %v10161_v31  ;;  %v9762_v19 = vld [vmem:[#allocation9 + $0x40] sm:$0xff]  }
0x1243   :  { %v12352_v33 = vsub.f32 %v12273_v57, %v7173_v36  ;;  %7224 = vadd.xlane.f32.xlu1 %v7204_v40  ;;  %v12427_v36 = vld [vmem:[#allocation11 + $0x78] sm:$0xff] }
0x1245   :  { %v7205_v4 = vmul.f32 %v12352_v33, %v12352_v33 }
0x1247   :  { %7226 = vadd.xlane.f32.xlu1 %v7205_v4 }
0x124c   :  { %v7153_v9 = vpop.xlane.xlu1 %7152 }
0x124d   :  { %v7176_v41 = vmul.f32 0.0078125, %v7153_v9 }
0x124f   :  { %v12357_v62 = vsub.f32 %v12279_v13, %v7176_v41 }
0x1250   :  { %v7155_v51 = vpop.xlane.xlu0 %7154  ;;  %v7149_v8 = vpop.xlane.xlu1 %7148 }
0x1251   :  { %v7177_v56 = vmul.f32 0.0078125, %v7155_v51  ;;  %v7174_v60 = vmul.f32 0.0078125, %v7149_v8  ;;  %v7208_v38 = vmul.f32 %v12357_v62, %v12357_v62 }
0x1253   :  { %v12362_v57 = vsub.f32 %v12285_v59, %v7177_v56  ;;  %v12365_v12 = vsub.f32 %v12288_v43, %v7174_v60  ;;  %7232 = vadd.xlane.f32.xlu1 %v7208_v38 }
0x1254   :  { %v7157_v54 = vpop.xlane.xlu0 %7156  ;;  %v7151_v30 = vpop.xlane.xlu1 %7150 }
0x1255   :  { %v7178_v35 = vmul.f32 0.0078125, %v7157_v54  ;;  %v7175_v29 = vmul.f32 0.0078125, %v7151_v30  ;;  %v7209_v13 = vmul.f32 %v12362_v57, %v12362_v57  ;;  %v7206_v6 = vmul.f32 %v12365_v12, %v12365_v12 }
0x1257   :  { %v12375_v59 = vsub.f32 %v12294_v27, %v7178_v35  ;;  %v12378_v43 = vsub.f32 %v12297_v10, %v7175_v29  ;;  %7234 = vadd.xlane.f32.xlu0 %v7209_v13  ;;  %7228 = vadd.xlane.f32.xlu1 %v7206_v6  ;;  %v8351_v27 = vld [vmem:[%s12635_s17] ss:$0 sm:$0xff]  ;;  %v12434_v29 = vld [vmem:[%s12629_s11 + $0x1] ss:$0 sm:$0xff] }
0x1258   :  { %v7159_v45 = vpop.xlane.xlu0 %7158  ;;  %v8031_v32 = vmul.f32 %v8351_v27, %v12381_v52 }
0x1259   :  { %v7179_v2 = vmul.f32 0.0078125, %v7159_v45  ;;  %v7210_v53 = vmul.f32 %v12375_v59, %v12375_v59  ;;  %v7207_v61 = vmul.f32 %v12378_v43, %v12378_v43 }
0x125b   :  { %v12391_v10 = vsub.f32 %v12303_v37, %v7179_v2  ;;  %7236 = vadd.xlane.f32.xlu0 %v7210_v53  ;;  %7230 = vadd.xlane.f32.xlu1 %v7207_v61 }
0x125c   :  { %v7161_v44 = vpop.xlane.xlu0 %7160 }
0x125d   :  { %v7180_v25 = vmul.f32 0.0078125, %v7161_v44  ;;  %v7211_v55 = vmul.f32 %v12391_v10, %v12391_v10 }
0x125f   :  { %v12397_v49 = vsub.f32 %v12308_v42, %v7180_v25  ;;  %7238 = vadd.xlane.f32.xlu0 %v7211_v55  ;;  %8033 = vadd.xlane.f32.xlu1 %v8031_v32 }
0x1260   :  { %v7163_v15 = vpop.xlane.xlu0 %7162 }
0x1261   :  { %v7181_v0 = vmul.f32 0.0078125, %v7163_v15  ;;  %v7212_v37 = vmul.f32 %v12397_v49, %v12397_v49 }
0x1263   :  { %v12402_v21 = vsub.f32 %v12313_v3, %v7181_v0  ;;  %7240 = vadd.xlane.f32.xlu0 %v7212_v37  ;;  %v12415_v3 = vadd.f32 %v8201_v26, %v11549_v16  ;;  %v9758_v16 = vld [vmem:[#allocation9 + $0x60] sm:$0xff]   ;;  %v12440_v26 = vld [vmem:[%s12630_s12 + $0x1] ss:$0 sm:$0xff] }
0x1264   :  { %v7165_v1 = vpop.xlane.xlu0 %7164 }
0x1265   :  { %v7182_v58 = vmul.f32 0.0078125, %v7165_v1  ;;  %v7213_v46 = vmul.f32 %v12402_v21, %v12402_v21 }
0x1267   :  { %v12407_v22 = vsub.f32 %v12318_v47, %v7182_v58  ;;  %7242 = vadd.xlane.f32.xlu0 %v7213_v46  ;;  %v8032_v47 = vmul.f32 %v8351_v27, %v12415_v3 }
0x1268   :  { %v7167_v42 = vpop.xlane.xlu0 %7166 }
0x1269   :  { %v7183_v20 = vmul.f32 0.0078125, %v7167_v42  ;;  %v7214_v5 = vmul.f32 %v12407_v22, %v12407_v22 }
0x126b   :  { %v12412_v7 = vsub.f32 %v12323_v48, %v7183_v20  ;;  %7244 = vadd.xlane.f32.xlu0 %v7214_v5  ;;  %v9757_v48 = vld [vmem:[#allocation9 + $0x68] sm:$0xff]  }
0x126c   :  { %9398 = vmatpush3.bf16.msra.mxu1 %v9757_v48 }
0x126d   :  { %v7215_v39 = vmul.f32 %v12412_v7, %v12412_v7  ;;  %9399 = vmatprep.subr.bf16.mxu1 %v10161_v31 }
0x126f   :  { %7246 = vadd.xlane.f32.xlu0 %v7215_v39 }
0x1270   :  { %9400 = vmatpush3.bf16.msra.mxu1 %v9758_v16 }
0x1271   :  { %9401 = vmatprep.subr.bf16.mxu1 %v10161_v31 }
0x1273   :  { %8035 = vadd.xlane.f32.xlu0 %v8032_v47 }
0x1274   :  { %9402 = vmatpush3.bf16.msra.mxu1 %v9759_v50 }
0x1275   :  { %9403 = vmatprep.subr.bf16.mxu1 %v10161_v31 }
0x1278   :  { %9404 = vmatpush3.bf16.msra.mxu1 %v9760_v63 }
0x1279   :  { %9405 = vmatprep.subr.bf16.mxu1 %v10161_v31 }
0x127c   :  { %9406 = vmatpush3.bf16.msra.mxu1 %v9761_v34 }
0x127d   :  { %9407 = vmatprep.subr.bf16.mxu1 %v10161_v31 }
0x1280   :  { %9408 = vmatpush3.bf16.msra.mxu1 %v9762_v19  ;;  %v12448_v19 = vld [vmem:[#allocation12 + $0x78] sm:$0xff] }
0x1281   :  { %9448 = vmatprep.subr.mxu1 %v12427_v36  ;;  %9413 = vmatprep.subr.mxu0 %v12448_v19 }
0x1282   :  { %9414 = vmatpush3.msra.mxu0 %v12448_v19 }
0x12bc   :  { %v7217_v40 = vpop.xlane.xlu1 %7216 }
0x12bd   :  { %v7248_v4 = vmul.f32 0.0078125, %v7217_v40  ;;  %v12450_v40 = vld [vmem:[#allocation12 + $0x70] sm:$0xff] }
0x12be   :  { %9415 = vmatprep.subr.mxu0 %v12450_v40 }
0x12bf   :  { %v7264_v9 = vadd.f32 1e-05, %v7248_v4  ;;  %9416 = vmatpush3.msra.mxu0 %v12450_v40 }
0x12c0   :  { %v7219_v41 = vpop.xlane.xlu0 %7218 }
0x12c1   :  { %9987 = vrsqrt.f32 %v7264_v9  ;;  %v7249_v51 = vmul.f32 0.0078125, %v7219_v41 }
0x12c3   :  { %v7265_v56 = vadd.f32 1e-05, %v7249_v51 }
0x12c4   :  { %v7221_v8 = vpop.xlane.xlu1 %7220 }
0x12c5   :  { %v7250_v60 = vmul.f32 0.0078125, %v7221_v8  ;;  %9989 = vrsqrt.f32 %v7265_v56 }
0x12c7   :  { %v7266_v54 = vadd.f32 1e-05, %v7250_v60  ;;  %v12455_v60 = vld [vmem:[#allocation12 + $0x68] sm:$0xff] }
0x12c8   :  { %v7223_v38 = vpop.xlane.xlu1 %7222  ;;  %9417 = vmatprep.subr.mxu0 %v12455_v60 }
0x12c9   :  { %9991 = vrsqrt.f32 %v7266_v54  ;;  %v7251_v13 = vmul.f32 0.0078125, %v7223_v38  ;;  %9418 = vmatpush3.msra.mxu0 %v12455_v60 }
0x12cb   :  { %v7267_v53 = vadd.f32 1e-05, %v7251_v13 }
0x12cc   :  { %v7225_v31 = vpop.xlane.xlu1 %7224 }
0x12cd   :  { %v7252_v61 = vmul.f32 0.0078125, %v7225_v31  ;;  %9993 = vrsqrt.f32 %v7267_v53 }
0x12ce   :  { %v9988_v30 = vpop.eup %9987 }
0x12cf   :  { %v7296_v35 = vmul.f32 %v9988_v30, %v12327_v28  ;;  %v7268_v25 = vadd.f32 1e-05, %v7252_v61  ;;  %v12464_v61 = vld [vmem:[#allocation12 + $0x58] sm:$0xff] }
0x12d0   :  { %v7227_v45 = vpop.xlane.xlu1 %7226 }
0x12d1   :  { %v7318_v6 = vmul.f32 %v12434_v29, %v7296_v35  ;;  %v7253_v28 = vmul.f32 0.0078125, %v7227_v45  ;;  %9995 = vrsqrt.f32 %v7268_v25  ;;  %v12460_v35 = vld [vmem:[#allocation12 + $0x60] sm:$0xff]  ;;  %v12469_v25 = vld [vmem:[#allocation12 + $0x50] sm:$0xff] }
0x12d2   :  { %v9990_v2 = vpop.eup %9989  ;;  %9419 = vmatprep.subr.mxu0 %v12460_v35 }
0x12d3   :  { %v7340_v27 = vadd.f32 %v12440_v26, %v7318_v6  ;;  %v7297_v44 = vmul.f32 %v9990_v2, %v12332_v14  ;;  %v7269_v15 = vadd.f32 1e-05, %v7253_v28  ;;  %9420 = vmatpush3.msra.mxu0 %v12460_v35 }
0x12d4   :  { %9421 = vmatprep.subr.mxu0 %v12464_v61 }
0x12d5   :  { %v7356_v32 = vrot.slane %v7340_v27, 4  ;;  %v7319_v37 = vmul.f32 %v12434_v29, %v7297_v44  ;;  %9997 = vrsqrt.f32 %v7269_v15  ;;  %9422 = vmatpush3.msra.mxu0 %v12464_v61 }
0x12d6   :  { %v9992_v55 = vpop.eup %9991  ;;  %9423 = vmatprep.subr.mxu0 %v12469_v25 }
0x12d7   :  { %v7298_v58 = vmul.f32 %v9992_v55, %v12337_v23  ;;  %v7357_v46 = vadd.f32 %v7356_v32, %v7340_v27  ;;  %v7341_v39 = vadd.f32 %v12440_v26, %v7319_v37  ;;  %9424 = vmatpush3.msra.mxu0 %v12469_v25 }
0x12d9   :  { %v7320_v11 = vmul.f32 %v12434_v29, %v7298_v58  ;;  %v7358_v18 = vrot.slane %v7357_v46, 2  ;;  %v7362_v63 = vrot.slane %v7341_v39, 4 }
0x12da   :  { %v9994_v4 = vpop.eup %9993 }
0x12db   :  { %v7342_v9 = vadd.f32 %v12440_v26, %v7320_v11  ;;  %v7359_v41 = vadd.f32 %v7358_v18, %v7357_v46  ;;  %v7363_v38 = vadd.f32 %v7362_v63, %v7341_v39  ;;  %v7299_v30 = vmul.f32 %v9994_v4, %v12342_v24 }
0x12dc   :  { %v7233_v0 = vpop.xlane.xlu1 %7232 }
0x12dd   :  { %v7256_v1 = vmul.f32 0.0078125, %v7233_v0  ;;  %v7368_v13 = vrot.slane %v7342_v9, 4  ;;  %v7360_v2 = vrot.slane %v7359_v41, 1  ;;  %v7364_v24 = vrot.slane %v7363_v38, 2 }
0x12de   :  { %v9996_v45 = vpop.eup %9995  ;;  %v7321_v44 = vmul.f32 %v12434_v29, %v7299_v30 }
0x12df   :  { %v7272_v42 = vadd.f32 1e-05, %v7256_v1  ;;  %v7369_v32 = vadd.f32 %v7368_v13, %v7342_v9  ;;  %v7300_v15 = vmul.f32 %v9996_v45, %v12347_v17  ;;  %v7361_v37 = vadd.f32 %v7360_v2, %v7359_v41 }
0x12e0   :  { %v7235_v20 = vpop.xlane.xlu0 %7234  ;;  %v7229_v5 = vpop.xlane.xlu1 %7228  ;;  %v7343_v17 = vadd.f32 %v12440_v26, %v7321_v44 }
0x12e1   :  { %9999 = vrsqrt.f32 %v7272_v42  ;;  %v7257_v14 = vmul.f32 0.0078125, %v7235_v20  ;;  %v7254_v47 = vmul.f32 0.0078125, %v7229_v5  ;;  %v12476_v42 = vld [vmem:[#allocation12 + $0x48] sm:$0xff]  ;;  %v7365_v20 = vadd.f32 %v7364_v24, %v7363_v38 }
0x12e2   :  { %v9998_v27 = vpop.eup %9997  ;;  %9425 = vmatprep.subr.mxu0 %v12476_v42 }
0x12e3   :  { %v7273_v48 = vadd.f32 1e-05, %v7257_v14  ;;  %v7270_v16 = vadd.f32 1e-05, %v7254_v47  ;;  %v7301_v1 = vmul.f32 %v9998_v27, %v12352_v33  ;;  %v12482_v14 = vld [vmem:[#allocation12 + $0x40] sm:$0xff]  ;;  %v7322_v47 = vmul.f32 %v12434_v29, %v7300_v15  ;;  %9426 = vmatpush3.msra.mxu0 %v12476_v42 }
0x12e4   :  { %v7237_v50 = vpop.xlane.xlu0 %7236  ;;  %v7231_v34 = vpop.xlane.xlu1 %7230  ;;  %v7366_v4 = vrot.slane %v7365_v20, 1  ;;  %9427 = vmatprep.subr.mxu0 %v12482_v14 }
0x12e5   :  { %10001 = vrsqrt.f32 %v7273_v48  ;;  %v7258_v23 = vmul.f32 0.0078125, %v7237_v50  ;;  %v7255_v8 = vmul.f32 0.0078125, %v7231_v34  ;;  %v12486_v48 = vmul.f32 0.125, %v7361_v37  ;;  %9428 = vmatpush3.msra.mxu0 %v12482_v14  ;;  %v12515_v37 = vld [vmem:[#allocation12 + $0x20] sm:$0xff] }
0x12e6   :  { %10003 = vrsqrt.f32 %v7270_v16  ;;  %v7323_v16 = vmul.f32 %v12434_v29, %v7301_v1 }
0x12e7   :  { %v7274_v51 = vadd.f32 1e-05, %v7258_v23  ;;  %v7271_v31 = vadd.f32 1e-05, %v7255_v8  ;;  %v12492_v23 = vld [vmem:[#allocation12 + $0x38] sm:$0xff]  ;;  %v7468_v24 = vpack.c.bf16 %v12486_v48, %v12486_v48 }
0x12e8   :  { %v7239_v56 = vpop.xlane.xlu0 %7238  ;;  %9429 = vmatprep.subr.mxu0 %v12492_v23 }
0x12e9   :  { %v7259_v54 = vmul.f32 0.0078125, %v7239_v56  ;;  %10005 = vrsqrt.f32 %v7274_v51  ;;  %v7374_v51 = vrot.slane %v7343_v17, 4  ;;  %v12498_v56 = vld [vmem:[#allocation12 + $0x30] sm:$0xff]  ;;  %9430 = vmatpush3.msra.mxu0 %v12492_v23 }
0x12ea   :  { %10007 = vrsqrt.f32 %v7271_v31  ;;  %9431 = vmatprep.subr.mxu0 %v12498_v56 }
0x12eb   :  { %v7275_v6 = vadd.f32 1e-05, %v7259_v54  ;;  %v7344_v54 = vadd.f32 %v12440_v26, %v7322_v47  ;;  %9432 = vmatpush3.msra.mxu0 %v12498_v56 }
0x12ec   :  { %v7241_v53 = vpop.xlane.xlu0 %7240 }
0x12ed   :  { %10009 = vrsqrt.f32 %v7275_v6  ;;  %v7260_v28 = vmul.f32 0.0078125, %v7241_v53  ;;  %v12507_v53 = vld [vmem:[#allocation12 + $0x28] sm:$0xff] }
0x12ee   :  { %v10000_v55 = vpop.eup %9999  ;;  %9433 = vmatprep.subr.mxu0 %v12507_v53 }
0x12ef   :  { %v7276_v0 = vadd.f32 1e-05, %v7260_v28  ;;  %v7304_v58 = vmul.f32 %v10000_v55, %v12357_v62  ;;  %v7370_v62 = vrot.slane %v7369_v32, 2  ;;  %v7367_v28 = vadd.f32 %v7366_v4, %v7365_v20  ;;  %9434 = vmatpush3.msra.mxu0 %v12507_v53 }
0x12f0   :  { %v7243_v46 = vpop.xlane.xlu0 %7242  ;;  %9435 = vmatprep.subr.mxu0 %v12515_v37 }
0x12f1   :  { %10011 = vrsqrt.f32 %v7276_v0  ;;  %v7261_v5 = vmul.f32 0.0078125, %v7243_v46  ;;  %v7326_v39 = vmul.f32 %v12434_v29, %v7304_v58  ;;  %v7371_v38 = vadd.f32 %v7370_v62, %v7369_v32  ;;  %v12522_v62 = vld [vmem:[#allocation12 + $0x18] sm:$0xff]  ;;  %9436 = vmatpush3.msra.mxu0 %v12515_v37 }
0x12f2   :  { %v10002_v33 = vpop.eup %10001  ;;  %v7375_v32 = vadd.f32 %v7374_v51, %v7343_v17  ;;  %9437 = vmatprep.subr.mxu0 %v12522_v62 }
0x12f3   :  { %v7277_v11 = vadd.f32 1e-05, %v7261_v5  ;;  %v10004_v18 = vpop.eup %10003  ;;  %v7348_v50 = vadd.f32 %v12440_v26, %v7326_v39  ;;  %v7305_v63 = vmul.f32 %v10002_v33, %v12362_v57  ;;  %v7372_v1 = vrot.slane %v7371_v38, 1  ;;  %9438 = vmatpush3.msra.mxu0 %v12522_v62 }
0x12f4   :  { %v7245_v34 = vpop.xlane.xlu0 %7244  ;;  %v7302_v9 = vmul.f32 %v10004_v18, %v12365_v12  ;;  %v7345_v12 = vadd.f32 %v12440_v26, %v7323_v16  ;;  %v7380_v5 = vrot.slane %v7344_v54, 4  ;;  %v7376_v48 = vrot.slane %v7375_v32, 2 }
0x12f5   :  { %10013 = vrsqrt.f32 %v7277_v11  ;;  %v7262_v41 = vmul.f32 0.0078125, %v7245_v34  ;;  %v7327_v8 = vmul.f32 %v12434_v29, %v7305_v63  ;;  %v7404_v13 = vrot.slane %v7348_v50, 4 }
0x12f6   :  { %v10006_v57 = vpop.eup %10005  ;;  %v7324_v30 = vmul.f32 %v12434_v29, %v7302_v9  ;;  %v7386_v39 = vrot.slane %v7345_v12, 4 }
0x12f7   :  { %v7278_v31 = vadd.f32 1e-05, %v7262_v41  ;;  %v7349_v6 = vadd.f32 %v12440_v26, %v7327_v8  ;;  %v7306_v45 = vmul.f32 %v10006_v57, %v12375_v59  ;;  %v10008_v27 = vpop.eup %10007  ;;  %v7405_v17 = vadd.f32 %v7404_v13, %v7348_v50 }
0x12f8   :  { %v7247_v2 = vpop.xlane.xlu0 %7246  ;;  %v7346_v0 = vadd.f32 %v12440_v26, %v7324_v30  ;;  %v7303_v58 = vmul.f32 %v10008_v27, %v12378_v43  ;;  %v7373_v50 = vadd.f32 %v7372_v1, %v7371_v38  ;;  %v7381_v41 = vadd.f32 %v7380_v5, %v7344_v54 }
0x12f9   :  { %10015 = vrsqrt.f32 %v7278_v31  ;;  %v7263_v44 = vmul.f32 0.0078125, %v7247_v2  ;;  %v7410_v15 = vrot.slane %v7349_v6, 4  ;;  %v7328_v59 = vmul.f32 %v12434_v29, %v7306_v45 }
0x12fa   :  { %v10010_v55 = vpop.eup %10009  ;;  %v7325_v11 = vmul.f32 %v12434_v29, %v7303_v58  ;;  %v7392_v16 = vrot.slane %v7346_v0, 4  ;;  %v7387_v51 = vadd.f32 %v7386_v39, %v7345_v12  ;;  %v7406_v8 = vrot.slane %v7405_v17, 2 }
0x12fb   :  { %v7307_v46 = vmul.f32 %v10010_v55, %v12391_v10  ;;  %v7279_v20 = vadd.f32 1e-05, %v7263_v44  ;;  %v7350_v33 = vadd.f32 %v12440_v26, %v7328_v59  ;;  %v7411_v47 = vadd.f32 %v7410_v15, %v7349_v6 }
0x12fc   :  { %v7453_v10 = vmul.f32 0.125, %v7367_v28  ;;  %v7347_v34 = vadd.f32 %v12440_v26, %v7325_v11  ;;  %v12534_v45 = vunpack.c.l.b16 %v7468_v24  ;;  %v7393_v27 = vadd.f32 %v7392_v16, %v7346_v0 }
0x12fd   :  { %v7329_v18 = vmul.f32 %v12434_v29, %v7307_v46  ;;  %10017 = vrsqrt.f32 %v7279_v20  ;;  %v7416_v63 = vrot.slane %v7350_v33, 4  ;;  %v7412_v30 = vrot.slane %v7411_v47, 2 }
0x12fe   :  { %v10012_v43 = vpop.eup %10011  ;;  %v7398_v31 = vrot.slane %v7347_v34, 4  ;;  %v7469_v2 = vpack.c.bf16 %v7453_v10, %v7453_v10  ;;  %v12537_v12 = vmul.f32 0.125, %v7373_v50  ;;  %v7382_v15 = vrot.slane %v7381_v41, 2 }
0x12ff   :  { %v7351_v4 = vadd.f32 %v12440_v26, %v7329_v18  ;;  %v7308_v9 = vmul.f32 %v10012_v43, %v12397_v49  ;;  %v7417_v57 = vadd.f32 %v7416_v63, %v7350_v33  ;;  %v7377_v49 = vadd.f32 %v7376_v48, %v7375_v32 }
0x1300   :  { %v7399_v44 = vadd.f32 %v7398_v31, %v7347_v34  ;;  %v7388_v59 = vrot.slane %v7387_v51, 2  ;;  %v7407_v58 = vadd.f32 %v7406_v8, %v7405_v17  ;;  %v7413_v46 = vadd.f32 %v7412_v30, %v7411_v47 }
0x1301   :  { %v7422_v13 = vrot.slane %v7351_v4, 4  ;;  %v7330_v6 = vmul.f32 %v12434_v29, %v7308_v9  ;;  %v7418_v28 = vrot.slane %v7417_v57, 2  ;;  %v12540_v39 = vunpack.c.l.b16 %v7469_v2 }
0x1302   :  { %v10014_v38 = vpop.eup %10013  ;;  %v7394_v0 = vrot.slane %v7393_v27, 2  ;;  %v7378_v11 = vrot.slane %v7377_v49, 1  ;;  %v7400_v18 = vrot.slane %v7399_v44, 2  ;;  %v7470_v48 = vpack.c.bf16 %v12537_v12, %v12537_v12 }
0x1303   :  { %v7423_v55 = vadd.f32 %v7422_v13, %v7351_v4  ;;  %v7352_v54 = vadd.f32 %v12440_v26, %v7330_v6  ;;  %v7309_v1 = vmul.f32 %v10014_v38, %v12402_v21  ;;  %v7419_v33 = vadd.f32 %v7418_v28, %v7417_v57 }
0x1304   :  { %v7383_v16 = vadd.f32 %v7382_v15, %v7381_v41  ;;  %v7389_v47 = vadd.f32 %v7388_v59, %v7387_v51  ;;  %v7408_v63 = vrot.slane %v7407_v58, 1  ;;  %v7414_v50 = vrot.slane %v7413_v46, 1 }
0x1305   :  { %v7424_v20 = vrot.slane %v7423_v55, 2  ;;  %v7428_v5 = vrot.slane %v7352_v54, 4  ;;  %v7331_v32 = vmul.f32 %v12434_v29, %v7309_v1  ;;  %v7395_v9 = vadd.f32 %v7394_v0, %v7393_v27 }
0x1306   :  { %v10016_v24 = vpop.eup %10015  ;;  %v7420_v8 = vrot.slane %v7419_v33, 1  ;;  %v7401_v31 = vadd.f32 %v7400_v18, %v7399_v44  ;;  %v7379_v41 = vadd.f32 %v7378_v11, %v7377_v49  ;;  %v7384_v2 = vrot.slane %v7383_v16, 1 }
0x1307   :  { %v7425_v43 = vadd.f32 %v7424_v20, %v7423_v55  ;;  %v7429_v10 = vadd.f32 %v7428_v5, %v7352_v54  ;;  %v7353_v21 = vadd.f32 %v12440_v26, %v7331_v32  ;;  %v7310_v17 = vmul.f32 %v10016_v24, %v12407_v22 }
0x1308   :  { %v7390_v51 = vrot.slane %v7389_v47, 1  ;;  %v7415_v55 = vadd.f32 %v7414_v50, %v7413_v46  ;;  %v7396_v27 = vrot.slane %v7395_v9, 1  ;;  %v7421_v59 = vadd.f32 %v7420_v8, %v7419_v33 }
0x1309   :  { %v7430_v34 = vrot.slane %v7429_v10, 2  ;;  %v7434_v57 = vrot.slane %v7353_v21, 4  ;;  %v7332_v30 = vmul.f32 %v12434_v29, %v7310_v17  ;;  %v7426_v13 = vrot.slane %v7425_v43, 1 }
0x130a   :  { %v10018_v4 = vpop.eup %10017  ;;  %v7409_v5 = vadd.f32 %v7408_v63, %v7407_v58  ;;  %v7402_v44 = vrot.slane %v7401_v31, 1  ;;  %v7455_v18 = vmul.f32 0.125, %v7379_v41  ;;  %v7397_v17 = vadd.f32 %v7396_v27, %v7395_v9 }
0x130b   :  { %v7431_v6 = vadd.f32 %v7430_v34, %v7429_v10  ;;  %v7311_v38 = vmul.f32 %v10018_v4, %v12412_v7  ;;  %v7435_v28 = vadd.f32 %v7434_v57, %v7353_v21  ;;  %v7354_v22 = vadd.f32 %v12440_v26, %v7332_v30 }
0x130c   :  { %v7427_v24 = vadd.f32 %v7426_v13, %v7425_v43  ;;  %v7385_v7 = vadd.f32 %v7384_v2, %v7383_v16  ;;  %v7391_v10 = vadd.f32 %v7390_v51, %v7389_v47  ;;  %v7461_v21 = vmul.f32 0.125, %v7415_v55 }
0x130d   :  { %v7432_v54 = vrot.slane %v7431_v6, 1  ;;  %v7333_v15 = vmul.f32 %v12434_v29, %v7311_v38  ;;  %v7436_v1 = vrot.slane %v7435_v28, 2  ;;  %v7440_v20 = vrot.slane %v7354_v22, 4 }
0x130e   :  { %v7462_v50 = vmul.f32 0.125, %v7421_v59  ;;  %v7460_v33 = vmul.f32 0.125, %v7409_v5  ;;  %v7463_v4 = vmul.f32 0.125, %v7427_v24  ;;  %v7403_v58 = vadd.f32 %v7402_v44, %v7401_v31 }
0x130f   :  { %v7355_v0 = vadd.f32 %v12440_v26, %v7333_v15  ;;  %v7433_v49 = vadd.f32 %v7432_v54, %v7431_v6  ;;  %v7437_v32 = vadd.f32 %v7436_v1, %v7435_v28  ;;  %v7441_v11 = vadd.f32 %v7440_v20, %v7354_v22 }
0x1310   :  { %v7456_v63 = vmul.f32 0.125, %v7385_v7  ;;  %v7471_v16 = vpack.c.bf16 %v7455_v18, %v7455_v18  ;;  %v7457_v30 = vmul.f32 0.125, %v7391_v10  ;;  %v7477_v13 = vpack.c.bf16 %v7461_v21, %v7461_v21 }
0x1311   :  { %v7446_v46 = vrot.slane %v7355_v0, 4  ;;  %v7438_v29 = vrot.slane %v7437_v32, 1  ;;  %v7442_v34 = vrot.slane %v7441_v11, 2  ;;  %v7464_v43 = vmul.f32 0.125, %v7433_v49 }
0x1312   :  { %v7458_v38 = vmul.f32 0.125, %v7397_v17  ;;  %v7478_v47 = vpack.c.bf16 %v7462_v50, %v7462_v50  ;;  %v7476_v9 = vpack.c.bf16 %v7460_v33, %v7460_v33  ;;  %v7479_v28 = vpack.c.bf16 %v7463_v4, %v7463_v4 }
0x1313   :  { %v7447_v8 = vadd.f32 %v7446_v46, %v7355_v0  ;;  %v7439_v57 = vadd.f32 %v7438_v29, %v7437_v32  ;;  %v7443_v26 = vadd.f32 %v7442_v34, %v7441_v11  ;;  %v7459_v51 = vmul.f32 0.125, %v7403_v58 }
0x1314   :  { %v7527_v31 = vunpack.c.l.b16 %v7470_v48  ;;  %v7472_v55 = vpack.c.bf16 %v7456_v63, %v7456_v63  ;;  %v7480_v54 = vpack.c.bf16 %v7464_v43, %v7464_v43  ;;  %v7473_v27 = vpack.c.bf16 %v7457_v30, %v7457_v30 }
0x1315   :  { %v7448_v6 = vrot.slane %v7447_v8, 2  ;;  %v7465_v41 = vmul.f32 0.125, %v7439_v57  ;;  %v7444_v2 = vrot.slane %v7443_v26, 1  ;;  %v7534_v59 = vunpack.c.l.b16 %v7477_v13 }
0x1316   :  { %v7528_v5 = vunpack.c.l.b16 %v7471_v16  ;;  %v7535_v44 = vunpack.c.l.b16 %v7478_v47  ;;  %v7474_v0 = vpack.c.bf16 %v7458_v38, %v7458_v38  ;;  %v7533_v7 = vunpack.c.l.b16 %v7476_v9  ;;  %v7658_v9 = vld [vmem:[#allocation11 + $0x60] sm:$0xff] }
0x1317   :  { %v7449_v22 = vadd.f32 %v7448_v6, %v7447_v8  ;;  %v7445_v15 = vadd.f32 %v7444_v2, %v7443_v26  ;;  %v7481_v1 = vpack.c.bf16 %v7465_v41, %v7465_v41  ;;  %v7536_v49 = vunpack.c.l.b16 %v7479_v28  ;;  %v7660_v41 = vld [vmem:[#allocation11 + $0x70] sm:$0xff]  ;;  %v7659_v2 = vld [vmem:[#allocation11 + $0x68] sm:$0xff]  ;;  %v7657_v28 = vld [vmem:[#allocation11 + $0x58] sm:$0xff] }
0x1318   :  { %v7475_v11 = vpack.c.bf16 %v7459_v51, %v7459_v51  ;;  %v7541_v12 = vsel %vm3789_vm6, %v12540_v39, %v12534_v45  ;;  %v7529_v48 = vunpack.c.l.b16 %v7472_v55  ;;  %v7537_v18 = vunpack.c.l.b16 %v7480_v54  ;;  %v7655_v51 = vld [vmem:[#allocation11 + $0x48] sm:$0xff]  ;;  %v7653_v55 = vld [vmem:[#allocation11 + $0x38] sm:$0xff]  ;;  %v7652_v54 = vld [vmem:[#allocation11 + $0x30] sm:$0xff] }
0x1319   :  { %v7450_v20 = vrot.slane %v7449_v22, 1  ;;  %v7466_v24 = vmul.f32 0.125, %v7445_v15  ;;  %v7530_v21 = vunpack.c.l.b16 %v7473_v27  ;;  %v7548_v46 = vsel %vm3789_vm6, %v7534_v59, %v7533_v7  ;;  %v7651_v15 = vld [vmem:[#allocation11 + $0x28] sm:$0xff]  ;;  %v7650_v27 = vld [vmem:[#allocation11 + $0x20] sm:$0xff]  ;;  %v7649_v59 = vld [vmem:[#allocation11 + $0x18] sm:$0xff] }
0x131a   :  { %v7538_v17 = vunpack.c.l.b16 %v7481_v1  ;;  %v7531_v29 = vunpack.c.l.b16 %v7474_v0  ;;  %v7542_v33 = vsel %vm3791_vm7, %v7527_v31, %v7541_v12  ;;  %v7549_v4 = vsel %vm3791_vm7, %v7535_v44, %v7548_v46  ;;  %v7654_v31 = vld [vmem:[#allocation11 + $0x40] sm:$0xff]  ;;  %v7648_v1 = vld [vmem:[#allocation11 + $0x10] sm:$0xff] }
0x131b   :  { %v7451_v32 = vadd.f32 %v7450_v20, %v7449_v22  ;;  %v7482_v10 = vpack.c.bf16 %v7466_v24, %v7466_v24  ;;  %v7532_v58 = vunpack.c.l.b16 %v7475_v11  ;;  %v7543_v63 = vsel %vm3793_vm11, %v7528_v5, %v7542_v33  ;;  %v7656_v22 = vld [vmem:[#allocation11 + $0x50] sm:$0xff]  ;;  %v7647_v20 = vld [vmem:[#allocation11 + $0x8] sm:$0xff]  ;;  %v7646_v5 = vld [vmem:[#allocation11] sm:$0xff] }
0x131c   :  { %v7550_v45 = vsel %vm3793_vm11, %v7536_v49, %v7549_v4  ;;  %v7544_v39 = vsel %vm3795_vm12, %v7529_v48, %v7543_v63  ;;  %v7845_v44 = vmul.f32 %v12427_v36, %v12427_v36  ;;  %v7844_v24 = vmul.f32 %v7660_v41, %v7660_v41  ;;  %v7663_v33 = vld [vmem:[#allocation12 + $0x8] sm:$0xff]  ;;  %v7662_v4 = vld [vmem:[#allocation12] sm:$0xff]  ;;  %v8352_v63 = vld [vmem:[%s12636_s18] ss:$0 sm:$0xff] }
0x131d   :  { %v7467_v50 = vmul.f32 0.125, %v7451_v32  ;;  %v7539_v34 = vunpack.c.l.b16 %v7482_v10  ;;  %v7551_v43 = vsel %vm3795_vm12, %v7537_v18, %v7550_v45  ;;  %v7545_v26 = vsel %vm3797_vm13, %v7530_v21, %v7544_v39 }
0x131e   :  { %v7552_v16 = vsel %vm3797_vm13, %v7538_v17, %v7551_v43  ;;  %v7546_v30 = vsel %vm3799_vm14, %v7531_v29, %v7545_v26  ;;  %v7828_v0 = vmul.f32 %v12381_v52, %v12381_v52  ;;  %v7843_v7 = vmul.f32 %v7659_v2, %v7659_v2 }
0x131f   :  { %v7483_v8 = vpack.c.bf16 %v7467_v50, %v7467_v50  ;;  %v7553_v13 = vsel %vm3799_vm14, %v7539_v34, %v7552_v16  ;;  %v7547_v6 = vsel %vm3801_vm15, %v7532_v58, %v7546_v30  ;;  %v7842_v49 = vmul.f32 %v7658_v9, %v7658_v9  ;;  %v7664_v34 = vld [vmem:[#allocation12 + $0x10] sm:$0xff] }
0x1320   :  { %v7841_v32 = vmul.f32 %v7657_v28, %v7657_v28  ;;  %v7839_v11 = vmul.f32 %v7655_v51, %v7655_v51  ;;  %v7837_v12 = vmul.f32 %v7653_v55, %v7653_v55  ;;  %v7836_v48 = vmul.f32 %v7652_v54, %v7652_v54  ;;  %9439 = vmatprep.subr.mxu0 %v7664_v34 }
0x1321   :  { %v7540_v57 = vunpack.c.l.b16 %v7483_v8  ;;  %v7835_v18 = vmul.f32 %v7651_v15, %v7651_v15  ;;  %v7834_v10 = vmul.f32 %v7650_v27, %v7650_v27  ;;  %v7833_v21 = vmul.f32 %v7649_v59, %v7649_v59  ;;  %9440 = vmatpush3.msra.mxu0 %v7664_v34 }
0x1322   :  { %v7832_v46 = vmul.f32 %v7648_v1, %v7648_v1  ;;  %v7831_v17 = vmul.f32 %v7647_v20, %v7647_v20  ;;  %v7830_v50 = vmul.f32 %v7646_v5, %v7646_v5  ;;  %v7829_v29 = vmul.f32 %v12415_v3, %v12415_v3  ;;  %9441 = vmatprep.subr.mxu0 %v7663_v33 }
0x1323   :  { %v7554_v38 = vsel %vm3801_vm15, %v7540_v57, %v7553_v13  ;;  %9442 = vmatpush3.msra.mxu0 %v7663_v33  ;;  %v7863_v8 = vmul.f32 %v12448_v19, %v12448_v19  ;;  %v7862_v19 = vmul.f32 %v12450_v40, %v12450_v40  ;;  %v7858_v40 = vmul.f32 %v12469_v25, %v12469_v25 }
0x1324   :  { %v7555_v47 = vpack.c.b16 %v7554_v38, %v7547_v6  ;;  %9443 = vmatprep.subr.mxu0 %v7662_v4  ;;  %v7861_v6 = vmul.f32 %v12455_v60, %v12455_v60  ;;  %v7860_v38 = vmul.f32 %v12460_v35, %v12460_v35  ;;  %v7857_v60 = vmul.f32 %v12476_v42, %v12476_v42 }
0x1325   :  { %9444 = vmatpush3.msra.mxu0 %v7662_v4  ;;  %v7856_v35 = vmul.f32 %v12482_v14, %v12482_v14  ;;  %v7854_v25 = vmul.f32 %v12498_v56, %v12498_v56  ;;  %v7853_v42 = vmul.f32 %v12507_v53, %v12507_v53  ;;  %v7852_v14 = vmul.f32 %v12515_v37, %v12515_v37 }
0x1326   :  { %9410 = vmatmul.mubr.bf16.vlgmr.msra.gmra.mxu1 %v7555_v47  ;;  %9483 = vmatprep.subr.mxu0 %v7863_v8  ;;  %v7859_v47 = vmul.f32 %v12464_v61, %v12464_v61  ;;  %v7855_v61 = vmul.f32 %v12492_v23, %v12492_v23  ;;  %v7851_v23 = vmul.f32 %v12522_v62, %v12522_v62 }
0x1327   :  { %9449 = vmatpush3.msra.mxu1 %v12427_v36  ;;  %9480 = vmatprep.mubr.f32.mxu1 %v12381_v52  ;;  %v7840_v36 = vmul.f32 %v7656_v22, %v7656_v22  ;;  %v7838_v52 = vmul.f32 %v7654_v31, %v7654_v31  ;;  %v7849_v56 = vmul.f32 %v7663_v33, %v7663_v33 }
0x1328   :  { %9450 = vmatprep.subr.mxu1 %v7660_v41 }
0x1329   :  { %9451 = vmatpush3.msra.mxu1 %v7660_v41  ;;  %v7850_v41 = vmul.f32 %v7664_v34, %v7664_v34 }
0x132a   :  { %9452 = vmatprep.subr.mxu1 %v7659_v2 }
0x132b   :  { %9453 = vmatpush3.msra.mxu1 %v7659_v2  ;;  %v7848_v2 = vmul.f32 %v7662_v4, %v7662_v4 }
0x132c   :  { %9454 = vmatprep.subr.mxu1 %v7658_v9 }
0x132d   :  { %9455 = vmatpush3.msra.mxu1 %v7658_v9 }
0x132e   :  { %9456 = vmatprep.subr.mxu1 %v7657_v28 }
0x132f   :  { %9457 = vmatpush3.msra.mxu1 %v7657_v28 }
0x1330   :  { %9458 = vmatprep.subr.mxu1 %v7656_v22 }
0x1331   :  { %9459 = vmatpush3.msra.mxu1 %v7656_v22 }
0x1332   :  { %9460 = vmatprep.subr.mxu1 %v7655_v51 }
0x1333   :  { %9461 = vmatpush3.msra.mxu1 %v7655_v51 }
0x1334   :  { %9462 = vmatprep.subr.mxu1 %v7654_v31 }
0x1335   :  { %9463 = vmatpush3.msra.mxu1 %v7654_v31 }
0x1336   :  { %9464 = vmatprep.subr.mxu1 %v7653_v55 }
0x1337   :  { %9465 = vmatpush3.msra.mxu1 %v7653_v55 }
0x1338   :  { %9466 = vmatprep.subr.mxu1 %v7652_v54 }
0x1339   :  { %9467 = vmatpush3.msra.mxu1 %v7652_v54 }
0x133a   :  { %9468 = vmatprep.subr.mxu1 %v7651_v15 }
0x133b   :  { %9469 = vmatpush3.msra.mxu1 %v7651_v15 }
0x133c   :  { %9470 = vmatprep.subr.mxu1 %v7650_v27 }
0x133d   :  { %9471 = vmatpush3.msra.mxu1 %v7650_v27 }
0x133e   :  { %9472 = vmatprep.subr.mxu1 %v7649_v59 }
0x133f   :  { %9473 = vmatpush3.msra.mxu1 %v7649_v59 }
0x1340   :  { %9474 = vmatprep.subr.mxu1 %v7648_v1 }
0x1341   :  { %9475 = vmatpush3.msra.mxu1 %v7648_v1 }
0x1342   :  { %9476 = vmatprep.subr.mxu1 %v7647_v20 }
0x1343   :  { %9477 = vmatpush3.msra.mxu1 %v7647_v20 }
0x1344   :  { %9478 = vmatprep.subr.mxu1 %v7646_v5 }
0x1345   :  { %9479 = vmatpush3.msra.mxu1 %v7646_v5 }
0x1346   :  { %9481 = vmatmul.mubr.f32.vlgmr.msra.gmra.mxu1 %v12415_v3  ;;  %9518 = vmatprep.subr.mxu1 %v7845_v44  ;;  %v8342_v3 = vld [vmem:[%s12632_s14 + $0x1] ss:$0 sm:$0xff] }
0x1347   :  { %9519 = vmatpush3.msra.mxu1 %v7845_v44  ;;  %9550 = vmatprep.mubr.f32.mxu1 %v7828_v0  ;;  %v8034_v0 = vpop.xlane.xlu1 %8033 }
0x1348   :  { %9520 = vmatprep.subr.mxu1 %v7844_v24 }
0x1349   :  { %9521 = vmatpush3.msra.mxu1 %v7844_v24  ;;  %v8036_v24 = vpop.xlane.xlu0 %8035 }
0x134a   :  { %9522 = vmatprep.subr.mxu1 %v7843_v7 }
0x134b   :  { %9523 = vmatpush3.msra.mxu1 %v7843_v7 }
0x134c   :  { %9524 = vmatprep.subr.mxu1 %v7842_v49 }
0x134d   :  { %9525 = vmatpush3.msra.mxu1 %v7842_v49 }
0x134e   :  { %9526 = vmatprep.subr.mxu1 %v7841_v32 }
0x134f   :  { %9527 = vmatpush3.msra.mxu1 %v7841_v32 }
0x1350   :  { %9528 = vmatprep.subr.mxu1 %v7840_v36 }
0x1351   :  { %9529 = vmatpush3.msra.mxu1 %v7840_v36 }
0x1352   :  { %9530 = vmatprep.subr.mxu1 %v7839_v11 }
0x1353   :  { %9531 = vmatpush3.msra.mxu1 %v7839_v11  ;;  %v8353_v11 = vld [vmem:[#allocation2] ss:$0 sm:$0xff] }
0x1354   :  { %9532 = vmatprep.subr.mxu1 %v7838_v52 }
0x1355   :  { %9533 = vmatpush3.msra.mxu1 %v7838_v52 }
0x1356   :  { %9534 = vmatprep.subr.mxu1 %v7837_v12 }
0x1357   :  { %9535 = vmatpush3.msra.mxu1 %v7837_v12 }
0x1358   :  { %9536 = vmatprep.subr.mxu1 %v7836_v48 }
0x1359   :  { %9537 = vmatpush3.msra.mxu1 %v7836_v48 }
0x135a   :  { %9538 = vmatprep.subr.mxu1 %v7835_v18 }
0x135b   :  { %9539 = vmatpush3.msra.mxu1 %v7835_v18  ;;  %v8354_v18 = vld [vmem:[#allocation3] ss:$0 sm:$0xff] }
0x135c   :  { %9540 = vmatprep.subr.mxu1 %v7834_v10 }
0x135d   :  { %9541 = vmatpush3.msra.mxu1 %v7834_v10 }
0x135e   :  { %9542 = vmatprep.subr.mxu1 %v7833_v21 }
0x135f   :  { %9543 = vmatpush3.msra.mxu1 %v7833_v21 }
0x1360   :  { %9544 = vmatprep.subr.mxu1 %v7832_v46 }
0x1361   :  { %9545 = vmatpush3.msra.mxu1 %v7832_v46 }
0x1362   :  { %9546 = vmatprep.subr.mxu1 %v7831_v17 }
0x1363   :  { %9547 = vmatpush3.msra.mxu1 %v7831_v17 }
0x1364   :  { %9548 = vmatprep.subr.mxu1 %v7830_v50 }
0x1365   :  { %9549 = vmatpush3.msra.mxu1 %v7830_v50 }
0x1366   :  { %9551 = vmatmul.mubr.f32.vlgmr.msra.gmra.mxu1 %v7829_v29 }
0x13e6   :  { %v7639_v58 = vpop.f32.mrf.mxu1 }
0x13e7   :  { %v7640_v45 = vadd.f32 %v8342_v3, %v7639_v58 }
0x13e8   :  { %v9411_v39 = vpop.f32.mrf.mxu1 }
0x13e9   :  { %9445 = vmatprep.mubr.f32.mxu0 %v7640_v45  ;;  %v8044_v43 = vmul.f32 %v8352_v63, %v7640_v45  ;;  %v7846_v30 = vmul.f32 %v7640_v45, %v7640_v45 }
0x13ea   :  { %v7642_v57 = vpop.f32.mrf.mxu1 }
0x13eb   :  { %v7643_v26 = vadd.f32 %v8342_v3, %v7642_v57  ;;  %8046 = vadd.xlane.f32.xlu1 %v8044_v43 }
0x13ec   :  { %v9412_v16 = vpop.f32.mrf.mxu1 }
0x13ed   :  { %9446 = vmatmul.mubr.f32.vlgmr.msra.gmra.mxu0 %v7643_v26  ;;  %v8045_v13 = vmul.f32 %v8352_v63, %v7643_v26  ;;  %v7847_v53 = vmul.f32 %v7643_v26, %v7643_v26 }
0x13ee   :  { %9484 = vmatpush3.msra.mxu0 %v7863_v8  ;;  %9515 = vmatprep.mubr.f32.mxu0 %v7846_v30 }
0x13ef   :  { %9485 = vmatprep.subr.mxu0 %v7862_v19  ;;  %8048 = vadd.xlane.f32.xlu0 %v8045_v13 }
0x13f0   :  { %9486 = vmatpush3.msra.mxu0 %v7862_v19 }
0x13f1   :  { %9487 = vmatprep.subr.mxu0 %v7861_v6 }
0x13f2   :  { %9488 = vmatpush3.msra.mxu0 %v7861_v6 }
0x13f3   :  { %9489 = vmatprep.subr.mxu0 %v7860_v38 }
0x13f4   :  { %9490 = vmatpush3.msra.mxu0 %v7860_v38 }
0x13f5   :  { %9491 = vmatprep.subr.mxu0 %v7859_v47 }
0x13f6   :  { %9492 = vmatpush3.msra.mxu0 %v7859_v47 }
0x13f7   :  { %9493 = vmatprep.subr.mxu0 %v7858_v40 }
0x13f8   :  { %9494 = vmatpush3.msra.mxu0 %v7858_v40 }
0x13f9   :  { %9495 = vmatprep.subr.mxu0 %v7857_v60 }
0x13fa   :  { %9496 = vmatpush3.msra.mxu0 %v7857_v60 }
0x13fb   :  { %9497 = vmatprep.subr.mxu0 %v7856_v35 }
0x13fc   :  { %9498 = vmatpush3.msra.mxu0 %v7856_v35 }
0x13fd   :  { %9499 = vmatprep.subr.mxu0 %v7855_v61 }
0x13fe   :  { %9500 = vmatpush3.msra.mxu0 %v7855_v61 }
0x13ff   :  { %9501 = vmatprep.subr.mxu0 %v7854_v25 }
0x1400   :  { %9502 = vmatpush3.msra.mxu0 %v7854_v25 }
0x1401   :  { %9503 = vmatprep.subr.mxu0 %v7853_v42 }
0x1402   :  { %9504 = vmatpush3.msra.mxu0 %v7853_v42 }
0x1403   :  { %9505 = vmatprep.subr.mxu0 %v7852_v14 }
0x1404   :  { %9506 = vmatpush3.msra.mxu0 %v7852_v14 }
0x1405   :  { %9507 = vmatprep.subr.mxu0 %v7851_v23 }
0x1406   :  { %9508 = vmatpush3.msra.mxu0 %v7851_v23  ;;  %v9482_v37 = vpop.f32.mrf.mxu1 }
0x1407   :  { %9509 = vmatprep.subr.mxu0 %v7850_v41 }
0x1408   :  { %9510 = vmatpush3.msra.mxu0 %v7850_v41  ;;  %v7819_v28 = vpop.f32.mrf.mxu1 }
0x1409   :  { %9511 = vmatprep.subr.mxu0 %v7849_v56 }
0x140a   :  { %9512 = vmatpush3.msra.mxu0 %v7849_v56 }
0x140b   :  { %9513 = vmatprep.subr.mxu0 %v7848_v2 }
0x140c   :  { %9514 = vmatpush3.msra.mxu0 %v7848_v2 }
0x140d   :  { %9516 = vmatmul.mubr.f32.vlgmr.msra.gmra.mxu0 %v7847_v53 }
0x1426   :  { %v9552_v51 = vpop.f32.mrf.mxu1 }
0x1428   :  { %v8005_v27 = vpop.f32.mrf.mxu1 }
0x1474   :  { %v8047_v49 = vpop.xlane.xlu1 %8046 }
0x1475   :  { %v8050_v36 = vadd.f32 %v8047_v49, %v8034_v0 }
0x1477   :  { %v8059_v21 = vadd.f32 %v8353_v11, %v8050_v36 }
0x1478   :  { %v8049_v7 = vpop.xlane.xlu0 %8048 }
0x1479   :  { %v8051_v32 = vadd.f32 %v8049_v7, %v8036_v24 }
0x147b   :  { %v8060_v12 = vadd.f32 %v8353_v11, %v8051_v32 }
0x14ad   :  { %v9447_v9 = vpop.f32.mrf.mxu0 }
0x14ae   :  { %v7825_v22 = vadd.f32 %v9482_v37, %v9447_v9 }
0x14af   :  { %v7744_v62 = vpop.f32.mrf.mxu0 }
0x14b0   :  { %v7820_v31 = vadd.f32 %v7819_v28, %v7744_v62  ;;  %v8015_v54 = vmul.f32 %v7825_v22, %v7825_v22 }
0x14b2   :  { %v8014_v1 = vmul.f32 %v7820_v31, %v7820_v31 }
0x14cd   :  { %v9517_v55 = vpop.f32.mrf.mxu0 }
0x14ce   :  { %v8011_v15 = vadd.f32 %v9552_v51, %v9517_v55 }
0x14cf   :  { %v7930_v59 = vpop.f32.mrf.mxu0 }
0x14d0   :  { %v8017_v20 = vsub.f32 %v8015_v54, %v8011_v15  ;;  %v8006_v5 = vadd.f32 %v8005_v27, %v7930_v59 }
0x14d2   :  { %v8016_v44 = vsub.f32 %v8014_v1, %v8006_v5  ;;  %8020 = vadd.xlane.f32.xlu0 %v8017_v20 }
0x14d4   :  { %8018 = vadd.xlane.f32.xlu1 %v8016_v44 }
0x155b   :  { %v8021_v52 = vpop.xlane.xlu0 %8020 }
0x155c   :  { %v8023_v48 = vmul.f32 0.5, %v8021_v52 }
0x155d   :  { %v8019_v10 = vpop.xlane.xlu1 %8018 }
0x155e   :  { %v8062_v46 = vadd.f32 %v8060_v12, %v8023_v48  ;;  %v8022_v17 = vmul.f32 0.5, %v8019_v10 }
0x1560   :  { %v8071_v50 = vadd.f32 %v8354_v18, %v8062_v46  ;;  %v8061_v29 = vadd.f32 %v8059_v21, %v8022_v17 }
0x1562   :  { %v8070_v34 = vadd.f32 %v8354_v18, %v8061_v29  ;;  %8079 = vperm.xlu0 %9569, %v8071_v50  }
0x1564   :  { %8074 = vperm.xlu1 %9570, %v8070_v34  }
0x15dd   :  { %v8080_v33 = vpop.permute.xlu0 %8079 }
0x15de   :  { %8083 = vst [vmem:[%s12638_s21 + $0x8] sm:$0xff] %v8080_v33 }
0x15df   :  { %v8075_v4 = vpop.permute.xlu1 %8074 }
0x15e0   :  { %8082 = vst [vmem:[%s12638_s21] sm:$0xff] %v8075_v4 }
0x15e1   :  { %8088 = vsyncpa [#allocation5], 1 }
0x15e2   :  { %8089 = vsyncpa [#allocation7], 1 }
0x15e3   :  { %8090 = vsyncpa [#allocation10], 1 }
0x15e4   :  { %8091 = vsyncpa [#allocation13], 1 }

</bundles_post_ra>
